<compile_context>
chip_gen: v7x
topology: tpu7x:2x2x1
jax: 0.10.0
libtpu: 0.0.40
codegen_flags: <defaults>
</compile_context>

<pallas_src>
import functools

import jax
import jax.numpy as jnp
from jax.experimental import pallas as pl
from jax.experimental.pallas import tpu as pltpu

DIM = 3
EPS = 1e-5
NUM_PASSES = 3
_TN_DIMS = (((0,), (0,)), ((), ()))   # contract dim 0 of both operands: a^T @ b


def _bn_scale_shift(s, ss, count, gamma, beta):
    """Training-mode BatchNorm1d scale/shift from sum & sum-of-squares (biased var)."""
    inv = 1.0 / count
    mean = s * inv
    var = ss * inv - mean * mean
    scale = jax.lax.rsqrt(var + EPS) * gamma
    shift = beta - mean * scale
    return scale, shift


def _bn_relu_rows(h, gamma, beta):
    """Training-mode BatchNorm1d + ReLU over the rows of a small resident tensor."""
    n = h.shape[0]
    mean = jnp.sum(h, axis=0, keepdims=True) / n
    var = jnp.sum(h * h, axis=0, keepdims=True) / n - mean * mean
    scale = jax.lax.rsqrt(var + EPS) * gamma
    shift = beta - mean * scale
    return jnp.maximum(h * scale + shift, 0.0)


def tnet_kernel(B, N,
                x_ref,
                w1_ref, b1_ref, g1_ref, be1_ref,
                w2_ref, b2_ref, g2_ref, be2_ref,
                w3_ref, b3_ref, g3_ref, be3_ref,
                wl1_ref, bl1_ref, gl1_ref, bel1_ref,
                wl2_ref, bl2_ref, gl2_ref, bel2_ref,
                wl3_ref, bl3_ref, id_ref,
                out_ref,
                s1_ref, ss1_ref, sc1_ref, sh1_ref,
                s2_ref, ss2_ref, sc2_ref, sh2_ref,
                s2bn_ref, amat_ref, mx_ref):
    p = pl.program_id(0)        # pass: 0 = BN1 stats, 1 = BN2 stats, 2 = conv3/pool/head
    b = pl.program_id(1)        # batch element
    t = pl.program_id(2)        # row tile within the batch element
    nt = pl.num_programs(2)
    two_b = 2.0 * B             # each padding-constant row occurs twice per batch elem
    n_real = float(B * N)

    # ---- one-time init of the cross-tile accumulators ------------------------
    @pl.when((p == 0) & (b == 0) & (t == 0))
    def _init():
        s1_ref[...] = jnp.zeros_like(s1_ref)
        ss1_ref[...] = jnp.zeros_like(ss1_ref)
        s2_ref[...] = jnp.zeros_like(s2_ref)
        ss2_ref[...] = jnp.zeros_like(ss2_ref)
        s2bn_ref[...] = jnp.zeros_like(s2bn_ref)
        amat_ref[...] = jnp.zeros_like(amat_ref)
        mx_ref[...] = jnp.full(mx_ref.shape, -jnp.inf, dtype=jnp.float32)

    # ---- conv1 (1x1) as a (TN,3)@(3,64) MXU matmul (needed by every pass) -----
    h1 = jnp.dot(x_ref[...], w1_ref[...],
                 preferred_element_type=jnp.float32) + b1_ref[...]          # (TN, 64)

    # ---- pass 0: accumulate BN1 batch statistics ------------------------------
    @pl.when(p == 0)
    def _pass0():
        s1_ref[...] += jnp.sum(h1, axis=0, keepdims=True)
        ss1_ref[...] += jnp.sum(h1 * h1, axis=0, keepdims=True)

    # ---- finalize BN1 once every pass-0 tile has been seen --------------------
    @pl.when((p == 1) & (b == 0) & (t == 0))
    def _fin_bn1():
        b1 = b1_ref[...]
        s = s1_ref[...] + two_b * b1          # fold the 2B padding rows (value = bias)
        ss = ss1_ref[...] + two_b * (b1 * b1)
        sc, sh = _bn_scale_shift(s, ss, B * (N + 2), g1_ref[...], be1_ref[...])
        sc1_ref[...] = sc
        sh1_ref[...] = sh

    # ---- passes 1 & 2 share the BN1 -> conv2 prefix (recomputed, cheap) -------
    @pl.when(p >= 1)
    def _pass12():
        h1bn = jnp.maximum(h1 * sc1_ref[...] + sh1_ref[...], 0.0)
        h2 = jnp.dot(h1bn.astype(jnp.bfloat16), w2_ref[...],
                     preferred_element_type=jnp.float32) + b2_ref[...]      # (TN, 128)

        @pl.when(p == 1)
        def _pass1():
            s2_ref[...] += jnp.sum(h2, axis=0, keepdims=True)
            ss2_ref[...] += jnp.sum(h2 * h2, axis=0, keepdims=True)

        @pl.when((p == 2) & (b == 0) & (t == 0))
        def _fin_bn2():
            b1 = b1_ref[...]
            b2 = b2_ref[...]
            c1p = jnp.maximum(b1 * sc1_ref[...] + sh1_ref[...], 0.0)
            c2a = jnp.dot(c1p.astype(jnp.bfloat16), w2_ref[...],
                          preferred_element_type=jnp.float32) + b2
            s = s2_ref[...] + two_b * (c2a + b2)
            ss = ss2_ref[...] + two_b * (c2a * c2a + b2 * b2)
            sc, sh = _bn_scale_shift(s, ss, B * (N + 4), g2_ref[...], be2_ref[...])
            sc2_ref[...] = sc
            sh2_ref[...] = sh

        @pl.when(p == 2)
        def _pass2():
            h2bn = jnp.maximum(h2 * sc2_ref[...] + sh2_ref[...], 0.0)
            h2b = h2bn.astype(jnp.bfloat16)

            # BN3 moments on the MXU: row-sum (mean) and second-moment matrix
            # A = h2bn^T h2bn (E[y^2] = diag(w3^T A w3) computed at finalize).
            s2bn_ref[...] += jnp.sum(h2bn, axis=0, keepdims=True)
            amat_ref[...] += jax.lax.dot_general(
                h2b, h2b, _TN_DIMS, preferred_element_type=jnp.float32)

            # conv3 (raw, pre-BN3) + per-batch running max over positions.
            y = jnp.dot(h2b, w3_ref[...],
                        preferred_element_type=jnp.float32) + b3_ref[...]   # (TN, 1024)
            tmax = jnp.max(y, axis=0, keepdims=True)                        # (1, 1024)
            row_ids = jax.lax.broadcasted_iota(jnp.int32, mx_ref.shape, 0)
            mx_ref[...] = jnp.where(row_ids == b,
                                    jnp.maximum(mx_ref[...], tmax),
                                    mx_ref[...])

            # ---- final tile: finalize BN3, fold padding consts, FC head -------
            @pl.when((b == B - 1) & (t == nt - 1))
            def _final():
                b1 = b1_ref[...]
                b2 = b2_ref[...]
                b3 = b3_ref[...]
                w3f = w3_ref[...].astype(jnp.float32)                       # (128,1024)

                # real-row BN3 moments from the MXU accumulators
                sum_y = jnp.dot(s2bn_ref[...], w3f,
                                preferred_element_type=jnp.float32)         # (1,1024)
                aw = jnp.dot(amat_ref[...], w3f,
                             preferred_element_type=jnp.float32)            # (128,1024)
                sumsq_y = jnp.sum(w3f * aw, axis=0, keepdims=True)          # (1,1024)
                sum3 = sum_y + n_real * b3
                ss3 = sumsq_y + 2.0 * b3 * sum_y + n_real * (b3 * b3)

                # padding-constant conv3 rows, stacked into one small matmul
                c1p = jnp.maximum(b1 * sc1_ref[...] + sh1_ref[...], 0.0)    # (1, 64)
                c2a = jnp.dot(c1p.astype(jnp.bfloat16), w2_ref[...],
                              preferred_element_type=jnp.float32) + b2      # (1, 128)
                cc = jnp.concatenate([c2a, b2], axis=0)                     # (2, 128)
                ccp = jnp.maximum(cc * sc2_ref[...] + sh2_ref[...], 0.0)
                c3 = jnp.dot(ccp.astype(jnp.bfloat16), w3_ref[...],
                             preferred_element_type=jnp.float32) + b3       # (2, 1024)
                sum3 = sum3 + two_b * (jnp.sum(c3, axis=0, keepdims=True) + b3)
                ss3 = ss3 + two_b * (jnp.sum(c3 * c3, axis=0, keepdims=True)
                                     + b3 * b3)
                sc3, sh3 = _bn_scale_shift(sum3, ss3, B * (N + 6),
                                           g3_ref[...], be3_ref[...])

                # max over all positions (incl. padding-constant columns); BN3+ReLU
                # applied post-pool -- valid because sc3 > 0 with gamma = 1.
                pooled = jnp.maximum(mx_ref[...],
                                     jnp.max(c3, axis=0, keepdims=True))    # (B,1024)
                pooled = jnp.maximum(pooled, b3)
                pooled = jnp.maximum(pooled * sc3 + sh3, 0.0)

                # FC head (bf16 matmuls, f32 accumulation)
                f = jnp.dot(pooled.astype(jnp.bfloat16), wl1_ref[...],
                            preferred_element_type=jnp.float32) + bl1_ref[...]
                f = _bn_relu_rows(f, gl1_ref[...], bel1_ref[...])           # (B, 512)
                f = jnp.dot(f.astype(jnp.bfloat16), wl2_ref[...],
                            preferred_element_type=jnp.float32) + bl2_ref[...]
                f = _bn_relu_rows(f, gl2_ref[...], bel2_ref[...])           # (B, 256)
                f = jnp.dot(f, wl3_ref[...],
                            preferred_element_type=jnp.float32) + bl3_ref[...]
                out_ref[...] = f + id_ref[...]                              # (B, 9)


def _choose_row_tile(n):
    """Rows per grid step (within one batch element)."""
    if n <= 1024:
        return n
    for tn in (1024, 512, 256, 128):
        if n % tn == 0:
            return tn
    return n   # fallback: whole length (see TODO about padding N)


def mytnet_forward(x, params):
    """x: (B, dim, N) float32 -- the PyTorch Conv1d input convention."""
    B, D, N = x.shape
    assert D == DIM
    assert N % 8 == 0, "row tiles must be sublane (8) aligned; pad N otherwise"

    prm = list(params)
    # bf16 weights for the big MXU matmuls (accumulation stays f32).
    for i in (4, 8, 12, 16):          # w2, w3, wl1, wl2
        prm[i] = prm[i].astype(jnp.bfloat16)

    # Channels-last rows so every 1x1 conv / linear is (rows, Cin) @ (Cin, Cout).
    x_rows = jnp.transpose(x, (0, 2, 1)).reshape(B * N, DIM).astype(jnp.float32)

    TN = _choose_row_tile(N)
    NT = N // TN
    grid = (NUM_PASSES, B, NT)        # (pass, batch element, row tile)

    def _const_spec(a):               # weights: fetched once, resident for all steps
        return pl.BlockSpec(a.shape, lambda pp, bb, tt: (0, 0))

    x_spec = pl.BlockSpec((TN, DIM), lambda pp, bb, tt: (bb * NT + tt, 0))
    out_spec = pl.BlockSpec((B, DIM * DIM), lambda pp, bb, tt: (0, 0))

    scratch_shapes = [
        pltpu.VMEM((1, 64), jnp.float32),     # s1   (BN1 sum)
        pltpu.VMEM((1, 64), jnp.float32),     # ss1  (BN1 sum of squares)
        pltpu.VMEM((1, 64), jnp.float32),     # sc1  (BN1 scale)
        pltpu.VMEM((1, 64), jnp.float32),     # sh1  (BN1 shift)
        pltpu.VMEM((1, 128), jnp.float32),    # s2
        pltpu.VMEM((1, 128), jnp.float32),    # ss2
        pltpu.VMEM((1, 128), jnp.float32),    # sc2
        pltpu.VMEM((1, 128), jnp.float32),    # sh2
        pltpu.VMEM((1, 128), jnp.float32),    # s2bn (sum of BN2+ReLU rows)
        pltpu.VMEM((128, 128), jnp.float32),  # A = h2bn^T h2bn
        pltpu.VMEM((B, 1024), jnp.float32),   # per-batch running max of raw conv3
    ]

    # VMEM budget from the actual footprint (resident weights, double-buffered x
    # tile + per-tile activations, finalize temporaries, scratch) with headroom.
    # Capped at 48 MiB so it fits v7x's 64 MiB/TC as well as v5e/v6e's 128 MiB.
    w_bytes = sum(int(a.size) * a.dtype.itemsize for a in prm)
    tile_bytes = TN * (128 * 4 + 64 * 4 + 128 * 4 + 128 * 2 + 1024 * 4)
    final_bytes = 3 * 128 * 1024 * 4 + 6 * B * 1024 * 4
    scratch_bytes = (128 * 128 + B * 1024 + 8 * 1024) * 4
    vmem_budget = int(min(max(2 * w_bytes + 2 * tile_bytes + final_bytes
                              + scratch_bytes + (8 << 20), 16 << 20), 48 << 20))

    out = pl.pallas_call(
        functools.partial(tnet_kernel, B, N),
        out_shape=jax.ShapeDtypeStruct((B, DIM * DIM), jnp.float32),
        grid_spec=pltpu.PrefetchScalarGridSpec(
            num_scalar_prefetch=0,
            grid=grid,
            in_specs=[x_spec] + [_const_spec(a) for a in prm],
            out_specs=out_spec,
            scratch_shapes=scratch_shapes),
        compiler_params=pltpu.CompilerParams(
            dimension_semantics=("arbitrary", "arbitrary", "arbitrary"),
            vmem_limit_bytes=vmem_budget),
    )(x_rows, *prm)
    return out.reshape(B, DIM, DIM)


def init_params(key, dim=DIM):
    """Deterministic synthetic parameters matching the module's shapes.

    Conv weights stored as (Cin, Cout), Linear weights as (in, out) so the kernel
    computes x @ W + b.  BN affine params follow PyTorch default init (gamma=1,
    beta=0); biases are small random values.
    """
    keys = jax.random.split(key, 12)

    def rnd(k, shape, scale=0.2):
        return scale * jax.random.normal(k, shape, dtype=jnp.float32)

    ones = lambda c: jnp.ones((1, c), jnp.float32)
    zeros = lambda c: jnp.zeros((1, c), jnp.float32)

    params = [
        # conv1 / BN1
        rnd(keys[0], (dim, 64)),        rnd(keys[1], (1, 64), 0.05),
        ones(64),                       zeros(64),
        # conv2 / BN2
        rnd(keys[2], (64, 128)),        rnd(keys[3], (1, 128), 0.05),
        ones(128),                      zeros(128),
        # conv3 / BN3
        rnd(keys[4], (128, 1024)),      rnd(keys[5], (1, 1024), 0.05),
        ones(1024),                     zeros(1024),
        # linear1 / BNL1
        rnd(keys[6], (1024, 512), 0.05), rnd(keys[7], (1, 512), 0.05),
        ones(512),                      zeros(512),
        # linear2 / BNL2
        rnd(keys[8], (512, 256), 0.05), rnd(keys[9], (1, 256), 0.05),
        ones(256),                      zeros(256),
        # linear3
        rnd(keys[10], (256, dim * dim), 0.05), rnd(keys[11], (1, dim * dim), 0.05),
        # flattened identity added before the final view
        jnp.eye(dim, dtype=jnp.float32).reshape(1, dim * dim),
    ]
    return params


if __name__ == "__main__":
    key = jax.random.PRNGKey(0)
    kx, kp = jax.random.split(key)
    B, N = 2, 16                      # batch=2, dim=3 channels, 16 points
    x = jax.random.normal(kx, (B, DIM, N), dtype=jnp.float32)
    params = init_params(kp)

    out = mytnet_forward(x, params)
    out = jax.block_until_ready(out)
    assert out.shape == (B, DIM, DIM) and out.dtype == jnp.float32
    print("KERNEL_OK")
</pallas_src>

<mosaic_0001>
module attributes {stable_mosaic.version = 11 : i64} {
  func.func @tnet_kernel(%arg0: i32, %arg1: i32, %arg2: i32, %arg3: memref<16x3xf32, #tpu.memory_space<vmem>>, %arg4: memref<3x64xf32, #tpu.memory_space<vmem>>, %arg5: memref<1x64xf32, #tpu.memory_space<vmem>>, %arg6: memref<1x64xf32, #tpu.memory_space<vmem>>, %arg7: memref<1x64xf32, #tpu.memory_space<vmem>>, %arg8: memref<64x128xbf16, #tpu.memory_space<vmem>>, %arg9: memref<1x128xf32, #tpu.memory_space<vmem>>, %arg10: memref<1x128xf32, #tpu.memory_space<vmem>>, %arg11: memref<1x128xf32, #tpu.memory_space<vmem>>, %arg12: memref<128x1024xbf16, #tpu.memory_space<vmem>>, %arg13: memref<1x1024xf32, #tpu.memory_space<vmem>>, %arg14: memref<1x1024xf32, #tpu.memory_space<vmem>>, %arg15: memref<1x1024xf32, #tpu.memory_space<vmem>>, %arg16: memref<1024x512xbf16, #tpu.memory_space<vmem>>, %arg17: memref<1x512xf32, #tpu.memory_space<vmem>>, %arg18: memref<1x512xf32, #tpu.memory_space<vmem>>, %arg19: memref<1x512xf32, #tpu.memory_space<vmem>>, %arg20: memref<512x256xbf16, #tpu.memory_space<vmem>>, %arg21: memref<1x256xf32, #tpu.memory_space<vmem>>, %arg22: memref<1x256xf32, #tpu.memory_space<vmem>>, %arg23: memref<1x256xf32, #tpu.memory_space<vmem>>, %arg24: memref<256x9xf32, #tpu.memory_space<vmem>>, %arg25: memref<1x9xf32, #tpu.memory_space<vmem>>, %arg26: memref<1x9xf32, #tpu.memory_space<vmem>>, %arg27: memref<2x9xf32, #tpu.memory_space<vmem>>, %arg28: memref<1x64xf32, #tpu.memory_space<vmem>>, %arg29: memref<1x64xf32, #tpu.memory_space<vmem>>, %arg30: memref<1x64xf32, #tpu.memory_space<vmem>>, %arg31: memref<1x64xf32, #tpu.memory_space<vmem>>, %arg32: memref<1x128xf32, #tpu.memory_space<vmem>>, %arg33: memref<1x128xf32, #tpu.memory_space<vmem>>, %arg34: memref<1x128xf32, #tpu.memory_space<vmem>>, %arg35: memref<1x128xf32, #tpu.memory_space<vmem>>, %arg36: memref<1x128xf32, #tpu.memory_space<vmem>>, %arg37: memref<128x128xf32, #tpu.memory_space<vmem>>, %arg38: memref<2x1024xf32, #tpu.memory_space<vmem>>) attributes {dimension_semantics = [#tpu.dimension_semantics<arbitrary>, #tpu.dimension_semantics<arbitrary>, #tpu.dimension_semantics<arbitrary>], iteration_bounds = array<i64: 3, 2, 1>, scalar_prefetch = 0 : i64, scratch_operands = 11 : i64, tpu.core_type = #tpu.core_type<tc>, window_params = [{transform_indices = @transform_0, window_bounds = array<i64: 16, 3>}, {pipeline_mode = #tpu.pipeline_mode<synchronous>, transform_indices = @transform_1, window_bounds = array<i64: 3, 64>}, {pipeline_mode = #tpu.pipeline_mode<synchronous>, transform_indices = @transform_2, window_bounds = array<i64: 1, 64>}, {pipeline_mode = #tpu.pipeline_mode<synchronous>, transform_indices = @transform_3, window_bounds = array<i64: 1, 64>}, {pipeline_mode = #tpu.pipeline_mode<synchronous>, transform_indices = @transform_4, window_bounds = array<i64: 1, 64>}, {pipeline_mode = #tpu.pipeline_mode<synchronous>, transform_indices = @transform_5, window_bounds = array<i64: 64, 128>}, {pipeline_mode = #tpu.pipeline_mode<synchronous>, transform_indices = @transform_6, window_bounds = array<i64: 1, 128>}, {pipeline_mode = #tpu.pipeline_mode<synchronous>, transform_indices = @transform_7, window_bounds = array<i64: 1, 128>}, {pipeline_mode = #tpu.pipeline_mode<synchronous>, transform_indices = @transform_8, window_bounds = array<i64: 1, 128>}, {pipeline_mode = #tpu.pipeline_mode<synchronous>, transform_indices = @transform_9, window_bounds = array<i64: 128, 1024>}, {pipeline_mode = #tpu.pipeline_mode<synchronous>, transform_indices = @transform_10, window_bounds = array<i64: 1, 1024>}, {pipeline_mode = #tpu.pipeline_mode<synchronous>, transform_indices = @transform_11, window_bounds = array<i64: 1, 1024>}, {pipeline_mode = #tpu.pipeline_mode<synchronous>, transform_indices = @transform_12, window_bounds = array<i64: 1, 1024>}, {pipeline_mode = #tpu.pipeline_mode<synchronous>, transform_indices = @transform_13, window_bounds = array<i64: 1024, 512>}, {pipeline_mode = #tpu.pipeline_mode<synchronous>, transform_indices = @transform_14, window_bounds = array<i64: 1, 512>}, {pipeline_mode = #tpu.pipeline_mode<synchronous>, transform_indices = @transform_15, window_bounds = array<i64: 1, 512>}, {pipeline_mode = #tpu.pipeline_mode<synchronous>, transform_indices = @transform_16, window_bounds = array<i64: 1, 512>}, {pipeline_mode = #tpu.pipeline_mode<synchronous>, transform_indices = @transform_17, window_bounds = array<i64: 512, 256>}, {pipeline_mode = #tpu.pipeline_mode<synchronous>, transform_indices = @transform_18, window_bounds = array<i64: 1, 256>}, {pipeline_mode = #tpu.pipeline_mode<synchronous>, transform_indices = @transform_19, window_bounds = array<i64: 1, 256>}, {pipeline_mode = #tpu.pipeline_mode<synchronous>, transform_indices = @transform_20, window_bounds = array<i64: 1, 256>}, {pipeline_mode = #tpu.pipeline_mode<synchronous>, transform_indices = @transform_21, window_bounds = array<i64: 256, 9>}, {pipeline_mode = #tpu.pipeline_mode<synchronous>, transform_indices = @transform_22, window_bounds = array<i64: 1, 9>}, {pipeline_mode = #tpu.pipeline_mode<synchronous>, transform_indices = @transform_23, window_bounds = array<i64: 1, 9>}, {pipeline_mode = #tpu.pipeline_mode<synchronous>, transform_indices = @transform_24, window_bounds = array<i64: 2, 9>}]} {
    %c0_i32 = arith.constant 0 : i32
    %0 = arith.cmpi eq, %arg0, %c0_i32 : i32
    %c0_i32_0 = arith.constant 0 : i32
    %1 = arith.cmpi eq, %arg1, %c0_i32_0 : i32
    %2 = arith.andi %0, %1 : i1
    %c0_i32_1 = arith.constant 0 : i32
    %3 = arith.cmpi eq, %arg2, %c0_i32_1 : i32
    %4 = arith.andi %2, %3 : i1
    %5 = arith.extui %4 : i1 to i32
    %c0_i32_2 = arith.constant 0 : i32
    %6 = arith.cmpi ne, %5, %c0_i32_2 : i32
    scf.if %6 {
      %cst_15 = arith.constant 0.000000e+00 : f32
      %26 = vector.broadcast %cst_15 : f32 to vector<1x64xf32>
      %c0_16 = arith.constant 0 : index
      %c0_17 = arith.constant 0 : index
      %27 = vector.load %arg28[%c0_16, %c0_17] : memref<1x64xf32, #tpu.memory_space<vmem>>, vector<1x64xf32>
      tpu.vector_store %arg28[%c0_16, %c0_17], %26 {strides = array<i32>} : memref<1x64xf32, #tpu.memory_space<vmem>>, vector<1x64xf32>,
      %cst_18 = arith.constant 0.000000e+00 : f32
      %28 = vector.broadcast %cst_18 : f32 to vector<1x64xf32>
      %c0_19 = arith.constant 0 : index
      %c0_20 = arith.constant 0 : index
      %29 = vector.load %arg29[%c0_19, %c0_20] : memref<1x64xf32, #tpu.memory_space<vmem>>, vector<1x64xf32>
      tpu.vector_store %arg29[%c0_19, %c0_20], %28 {strides = array<i32>} : memref<1x64xf32, #tpu.memory_space<vmem>>, vector<1x64xf32>,
      %cst_21 = arith.constant 0.000000e+00 : f32
      %30 = vector.broadcast %cst_21 : f32 to vector<1x128xf32>
      %c0_22 = arith.constant 0 : index
      %c0_23 = arith.constant 0 : index
      %31 = vector.load %arg32[%c0_22, %c0_23] : memref<1x128xf32, #tpu.memory_space<vmem>>, vector<1x128xf32>
      tpu.vector_store %arg32[%c0_22, %c0_23], %30 {strides = array<i32>} : memref<1x128xf32, #tpu.memory_space<vmem>>, vector<1x128xf32>,
      %cst_24 = arith.constant 0.000000e+00 : f32
      %32 = vector.broadcast %cst_24 : f32 to vector<1x128xf32>
      %c0_25 = arith.constant 0 : index
      %c0_26 = arith.constant 0 : index
      %33 = vector.load %arg33[%c0_25, %c0_26] : memref<1x128xf32, #tpu.memory_space<vmem>>, vector<1x128xf32>
      tpu.vector_store %arg33[%c0_25, %c0_26], %32 {strides = array<i32>} : memref<1x128xf32, #tpu.memory_space<vmem>>, vector<1x128xf32>,
      %cst_27 = arith.constant 0.000000e+00 : f32
      %34 = vector.broadcast %cst_27 : f32 to vector<1x128xf32>
      %c0_28 = arith.constant 0 : index
      %c0_29 = arith.constant 0 : index
      %35 = vector.load %arg36[%c0_28, %c0_29] : memref<1x128xf32, #tpu.memory_space<vmem>>, vector<1x128xf32>
      tpu.vector_store %arg36[%c0_28, %c0_29], %34 {strides = array<i32>} : memref<1x128xf32, #tpu.memory_space<vmem>>, vector<1x128xf32>,
      %cst_30 = arith.constant 0.000000e+00 : f32
      %36 = vector.broadcast %cst_30 : f32 to vector<128x128xf32>
      %c0_31 = arith.constant 0 : index
      %c0_32 = arith.constant 0 : index
      %37 = vector.load %arg37[%c0_31, %c0_32] : memref<128x128xf32, #tpu.memory_space<vmem>>, vector<128x128xf32>
      tpu.vector_store %arg37[%c0_31, %c0_32], %36 {strides = array<i32>} : memref<128x128xf32, #tpu.memory_space<vmem>>, vector<128x128xf32>,
      %cst_33 = arith.constant 0xFF800000 : f32
      %38 = vector.broadcast %cst_33 : f32 to vector<2x1024xf32>
      %c0_34 = arith.constant 0 : index
      %c0_35 = arith.constant 0 : index
      %39 = vector.load %arg38[%c0_34, %c0_35] : memref<2x1024xf32, #tpu.memory_space<vmem>>, vector<2x1024xf32>
      tpu.vector_store %arg38[%c0_34, %c0_35], %38 {strides = array<i32>} : memref<2x1024xf32, #tpu.memory_space<vmem>>, vector<2x1024xf32>,
    } else {
    }
    %c0 = arith.constant 0 : index
    %c0_3 = arith.constant 0 : index
    %7 = vector.load %arg3[%c0, %c0_3] : memref<16x3xf32, #tpu.memory_space<vmem>>, vector<16x3xf32>
    %c0_4 = arith.constant 0 : index
    %c0_5 = arith.constant 0 : index
    %8 = vector.load %arg4[%c0_4, %c0_5] : memref<3x64xf32, #tpu.memory_space<vmem>>, vector<3x64xf32>
    %cst = arith.constant dense<0.000000e+00> : vector<16x64xf32>
    %9 = tpu.matmul %7, %8, %cst {dimension_numbers = #tpu.dot_dimension_numbers<[1], [0], [0], [1], [0, 0, 1, 1], [], []>} : vector<16x3xf32>, vector<3x64xf32>, vector<16x64xf32> -> vector<16x64xf32>
    %c0_6 = arith.constant 0 : index
    %c0_7 = arith.constant 0 : index
    %10 = vector.load %arg5[%c0_6, %c0_7] : memref<1x64xf32, #tpu.memory_space<vmem>>, vector<1x64xf32>
    %11 = vector.broadcast %10 : vector<1x64xf32> to vector<16x64xf32>
    %12 = arith.addf %9, %11 : vector<16x64xf32>
    %c0_i32_8 = arith.constant 0 : i32
    %13 = arith.cmpi eq, %arg0, %c0_i32_8 : i32
    %14 = arith.extui %13 : i1 to i32
    %c0_i32_9 = arith.constant 0 : i32
    %15 = arith.cmpi ne, %14, %c0_i32_9 : i32
    scf.if %15 {
      %c0_15 = arith.constant 0 : index
      %c0_16 = arith.constant 0 : index
      %26 = vector.load %arg28[%c0_15, %c0_16] : memref<1x64xf32, #tpu.memory_space<vmem>>, vector<1x64xf32>
      %cst_17 = arith.constant dense<0.000000e+00> : vector<64xf32>
      %27 = vector.multi_reduction <add>, %12, %cst_17 [0] : vector<16x64xf32> to vector<64xf32>
      %28 = vector.shape_cast %27 : vector<64xf32> to vector<1x64xf32>
      %29 = arith.addf %26, %28 : vector<1x64xf32>
      %c0_18 = arith.constant 0 : index
      %c0_19 = arith.constant 0 : index
      %30 = vector.load %arg28[%c0_18, %c0_19] : memref<1x64xf32, #tpu.memory_space<vmem>>, vector<1x64xf32>
      tpu.vector_store %arg28[%c0_18, %c0_19], %29 {strides = array<i32>} : memref<1x64xf32, #tpu.memory_space<vmem>>, vector<1x64xf32>,
      %c0_20 = arith.constant 0 : index
      %c0_21 = arith.constant 0 : index
      %31 = vector.load %arg29[%c0_20, %c0_21] : memref<1x64xf32, #tpu.memory_space<vmem>>, vector<1x64xf32>
      %32 = arith.mulf %12, %12 : vector<16x64xf32>
      %cst_22 = arith.constant dense<0.000000e+00> : vector<64xf32>
      %33 = vector.multi_reduction <add>, %32, %cst_22 [0] : vector<16x64xf32> to vector<64xf32>
      %34 = vector.shape_cast %33 : vector<64xf32> to vector<1x64xf32>
      %35 = arith.addf %31, %34 : vector<1x64xf32>
      %c0_23 = arith.constant 0 : index
      %c0_24 = arith.constant 0 : index
      %36 = vector.load %arg29[%c0_23, %c0_24] : memref<1x64xf32, #tpu.memory_space<vmem>>, vector<1x64xf32>
      tpu.vector_store %arg29[%c0_23, %c0_24], %35 {strides = array<i32>} : memref<1x64xf32, #tpu.memory_space<vmem>>, vector<1x64xf32>,
    } else {
    }
    %c1_i32 = arith.constant 1 : i32
    %16 = arith.cmpi eq, %arg0, %c1_i32 : i32
    %c0_i32_10 = arith.constant 0 : i32
    %17 = arith.cmpi eq, %arg1, %c0_i32_10 : i32
    %18 = arith.andi %16, %17 : i1
    %c0_i32_11 = arith.constant 0 : i32
    %19 = arith.cmpi eq, %arg2, %c0_i32_11 : i32
    %20 = arith.andi %18, %19 : i1
    %21 = arith.extui %20 : i1 to i32
    %c0_i32_12 = arith.constant 0 : i32
    %22 = arith.cmpi ne, %21, %c0_i32_12 : i32
    scf.if %22 {
      %c0_15 = arith.constant 0 : index
      %c0_16 = arith.constant 0 : index
      %26 = vector.load %arg5[%c0_15, %c0_16] : memref<1x64xf32, #tpu.memory_space<vmem>>, vector<1x64xf32>
      %c0_17 = arith.constant 0 : index
      %c0_18 = arith.constant 0 : index
      %27 = vector.load %arg28[%c0_17, %c0_18] : memref<1x64xf32, #tpu.memory_space<vmem>>, vector<1x64xf32>
      %cst_19 = arith.constant 4.000000e+00 : f32
      %28 = vector.broadcast %cst_19 : f32 to vector<1x64xf32>
      %29 = arith.mulf %28, %26 : vector<1x64xf32>
      %30 = arith.addf %27, %29 : vector<1x64xf32>
      %c0_20 = arith.constant 0 : index
      %c0_21 = arith.constant 0 : index
      %31 = vector.load %arg29[%c0_20, %c0_21] : memref<1x64xf32, #tpu.memory_space<vmem>>, vector<1x64xf32>
      %32 = arith.mulf %26, %26 : vector<1x64xf32>
      %cst_22 = arith.constant 4.000000e+00 : f32
      %33 = vector.broadcast %cst_22 : f32 to vector<1x64xf32>
      %34 = arith.mulf %33, %32 : vector<1x64xf32>
      %35 = arith.addf %31, %34 : vector<1x64xf32>
      %c0_23 = arith.constant 0 : index
      %c0_24 = arith.constant 0 : index
      %36 = vector.load %arg6[%c0_23, %c0_24] : memref<1x64xf32, #tpu.memory_space<vmem>>, vector<1x64xf32>
      %c0_25 = arith.constant 0 : index
      %c0_26 = arith.constant 0 : index
      %37 = vector.load %arg7[%c0_25, %c0_26] : memref<1x64xf32, #tpu.memory_space<vmem>>, vector<1x64xf32>
      %cst_27 = arith.constant 0.027777778 : f32
      %38 = vector.broadcast %cst_27 : f32 to vector<1x64xf32>
      %39 = arith.mulf %30, %38 : vector<1x64xf32>
      %cst_28 = arith.constant 0.027777778 : f32
      %40 = vector.broadcast %cst_28 : f32 to vector<1x64xf32>
      %41 = arith.mulf %35, %40 : vector<1x64xf32>
      %42 = arith.mulf %39, %39 : vector<1x64xf32>
      %43 = arith.subf %41, %42 : vector<1x64xf32>
      %cst_29 = arith.constant 9.99999974E-6 : f32
      %44 = vector.broadcast %cst_29 : f32 to vector<1x64xf32>
      %45 = arith.addf %43, %44 : vector<1x64xf32>
      %46 = math.rsqrt %45 : vector<1x64xf32>
      %47 = arith.mulf %46, %36 : vector<1x64xf32>
      %48 = arith.mulf %39, %47 : vector<1x64xf32>
      %49 = arith.subf %37, %48 : vector<1x64xf32>
      %c0_30 = arith.constant 0 : index
      %c0_31 = arith.constant 0 : index
      %50 = vector.load %arg30[%c0_30, %c0_31] : memref<1x64xf32, #tpu.memory_space<vmem>>, vector<1x64xf32>
      tpu.vector_store %arg30[%c0_30, %c0_31], %47 {strides = array<i32>} : memref<1x64xf32, #tpu.memory_space<vmem>>, vector<1x64xf32>,
      %c0_32 = arith.constant 0 : index
      %c0_33 = arith.constant 0 : index
      %51 = vector.load %arg31[%c0_32, %c0_33] : memref<1x64xf32, #tpu.memory_space<vmem>>, vector<1x64xf32>
      tpu.vector_store %arg31[%c0_32, %c0_33], %49 {strides = array<i32>} : memref<1x64xf32, #tpu.memory_space<vmem>>, vector<1x64xf32>,
    } else {
    }
    %c1_i32_13 = arith.constant 1 : i32
    %23 = arith.cmpi sge, %arg0, %c1_i32_13 : i32
    %24 = arith.extui %23 : i1 to i32
    %c0_i32_14 = arith.constant 0 : i32
    %25 = arith.cmpi ne, %24, %c0_i32_14 : i32
    scf.if %25 {
      %c0_15 = arith.constant 0 : index
      %c0_16 = arith.constant 0 : index
      %26 = vector.load %arg30[%c0_15, %c0_16] : memref<1x64xf32, #tpu.memory_space<vmem>>, vector<1x64xf32>
      %27 = vector.broadcast %26 : vector<1x64xf32> to vector<16x64xf32>
      %28 = arith.mulf %12, %27 : vector<16x64xf32>
      %c0_17 = arith.constant 0 : index
      %c0_18 = arith.constant 0 : index
      %29 = vector.load %arg31[%c0_17, %c0_18] : memref<1x64xf32, #tpu.memory_space<vmem>>, vector<1x64xf32>
      %30 = vector.broadcast %29 : vector<1x64xf32> to vector<16x64xf32>
      %31 = arith.addf %28, %30 : vector<16x64xf32>
      %cst_19 = arith.constant 0.000000e+00 : f32
      %32 = vector.broadcast %cst_19 : f32 to vector<16x64xf32>
      %33 = arith.maximumf %31, %32 : vector<16x64xf32>
      %34 = arith.truncf %33 : vector<16x64xf32> to vector<16x64xbf16>
      %c0_20 = arith.constant 0 : index
      %c0_21 = arith.constant 0 : index
      %35 = vector.load %arg8[%c0_20, %c0_21] : memref<64x128xbf16, #tpu.memory_space<vmem>>, vector<64x128xbf16>
      %cst_22 = arith.constant dense<0.000000e+00> : vector<16x128xf32>
      %36 = tpu.matmul %34, %35, %cst_22 {dimension_numbers = #tpu.dot_dimension_numbers<[1], [0], [0], [1], [0, 0, 1, 1], [], []>} : vector<16x64xbf16>, vector<64x128xbf16>, vector<16x128xf32> -> vector<16x128xf32>
      %c0_23 = arith.constant 0 : index
      %c0_24 = arith.constant 0 : index
      %37 = vector.load %arg9[%c0_23, %c0_24] : memref<1x128xf32, #tpu.memory_space<vmem>>, vector<1x128xf32>
      %38 = vector.broadcast %37 : vector<1x128xf32> to vector<16x128xf32>
      %39 = arith.addf %36, %38 : vector<16x128xf32>
      %c1_i32_25 = arith.constant 1 : i32
      %40 = arith.cmpi eq, %arg0, %c1_i32_25 : i32
      %41 = arith.extui %40 : i1 to i32
      %c0_i32_26 = arith.constant 0 : i32
      %42 = arith.cmpi ne, %41, %c0_i32_26 : i32
      scf.if %42 {
        %c0_32 = arith.constant 0 : index
        %c0_33 = arith.constant 0 : index
        %53 = vector.load %arg32[%c0_32, %c0_33] : memref<1x128xf32, #tpu.memory_space<vmem>>, vector<1x128xf32>
        %cst_34 = arith.constant dense<0.000000e+00> : vector<128xf32>
        %54 = vector.multi_reduction <add>, %39, %cst_34 [0] : vector<16x128xf32> to vector<128xf32>
        %55 = vector.shape_cast %54 : vector<128xf32> to vector<1x128xf32>
        %56 = arith.addf %53, %55 : vector<1x128xf32>
        %c0_35 = arith.constant 0 : index
        %c0_36 = arith.constant 0 : index
        %57 = vector.load %arg32[%c0_35, %c0_36] : memref<1x128xf32, #tpu.memory_space<vmem>>, vector<1x128xf32>
        tpu.vector_store %arg32[%c0_35, %c0_36], %56 {strides = array<i32>} : memref<1x128xf32, #tpu.memory_space<vmem>>, vector<1x128xf32>,
        %c0_37 = arith.constant 0 : index
        %c0_38 = arith.constant 0 : index
        %58 = vector.load %arg33[%c0_37, %c0_38] : memref<1x128xf32, #tpu.memory_space<vmem>>, vector<1x128xf32>
        %59 = arith.mulf %39, %39 : vector<16x128xf32>
        %cst_39 = arith.constant dense<0.000000e+00> : vector<128xf32>
        %60 = vector.multi_reduction <add>, %59, %cst_39 [0] : vector<16x128xf32> to vector<128xf32>
        %61 = vector.shape_cast %60 : vector<128xf32> to vector<1x128xf32>
        %62 = arith.addf %58, %61 : vector<1x128xf32>
        %c0_40 = arith.constant 0 : index
        %c0_41 = arith.constant 0 : index
        %63 = vector.load %arg33[%c0_40, %c0_41] : memref<1x128xf32, #tpu.memory_space<vmem>>, vector<1x128xf32>
        tpu.vector_store %arg33[%c0_40, %c0_41], %62 {strides = array<i32>} : memref<1x128xf32, #tpu.memory_space<vmem>>, vector<1x128xf32>,
      } else {
      }
      %c2_i32 = arith.constant 2 : i32
      %43 = arith.cmpi eq, %arg0, %c2_i32 : i32
      %c0_i32_27 = arith.constant 0 : i32
      %44 = arith.cmpi eq, %arg1, %c0_i32_27 : i32
      %45 = arith.andi %43, %44 : i1
      %c0_i32_28 = arith.constant 0 : i32
      %46 = arith.cmpi eq, %arg2, %c0_i32_28 : i32
      %47 = arith.andi %45, %46 : i1
      %48 = arith.extui %47 : i1 to i32
      %c0_i32_29 = arith.constant 0 : i32
      %49 = arith.cmpi ne, %48, %c0_i32_29 : i32
      scf.if %49 {
        %c0_32 = arith.constant 0 : index
        %c0_33 = arith.constant 0 : index
        %53 = vector.load %arg5[%c0_32, %c0_33] : memref<1x64xf32, #tpu.memory_space<vmem>>, vector<1x64xf32>
        %c0_34 = arith.constant 0 : index
        %c0_35 = arith.constant 0 : index
        %54 = vector.load %arg9[%c0_34, %c0_35] : memref<1x128xf32, #tpu.memory_space<vmem>>, vector<1x128xf32>
        %c0_36 = arith.constant 0 : index
        %c0_37 = arith.constant 0 : index
        %55 = vector.load %arg30[%c0_36, %c0_37] : memref<1x64xf32, #tpu.memory_space<vmem>>, vector<1x64xf32>
        %56 = arith.mulf %53, %55 : vector<1x64xf32>
        %c0_38 = arith.constant 0 : index
        %c0_39 = arith.constant 0 : index
        %57 = vector.load %arg31[%c0_38, %c0_39] : memref<1x64xf32, #tpu.memory_space<vmem>>, vector<1x64xf32>
        %58 = arith.addf %56, %57 : vector<1x64xf32>
        %cst_40 = arith.constant 0.000000e+00 : f32
        %59 = vector.broadcast %cst_40 : f32 to vector<1x64xf32>
        %60 = arith.maximumf %58, %59 : vector<1x64xf32>
        %61 = arith.truncf %60 : vector<1x64xf32> to vector<1x64xbf16>
        %c0_41 = arith.constant 0 : index
        %c0_42 = arith.constant 0 : index
        %62 = vector.load %arg8[%c0_41, %c0_42] : memref<64x128xbf16, #tpu.memory_space<vmem>>, vector<64x128xbf16>
        %cst_43 = arith.constant dense<0.000000e+00> : vector<1x128xf32>
        %63 = tpu.matmul %61, %62, %cst_43 {dimension_numbers = #tpu.dot_dimension_numbers<[1], [0], [0], [1], [0, 0, 1, 1], [], []>} : vector<1x64xbf16>, vector<64x128xbf16>, vector<1x128xf32> -> vector<1x128xf32>
        %64 = arith.addf %63, %54 : vector<1x128xf32>
        %c0_44 = arith.constant 0 : index
        %c0_45 = arith.constant 0 : index
        %65 = vector.load %arg32[%c0_44, %c0_45] : memref<1x128xf32, #tpu.memory_space<vmem>>, vector<1x128xf32>
        %66 = arith.addf %64, %54 : vector<1x128xf32>
        %cst_46 = arith.constant 4.000000e+00 : f32
        %67 = vector.broadcast %cst_46 : f32 to vector<1x128xf32>
        %68 = arith.mulf %67, %66 : vector<1x128xf32>
        %69 = arith.addf %65, %68 : vector<1x128xf32>
        %c0_47 = arith.constant 0 : index
        %c0_48 = arith.constant 0 : index
        %70 = vector.load %arg33[%c0_47, %c0_48] : memref<1x128xf32, #tpu.memory_space<vmem>>, vector<1x128xf32>
        %71 = arith.mulf %64, %64 : vector<1x128xf32>
        %72 = arith.mulf %54, %54 : vector<1x128xf32>
        %73 = arith.addf %71, %72 : vector<1x128xf32>
        %cst_49 = arith.constant 4.000000e+00 : f32
        %74 = vector.broadcast %cst_49 : f32 to vector<1x128xf32>
        %75 = arith.mulf %74, %73 : vector<1x128xf32>
        %76 = arith.addf %70, %75 : vector<1x128xf32>
        %c0_50 = arith.constant 0 : index
        %c0_51 = arith.constant 0 : index
        %77 = vector.load %arg10[%c0_50, %c0_51] : memref<1x128xf32, #tpu.memory_space<vmem>>, vector<1x128xf32>
        %c0_52 = arith.constant 0 : index
        %c0_53 = arith.constant 0 : index
        %78 = vector.load %arg11[%c0_52, %c0_53] : memref<1x128xf32, #tpu.memory_space<vmem>>, vector<1x128xf32>
        %cst_54 = arith.constant 2.500000e-02 : f32
        %79 = vector.broadcast %cst_54 : f32 to vector<1x128xf32>
        %80 = arith.mulf %69, %79 : vector<1x128xf32>
        %cst_55 = arith.constant 2.500000e-02 : f32
        %81 = vector.broadcast %cst_55 : f32 to vector<1x128xf32>
        %82 = arith.mulf %76, %81 : vector<1x128xf32>
        %83 = arith.mulf %80, %80 : vector<1x128xf32>
        %84 = arith.subf %82, %83 : vector<1x128xf32>
        %cst_56 = arith.constant 9.99999974E-6 : f32
        %85 = vector.broadcast %cst_56 : f32 to vector<1x128xf32>
        %86 = arith.addf %84, %85 : vector<1x128xf32>
        %87 = math.rsqrt %86 : vector<1x128xf32>
        %88 = arith.mulf %87, %77 : vector<1x128xf32>
        %89 = arith.mulf %80, %88 : vector<1x128xf32>
        %90 = arith.subf %78, %89 : vector<1x128xf32>
        %c0_57 = arith.constant 0 : index
        %c0_58 = arith.constant 0 : index
        %91 = vector.load %arg34[%c0_57, %c0_58] : memref<1x128xf32, #tpu.memory_space<vmem>>, vector<1x128xf32>
        tpu.vector_store %arg34[%c0_57, %c0_58], %88 {strides = array<i32>} : memref<1x128xf32, #tpu.memory_space<vmem>>, vector<1x128xf32>,
        %c0_59 = arith.constant 0 : index
        %c0_60 = arith.constant 0 : index
        %92 = vector.load %arg35[%c0_59, %c0_60] : memref<1x128xf32, #tpu.memory_space<vmem>>, vector<1x128xf32>
        tpu.vector_store %arg35[%c0_59, %c0_60], %90 {strides = array<i32>} : memref<1x128xf32, #tpu.memory_space<vmem>>, vector<1x128xf32>,
      } else {
      }
      %c2_i32_30 = arith.constant 2 : i32
      %50 = arith.cmpi eq, %arg0, %c2_i32_30 : i32
      %51 = arith.extui %50 : i1 to i32
      %c0_i32_31 = arith.constant 0 : i32
      %52 = arith.cmpi ne, %51, %c0_i32_31 : i32
      scf.if %52 {
        %c0_32 = arith.constant 0 : index
        %c0_33 = arith.constant 0 : index
        %53 = vector.load %arg34[%c0_32, %c0_33] : memref<1x128xf32, #tpu.memory_space<vmem>>, vector<1x128xf32>
        %54 = vector.broadcast %53 : vector<1x128xf32> to vector<16x128xf32>
        %55 = arith.mulf %39, %54 : vector<16x128xf32>
        %c0_34 = arith.constant 0 : index
        %c0_35 = arith.constant 0 : index
        %56 = vector.load %arg35[%c0_34, %c0_35] : memref<1x128xf32, #tpu.memory_space<vmem>>, vector<1x128xf32>
        %57 = vector.broadcast %56 : vector<1x128xf32> to vector<16x128xf32>
        %58 = arith.addf %55, %57 : vector<16x128xf32>
        %cst_36 = arith.constant 0.000000e+00 : f32
        %59 = vector.broadcast %cst_36 : f32 to vector<16x128xf32>
        %60 = arith.maximumf %58, %59 : vector<16x128xf32>
        %61 = arith.truncf %60 : vector<16x128xf32> to vector<16x128xbf16>
        %c0_37 = arith.constant 0 : index
        %c0_38 = arith.constant 0 : index
        %62 = vector.load %arg36[%c0_37, %c0_38] : memref<1x128xf32, #tpu.memory_space<vmem>>, vector<1x128xf32>
        %cst_39 = arith.constant dense<0.000000e+00> : vector<128xf32>
        %63 = vector.multi_reduction <add>, %60, %cst_39 [0] : vector<16x128xf32> to vector<128xf32>
        %64 = vector.shape_cast %63 : vector<128xf32> to vector<1x128xf32>
        %65 = arith.addf %62, %64 : vector<1x128xf32>
        %c0_40 = arith.constant 0 : index
        %c0_41 = arith.constant 0 : index
        %66 = vector.load %arg36[%c0_40, %c0_41] : memref<1x128xf32, #tpu.memory_space<vmem>>, vector<1x128xf32>
        tpu.vector_store %arg36[%c0_40, %c0_41], %65 {strides = array<i32>} : memref<1x128xf32, #tpu.memory_space<vmem>>, vector<1x128xf32>,
        %c0_42 = arith.constant 0 : index
        %c0_43 = arith.constant 0 : index
        %67 = vector.load %arg37[%c0_42, %c0_43] : memref<128x128xf32, #tpu.memory_space<vmem>>, vector<128x128xf32>
        %cst_44 = arith.constant dense<0.000000e+00> : vector<128x128xf32>
        %68 = tpu.matmul %61, %61, %cst_44 {dimension_numbers = #tpu.dot_dimension_numbers<[0], [0], [1], [1], [0, 1, 1, 1], [], []>} : vector<16x128xbf16>, vector<16x128xbf16>, vector<128x128xf32> -> vector<128x128xf32>
        %69 = arith.addf %67, %68 : vector<128x128xf32>
        %c0_45 = arith.constant 0 : index
        %c0_46 = arith.constant 0 : index
        %70 = vector.load %arg37[%c0_45, %c0_46] : memref<128x128xf32, #tpu.memory_space<vmem>>, vector<128x128xf32>
        tpu.vector_store %arg37[%c0_45, %c0_46], %69 {strides = array<i32>} : memref<128x128xf32, #tpu.memory_space<vmem>>, vector<128x128xf32>,
        %c0_47 = arith.constant 0 : index
        %c0_48 = arith.constant 0 : index
        %71 = vector.load %arg12[%c0_47, %c0_48] : memref<128x1024xbf16, #tpu.memory_space<vmem>>, vector<128x1024xbf16>
        %cst_49 = arith.constant dense<0.000000e+00> : vector<16x1024xf32>
        %72 = tpu.matmul %61, %71, %cst_49 {dimension_numbers = #tpu.dot_dimension_numbers<[1], [0], [0], [1], [0, 0, 1, 1], [], []>} : vector<16x128xbf16>, vector<128x1024xbf16>, vector<16x1024xf32> -> vector<16x1024xf32>
        %c0_50 = arith.constant 0 : index
        %c0_51 = arith.constant 0 : index
        %73 = vector.load %arg13[%c0_50, %c0_51] : memref<1x1024xf32, #tpu.memory_space<vmem>>, vector<1x1024xf32>
        %74 = vector.broadcast %73 : vector<1x1024xf32> to vector<16x1024xf32>
        %75 = arith.addf %72, %74 : vector<16x1024xf32>
        %cst_52 = arith.constant dense<0xFF800000> : vector<1024xf32>
        %76 = vector.multi_reduction <maximumf>, %75, %cst_52 [0] : vector<16x1024xf32> to vector<1024xf32>
        %77 = vector.shape_cast %76 : vector<1024xf32> to vector<1x1024xf32>
        %78 = tpu.iota {dimensions = array<i32: 0>} : vector<2x1024xi32>
        %79 = vector.broadcast %arg1 : i32 to vector<2x1024xi32>
        %80 = arith.cmpi eq, %78, %79 : vector<2x1024xi32>
        %c0_53 = arith.constant 0 : index
        %c0_54 = arith.constant 0 : index
        %81 = vector.load %arg38[%c0_53, %c0_54] : memref<2x1024xf32, #tpu.memory_space<vmem>>, vector<2x1024xf32>
        %82 = vector.broadcast %77 : vector<1x1024xf32> to vector<2x1024xf32>
        %83 = arith.maximumf %81, %82 : vector<2x1024xf32>
        %c0_55 = arith.constant 0 : index
        %c0_56 = arith.constant 0 : index
        %84 = vector.load %arg38[%c0_55, %c0_56] : memref<2x1024xf32, #tpu.memory_space<vmem>>, vector<2x1024xf32>
        %85 = arith.select %80, %83, %84 : vector<2x1024xi1>, vector<2x1024xf32>
        %c0_57 = arith.constant 0 : index
        %c0_58 = arith.constant 0 : index
        %86 = vector.load %arg38[%c0_57, %c0_58] : memref<2x1024xf32, #tpu.memory_space<vmem>>, vector<2x1024xf32>
        tpu.vector_store %arg38[%c0_57, %c0_58], %85 {strides = array<i32>} : memref<2x1024xf32, #tpu.memory_space<vmem>>, vector<2x1024xf32>,
        %c1_i32_59 = arith.constant 1 : i32
        %87 = arith.cmpi eq, %arg1, %c1_i32_59 : i32
        %c0_i32_60 = arith.constant 0 : i32
        %88 = arith.cmpi eq, %arg2, %c0_i32_60 : i32
        %89 = arith.andi %87, %88 : i1
        %90 = arith.extui %89 : i1 to i32
        %c0_i32_61 = arith.constant 0 : i32
        %91 = arith.cmpi ne, %90, %c0_i32_61 : i32
        scf.if %91 {
          %c0_62 = arith.constant 0 : index
          %c0_63 = arith.constant 0 : index
          %92 = vector.load %arg5[%c0_62, %c0_63] : memref<1x64xf32, #tpu.memory_space<vmem>>, vector<1x64xf32>
          %c0_64 = arith.constant 0 : index
          %c0_65 = arith.constant 0 : index
          %93 = vector.load %arg9[%c0_64, %c0_65] : memref<1x128xf32, #tpu.memory_space<vmem>>, vector<1x128xf32>
          %c0_66 = arith.constant 0 : index
          %c0_67 = arith.constant 0 : index
          %94 = vector.load %arg13[%c0_66, %c0_67] : memref<1x1024xf32, #tpu.memory_space<vmem>>, vector<1x1024xf32>
          %c0_68 = arith.constant 0 : index
          %c0_69 = arith.constant 0 : index
          %95 = vector.load %arg12[%c0_68, %c0_69] : memref<128x1024xbf16, #tpu.memory_space<vmem>>, vector<128x1024xbf16>
          %96 = arith.extf %95 : vector<128x1024xbf16> to vector<128x1024xf32>
          %c0_70 = arith.constant 0 : index
          %c0_71 = arith.constant 0 : index
          %97 = vector.load %arg36[%c0_70, %c0_71] : memref<1x128xf32, #tpu.memory_space<vmem>>, vector<1x128xf32>
          %cst_72 = arith.constant dense<0.000000e+00> : vector<1x1024xf32>
          %98 = tpu.matmul %97, %96, %cst_72 {dimension_numbers = #tpu.dot_dimension_numbers<[1], [0], [0], [1], [0, 0, 1, 1], [], []>} : vector<1x128xf32>, vector<128x1024xf32>, vector<1x1024xf32> -> vector<1x1024xf32>
          %c0_73 = arith.constant 0 : index
          %c0_74 = arith.constant 0 : index
          %99 = vector.load %arg37[%c0_73, %c0_74] : memref<128x128xf32, #tpu.memory_space<vmem>>, vector<128x128xf32>
          %cst_75 = arith.constant dense<0.000000e+00> : vector<128x1024xf32>
          %100 = tpu.matmul %99, %96, %cst_75 {dimension_numbers = #tpu.dot_dimension_numbers<[1], [0], [0], [1], [0, 0, 1, 1], [], []>} : vector<128x128xf32>, vector<128x1024xf32>, vector<128x1024xf32> -> vector<128x1024xf32>
          %101 = arith.mulf %96, %100 : vector<128x1024xf32>
          %cst_76 = arith.constant dense<0.000000e+00> : vector<1024xf32>
          %102 = vector.multi_reduction <add>, %101, %cst_76 [0] : vector<128x1024xf32> to vector<1024xf32>
          %103 = vector.shape_cast %102 : vector<1024xf32> to vector<1x1024xf32>
          %cst_77 = arith.constant 3.200000e+01 : f32
          %104 = vector.broadcast %cst_77 : f32 to vector<1x1024xf32>
          %105 = arith.mulf %104, %94 : vector<1x1024xf32>
          %106 = arith.addf %98, %105 : vector<1x1024xf32>
          %cst_78 = arith.constant 2.000000e+00 : f32
          %107 = vector.broadcast %cst_78 : f32 to vector<1x1024xf32>
          %108 = arith.mulf %107, %94 : vector<1x1024xf32>
          %109 = arith.mulf %108, %98 : vector<1x1024xf32>
          %110 = arith.addf %103, %109 : vector<1x1024xf32>
          %111 = arith.mulf %94, %94 : vector<1x1024xf32>
          %cst_79 = arith.constant 3.200000e+01 : f32
          %112 = vector.broadcast %cst_79 : f32 to vector<1x1024xf32>
          %113 = arith.mulf %112, %111 : vector<1x1024xf32>
          %114 = arith.addf %110, %113 : vector<1x1024xf32>
          %c0_80 = arith.constant 0 : index
          %c0_81 = arith.constant 0 : index
          %115 = vector.load %arg30[%c0_80, %c0_81] : memref<1x64xf32, #tpu.memory_space<vmem>>, vector<1x64xf32>
          %116 = arith.mulf %92, %115 : vector<1x64xf32>
          %c0_82 = arith.constant 0 : index
          %c0_83 = arith.constant 0 : index
          %117 = vector.load %arg31[%c0_82, %c0_83] : memref<1x64xf32, #tpu.memory_space<vmem>>, vector<1x64xf32>
          %118 = arith.addf %116, %117 : vector<1x64xf32>
          %cst_84 = arith.constant 0.000000e+00 : f32
          %119 = vector.broadcast %cst_84 : f32 to vector<1x64xf32>
          %120 = arith.maximumf %118, %119 : vector<1x64xf32>
          %121 = arith.truncf %120 : vector<1x64xf32> to vector<1x64xbf16>
          %c0_85 = arith.constant 0 : index
          %c0_86 = arith.constant 0 : index
          %122 = vector.load %arg8[%c0_85, %c0_86] : memref<64x128xbf16, #tpu.memory_space<vmem>>, vector<64x128xbf16>
          %cst_87 = arith.constant dense<0.000000e+00> : vector<1x128xf32>
          %123 = tpu.matmul %121, %122, %cst_87 {dimension_numbers = #tpu.dot_dimension_numbers<[1], [0], [0], [1], [0, 0, 1, 1], [], []>} : vector<1x64xbf16>, vector<64x128xbf16>, vector<1x128xf32> -> vector<1x128xf32>
          %124 = arith.addf %123, %93 : vector<1x128xf32>
          %125 = tpu.concatenate %124, %93 in 0 : vector<1x128xf32>, vector<1x128xf32> -> vector<2x128xf32>
          %c0_88 = arith.constant 0 : index
          %c0_89 = arith.constant 0 : index
          %126 = vector.load %arg34[%c0_88, %c0_89] : memref<1x128xf32, #tpu.memory_space<vmem>>, vector<1x128xf32>
          %127 = vector.broadcast %126 : vector<1x128xf32> to vector<2x128xf32>
          %128 = arith.mulf %125, %127 : vector<2x128xf32>
          %c0_90 = arith.constant 0 : index
          %c0_91 = arith.constant 0 : index
          %129 = vector.load %arg35[%c0_90, %c0_91] : memref<1x128xf32, #tpu.memory_space<vmem>>, vector<1x128xf32>
          %130 = vector.broadcast %129 : vector<1x128xf32> to vector<2x128xf32>
          %131 = arith.addf %128, %130 : vector<2x128xf32>
          %cst_92 = arith.constant 0.000000e+00 : f32
          %132 = vector.broadcast %cst_92 : f32 to vector<2x128xf32>
          %133 = arith.maximumf %131, %132 : vector<2x128xf32>
          %134 = arith.truncf %133 : vector<2x128xf32> to vector<2x128xbf16>
          %c0_93 = arith.constant 0 : index
          %c0_94 = arith.constant 0 : index
          %135 = vector.load %arg12[%c0_93, %c0_94] : memref<128x1024xbf16, #tpu.memory_space<vmem>>, vector<128x1024xbf16>
          %cst_95 = arith.constant dense<0.000000e+00> : vector<2x1024xf32>
          %136 = tpu.matmul %134, %135, %cst_95 {dimension_numbers = #tpu.dot_dimension_numbers<[1], [0], [0], [1], [0, 0, 1, 1], [], []>} : vector<2x128xbf16>, vector<128x1024xbf16>, vector<2x1024xf32> -> vector<2x1024xf32>
          %137 = vector.broadcast %94 : vector<1x1024xf32> to vector<2x1024xf32>
          %138 = arith.addf %136, %137 : vector<2x1024xf32>
          %cst_96 = arith.constant dense<0.000000e+00> : vector<1024xf32>
          %139 = vector.multi_reduction <add>, %138, %cst_96 [0] : vector<2x1024xf32> to vector<1024xf32>
          %140 = vector.shape_cast %139 : vector<1024xf32> to vector<1x1024xf32>
          %141 = arith.addf %140, %94 : vector<1x1024xf32>
          %cst_97 = arith.constant 4.000000e+00 : f32
          %142 = vector.broadcast %cst_97 : f32 to vector<1x1024xf32>
          %143 = arith.mulf %142, %141 : vector<1x1024xf32>
          %144 = arith.addf %106, %143 : vector<1x1024xf32>
          %145 = arith.mulf %138, %138 : vector<2x1024xf32>
          %cst_98 = arith.constant dense<0.000000e+00> : vector<1024xf32>
          %146 = vector.multi_reduction <add>, %145, %cst_98 [0] : vector<2x1024xf32> to vector<1024xf32>
          %147 = vector.shape_cast %146 : vector<1024xf32> to vector<1x1024xf32>
          %148 = arith.mulf %94, %94 : vector<1x1024xf32>
          %149 = arith.addf %147, %148 : vector<1x1024xf32>
          %cst_99 = arith.constant 4.000000e+00 : f32
          %150 = vector.broadcast %cst_99 : f32 to vector<1x1024xf32>
          %151 = arith.mulf %150, %149 : vector<1x1024xf32>
          %152 = arith.addf %114, %151 : vector<1x1024xf32>
          %c0_100 = arith.constant 0 : index
          %c0_101 = arith.constant 0 : index
          %153 = vector.load %arg14[%c0_100, %c0_101] : memref<1x1024xf32, #tpu.memory_space<vmem>>, vector<1x1024xf32>
          %c0_102 = arith.constant 0 : index
          %c0_103 = arith.constant 0 : index
          %154 = vector.load %arg15[%c0_102, %c0_103] : memref<1x1024xf32, #tpu.memory_space<vmem>>, vector<1x1024xf32>
          %cst_104 = arith.constant 0.0227272734 : f32
          %155 = vector.broadcast %cst_104 : f32 to vector<1x1024xf32>
          %156 = arith.mulf %144, %155 : vector<1x1024xf32>
          %cst_105 = arith.constant 0.0227272734 : f32
          %157 = vector.broadcast %cst_105 : f32 to vector<1x1024xf32>
          %158 = arith.mulf %152, %157 : vector<1x1024xf32>
          %159 = arith.mulf %156, %156 : vector<1x1024xf32>
          %160 = arith.subf %158, %159 : vector<1x1024xf32>
          %cst_106 = arith.constant 9.99999974E-6 : f32
          %161 = vector.broadcast %cst_106 : f32 to vector<1x1024xf32>
          %162 = arith.addf %160, %161 : vector<1x1024xf32>
          %163 = math.rsqrt %162 : vector<1x1024xf32>
          %164 = arith.mulf %163, %153 : vector<1x1024xf32>
          %165 = arith.mulf %156, %164 : vector<1x1024xf32>
          %166 = arith.subf %154, %165 : vector<1x1024xf32>
          %c0_107 = arith.constant 0 : index
          %c0_108 = arith.constant 0 : index
          %167 = vector.load %arg38[%c0_107, %c0_108] : memref<2x1024xf32, #tpu.memory_space<vmem>>, vector<2x1024xf32>
          %cst_109 = arith.constant dense<0xFF800000> : vector<1024xf32>
          %168 = vector.multi_reduction <maximumf>, %138, %cst_109 [0] : vector<2x1024xf32> to vector<1024xf32>
          %169 = vector.shape_cast %168 : vector<1024xf32> to vector<1x1024xf32>
          %170 = vector.broadcast %169 : vector<1x1024xf32> to vector<2x1024xf32>
          %171 = arith.maximumf %167, %170 : vector<2x1024xf32>
          %172 = vector.broadcast %94 : vector<1x1024xf32> to vector<2x1024xf32>
          %173 = arith.maximumf %171, %172 : vector<2x1024xf32>
          %174 = vector.broadcast %164 : vector<1x1024xf32> to vector<2x1024xf32>
          %175 = arith.mulf %173, %174 : vector<2x1024xf32>
          %176 = vector.broadcast %166 : vector<1x1024xf32> to vector<2x1024xf32>
          %177 = arith.addf %175, %176 : vector<2x1024xf32>
          %cst_110 = arith.constant 0.000000e+00 : f32
          %178 = vector.broadcast %cst_110 : f32 to vector<2x1024xf32>
          %179 = arith.maximumf %177, %178 : vector<2x1024xf32>
          %180 = arith.truncf %179 : vector<2x1024xf32> to vector<2x1024xbf16>
          %c0_111 = arith.constant 0 : index
          %c0_112 = arith.constant 0 : index
          %181 = vector.load %arg16[%c0_111, %c0_112] : memref<1024x512xbf16, #tpu.memory_space<vmem>>, vector<1024x512xbf16>
          %cst_113 = arith.constant dense<0.000000e+00> : vector<2x512xf32>
          %182 = tpu.matmul %180, %181, %cst_113 {dimension_numbers = #tpu.dot_dimension_numbers<[1], [0], [0], [1], [0, 0, 1, 1], [], []>} : vector<2x1024xbf16>, vector<1024x512xbf16>, vector<2x512xf32> -> vector<2x512xf32>
          %c0_114 = arith.constant 0 : index
          %c0_115 = arith.constant 0 : index
          %183 = vector.load %arg17[%c0_114, %c0_115] : memref<1x512xf32, #tpu.memory_space<vmem>>, vector<1x512xf32>
          %184 = vector.broadcast %183 : vector<1x512xf32> to vector<2x512xf32>
          %185 = arith.addf %182, %184 : vector<2x512xf32>
          %c0_116 = arith.constant 0 : index
          %c0_117 = arith.constant 0 : index
          %186 = vector.load %arg18[%c0_116, %c0_117] : memref<1x512xf32, #tpu.memory_space<vmem>>, vector<1x512xf32>
          %c0_118 = arith.constant 0 : index
          %c0_119 = arith.constant 0 : index
          %187 = vector.load %arg19[%c0_118, %c0_119] : memref<1x512xf32, #tpu.memory_space<vmem>>, vector<1x512xf32>
          %cst_120 = arith.constant dense<0.000000e+00> : vector<512xf32>
          %188 = vector.multi_reduction <add>, %185, %cst_120 [0] : vector<2x512xf32> to vector<512xf32>
          %189 = vector.shape_cast %188 : vector<512xf32> to vector<1x512xf32>
          %cst_121 = arith.constant 2.000000e+00 : f32
          %190 = vector.broadcast %cst_121 : f32 to vector<1x512xf32>
          %191 = arith.divf %189, %190 : vector<1x512xf32>
          %192 = arith.mulf %185, %185 : vector<2x512xf32>
          %cst_122 = arith.constant dense<0.000000e+00> : vector<512xf32>
          %193 = vector.multi_reduction <add>, %192, %cst_122 [0] : vector<2x512xf32> to vector<512xf32>
          %194 = vector.shape_cast %193 : vector<512xf32> to vector<1x512xf32>
          %cst_123 = arith.constant 2.000000e+00 : f32
          %195 = vector.broadcast %cst_123 : f32 to vector<1x512xf32>
          %196 = arith.divf %194, %195 : vector<1x512xf32>
          %197 = arith.mulf %191, %191 : vector<1x512xf32>
          %198 = arith.subf %196, %197 : vector<1x512xf32>
          %cst_124 = arith.constant 9.99999974E-6 : f32
          %199 = vector.broadcast %cst_124 : f32 to vector<1x512xf32>
          %200 = arith.addf %198, %199 : vector<1x512xf32>
          %201 = math.rsqrt %200 : vector<1x512xf32>
          %202 = arith.mulf %201, %186 : vector<1x512xf32>
          %203 = arith.mulf %191, %202 : vector<1x512xf32>
          %204 = arith.subf %187, %203 : vector<1x512xf32>
          %205 = vector.broadcast %202 : vector<1x512xf32> to vector<2x512xf32>
          %206 = arith.mulf %185, %205 : vector<2x512xf32>
          %207 = vector.broadcast %204 : vector<1x512xf32> to vector<2x512xf32>
          %208 = arith.addf %206, %207 : vector<2x512xf32>
          %cst_125 = arith.constant 0.000000e+00 : f32
          %209 = vector.broadcast %cst_125 : f32 to vector<2x512xf32>
          %210 = arith.maximumf %208, %209 : vector<2x512xf32>
          %211 = arith.truncf %210 : vector<2x512xf32> to vector<2x512xbf16>
          %c0_126 = arith.constant 0 : index
          %c0_127 = arith.constant 0 : index
          %212 = vector.load %arg20[%c0_126, %c0_127] : memref<512x256xbf16, #tpu.memory_space<vmem>>, vector<512x256xbf16>
          %cst_128 = arith.constant dense<0.000000e+00> : vector<2x256xf32>
          %213 = tpu.matmul %211, %212, %cst_128 {dimension_numbers = #tpu.dot_dimension_numbers<[1], [0], [0], [1], [0, 0, 1, 1], [], []>} : vector<2x512xbf16>, vector<512x256xbf16>, vector<2x256xf32> -> vector<2x256xf32>
          %c0_129 = arith.constant 0 : index
          %c0_130 = arith.constant 0 : index
          %214 = vector.load %arg21[%c0_129, %c0_130] : memref<1x256xf32, #tpu.memory_space<vmem>>, vector<1x256xf32>
          %215 = vector.broadcast %214 : vector<1x256xf32> to vector<2x256xf32>
          %216 = arith.addf %213, %215 : vector<2x256xf32>
          %c0_131 = arith.constant 0 : index
          %c0_132 = arith.constant 0 : index
          %217 = vector.load %arg22[%c0_131, %c0_132] : memref<1x256xf32, #tpu.memory_space<vmem>>, vector<1x256xf32>
          %c0_133 = arith.constant 0 : index
          %c0_134 = arith.constant 0 : index
          %218 = vector.load %arg23[%c0_133, %c0_134] : memref<1x256xf32, #tpu.memory_space<vmem>>, vector<1x256xf32>
          %cst_135 = arith.constant dense<0.000000e+00> : vector<256xf32>
          %219 = vector.multi_reduction <add>, %216, %cst_135 [0] : vector<2x256xf32> to vector<256xf32>
          %220 = vector.shape_cast %219 : vector<256xf32> to vector<1x256xf32>
          %cst_136 = arith.constant 2.000000e+00 : f32
          %221 = vector.broadcast %cst_136 : f32 to vector<1x256xf32>
          %222 = arith.divf %220, %221 : vector<1x256xf32>
          %223 = arith.mulf %216, %216 : vector<2x256xf32>
          %cst_137 = arith.constant dense<0.000000e+00> : vector<256xf32>
          %224 = vector.multi_reduction <add>, %223, %cst_137 [0] : vector<2x256xf32> to vector<256xf32>
          %225 = vector.shape_cast %224 : vector<256xf32> to vector<1x256xf32>
          %cst_138 = arith.constant 2.000000e+00 : f32
          %226 = vector.broadcast %cst_138 : f32 to vector<1x256xf32>
          %227 = arith.divf %225, %226 : vector<1x256xf32>
          %228 = arith.mulf %222, %222 : vector<1x256xf32>
          %229 = arith.subf %227, %228 : vector<1x256xf32>
          %cst_139 = arith.constant 9.99999974E-6 : f32
          %230 = vector.broadcast %cst_139 : f32 to vector<1x256xf32>
          %231 = arith.addf %229, %230 : vector<1x256xf32>
          %232 = math.rsqrt %231 : vector<1x256xf32>
          %233 = arith.mulf %232, %217 : vector<1x256xf32>
          %234 = arith.mulf %222, %233 : vector<1x256xf32>
          %235 = arith.subf %218, %234 : vector<1x256xf32>
          %236 = vector.broadcast %233 : vector<1x256xf32> to vector<2x256xf32>
          %237 = arith.mulf %216, %236 : vector<2x256xf32>
          %238 = vector.broadcast %235 : vector<1x256xf32> to vector<2x256xf32>
          %239 = arith.addf %237, %238 : vector<2x256xf32>
          %cst_140 = arith.constant 0.000000e+00 : f32
          %240 = vector.broadcast %cst_140 : f32 to vector<2x256xf32>
          %241 = arith.maximumf %239, %240 : vector<2x256xf32>
          %c0_141 = arith.constant 0 : index
          %c0_142 = arith.constant 0 : index
          %242 = vector.load %arg24[%c0_141, %c0_142] : memref<256x9xf32, #tpu.memory_space<vmem>>, vector<256x9xf32>
          %cst_143 = arith.constant dense<0.000000e+00> : vector<2x9xf32>
          %243 = tpu.matmul %241, %242, %cst_143 {dimension_numbers = #tpu.dot_dimension_numbers<[1], [0], [0], [1], [0, 0, 1, 1], [], []>} : vector<2x256xf32>, vector<256x9xf32>, vector<2x9xf32> -> vector<2x9xf32>
          %c0_144 = arith.constant 0 : index
          %c0_145 = arith.constant 0 : index
          %244 = vector.load %arg25[%c0_144, %c0_145] : memref<1x9xf32, #tpu.memory_space<vmem>>, vector<1x9xf32>
          %245 = vector.broadcast %244 : vector<1x9xf32> to vector<2x9xf32>
          %246 = arith.addf %243, %245 : vector<2x9xf32>
          %c0_146 = arith.constant 0 : index
          %c0_147 = arith.constant 0 : index
          %247 = vector.load %arg26[%c0_146, %c0_147] : memref<1x9xf32, #tpu.memory_space<vmem>>, vector<1x9xf32>
          %248 = vector.broadcast %247 : vector<1x9xf32> to vector<2x9xf32>
          %249 = arith.addf %246, %248 : vector<2x9xf32>
          %c0_148 = arith.constant 0 : index
          %c0_149 = arith.constant 0 : index
          %250 = vector.load %arg27[%c0_148, %c0_149] : memref<2x9xf32, #tpu.memory_space<vmem>>, vector<2x9xf32>
          tpu.vector_store %arg27[%c0_148, %c0_149], %249 {strides = array<i32>} : memref<2x9xf32, #tpu.memory_space<vmem>>, vector<2x9xf32>,
        } else {
        }
      } else {
      }
    } else {
    }
    return
  }
  func.func @transform_0(%arg0: i32, %arg1: i32, %arg2: i32) -> (i32, i32) {
    %c1_i32 = arith.constant 1 : i32
    %0 = arith.muli %arg1, %c1_i32 : i32
    %1 = arith.addi %0, %arg2 : i32
    %c0_i32 = arith.constant 0 : i32
    %c0_i32_0 = arith.constant 0 : i32
    return %1, %c0_i32 : i32, i32
  }
  func.func @transform_1(%arg0: i32, %arg1: i32, %arg2: i32) -> (i32, i32) {
    %c0_i32 = arith.constant 0 : i32
    %c0_i32_0 = arith.constant 0 : i32
    %c0_i32_1 = arith.constant 0 : i32
    return %c0_i32, %c0_i32_0 : i32, i32
  }
  func.func @transform_2(%arg0: i32, %arg1: i32, %arg2: i32) -> (i32, i32) {
    %c0_i32 = arith.constant 0 : i32
    %c0_i32_0 = arith.constant 0 : i32
    %c0_i32_1 = arith.constant 0 : i32
    return %c0_i32, %c0_i32_0 : i32, i32
  }
  func.func @transform_3(%arg0: i32, %arg1: i32, %arg2: i32) -> (i32, i32) {
    %c0_i32 = arith.constant 0 : i32
    %c0_i32_0 = arith.constant 0 : i32
    %c0_i32_1 = arith.constant 0 : i32
    return %c0_i32, %c0_i32_0 : i32, i32
  }
  func.func @transform_4(%arg0: i32, %arg1: i32, %arg2: i32) -> (i32, i32) {
    %c0_i32 = arith.constant 0 : i32
    %c0_i32_0 = arith.constant 0 : i32
    %c0_i32_1 = arith.constant 0 : i32
    return %c0_i32, %c0_i32_0 : i32, i32
  }
  func.func @transform_5(%arg0: i32, %arg1: i32, %arg2: i32) -> (i32, i32) {
    %c0_i32 = arith.constant 0 : i32
    %c0_i32_0 = arith.constant 0 : i32
    %c0_i32_1 = arith.constant 0 : i32
    return %c0_i32, %c0_i32_0 : i32, i32
  }
  func.func @transform_6(%arg0: i32, %arg1: i32, %arg2: i32) -> (i32, i32) {
    %c0_i32 = arith.constant 0 : i32
    %c0_i32_0 = arith.constant 0 : i32
    %c0_i32_1 = arith.constant 0 : i32
    return %c0_i32, %c0_i32_0 : i32, i32
  }
  func.func @transform_7(%arg0: i32, %arg1: i32, %arg2: i32) -> (i32, i32) {
    %c0_i32 = arith.constant 0 : i32
    %c0_i32_0 = arith.constant 0 : i32
    %c0_i32_1 = arith.constant 0 : i32
    return %c0_i32, %c0_i32_0 : i32, i32
  }
  func.func @transform_8(%arg0: i32, %arg1: i32, %arg2: i32) -> (i32, i32) {
    %c0_i32 = arith.constant 0 : i32
    %c0_i32_0 = arith.constant 0 : i32
    %c0_i32_1 = arith.constant 0 : i32
    return %c0_i32, %c0_i32_0 : i32, i32
  }
  func.func @transform_9(%arg0: i32, %arg1: i32, %arg2: i32) -> (i32, i32) {
    %c0_i32 = arith.constant 0 : i32
    %c0_i32_0 = arith.constant 0 : i32
    %c0_i32_1 = arith.constant 0 : i32
    return %c0_i32, %c0_i32_0 : i32, i32
  }
  func.func @transform_10(%arg0: i32, %arg1: i32, %arg2: i32) -> (i32, i32) {
    %c0_i32 = arith.constant 0 : i32
    %c0_i32_0 = arith.constant 0 : i32
    %c0_i32_1 = arith.constant 0 : i32
    return %c0_i32, %c0_i32_0 : i32, i32
  }
  func.func @transform_11(%arg0: i32, %arg1: i32, %arg2: i32) -> (i32, i32) {
    %c0_i32 = arith.constant 0 : i32
    %c0_i32_0 = arith.constant 0 : i32
    %c0_i32_1 = arith.constant 0 : i32
    return %c0_i32, %c0_i32_0 : i32, i32
  }
  func.func @transform_12(%arg0: i32, %arg1: i32, %arg2: i32) -> (i32, i32) {
    %c0_i32 = arith.constant 0 : i32
    %c0_i32_0 = arith.constant 0 : i32
    %c0_i32_1 = arith.constant 0 : i32
    return %c0_i32, %c0_i32_0 : i32, i32
  }
  func.func @transform_13(%arg0: i32, %arg1: i32, %arg2: i32) -> (i32, i32) {
    %c0_i32 = arith.constant 0 : i32
    %c0_i32_0 = arith.constant 0 : i32
    %c0_i32_1 = arith.constant 0 : i32
    return %c0_i32, %c0_i32_0 : i32, i32
  }
  func.func @transform_14(%arg0: i32, %arg1: i32, %arg2: i32) -> (i32, i32) {
    %c0_i32 = arith.constant 0 : i32
    %c0_i32_0 = arith.constant 0 : i32
    %c0_i32_1 = arith.constant 0 : i32
    return %c0_i32, %c0_i32_0 : i32, i32
  }
  func.func @transform_15(%arg0: i32, %arg1: i32, %arg2: i32) -> (i32, i32) {
    %c0_i32 = arith.constant 0 : i32
    %c0_i32_0 = arith.constant 0 : i32
    %c0_i32_1 = arith.constant 0 : i32
    return %c0_i32, %c0_i32_0 : i32, i32
  }
  func.func @transform_16(%arg0: i32, %arg1: i32, %arg2: i32) -> (i32, i32) {
    %c0_i32 = arith.constant 0 : i32
    %c0_i32_0 = arith.constant 0 : i32
    %c0_i32_1 = arith.constant 0 : i32
    return %c0_i32, %c0_i32_0 : i32, i32
  }
  func.func @transform_17(%arg0: i32, %arg1: i32, %arg2: i32) -> (i32, i32) {
    %c0_i32 = arith.constant 0 : i32
    %c0_i32_0 = arith.constant 0 : i32
    %c0_i32_1 = arith.constant 0 : i32
    return %c0_i32, %c0_i32_0 : i32, i32
  }
  func.func @transform_18(%arg0: i32, %arg1: i32, %arg2: i32) -> (i32, i32) {
    %c0_i32 = arith.constant 0 : i32
    %c0_i32_0 = arith.constant 0 : i32
    %c0_i32_1 = arith.constant 0 : i32
    return %c0_i32, %c0_i32_0 : i32, i32
  }
  func.func @transform_19(%arg0: i32, %arg1: i32, %arg2: i32) -> (i32, i32) {
    %c0_i32 = arith.constant 0 : i32
    %c0_i32_0 = arith.constant 0 : i32
    %c0_i32_1 = arith.constant 0 : i32
    return %c0_i32, %c0_i32_0 : i32, i32
  }
  func.func @transform_20(%arg0: i32, %arg1: i32, %arg2: i32) -> (i32, i32) {
    %c0_i32 = arith.constant 0 : i32
    %c0_i32_0 = arith.constant 0 : i32
    %c0_i32_1 = arith.constant 0 : i32
    return %c0_i32, %c0_i32_0 : i32, i32
  }
  func.func @transform_21(%arg0: i32, %arg1: i32, %arg2: i32) -> (i32, i32) {
    %c0_i32 = arith.constant 0 : i32
    %c0_i32_0 = arith.constant 0 : i32
    %c0_i32_1 = arith.constant 0 : i32
    return %c0_i32, %c0_i32_0 : i32, i32
  }
  func.func @transform_22(%arg0: i32, %arg1: i32, %arg2: i32) -> (i32, i32) {
    %c0_i32 = arith.constant 0 : i32
    %c0_i32_0 = arith.constant 0 : i32
    %c0_i32_1 = arith.constant 0 : i32
    return %c0_i32, %c0_i32_0 : i32, i32
  }
  func.func @transform_23(%arg0: i32, %arg1: i32, %arg2: i32) -> (i32, i32) {
    %c0_i32 = arith.constant 0 : i32
    %c0_i32_0 = arith.constant 0 : i32
    %c0_i32_1 = arith.constant 0 : i32
    return %c0_i32, %c0_i32_0 : i32, i32
  }
  func.func @transform_24(%arg0: i32, %arg1: i32, %arg2: i32) -> (i32, i32) {
    %c0_i32 = arith.constant 0 : i32
    %c0_i32_0 = arith.constant 0 : i32
    %c0_i32_1 = arith.constant 0 : i32
    return %c0_i32, %c0_i32_0 : i32, i32
  }
}

</mosaic_0001>

<bundles_post_ra>
// kernel: tpu_custom_call.1
= control target key start
LH: loop header
LB: loop body
LE: loop exit
PB: predicated region body
PF: predicated region fallthrough
CT: control target
= control target key end

     0   :  { %s11914_s0 = inlined_call_operand.vmem [shape: f32[32,3], index: 0, kind: input, shape index: {}]   ;;  %s11915_s1 = inlined_call_operand.vmem [shape: f32[3,64], index: 1, kind: input, shape index: {}]   ;;  %s11916_s2 = inlined_call_operand.vmem [shape: f32[1,64], index: 2, kind: input, shape index: {}]   ;;  %s11917_s3 = inlined_call_operand.vmem [shape: f32[1,64], index: 3, kind: input, shape index: {}]   ;;  %s11918_s4 = inlined_call_operand.vmem [shape: f32[1,64], index: 4, kind: input, shape index: {}]   ;;  %s11919_s5 = inlined_call_operand.vmem [shape: bf16[64,128], index: 5, kind: input, shape index: {}]   ;;  %s11920_s6 = inlined_call_operand.vmem [shape: f32[1,128], index: 6, kind: input, shape index: {}]   ;;  %s11921_s7 = inlined_call_operand.vmem [shape: f32[1,128], index: 7, kind: input, shape index: {}]   ;;  %s11922_s8 = inlined_call_operand.vmem [shape: f32[1,128], index: 8, kind: input, shape index: {}]   ;;  %s11923_s9 = inlined_call_operand.hbm [shape: bf16[128,1024], index: 9, kind: input, shape index: {}]   ;;  %s11924_s10 = inlined_call_operand.vmem [shape: f32[1,1024], index: 10, kind: input, shape index: {}]   ;;  %s11925_s11 = inlined_call_operand.vmem [shape: f32[1,1024], index: 11, kind: input, shape index: {}]   ;;  %s11926_s12 = inlined_call_operand.vmem [shape: f32[1,1024], index: 12, kind: input, shape index: {}]   ;;  %s11927_s13 = inlined_call_operand.hbm [shape: bf16[1024,512], index: 13, kind: input, shape index: {}]   ;;  %s11928_s14 = inlined_call_operand.vmem [shape: f32[1,512], index: 14, kind: input, shape index: {}]   ;;  %s11929_s15 = inlined_call_operand.vmem [shape: f32[1,512], index: 15, kind: input, shape index: {}]   ;;  %s11930_s16 = inlined_call_operand.vmem [shape: f32[1,512], index: 16, kind: input, shape index: {}]   ;;  %s11931_s17 = inlined_call_operand.hbm [shape: bf16[512,256], index: 17, kind: input, shape index: {}]   ;;  %s11932_s18 = inlined_call_operand.vmem [shape: f32[1,256], index: 18, kind: input, shape index: {}]   ;;  %s11933_s19 = inlined_call_operand.vmem [shape: f32[1,256], index: 19, kind: input, shape index: {}]   ;;  %s11934_s20 = inlined_call_operand.vmem [shape: f32[1,256], index: 20, kind: input, shape index: {}]   ;;  %s11935_s21 = inlined_call_operand.vmem [shape: f32[256,9], index: 21, kind: input, shape index: {}]   ;;  %s11936_s22 = inlined_call_operand.vmem [shape: f32[1,9], index: 22, kind: input, shape index: {}]   ;;  %s11937_s23 = inlined_call_operand.vmem [shape: f32[1,9], index: 23, kind: input, shape index: {}]   ;;  %s11938_s24 = inlined_call_operand.hbm [shape: f32[2,9], index: 24, kind: output, shape index: {}]  }
   0x1   :  { %11995 = sst [smem:[#allocation55_spill]] %s11914_s0 }
   0x2   :  { %11996 = sst [smem:[#allocation56_spill]] %s11915_s1 }
   0x3   :  { %11997 = sst [smem:[#allocation57_spill]] %s11916_s2 }
   0x4   :  { %11998 = sst [smem:[#allocation58_spill]] %s11917_s3 }
   0x5   :  { %11999 = sst [smem:[#allocation59_spill]] %s11918_s4 }
   0x6   :  { %12000 = sst [smem:[#allocation60_spill]] %s11919_s5 }
   0x7   :  { %12001 = sst [smem:[#allocation61_spill]] %s11920_s6 }
   0x8   :  { %12002 = sst [smem:[#allocation62_spill]] %s11921_s7 }
   0x9   :  { %12003 = sst [smem:[#allocation63_spill]] %s11922_s8 }
   0xa   :  { %12004 = sst [smem:[#allocation64_spill]] %s11927_s13 }
   0xb   :  { %12005 = sst [smem:[#allocation65_spill]] %s11932_s18 }
   0xc   :  { %12006 = sst [smem:[#allocation66_spill]] %s11933_s19 }
   0xd   :  { %12007 = sst [smem:[#allocation67_spill]] %s11934_s20 }
   0xe   :  { %12008 = sst [smem:[#allocation68_spill]] %s11935_s21 }
   0xf   :  { %12009 = sst [smem:[#allocation69_spill]] %s11936_s22 }
  0x10   :  { %12010 = sst [smem:[#allocation70_spill]] %s11937_s23 }
  0x11   :  { %12011 = sst [smem:[#allocation71_spill]] %s11938_s24 }
  0x12   :  { %29 = vsyncpa [#allocation14], 0 }
  0x13   :  { %30 = vsyncpa [#allocation17], 0 }
  0x14   :  { %31 = vsyncpa [#allocation15], 0  ;;  %s10258_s5 = smov 0   ;;  %s10260_s26 = smov 0  }
  0x15   :  { %s10262_s27 = smov 0   ;;  %s10264_s28 = smov 0  }
  0x16   :  { %s10266_s6 = smov 0  }
  0x17 LB: > { %12012 = sst [smem:[#allocation23_spill]] %s10109_s6  ;;  %s10111_s2 = smov [#allocation16]   ;;  %s10109_s6 = sphi %s10266_s6, %s37_s6   ;;  %s10105_s28 = sphi %s10264_s28, %s12145_s28   ;;  %s10101_s27 = sphi %s10262_s27, %s12144_s27   ;;  %s10097_s26 = sphi %s10260_s26, %s12143_s26   ;;  %s10093_s5 = sphi %s10258_s5, %s12142_s5  }
  0x18   : > { %s651_s29 = sshll.u32 %s10111_s2, 4  ;;  %s11942_s0 = sadd.s32 4294967295, %s10109_s6   ;;  %s652_s29 = int_to_ptr.vmem [resolvable:$true] %s651_s29 }
  0x19   : > { %p8183_p0 = scmp.ge.s32.totalorder %s10109_s6, 1  ;;  %p593_p1 = scmp.lt.s32.totalorder %s10109_s6, 7 }
  0x1a   : > { %p10288_p2 = scmp.eq.s32.totalorder %s11942_s0, 0  ;;  %s12016_s13 = sld [smem:[#allocation64_spill]] }
  0x1b   : > { %p10292_p3 = pnand %p8183_p0, %p593_p1 }
  0x1c   : > { %s12013_s7 = scalar_select %p10288_p2, 1, 0 }
  0x1d   : > { %s12014_s30 = scalar_select %p10292_p3, 1, 0 }
  0x1e   : > { %p9278_p4 = pneg %p10292_p3 }
  0x20   : > { %p10300_p5 = pnand %p10288_p2, %p9278_p4  ;;  %s9949_s4 = scalar_lea.hbm %s12016_s13, 32768 }
  0x21   : > { %p9950_p6 = scmp.ne.s32.totalorder %s12016_s13, %s9949_s4  ;;  %p9956_p10 = scmp.lt.u32.totalorder %s9949_s4, %s12016_s13 }
  0x22   : > { %p10312_p7 = pneg %p10300_p5 }
  0x24   : > { %p9952_p8 = pnand %p10312_p7, %p9950_p6 }
  0x26   : > { %p9953_p9 = pneg %p9952_p8 }
  0x28   : > { %p9958_p11 = pnand %p9956_p10, %p9953_p9 }
  0x2a   : > { %9961 = shalt.err (!%p9958_p11)
}
  0x2b   : > { %s9962_s25 = scalar_lea.vmem %s652_s29, 32768  ;;  %p9970_p1 = scmp.lt.s32.totalorder %s652_s29, %s652_s29 }
  0x2c   : > { %p9963_p12 = scmp.ne.s32.totalorder %s652_s29, %s9962_s25  ;;  %p9971_p4 = scmp.lt.s32.totalorder %s9962_s25, %s9962_s25 }
  0x2e   : > { %p9965_p13 = pnand %p9963_p12, %p10312_p7  ;;  %p9972_p2 = por %p9971_p4, %p9970_p1 }
  0x30   : > { %p9966_p0 = pneg %p9965_p13 }
  0x32   : > { %p9973_p3 = pnand %p9972_p2, %p9966_p0 }
  0x34   : > { %9976 = shalt.err (!%p9973_p3)
}
  0x35   : > { %s10112_s8 = smov 256   ;;  %s10113_s24 = smov 16  }
  0x36   : > { %9284 = dma.hbm_to_vmem [thread:$0]  (!%p10300_p5), %s12016_s13, 32768, %s652_s29, [#allocation17], %s10112_s8, %s10112_s8, %s10113_s24  }
  0x37   : > { %s52_s1 = sadd.s32 1, %s10101_s27  ;;  %s56_s2 = sadd.s32 1, %s10105_s28 }
  0x38   : > { %p54_p6 = scmp.ge.s32.totalorder %s52_s1, 2  ;;  %s10114_s23 = smov [#allocation13]  }
  0x39   : > { %s629_s25 = sshll.u32 %s10114_s23, 4  ;;  %s9977_s19 = scalar_lea.hbm %s11923_s9, 8192  ;;  %s630_s25 = int_to_ptr.vmem [resolvable:$true] %s629_s25 }
  0x3a   : > { %s12147_s1 = smov (%p54_p6, %s52_s1), 0  ;;  %s12149_s2 = smov (!%p54_p6, %s56_s2), %s10105_s28 }
  0x3b   : > { %p9978_p3 = scmp.ne.s32.totalorder %s11923_s9, %s9977_s19  ;;  %p9984_p10 = scmp.lt.u32.totalorder %s9977_s19, %s11923_s9 }
  0x3d   : > { %p9980_p8 = pnand %p9978_p3, %p10312_p7 }
  0x3f   : > { %p9981_p9 = pneg %p9980_p8 }
  0x41   : > { %p9986_p11 = pnand %p9984_p10, %p9981_p9 }
  0x43   : > { %9989 = shalt.err (!%p9986_p11)
}
  0x44   : > { %s9990_s23 = scalar_lea.vmem %s630_s25, 8192  ;;  %p9998_p1 = scmp.lt.s32.totalorder %s630_s25, %s630_s25 }
  0x45   : > { %p9991_p12 = scmp.ne.s32.totalorder %s630_s25, %s9990_s23  ;;  %p9999_p4 = scmp.lt.s32.totalorder %s9990_s23, %s9990_s23 }
  0x47   : > { %p9993_p13 = pnand %p9991_p12, %p10312_p7  ;;  %p10000_p6 = por %p9999_p4, %p9998_p1 }
  0x49   : > { %p9994_p0 = pneg %p9993_p13 }
  0x4b   : > { %p10001_p2 = pnand %p10000_p6, %p9994_p0 }
  0x4d   : > { %10004 = shalt.err (!%p10001_p2)
}
  0x4e   : > { %s10115_s18 = smov 512   ;;  %s10116_s20 = smov 32  }
  0x4f   : > { %9281 = dma.hbm_to_vmem [thread:$0]  (!%p10300_p5), %s11923_s9, 8192, %s630_s25, [#allocation14], %s10115_s18, %s10115_s18, %s10116_s20  }
  0x50   : > { %p12018_p3 = scmp.ge.s32.totalorder %s12149_s2, 3  ;;  %s10117_s22 = smov [#allocation18]  }
  0x51   : > { %s673_s24 = sshll.u32 %s10117_s22, 4  ;;  %s10005_s29 = scalar_lea.hbm %s11931_s17, 8192  ;;  %s674_s24 = int_to_ptr.vmem [resolvable:$true] %s673_s24 }
  0x52   : > { %s12151_s2 = smov (%p12018_p3, %s12149_s2), 0  ;;  %p10006_p2 = scmp.ne.s32.totalorder %s11931_s17, %s10005_s29 }
  0x53   : > { %p10012_p10 = scmp.lt.u32.totalorder %s10005_s29, %s11931_s17 }
  0x54   : > { %p10008_p8 = pnand %p10006_p2, %p10312_p7 }
  0x56   : > { %p10009_p9 = pneg %p10008_p8 }
  0x58   : > { %p10014_p11 = pnand %p10012_p10, %p10009_p9 }
  0x5a   : > { %10017 = shalt.err (!%p10014_p11)
}
  0x5b   : > { %s10018_s25 = scalar_lea.vmem %s674_s24, 8192  ;;  %p10026_p1 = scmp.lt.s32.totalorder %s674_s24, %s674_s24 }
  0x5c   : > { %p10019_p12 = scmp.ne.s32.totalorder %s674_s24, %s10018_s25  ;;  %p10027_p4 = scmp.lt.s32.totalorder %s10018_s25, %s10018_s25 }
  0x5e   : > { %p10021_p13 = pnand %p10019_p12, %p10312_p7  ;;  %p10028_p6 = por %p10027_p4, %p10026_p1 }
  0x60   : > { %p10022_p0 = pneg %p10021_p13 }
  0x62   : > { %p10029_p3 = pnand %p10028_p6, %p10022_p0 }
  0x64   : > { %10032 = shalt.err (!%p10029_p3)
}
  0x65   : > { %s10118_s18 = smov 128   ;;  %s10119_s20 = smov 8  }
  0x66   : > { %9287 = dma.hbm_to_vmem [thread:$0]  (!%p10300_p5), %s11931_s17, 8192, %s674_s24, [#allocation17], %s10118_s18, %s10118_s18, %s10119_s20  }
  0x67   : > { %p12019_p2 = scmp.ne.s32.totalorder %s12014_s30, 0 }
  0x68   : > { %p12020_p8 = scmp.ne.s32.totalorder (!%p12019_p2), %s12013_s7, 0 }
  0x69   : > { %718 = sbr.rel (%p12019_p2) target bundleno = 3270 (0xcc6), region = 116 }
  0x70   : > { %10080 = dma.done.wait (%p12020_p8), [#allocation14], 8192  }
  0x71   : > { %10082 = vsyncadd (%p12020_p8), [#allocation14], 4294959104 }
  0x72   : > { %10084 = dma.done.wait (%p12020_p8), [#allocation17], 40960  }
  0x73   : > { %10086 = vsyncadd (%p12020_p8), [#allocation17], 4294926336  ;;  %s8192_s0 = sshll.u32 %s10093_s5, 1  ;;  %p797_p5 = scmp.eq.s32.totalorder %s10097_s26, 0 }
  0x74   : > { %p790_p7 = scmp.lt.s32.totalorder %s8192_s0, 3  ;;  %p798_p9 = scmp.eq.s32.totalorder %s10093_s5, 0 }
  0x75   : > { %s12021_s24 = sld [smem:[#allocation55_spill]] }
  0x76   : > { %s12153_s0 = smov (!%p790_p7, %s8192_s0), 3  ;;  %p799_p10 = pnand %p798_p9, %p797_p5 }
  0x77   : > { %s8193_s30 = sshll.u32 %s12153_s0, 3  ;;  %vm806_vm0 = vcmask (!%p799_p10), 516096   ;;  %v10120_v0 = vmov (!%p799_p10), 0.0   ;;  %v10121_v1 = vmov (!%p799_p10), -inf  }
  0x78   : > { %805 = sbr.rel (%p799_p10) target bundleno = 132 (0x84), region = 132  ;;  %807 = vst.msk [vmem:[#allocation2] sm:$0x1] (!%p799_p10), %vm806_vm0, %v10120_v0  ;;  %808 = vst.msk [vmem:[#allocation3] sm:$0x1] (!%p799_p10), %vm806_vm0, %v10120_v0 }
  0x79   : > { %809 = vst [vmem:[#allocation6] sm:$0x1] (!%p799_p10), %v10120_v0  ;;  %810 = vst [vmem:[#allocation7] sm:$0x1] (!%p799_p10), %v10120_v0 }
  0x7a   : > { %811 = vst [vmem:[#allocation10] sm:$0x1] (!%p799_p10), %v10120_v0  ;;  %812 = vst [vmem:[#allocation11] sm:$0xff] (!%p799_p10), %v10120_v0 }
  0x7b   : > { %s10390_s6 = scalar_lea.vmem %s12021_s24, %s8193_s30  ;;  %813 = vst [vmem:[#allocation11 + $0x8] sm:$0xff] (!%p799_p10), %v10120_v0  ;;  %814 = vst [vmem:[#allocation11 + $0x10] sm:$0xff] (!%p799_p10), %v10120_v0 }
  0x7c   : > { %815 = vst [vmem:[#allocation11 + $0x18] sm:$0xff] (!%p799_p10), %v10120_v0  ;;  %816 = vst [vmem:[#allocation11 + $0x20] sm:$0xff] (!%p799_p10), %v10120_v0 }
  0x7d   : > { %817 = vst [vmem:[#allocation11 + $0x28] sm:$0xff] (!%p799_p10), %v10120_v0  ;;  %818 = vst [vmem:[#allocation11 + $0x30] sm:$0xff] (!%p799_p10), %v10120_v0 }
  0x7e   : > { %819 = vst [vmem:[#allocation11 + $0x38] sm:$0xff] (!%p799_p10), %v10120_v0  ;;  %820 = vst [vmem:[#allocation11 + $0x40] sm:$0xff] (!%p799_p10), %v10120_v0 }
  0x7f   : > { %821 = vst [vmem:[#allocation11 + $0x48] sm:$0xff] %v10120_v0  ;;  %822 = vst [vmem:[#allocation11 + $0x50] sm:$0xff] %v10120_v0 }
  0x80   : > { %823 = vst [vmem:[#allocation11 + $0x58] sm:$0xff] %v10120_v0  ;;  %824 = vst [vmem:[#allocation11 + $0x60] sm:$0xff] %v10120_v0 }
  0x81   : > { %825 = vst [vmem:[#allocation11 + $0x68] sm:$0xff] %v10120_v0  ;;  %826 = vst [vmem:[#allocation11 + $0x70] sm:$0xff] %v10120_v0 }
  0x82   : > { %827 = vst [vmem:[#allocation11 + $0x78] sm:$0xff] %v10120_v0  ;;  %828 = vst [vmem:[#allocation12] sm:$0xff] %v10121_v1 }
  0x83   : > { %829 = vst [vmem:[#allocation12 + $0x8] sm:$0xff] %v10121_v1 }
  0x84 PF: > { %s12022_s29 = sld [smem:[#allocation56_spill]]  ;;  %vm847_vm1 = vcmask 1042432   ;;  %v830_v3 = vld [vmem:[%s10390_s6] sm:$0xff]  ;;  %vm840_vm2 = vcmask 23552   ;;  %v831_v4 = vld [vmem:[%s10390_s6 + $0x8] sm:$0xff]  ;;  %s12023_s21 = sld [smem:[#allocation57_spill]] }
  0x85   : > { %8755 = vmatprep.mubr.msk.f32.mxu0 %vm840_vm2, %v830_v3  ;;  %p8199_p11 = scmp.ne.s32.totalorder %s10097_s26, 0 }
  0x86   : > { %vm930_vm3 = vcmask (!%p8199_p11), 523264   ;;  %v929_v27 = vld [vmem:[#allocation2] sm:$0x1] (!%p8199_p11)  ;;  %v943_v30 = vld [vmem:[#allocation3] sm:$0x1] (!%p8199_p11)  ;;  %vm941_vm4 = vcmask (!%p8199_p11), 516096  }
  0x8a   : > { %v832_v2 = vld [vmem:[%s12022_s29] sm:$0x7] }
  0x8b   : > { %8753 = vmatprep.subr.msk.mxu0 %vm847_vm1, %v832_v2  ;;  %v8195_v5 = vld [vmem:[%s12023_s21] ss:$0 sm:$0xff] }
  0x8c   : > { %8754 = vmatpush3.msk.msra.mxu0 %vm847_vm1, %v832_v2 }
  0x8d   : > { %8756 = vmatmul.mubr.msk.f32.vlgmr.msra.gmra.mrb[0].mxu0 %vm840_vm2, %v831_v4 }
 0x15c   : > { %928 = sbr.rel (%p8199_p11) target bundleno = 376 (0x178), region = 136 }
 0x160   : > { %v8757_v6 = vpop.f32.mrb[0].mxu0 }
 0x161   : > { %v10400_v7 = vadd.f32 %v8757_v6, %v8195_v5  ;;  %v917_v8 = vpop.f32.mrb[1].mxu0 }
 0x162   : > { %v10402_v9 = vadd.f32 %v8195_v5, %v917_v8 }
 0x163   : > { %v945_v11 = vmul.f32 %v10400_v7, %v10400_v7  ;;  %v932_v13 = vsel %vm930_vm3, %v10400_v7, 0.0 }
 0x164   : > { %v944_v10 = vmul.f32 %v10402_v9, %v10402_v9  ;;  %v931_v12 = vsel %vm930_vm3, %v10402_v9, 0.0 }
 0x165   : > { %v933_v14 = vadd.f32 %v932_v13, %v931_v12  ;;  %v947_v16 = vsel %vm930_vm3, %v945_v11, 0.0 }
 0x166   : > { %v946_v15 = vsel %vm930_vm3, %v944_v10, 0.0 }
 0x167   : > { %v948_v17 = vadd.f32 %v947_v16, %v946_v15  ;;  %v934_v18 = vrot.slane %v933_v14, 4 }
 0x169   : > { %v949_v19 = vrot.slane %v948_v17, 4  ;;  %v935_v20 = vadd.f32 %v934_v18, %v933_v14 }
 0x16b   : > { %v950_v21 = vadd.f32 %v949_v19, %v948_v17  ;;  %v936_v22 = vrot.slane %v935_v20, 2 }
 0x16d   : > { %v951_v23 = vrot.slane %v950_v21, 2  ;;  %v937_v24 = vadd.f32 %v936_v22, %v935_v20 }
 0x16f   : > { %v952_v25 = vadd.f32 %v951_v23, %v950_v21  ;;  %v938_v26 = vrot.slane %v937_v24, 1 }
 0x171   : > { %v953_v28 = vrot.slane %v952_v25, 1  ;;  %v939_v29 = vadd.f32 %v938_v26, %v937_v24 }
 0x173   : > { %v954_v31 = vadd.f32 %v953_v28, %v952_v25  ;;  %v940_v32 = vadd.f32 %v939_v29, %v929_v27 }
 0x175   : > { %v955_v33 = vadd.f32 %v954_v31, %v943_v30  ;;  %942 = vst.msk [vmem:[#allocation2] sm:$0x1] %vm941_vm4, %v940_v32 }
 0x177   : > { %956 = vst.msk [vmem:[#allocation3] sm:$0x1] %vm941_vm4, %v955_v33 }
 0x178 PF: > { %p957_p12 = scmp.eq.s32.totalorder %s10097_s26, 1 }
 0x17a   : > { %p958_p13 = pnand %p957_p12, %p798_p9 }
 0x17b   : > { %s12024_s20 = sld [smem:[#allocation57_spill]] (!%p958_p13)  ;;  %s12025_s0 = sld [smem:[#allocation58_spill]] (!%p958_p13)  ;;  %vm983_vm5 = vcmask (!%p958_p13), 516096  }
 0x17c   : > { %963 = sbr.rel (%p958_p13) target bundleno = 416 (0x1a0), region = 140  ;;  %v965_v35 = vld [vmem:[#allocation2] sm:$0x1] (!%p958_p13)  ;;  %s12026_s22 = sld [smem:[#allocation59_spill]] (!%p958_p13) }
 0x17e   : > { %v968_v38 = vld [vmem:[#allocation3] sm:$0x1] (!%p958_p13) }
 0x181   : > { %v964_v34 = vld [vmem:[%s12024_s20] sm:$0x1] (!%p958_p13) }
 0x182   : > { %v966_v36 = vmul.f32 (!%p958_p13), 4.0, %v964_v34  ;;  %v969_v37 = vmul.f32 (!%p958_p13), %v964_v34, %v964_v34  ;;  %v972_v47 = vld [vmem:[%s12025_s0] sm:$0x1] (!%p958_p13) }
 0x183   : > { %v973_v50 = vld [vmem:[%s12026_s22] sm:$0x1] }
 0x184   : > { %v967_v39 = vadd.f32 %v966_v36, %v965_v35  ;;  %v970_v40 = vmul.f32 4.0, %v969_v37 }
 0x186   : > { %v971_v41 = vadd.f32 %v970_v40, %v968_v38  ;;  %v974_v42 = vmul.f32 0.027777778, %v967_v39 }
 0x188   : > { %v975_v43 = vmul.f32 0.027777778, %v971_v41  ;;  %v976_v44 = vmul.f32 %v974_v42, %v974_v42 }
 0x18a   : > { %v977_v45 = vsub.f32 %v975_v43, %v976_v44 }
 0x18c   : > { %v978_v46 = vadd.f32 1e-05, %v977_v45 }
 0x18e   : > { %9358 = vrsqrt.f32 %v978_v46 }
 0x198   : > { %v9359_v48 = vpop.eup %9358 }
 0x199   : > { %v980_v49 = vmul.f32 %v9359_v48, %v972_v47 }
 0x19b   : > { %984 = vst.msk [vmem:[#allocation4] sm:$0x1] %vm983_vm5, %v980_v49  ;;  %v981_v51 = vmul.f32 %v980_v49, %v974_v42 }
 0x19d   : > { %v982_v52 = vsub.f32 %v973_v50, %v981_v51 }
 0x19f   : > { %985 = vst.msk [vmem:[#allocation5] sm:$0x1] %vm983_vm5, %v982_v52 }
 0x1a0 PF: > { %p8201_p0 = scmp.lt.s32.totalorder %s10097_s26, 1 }
 0x1a1   : > { %s12027_s7 = sld [smem:[#allocation60_spill]] (!%p8201_p0)  ;;  %v10122_v54 = vmov (!%p8201_p0), 0.0   ;;  %vm10123_vm6 = vmmov (!%p8201_p0), 0   ;;  %vm1050_vm7 = vcmask (!%p8201_p0), 523264   ;;  %s12028_s19 = sld [smem:[#allocation61_spill]] (!%p8201_p0) }
 0x1a2   : > { %989 = sbr.rel (%p8201_p0) target bundleno = 3235 (0xca3), region = 144  ;;  %8758 = vmatprep.subr.bf16.mxu0 (!%p8201_p0), %v10122_v54  ;;  %8766 = vmatprep.mubr.msk.bf16.mxu0 (!%p8201_p0), %vm10123_vm6, %v10122_v54  ;;  %v8202_v56 = vld [vmem:[#allocation4] ss:$0 sm:$0xff] (!%p8201_p0)  ;;  %p8210_p1 = scmp.ne.s32.totalorder (!%p8201_p0), %s10097_s26, 1 }
 0x1a3   : > { %v997_v58 = vmul.f32 (!%p8201_p0), %v8202_v56, %v10402_v9  ;;  %v998_v59 = vmul.f32 (!%p8201_p0), %v8202_v56, %v10400_v7 }
 0x1a6   : > { %v8203_v57 = vld [vmem:[#allocation5] ss:$0 sm:$0xff] (!%p8201_p0) }
 0x1a7   : > { %v9360_v53 = vld [vmem:[%s12027_s7] sm:$0xff] (!%p8201_p0)   ;;  %v9361_v55 = vld [vmem:[%s12027_s7 + $0x8] sm:$0xff] (!%p8201_p0)   ;;  %v9362_v60 = vld [vmem:[%s12027_s7 + $0x10] sm:$0xff] (!%p8201_p0)   ;;  %v1006_v61 = vadd.f32 (!%p8201_p0), %v8203_v57, %v997_v58  ;;  %v1007_v62 = vadd.f32 (!%p8201_p0), %v8203_v57, %v998_v59 }
 0x1a8   : > { %8759 = vmatpush3.bf16.msra.mxu0 (!%p8201_p0), %v9360_v53  ;;  %v9363_v1 = vld [vmem:[%s12027_s7 + $0x18] sm:$0xff] (!%p8201_p0)   ;;  %v8204_v3 = vld [vmem:[%s12028_s19] ss:$0 sm:$0xff] (!%p8201_p0) }
 0x1a9   : > { %8760 = vmatprep.subr.bf16.mxu0 %v10122_v54  ;;  %v1008_v63 = vmax.f32 %v1006_v61, 0.0  ;;  %v1009_v0 = vmax.f32 %v1007_v62, 0.0  ;;  %v1098_v23 = vld [vmem:[#allocation6] sm:$0x1] (!%p8210_p1)  ;;  %v1108_v26 = vld [vmem:[#allocation7] sm:$0x1] (!%p8210_p1) }
 0x1ab   : > { %v1010_v2 = vpack.c.bf16 %v1009_v0, %v1008_v63 }
 0x1ac   : > { %8761 = vmatpush3.bf16.msra.mxu0 %v9361_v55 }
 0x1ad   : > { %8762 = vmatprep.subr.bf16.mxu0 %v10122_v54 }
 0x1b0   : > { %8763 = vmatpush3.bf16.msra.mxu0 %v9362_v60 }
 0x1b1   : > { %8764 = vmatprep.subr.bf16.mxu0 %v10122_v54 }
 0x1b4   : > { %8765 = vmatpush3.bf16.msra.mxu0 %v9363_v1 }
 0x1b7   : > { %8767 = vmatmul.mubr.msk.bf16.vlgmr.msra.gmra.mrb[0].mxu0 %vm1050_vm7, %v1010_v2 }
 0x287   : > { %1097 = sbr.rel (%p8210_p1) target bundleno = 674 (0x2a2), region = 148 }
 0x28a   : > { %v1088_v4 = vpop.f32.mrb[0].mxu0 }
 0x28b   : > { %v10442_v5 = vadd.f32 %v8204_v3, %v1088_v4  ;;  %v8768_v6 = vpop.f32.mrb[1].mxu0 }
 0x28c   : > { %v1091_v7 = vpop.f32.mrb[2].mxu0 }
 0x28d   : > { %v10444_v8 = vadd.f32 %v8204_v3, %v1091_v7  ;;  %v8769_v9 = vpop.f32.mrb[3].mxu0  ;;  %v1109_v11 = vmul.f32 (!%p8210_p1), %v10442_v5, %v10442_v5 }
 0x28f   : > { %v1099_v10 = vadd.f32 %v10444_v8, %v10442_v5  ;;  %v1110_v12 = vmul.f32 %v10444_v8, %v10444_v8 }
 0x291   : > { %v1100_v13 = vrot.slane %v1099_v10, 4  ;;  %v1111_v14 = vadd.f32 %v1110_v12, %v1109_v11 }
 0x293   : > { %v1101_v15 = vadd.f32 %v1100_v13, %v1099_v10  ;;  %v1112_v16 = vrot.slane %v1111_v14, 4 }
 0x295   : > { %v1102_v17 = vrot.slane %v1101_v15, 2  ;;  %v1113_v18 = vadd.f32 %v1112_v16, %v1111_v14 }
 0x297   : > { %v1103_v19 = vadd.f32 %v1102_v17, %v1101_v15  ;;  %v1114_v20 = vrot.slane %v1113_v18, 2 }
 0x299   : > { %v1104_v21 = vrot.slane %v1103_v19, 1  ;;  %v1115_v22 = vadd.f32 %v1114_v20, %v1113_v18 }
 0x29b   : > { %v1105_v24 = vadd.f32 %v1104_v21, %v1103_v19  ;;  %v1116_v25 = vrot.slane %v1115_v22, 1 }
 0x29d   : > { %v1106_v27 = vadd.f32 %v1105_v24, %v1098_v23  ;;  %v1117_v28 = vadd.f32 %v1116_v25, %v1115_v22 }
 0x29f   : > { %1107 = vst [vmem:[#allocation6] sm:$0x1] %v1106_v27  ;;  %v1118_v29 = vadd.f32 %v1117_v28, %v1108_v26 }
 0x2a1   : > { %1119 = vst [vmem:[#allocation7] sm:$0x1] %v1118_v29 }
 0x2a2 PF: > { %p1120_p4 = scmp.eq.s32.totalorder %s10097_s26, 2 }
 0x2a4   : > { %p1121_p6 = pnand %p1120_p4, %p798_p9 }
 0x2a5   : > { %s12029_s30 = sld [smem:[#allocation60_spill]] (!%p1121_p6)  ;;  %v10124_v31 = vmov (!%p1121_p6), 0.0   ;;  %vm10125_vm8 = vmmov (!%p1121_p6), 0   ;;  %s12030_s7 = sld [smem:[#allocation57_spill]] (!%p1121_p6)  ;;  %v1129_v34 = vld [vmem:[#allocation4] sm:$0x1] (!%p1121_p6) }
 0x2a6   : > { %1126 = sbr.rel (%p1121_p6) target bundleno = 945 (0x3b1), region = 152  ;;  %8770 = vmatprep.subr.bf16.mxu0 (!%p1121_p6), %v10124_v31  ;;  %8778 = vmatprep.mubr.msk.bf16.mxu0 (!%p1121_p6), %vm10125_vm8, %v10124_v31  ;;  %v1131_v35 = vld [vmem:[#allocation5] sm:$0x1] (!%p1121_p6)  ;;  %s12031_s18 = sld [smem:[#allocation61_spill]] (!%p1121_p6)  ;;  %v1210_v51 = vld [vmem:[#allocation6] sm:$0x1] (!%p1121_p6) }
 0x2a7   : > { %s12032_s13 = sld [smem:[#allocation62_spill]] (!%p1121_p6)  ;;  %s12033_s3 = sld [smem:[#allocation63_spill]] (!%p1121_p6) }
 0x2a8   : > { %v1214_v54 = vld [vmem:[#allocation7] sm:$0x1] (!%p1121_p6) }
 0x2ab   : > { %v9364_v30 = vld [vmem:[%s12029_s30] sm:$0xff] (!%p1121_p6)   ;;  %v9365_v32 = vld [vmem:[%s12029_s30 + $0x8] sm:$0xff] (!%p1121_p6)   ;;  %v9366_v37 = vld [vmem:[%s12029_s30 + $0x10] sm:$0xff] (!%p1121_p6)  }
 0x2ac   : > { %8771 = vmatpush3.bf16.msra.mxu0 (!%p1121_p6), %v9364_v30  ;;  %v1127_v33 = vld [vmem:[%s12030_s7] sm:$0x1] (!%p1121_p6)  ;;  %v9367_v40 = vld [vmem:[%s12029_s30 + $0x18] sm:$0xff] (!%p1121_p6)  }
 0x2ad   : > { %8772 = vmatprep.subr.bf16.mxu0 %v10124_v31  ;;  %v1130_v36 = vmul.f32 %v1129_v34, %v1127_v33  ;;  %v1128_v42 = vld [vmem:[%s12031_s18] sm:$0x1] }
 0x2ae   : > { %v1216_v45 = vmul.f32 %v1128_v42, %v1128_v42  ;;  %v1220_v63 = vld [vmem:[%s12032_s13] sm:$0x1] }
 0x2af   : > { %v1132_v38 = vadd.f32 %v1131_v35, %v1130_v36  ;;  %v1221_v2 = vld [vmem:[%s12033_s3] sm:$0x1] }
 0x2b0   : > { %8773 = vmatpush3.bf16.msra.mxu0 %v9365_v32 }
 0x2b1   : > { %8774 = vmatprep.subr.bf16.mxu0 %v10124_v31  ;;  %v1133_v39 = vmax.f32 %v1132_v38, 0.0 }
 0x2b3   : > { %v1134_v41 = vpack.c.bf16 %v1133_v39, %v1133_v39 }
 0x2b4   : > { %8775 = vmatpush3.bf16.msra.mxu0 %v9366_v37 }
 0x2b5   : > { %8776 = vmatprep.subr.bf16.mxu0 %v10124_v31 }
 0x2b8   : > { %8777 = vmatpush3.bf16.msra.mxu0 %v9367_v40 }
 0x2bb   : > { %8779 = vmatmul.mubr.msk.bf16.vlgmr.msra.gmra.mrb[0].mxu0 %vm1050_vm7, %v1134_v41 }
 0x38e   : > { %v1204_v43 = vpop.f32.mrb[0].mxu0 }
 0x38f   : > { %v1205_v44 = vadd.f32 %v1204_v43, %v1128_v42  ;;  %v8780_v46 = vpop.f32.mrb[1].mxu0 }
 0x390   : > { %v1207_v47 = vpop.f32.mrb[2].mxu0 }
 0x391   : > { %v1211_v48 = vadd.f32 %v1205_v44, %v1128_v42  ;;  %v1215_v49 = vmul.f32 %v1205_v44, %v1205_v44  ;;  %v8781_v50 = vpop.f32.mrb[3].mxu0 }
 0x393   : > { %v1212_v52 = vmul.f32 4.0, %v1211_v48  ;;  %v1217_v53 = vadd.f32 %v1216_v45, %v1215_v49 }
 0x395   : > { %v1213_v55 = vadd.f32 %v1212_v52, %v1210_v51  ;;  %v1218_v56 = vmul.f32 4.0, %v1217_v53 }
 0x397   : > { %v1219_v57 = vadd.f32 %v1218_v56, %v1214_v54  ;;  %v1222_v58 = vmul.f32 0.025, %v1213_v55 }
 0x399   : > { %v1223_v59 = vmul.f32 0.025, %v1219_v57  ;;  %v1224_v60 = vmul.f32 %v1222_v58, %v1222_v58 }
 0x39b   : > { %v1225_v61 = vsub.f32 %v1223_v59, %v1224_v60 }
 0x39d   : > { %v1226_v62 = vadd.f32 1e-05, %v1225_v61 }
 0x39f   : > { %9368 = vrsqrt.f32 %v1226_v62 }
 0x3a9   : > { %v9369_v0 = vpop.eup %9368 }
 0x3aa   : > { %v1228_v1 = vmul.f32 %v9369_v0, %v1220_v63 }
 0x3ac   : > { %v1229_v3 = vmul.f32 %v1228_v1, %v1222_v58  ;;  %1231 = vst [vmem:[#allocation8] sm:$0x1] %v1228_v1 }
 0x3ae   : > { %v1230_v4 = vsub.f32 %v1221_v2, %v1229_v3 }
 0x3b0   : > { %1232 = vst [vmem:[#allocation9] sm:$0x1] %v1230_v4 }
 0x3b1 PF: > { %p8217_p3 = scmp.ne.s32.totalorder %s10097_s26, 2 }
 0x3b3   : > { %1235 = sbr.rel (%p8217_p3) target bundleno = 3235 (0xca3), region = 156 }
 0x3ba   : > { %v8218_v6 = vld [vmem:[#allocation8] ss:$0 sm:$0xff]  ;;  %v8219_v7 = vld [vmem:[#allocation9] ss:$0 sm:$0xff]  ;;  %v1453_v11 = vld [vmem:[#allocation13] sm:$0xff]  ;;  %v10126_v38 = vmov 0  }
 0x3bb   : > { %v1243_v9 = vmul.f32 %v8218_v6, %v10442_v5  ;;  %v1244_v10 = vmul.f32 %v8218_v6, %v10444_v8  ;;  %v1457_v12 = vld [vmem:[#allocation13 + $0x20] sm:$0xff]  ;;  %v10484_v22 = vld [vmem:[#allocation13 + $0x8] sm:$0xff]  ;;  %1911 = vmatprep.mubr.bf16.mxu1 %v10126_v38  ;;  %v1455_v59 = vld [vmem:[#allocation13 + $0x10] sm:$0xff]  ;;  %vm1299_vm9 = vcmask 130048   ;;  %p2301_p2 = scmp.eq.s32.totalorder %s10093_s5, 1 }
 0x3bc   : > { %v1461_v13 = vld [vmem:[#allocation13 + $0x40] sm:$0xff]  ;;  %v8229_v14 = vcombine.high %v1453_v11, %v1457_v12  ;;  %v8228_v15 = vcombine.low %v1453_v11, %v1457_v12  ;;  %v10486_v23 = vld [vmem:[#allocation13 + $0x28] sm:$0xff]  ;;  %v1459_v60 = vld [vmem:[#allocation13 + $0x30] sm:$0xff] }
 0x3bd   : > { %v1465_v16 = vld [vmem:[#allocation13 + $0x60] sm:$0xff]  ;;  %v1252_v18 = vadd.f32 %v8219_v7, %v1243_v9  ;;  %v1253_v19 = vadd.f32 %v8219_v7, %v1244_v10  ;;  %v8230_v5 = vcombine.low %v10484_v22, %v10486_v23  ;;  %v8231_v31 = vcombine.high %v10484_v22, %v10486_v23  ;;  %v1257_v47 = vld [vmem:[#allocation10] sm:$0x1]  ;;  %v1463_v63 = vld [vmem:[#allocation13 + $0x50] sm:$0xff] }
 0x3be   : > { %v1469_v17 = vld [vmem:[#allocation13 + $0x80] sm:$0xff]  ;;  %v8237_v20 = vcombine.high %v1461_v13, %v1465_v16  ;;  %1879 = vmatprep.subr.bf16.mxu1 %v8229_v14  ;;  %v8236_v25 = vcombine.low %v1461_v13, %v1465_v16  ;;  %v8233_v62 = vcombine.high %v1455_v59, %v1459_v60  ;;  %v1467_v0 = vld [vmem:[#allocation13 + $0x70] sm:$0xff]  ;;  %v8232_v1 = vcombine.low %v1455_v59, %v1459_v60  ;;  %v1510_v60 = vld [vmem:[#allocation13 + $0x1c8] sm:$0xff] }
 0x3bf   : > { %v1473_v21 = vld [vmem:[#allocation13 + $0xa0] sm:$0xff]  ;;  %v1254_v8 = vmax.f32 %v1252_v18, 0.0  ;;  %v1255_v24 = vmax.f32 %v1253_v19, 0.0  ;;  %1880 = vmatpush1.bf16.msra.mxu1 %v8228_v15  ;;  %v8241_v2 = vcombine.high %v1463_v63, %v1467_v0  ;;  %v1471_v3 = vld [vmem:[#allocation13 + $0x90] sm:$0xff]  ;;  %v8240_v6 = vcombine.low %v1463_v63, %v1467_v0 }
 0x3c0   : > { %1881 = vmatprep.subr.bf16.mxu1 %v8237_v20  ;;  %v8245_v26 = vcombine.high %v1469_v17, %v1473_v21  ;;  %v1477_v29 = vld [vmem:[#allocation13 + $0xc0] sm:$0xff]  ;;  %v8244_v33 = vcombine.low %v1469_v17, %v1473_v21  ;;  %v1475_v4 = vld [vmem:[#allocation13 + $0xb0] sm:$0xff] }
 0x3c1   : > { %v10490_v27 = vpack.c.bf16 %v1255_v24, %v1254_v8  ;;  %v1258_v28 = vadd.f32 %v1255_v24, %v1254_v8  ;;  %v1481_v30 = vld [vmem:[#allocation13 + $0xe0] sm:$0xff]  ;;  %v8249_v7 = vcombine.high %v1471_v3, %v1475_v4  ;;  %v1479_v9 = vld [vmem:[#allocation13 + $0xd0] sm:$0xff]  ;;  %v8248_v11 = vcombine.low %v1471_v3, %v1475_v4 }
 0x3c2   : > { %v8253_v34 = vcombine.high %v1477_v29, %v1481_v30  ;;  %v1485_v36 = vld [vmem:[#allocation13 + $0x100] sm:$0xff]  ;;  %v8252_v40 = vcombine.low %v1477_v29, %v1481_v30  ;;  %v1483_v10 = vld [vmem:[#allocation13 + $0xf0] sm:$0xff] }
 0x3c3   : > { %v1259_v32 = vrot.slane %v1258_v28, 4  ;;  %1283 = vxpose.xlu0.c.b16.start.end [1/1] (short) %v10490_v27, 128  ;;  %1882 = vmatpush1.bf16.msra.mxu1 %v8236_v25  ;;  %v1489_v37 = vld [vmem:[#allocation13 + $0x120] sm:$0xff]  ;;  %v8257_v12 = vcombine.high %v1479_v9, %v1483_v10  ;;  %v1487_v13 = vld [vmem:[#allocation13 + $0x110] sm:$0xff]  ;;  %v8256_v15 = vcombine.low %v1479_v9, %v1483_v10 }
 0x3c4   : > { %8782 = vmatprep.subr.bf16.mxu0 %v10490_v27  ;;  %1883 = vmatprep.subr.bf16.mxu1 %v8245_v26  ;;  %v8261_v41 = vcombine.high %v1485_v36, %v1489_v37  ;;  %v1493_v43 = vld [vmem:[#allocation13 + $0x140] sm:$0xff]  ;;  %v8260_v46 = vcombine.low %v1485_v36, %v1489_v37  ;;  %v1491_v14 = vld [vmem:[#allocation13 + $0x130] sm:$0xff]  ;;  %v1470_v37 = vld [vmem:[#allocation13 + $0x88] sm:$0xff] }
 0x3c5   : > { %v1260_v35 = vadd.f32 %v1259_v32, %v1258_v28  ;;  %8783 = vmatpush3.bf16.msra.mxu0 %v10490_v27  ;;  %v1497_v44 = vld [vmem:[#allocation13 + $0x160] sm:$0xff]  ;;  %v8265_v16 = vcombine.high %v1487_v13, %v1491_v14  ;;  %v1495_v17 = vld [vmem:[#allocation13 + $0x150] sm:$0xff]  ;;  %v8264_v19 = vcombine.low %v1487_v13, %v1491_v14 }
 0x3c6   : > { %1922 = vmatprep.subr.bf16.mxu0 %v8231_v31  ;;  %v8269_v48 = vcombine.high %v1493_v43, %v1497_v44  ;;  %v1501_v50 = vld [vmem:[#allocation13 + $0x180] sm:$0xff]  ;;  %v8268_v53 = vcombine.low %v1493_v43, %v1497_v44  ;;  %v1499_v18 = vld [vmem:[#allocation13 + $0x170] sm:$0xff]  ;;  %v1478_v43 = vld [vmem:[#allocation13 + $0xc8] sm:$0xff] }
 0x3c7   : > { %v1261_v39 = vrot.slane %v1260_v35, 2  ;;  %1884 = vmatpush1.bf16.msra.mxu1 %v8244_v33  ;;  %v1505_v51 = vld [vmem:[#allocation13 + $0x1a0] sm:$0xff]  ;;  %v8273_v20 = vcombine.high %v1495_v17, %v1499_v18  ;;  %v1503_v21 = vld [vmem:[#allocation13 + $0x190] sm:$0xff]  ;;  %v8272_v24 = vcombine.low %v1495_v17, %v1499_v18  ;;  %v1462_v33 = vld [vmem:[#allocation13 + $0x48] sm:$0xff] }
 0x3c8   : > { %1885 = vmatprep.subr.bf16.mxu1 %v8253_v34  ;;  %v8277_v54 = vcombine.high %v1501_v50, %v1505_v51  ;;  %v1509_v55 = vld [vmem:[#allocation13 + $0x1c0] sm:$0xff]  ;;  %v8276_v57 = vcombine.low %v1501_v50, %v1505_v51  ;;  %v1507_v8 = vld [vmem:[#allocation13 + $0x1b0] sm:$0xff]  ;;  %v1466_v34 = vld [vmem:[#allocation13 + $0x68] sm:$0xff] }
 0x3c9   : > { %v1262_v42 = vadd.f32 %v1261_v39, %v1260_v35  ;;  %v1513_v56 = vld [vmem:[#allocation13 + $0x1e0] sm:$0xff]  ;;  %v8281_v25 = vcombine.high %v1503_v21, %v1507_v8  ;;  %v1511_v26 = vld [vmem:[#allocation13 + $0x1d0] sm:$0xff]  ;;  %v8280_v29 = vcombine.low %v1503_v21, %v1507_v8  ;;  %v8239_v35 = vcombine.high %v1462_v33, %v1466_v34  ;;  %v1474_v39 = vld [vmem:[#allocation13 + $0xa8] sm:$0xff] }
 0x3ca   : > { %v8285_v58 = vcombine.high %v1509_v55, %v1513_v56  ;;  %v8284_v61 = vcombine.low %v1509_v55, %v1513_v56  ;;  %v1515_v28 = vld [vmem:[#allocation13 + $0x1f0] sm:$0xff]  ;;  %v1482_v44 = vld [vmem:[#allocation13 + $0xe8] sm:$0xff] }
 0x3cb   : > { %v1263_v45 = vrot.slane %v1262_v42, 1  ;;  %1886 = vmatpush1.bf16.msra.mxu1 %v8252_v40  ;;  %v8289_v30 = vcombine.high %v1511_v26, %v1515_v28  ;;  %v8288_v31 = vcombine.low %v1511_v26, %v1515_v28  ;;  %v8238_v40 = vcombine.low %v1462_v33, %v1466_v34  ;;  %v1494_v50 = vld [vmem:[#allocation13 + $0x148] sm:$0xff]  ;;  %v1504_v28 = vld [vmem:[#allocation13 + $0x198] sm:$0xff] }
 0x3cc   : > { %1887 = vmatprep.subr.bf16.mxu1 %v8261_v41  ;;  %v8247_v41 = vcombine.high %v1470_v37, %v1474_v39  ;;  %v8254_v22 = vcombine.low %v1478_v43, %v1482_v44  ;;  %v1498_v51 = vld [vmem:[#allocation13 + $0x168] sm:$0xff]  ;;  %v1516_v33 = vld [vmem:[#allocation13 + $0x1f8] sm:$0xff] }
 0x3cd   : > { %v1264_v49 = vadd.f32 %v1263_v45, %v1262_v42  ;;  %v8246_v45 = vcombine.low %v1470_v37, %v1474_v39  ;;  %v1502_v55 = vld [vmem:[#allocation13 + $0x188] sm:$0xff]  ;;  %v1519_v37 = vlaneseq }
 0x3ce   : > { %v1506_v56 = vld [vmem:[#allocation13 + $0x1a8] sm:$0xff] }
 0x3cf   : > { %v1265_v52 = vadd.f32 %v1264_v49, %v1257_v47  ;;  %1888 = vmatpush1.bf16.msra.mxu1 %v8260_v46  ;;  %v8255_v46 = vcombine.high %v1478_v43, %v1482_v44  ;;  %v1490_v49 = vld [vmem:[#allocation13 + $0x128] sm:$0xff]  ;;  %v10516_v39 = vshrl.u32 %v1519_v37, 7 }
 0x3d0   : > { %1889 = vmatprep.subr.bf16.mxu1 %v8269_v48  ;;  %v1486_v48 = vld [vmem:[#allocation13 + $0x108] sm:$0xff] }
 0x3d1   : > { %1266 = vst [vmem:[#allocation10] sm:$0x1] %v1265_v52  ;;  %v8263_v23 = vcombine.high %v1486_v48, %v1490_v49  ;;  %v8262_v52 = vcombine.low %v1486_v48, %v1490_v49 }
 0x3d3   : > { %1890 = vmatpush1.bf16.msra.mxu1 %v8268_v53  ;;  %v8271_v53 = vcombine.high %v1494_v50, %v1498_v51 }
 0x3d4   : > { %1891 = vmatprep.subr.bf16.mxu1 %v8277_v54 }
 0x3d7   : > { %1892 = vmatpush1.bf16.msra.mxu1 %v8276_v57  ;;  %v8270_v57 = vcombine.low %v1494_v50, %v1498_v51 }
 0x3d8   : > { %1893 = vmatprep.subr.bf16.mxu1 %v8285_v58  ;;  %v8279_v58 = vcombine.high %v1502_v55, %v1506_v56 }
 0x3db   : > { %1894 = vmatpush1.bf16.msra.mxu1 %v8284_v61  ;;  %v1514_v61 = vld [vmem:[#allocation13 + $0x1e8] sm:$0xff] }
 0x3dc   : > { %1965 = vmatprep.subr.bf16.mxu1 %v8233_v62  ;;  %v8278_v62 = vcombine.low %v1502_v55, %v1506_v56  ;;  %v8287_v63 = vcombine.high %v1510_v60, %v1514_v61  ;;  %v8286_v3 = vcombine.low %v1510_v60, %v1514_v61 }
 0x3de   : > { %1912 = vmatmul.mubr.bf16.vlgmr.msra.gmra.mrb[0].mxu1 %v10490_v27 }
 0x3df   : > { %1966 = vmatpush1.bf16.msra.mxu1 %v8232_v1  ;;  %1997 = vmatprep.mubr.bf16.mxu1 %v10126_v38  ;;  %v1456_v1 = vld [vmem:[#allocation13 + $0x18] sm:$0xff] }
 0x3e0   : > { %1967 = vmatprep.subr.bf16.mxu1 %v8241_v2  ;;  %v1460_v2 = vld [vmem:[#allocation13 + $0x38] sm:$0xff] }
 0x3e1   : > { %v8235_v4 = vcombine.high %v1456_v1, %v1460_v2  ;;  %v8234_v9 = vcombine.low %v1456_v1, %v1460_v2  ;;  %v10543_v1 = vsub.s32 5, %v10516_v39 }
 0x3e3   : > { %1968 = vmatpush1.bf16.msra.mxu1 %v8240_v6  ;;  %v1464_v6 = vld [vmem:[#allocation13 + $0x58] sm:$0xff]  ;;  %12037 = vst [vmem:[#allocation27_spill] sm:$0xff] %v10543_v1 }
 0x3e4   : > { %1969 = vmatprep.subr.bf16.mxu1 %v8249_v7  ;;  %v1468_v7 = vld [vmem:[#allocation13 + $0x78] sm:$0xff] }
 0x3e5   : > { %v8243_v10 = vcombine.high %v1464_v6, %v1468_v7  ;;  %v8242_v13 = vcombine.low %v1464_v6, %v1468_v7 }
 0x3e7   : > { %1970 = vmatpush1.bf16.msra.mxu1 %v8248_v11  ;;  %v1472_v11 = vld [vmem:[#allocation13 + $0x98] sm:$0xff] }
 0x3e8   : > { %1971 = vmatprep.subr.bf16.mxu1 %v8257_v12  ;;  %v1476_v12 = vld [vmem:[#allocation13 + $0xb8] sm:$0xff] }
 0x3e9   : > { %v8251_v14 = vcombine.high %v1472_v11, %v1476_v12  ;;  %v8250_v17 = vcombine.low %v1472_v11, %v1476_v12 }
 0x3eb   : > { %1972 = vmatpush1.bf16.msra.mxu1 %v8256_v15  ;;  %v1480_v15 = vld [vmem:[#allocation13 + $0xd8] sm:$0xff] }
 0x3ec   : > { %1973 = vmatprep.subr.bf16.mxu1 %v8265_v16  ;;  %v1484_v16 = vld [vmem:[#allocation13 + $0xf8] sm:$0xff] }
 0x3ed   : > { %v8259_v18 = vcombine.high %v1480_v15, %v1484_v16  ;;  %v8258_v21 = vcombine.low %v1480_v15, %v1484_v16 }
 0x3ef   : > { %1974 = vmatpush1.bf16.msra.mxu1 %v8264_v19  ;;  %v1488_v19 = vld [vmem:[#allocation13 + $0x118] sm:$0xff] }
 0x3f0   : > { %1975 = vmatprep.subr.bf16.mxu1 %v8273_v20  ;;  %v1492_v20 = vld [vmem:[#allocation13 + $0x138] sm:$0xff] }
 0x3f1   : > { %v8267_v8 = vcombine.high %v1488_v19, %v1492_v20  ;;  %v8266_v26 = vcombine.low %v1488_v19, %v1492_v20 }
 0x3f3   : > { %1976 = vmatpush1.bf16.msra.mxu1 %v8272_v24  ;;  %v1496_v24 = vld [vmem:[#allocation13 + $0x158] sm:$0xff] }
 0x3f4   : > { %1977 = vmatprep.subr.bf16.mxu1 %v8281_v25  ;;  %v1500_v25 = vld [vmem:[#allocation13 + $0x178] sm:$0xff] }
 0x3f7   : > { %1978 = vmatpush1.bf16.msra.mxu1 %v8280_v29  ;;  %v1508_v29 = vld [vmem:[#allocation13 + $0x1b8] sm:$0xff] }
 0x3f8   : > { %1979 = vmatprep.subr.bf16.mxu1 %v8289_v30  ;;  %v8274_v30 = vcombine.low %v1496_v24, %v1500_v25  ;;  %v8282_v34 = vcombine.low %v1504_v28, %v1508_v29 }
 0x3fb   : > { %1980 = vmatpush1.bf16.msra.mxu1 %v8288_v31  ;;  %v8283_v31 = vcombine.high %v1504_v28, %v1508_v29 }
 0x3fe   : > { %1998 = vmatmul.mubr.bf16.vlgmr.msra.gmra.mrb[4].mxu1 %v10490_v27 }
 0x429   : > { %v1291_v32 = vpop.trf.xlu0 }
 0x42a   : > { %8784 = vmatprep.mubr.msk.bf16.mxu0 %vm1299_vm9, %v1291_v32  ;;  %v1512_v32 = vld [vmem:[#allocation13 + $0x1d8] sm:$0xff] }
 0x42d   : > { %v1292_v36 = vpop.trf.xlu0 }
 0x42e   : > { %8785 = vmatmul.mubr.msk.bf16.vlgmr.msra.gmra.mrb[0].mxu0 %vm1299_vm9, %v1292_v36  ;;  %v8290_v36 = vcombine.low %v1512_v32, %v1516_v33 }
 0x42f   : > { %1923 = vmatpush1.bf16.msra.mxu0 %v8230_v5 }
 0x430   : > { %1924 = vmatprep.subr.bf16.mxu0 %v8239_v35  ;;  %v8291_v35 = vcombine.high %v1512_v32, %v1516_v33  ;;  %v1270_v33 = vld [vmem:[#allocation11 + $0x18] sm:$0xff] }
 0x431   : > { %v1293_v42 = vpop.trf.xlu0 }
 0x432   : > { %8788 = vmatprep.mubr.msk.bf16.mxu0 %vm1299_vm9, %v1293_v42  ;;  %v10527_v42 = vsub.s32 1, %v10516_v39 }
 0x433   : > { %1925 = vmatpush1.bf16.msra.mxu0 %v8238_v40  ;;  %v10519_v40 = vsub.s32 0, %v10516_v39 }
 0x434   : > { %1926 = vmatprep.subr.bf16.mxu0 %v8247_v41  ;;  %v10524_v41 = vld [vmem:[%s11924_s10] sm:$0xff]  ;;  %12035 = vst [vmem:[#allocation25_spill] sm:$0xff] %v10527_v42 }
 0x435   : > { %v1294_v47 = vpop.trf.xlu0  ;;  %12034 = vst [vmem:[#allocation24_spill] sm:$0xff] %v10519_v40  ;;  %v1522_v43 = vrot.slane %v10524_v41, %v10519_v40 }
 0x436   : > { %8789 = vmatmul.mubr.msk.bf16.gmra.mrb[4].mxu0 %vm1299_vm9, %v1294_v47 }
 0x437   : > { %1927 = vmatpush1.bf16.msra.mxu0 %v8246_v45 }
 0x438   : > { %1928 = vmatprep.subr.bf16.mxu0 %v8255_v46 }
 0x439   : > { %v1295_v5 = vpop.trf.xlu0 }
 0x43a   : > { %8792 = vmatprep.mubr.msk.bf16.mxu0 %vm1299_vm9, %v1295_v5 }
 0x43b   : > { %1929 = vmatpush1.bf16.msra.mxu0 %v8254_v22 }
 0x43c   : > { %1930 = vmatprep.subr.bf16.mxu0 %v8263_v23 }
 0x43d   : > { %v1296_v54 = vpop.trf.xlu0 }
 0x43e   : > { %8793 = vmatmul.mubr.msk.bf16.gmra.mrb[8].mxu0 %vm1299_vm9, %v1296_v54 }
 0x43f   : > { %1931 = vmatpush1.bf16.msra.mxu0 %v8262_v52 }
 0x440   : > { %1932 = vmatprep.subr.bf16.mxu0 %v8271_v53 }
 0x441   : > { %v1297_v59 = vpop.trf.xlu0 }
 0x442   : > { %8796 = vmatprep.mubr.msk.bf16.mxu0 %vm1299_vm9, %v1297_v59 }
 0x443   : > { %1933 = vmatpush1.bf16.msra.mxu0 %v8270_v57 }
 0x444   : > { %1934 = vmatprep.subr.bf16.mxu0 %v8279_v58 }
 0x445   : > { %v1298_v0 = vpop.trf.xlu0 }
 0x446   : > { %8797 = vmatmul.mubr.msk.bf16.gmra.mrb[12].mxu0 %vm1299_vm9, %v1298_v0  ;;  %v10540_v0 = vsub.s32 4, %v10516_v39 }
 0x447   : > { %1935 = vmatpush1.bf16.msra.mxu0 %v8278_v62  ;;  %1954 = vmatprep.mubr.bf16.mxu0 %v10126_v38 }
 0x448   : > { %1936 = vmatprep.subr.bf16.mxu0 %v8287_v63  ;;  %12036 = vst [vmem:[#allocation26_spill] sm:$0xff] %v10540_v0  ;;  %v1538_v2 = vrot.slane %v10524_v41, %v10540_v0 }
 0x44b   : > { %1937 = vmatpush1.bf16.msra.mxu0 %v8286_v3  ;;  %v1542_v3 = vrot.slane %v10524_v41, %v10543_v1 }
 0x44c   : > { %2008 = vmatprep.subr.bf16.mxu0 %v8235_v4 }
 0x44e   : > { %1955 = vmatmul.mubr.bf16.vlgmr.msra.gmra.mrb[16].mxu0 %v10490_v27 }
 0x44f   : > { %2009 = vmatpush1.bf16.msra.mxu0 %v8234_v9  ;;  %2040 = vmatprep.mubr.bf16.mxu0 %v10126_v38  ;;  %v8275_v38 = vcombine.high %v1496_v24, %v1500_v25 }
 0x450   : > { %2010 = vmatprep.subr.bf16.mxu0 %v8243_v10 }
 0x453   : > { %2011 = vmatpush1.bf16.msra.mxu0 %v8242_v13 }
 0x454   : > { %2012 = vmatprep.subr.bf16.mxu0 %v8251_v14 }
 0x457   : > { %2013 = vmatpush1.bf16.msra.mxu0 %v8250_v17 }
 0x458   : > { %2014 = vmatprep.subr.bf16.mxu0 %v8259_v18 }
 0x45b   : > { %2015 = vmatpush1.bf16.msra.mxu0 %v8258_v21 }
 0x45c   : > { %2016 = vmatprep.subr.bf16.mxu0 %v8267_v8 }
 0x45f   : > { %2017 = vmatpush1.bf16.msra.mxu0 %v8266_v26 }
 0x460   : > { %2018 = vmatprep.subr.bf16.mxu0 %v8275_v38 }
 0x463   : > { %2019 = vmatpush1.bf16.msra.mxu0 %v8274_v30  ;;  %v1269_v30 = vld [vmem:[#allocation11 + $0x10] sm:$0xff] }
 0x464   : > { %2020 = vmatprep.subr.bf16.mxu0 %v8283_v31  ;;  %v1267_v31 = vld [vmem:[#allocation11] sm:$0xff] }
 0x467   : > { %2021 = vmatpush1.bf16.msra.mxu0 %v8282_v34 }
 0x468   : > { %2022 = vmatprep.subr.bf16.mxu0 %v8291_v35 }
 0x46b   : > { %2023 = vmatpush1.bf16.msra.mxu0 %v8290_v36  ;;  %v1268_v36 = vld [vmem:[#allocation11 + $0x8] sm:$0xff] }
 0x46e   : > { %2041 = vmatmul.mubr.bf16.vlgmr.msra.gmra.mrb[20].mxu0 %v10490_v27  ;;  %v1526_v27 = vrot.slane %v10524_v41, %v10527_v42 }
 0x4b1   : > { %v1913_v44 = vpop.f32.mrb[0].mxu1 }
 0x4b2   : > { %v1914_v45 = vadd.f32 %v1913_v44, %v1522_v43  ;;  %v1915_v46 = vpop.f32.mrb[1].mxu1 }
 0x4b3   : > { %v1916_v47 = vadd.f32 %v1915_v46, %v1526_v27  ;;  %v1917_v48 = vpop.f32.mrb[2].mxu1  ;;  %v1273_v46 = vld [vmem:[#allocation11 + $0x30] sm:$0xff] }
 0x4b4   : > { %v1918_v49 = vadd.f32 %v1917_v48, %v1522_v43  ;;  %v1919_v22 = vpop.f32.mrb[3].mxu1 }
 0x4b5   : > { %v1920_v23 = vadd.f32 %v1919_v22, %v1526_v27 }
 0x4b6   : > { %v2051_v5 = vmax.f32 %v1914_v45, %v1918_v49  ;;  %v1274_v49 = vld [vmem:[#allocation11 + $0x38] sm:$0xff] }
 0x4b7   : > { %v2058_v50 = vmax.f32 %v1916_v47, %v1920_v23  ;;  %v1271_v47 = vld [vmem:[#allocation11 + $0x20] sm:$0xff] }
 0x4b8   : > { %v2052_v51 = vrot.slane %v2051_v5, 4 }
 0x4b9   : > { %v2059_v52 = vrot.slane %v2058_v50, 4 }
 0x4ba   : > { %v2053_v53 = vmax.f32 %v2051_v5, %v2052_v51  ;;  %v1272_v5 = vld [vmem:[#allocation11 + $0x28] sm:$0xff] }
 0x4bb   : > { %v2060_v54 = vmax.f32 %v2058_v50, %v2059_v52 }
 0x4bc   : > { %v2054_v55 = vrot.slane %v2053_v53, 2 }
 0x4bd   : > { %v2061_v56 = vrot.slane %v2060_v54, 2 }
 0x4be   : > { %v2055_v57 = vmax.f32 %v2053_v53, %v2054_v55  ;;  %v1277_v55 = vld [vmem:[#allocation11 + $0x50] sm:$0xff] }
 0x4bf   : > { %v2062_v58 = vmax.f32 %v2060_v54, %v2061_v56  ;;  %v1275_v56 = vld [vmem:[#allocation11 + $0x40] sm:$0xff] }
 0x4c0   : > { %v2056_v59 = vrot.slane %v2055_v57, 1 }
 0x4c1   : > { %v2063_v60 = vrot.slane %v2062_v58, 1 }
 0x4c2   : > { %v10533_v61 = vmax.f32 %v2055_v57, %v2056_v59 }
 0x4c3   : > { %v10535_v62 = vmax.f32 %v2062_v58, %v2063_v60  ;;  %v1278_v58 = vld [vmem:[#allocation11 + $0x58] sm:$0xff] }
 0x4c5   : > { %v2121_v63 = vcombine.low %v10533_v61, %v10535_v62  ;;  %v10582_v61 = vsub.s32 7, %v10516_v39 }
 0x4c7   : > { %12042 = vst [vmem:[#allocation32_spill] sm:$0xff] %v10582_v61 }
 0x4d1   : > { %v1999_v4 = vpop.f32.mrb[4].mxu1 }
 0x4d2   : > { %v2000_v6 = vadd.f32 %v1999_v4, %v1538_v2  ;;  %v2001_v7 = vpop.f32.mrb[5].mxu1 }
 0x4d3   : > { %v2002_v9 = vadd.f32 %v2001_v7, %v1542_v3  ;;  %v2003_v10 = vpop.f32.mrb[6].mxu1 }
 0x4d4   : > { %v2004_v11 = vadd.f32 %v2003_v10, %v1538_v2  ;;  %v2005_v12 = vpop.f32.mrb[7].mxu1  ;;  %v1276_v2 = vld [vmem:[#allocation11 + $0x48] sm:$0xff]  ;;  %v1281_v10 = vld [vmem:[#allocation11 + $0x70] sm:$0xff] }
 0x4d5   : > { %v2006_v13 = vadd.f32 %v2005_v12, %v1542_v3 }
 0x4d6   : > { %v2079_v14 = vmax.f32 %v2000_v6, %v2004_v11  ;;  %v1279_v11 = vld [vmem:[#allocation11 + $0x60] sm:$0xff] }
 0x4d7   : > { %v2086_v15 = vmax.f32 %v2002_v9, %v2006_v13  ;;  %v1282_v13 = vld [vmem:[#allocation11 + $0x78] sm:$0xff] }
 0x4d8   : > { %v2080_v16 = vrot.slane %v2079_v14, 4 }
 0x4d9   : > { %v2087_v17 = vrot.slane %v2086_v15, 4 }
 0x4da   : > { %v2081_v18 = vmax.f32 %v2079_v14, %v2080_v16  ;;  %v1280_v16 = vld [vmem:[#allocation11 + $0x68] sm:$0xff] }
 0x4db   : > { %v2088_v19 = vmax.f32 %v2086_v15, %v2087_v17 }
 0x4dc   : > { %v2082_v20 = vrot.slane %v2081_v18, 2 }
 0x4dd   : > { %v2089_v21 = vrot.slane %v2088_v19, 2 }
 0x4de   : > { %v2083_v8 = vmax.f32 %v2081_v18, %v2082_v20 }
 0x4df   : > { %v2090_v24 = vmax.f32 %v2088_v19, %v2089_v21  ;;  %v10557_v21 = vsub.s32 2, %v10516_v39 }
 0x4e0   : > { %v2084_v25 = vrot.slane %v2083_v8, 1 }
 0x4e1   : > { %v2091_v26 = vrot.slane %v2090_v24, 1  ;;  %12038 = vst [vmem:[#allocation28_spill] sm:$0xff] %v10557_v21 }
 0x4e2   : > { %v10549_v38 = vmax.f32 %v2083_v8, %v2084_v25  ;;  %v1530_v25 = vrot.slane %v10524_v41, %v10557_v21 }
 0x4e3   : > { %v10551_v28 = vmax.f32 %v2090_v24, %v2091_v26  ;;  %v10560_v24 = vsub.s32 3, %v10516_v39 }
 0x4e5   : > { %v2138_v29 = vcombine.low %v10549_v38, %v10551_v28  ;;  %12039 = vst [vmem:[#allocation29_spill] sm:$0xff] %v10560_v24 }
 0x501   : > { %v8786_v32 = vpop.f32.mrb[0].mxu0 }
 0x502   : > { %v1423_v34 = vadd.f32 %v8786_v32, %v1269_v30  ;;  %v1358_v35 = vpop.f32.mrb[1].mxu0  ;;  %v1534_v30 = vrot.slane %v10524_v41, %v10560_v24 }
 0x503   : > { %v1421_v37 = vadd.f32 %v1358_v35, %v1267_v31  ;;  %v8787_v43 = vpop.f32.mrb[2].mxu0 }
 0x504   : > { %1439 = vst [vmem:[#allocation11 + $0x10] sm:$0xff] %v1423_v34  ;;  %v1424_v27 = vadd.f32 %v8787_v43, %v1270_v33  ;;  %v1361_v44 = vpop.f32.mrb[3].mxu0 }
 0x505   : > { %1437 = vst [vmem:[#allocation11] sm:$0xff] %v1421_v37  ;;  %v1422_v45 = vadd.f32 %v1361_v44, %v1268_v36 }
 0x506   : > { %1440 = vst [vmem:[#allocation11 + $0x18] sm:$0xff] %v1424_v27 }
 0x507   : > { %1438 = vst [vmem:[#allocation11 + $0x8] sm:$0xff] %v1422_v45 }
 0x509   : > { %v8790_v48 = vpop.f32.mrb[4].mxu0 }
 0x50a   : > { %v1427_v22 = vadd.f32 %v8790_v48, %v1273_v46  ;;  %v1374_v23 = vpop.f32.mrb[5].mxu0 }
 0x50b   : > { %v1425_v50 = vadd.f32 %v1374_v23, %v1271_v47  ;;  %v8791_v51 = vpop.f32.mrb[6].mxu0  ;;  %v10127_v47 = vmov 1983009808  }
 0x50c   : > { %1443 = vst [vmem:[#allocation11 + $0x30] sm:$0xff] %v1427_v22  ;;  %v1428_v52 = vadd.f32 %v8791_v51, %v1274_v49  ;;  %v1377_v53 = vpop.f32.mrb[7].mxu0  ;;  %v2124_v48 = vunpack.c.l.s4 %v10127_v47 }
 0x50d   : > { %1441 = vst [vmem:[#allocation11 + $0x20] sm:$0xff] %v1425_v50  ;;  %v1426_v54 = vadd.f32 %v1377_v53, %v1272_v5 }
 0x50e   : > { %1444 = vst [vmem:[#allocation11 + $0x38] sm:$0xff] %v1428_v52  ;;  %v2125_v50 = vunpack.c.0.s8 %v2124_v48 }
 0x50f   : > { %1442 = vst [vmem:[#allocation11 + $0x28] sm:$0xff] %v1426_v54 }
 0x511   : > { %v8794_v57 = vpop.f32.mrb[8].mxu0 }
 0x512   : > { %v1431_v59 = vadd.f32 %v8794_v57, %v1277_v55  ;;  %v1390_v60 = vpop.f32.mrb[9].mxu0  ;;  %v10567_v55 = vsub.s32 %v2125_v50, %v10516_v39 }
 0x513   : > { %v1429_v3 = vadd.f32 %v1390_v60, %v1275_v56  ;;  %v8795_v4 = vpop.f32.mrb[10].mxu0 }
 0x514   : > { %1447 = vst [vmem:[#allocation11 + $0x50] sm:$0xff] %v1431_v59  ;;  %v1432_v6 = vadd.f32 %v8795_v4, %v1278_v58  ;;  %v1393_v7 = vpop.f32.mrb[11].mxu0  ;;  %12040 = vst [vmem:[#allocation30_spill] sm:$0xff] %v10567_v55  ;;  %v2111_v58 = vld [vmem:[#allocation12] sm:$0xff]  ;;  %v2129_v59 = vrot.slane %v2121_v63, %v10567_v55 }
 0x515   : > { %1445 = vst [vmem:[#allocation11 + $0x40] sm:$0xff] %v1429_v3  ;;  %v1430_v9 = vadd.f32 %v1393_v7, %v1276_v2  ;;  %v2205_v2 = vcombine.high %v2111_v58, %v2111_v58  ;;  %v2212_v4 = vrot.slane %v2111_v58, %v10567_v55 }
 0x516   : > { %1448 = vst [vmem:[#allocation11 + $0x58] sm:$0xff] %v1432_v6  ;;  %v2109_v6 = vstv %s10093_s5 }
 0x517   : > { %1446 = vst [vmem:[#allocation11 + $0x48] sm:$0xff] %v1430_v9  ;;  %v2219_v9 = vrot.slane %v2205_v2, %v10567_v55  ;;  %vm10585_vm10 = vcmp.eq.s32.totalorder %v10516_v39, %v2109_v6 }
 0x519   : > { %v8798_v12 = vpop.f32.mrb[12].mxu0 }
 0x51a   : > { %v1435_v14 = vadd.f32 %v8798_v12, %v1281_v10  ;;  %v1406_v15 = vpop.f32.mrb[13].mxu0  ;;  %v10578_v10 = vsub.s32 6, %v10516_v39 }
 0x51b   : > { %v1433_v17 = vadd.f32 %v1406_v15, %v1279_v11  ;;  %v8799_v18 = vpop.f32.mrb[14].mxu0  ;;  %v2221_v15 = vcombine.high %v2219_v9, %v2219_v9 }
 0x51c   : > { %1451 = vst [vmem:[#allocation11 + $0x70] sm:$0xff] %v1435_v14  ;;  %v1436_v19 = vadd.f32 %v8799_v18, %v1282_v13  ;;  %v1409_v20 = vpop.f32.mrb[15].mxu0  ;;  %12041 = vst [vmem:[#allocation31_spill] sm:$0xff] %v10578_v10  ;;  %v2220_v13 = vcombine.high %v2212_v4, %v2212_v4 }
 0x51d   : > { %1449 = vst [vmem:[#allocation11 + $0x60] sm:$0xff] %v1433_v17  ;;  %v1434_v8 = vadd.f32 %v1409_v20, %v1280_v16  ;;  %v1546_v16 = vrot.slane %v10524_v41, %v10578_v10 }
 0x51e   : > { %1452 = vst [vmem:[#allocation11 + $0x78] sm:$0xff] %v1436_v19 }
 0x51f   : > { %1450 = vst [vmem:[#allocation11 + $0x68] sm:$0xff] %v1434_v8  ;;  %v1550_v8 = vrot.slane %v10524_v41, %v10582_v61 }
 0x521   : > { %v1956_v26 = vpop.f32.mrb[16].mxu0 }
 0x522   : > { %v1958_v31 = vpop.f32.mrb[17].mxu0  ;;  %v1957_v33 = vadd.f32 %v1956_v26, %v1530_v25 }
 0x523   : > { %v1960_v32 = vpop.f32.mrb[18].mxu0  ;;  %v1959_v36 = vadd.f32 %v1958_v31, %v1534_v30 }
 0x524   : > { %v1961_v34 = vadd.f32 %v1960_v32, %v1530_v25  ;;  %v1962_v35 = vpop.f32.mrb[19].mxu0 }
 0x525   : > { %v1963_v37 = vadd.f32 %v1962_v35, %v1534_v30 }
 0x526   : > { %v2065_v43 = vmax.f32 %v1957_v33, %v1961_v34 }
 0x527   : > { %v2072_v27 = vmax.f32 %v1959_v36, %v1963_v37 }
 0x528   : > { %v2066_v44 = vrot.slane %v2065_v43, 4 }
 0x529   : > { %v2073_v45 = vrot.slane %v2072_v27, 4 }
 0x52a   : > { %v2067_v46 = vmax.f32 %v2065_v43, %v2066_v44 }
 0x52b   : > { %v2074_v49 = vmax.f32 %v2072_v27, %v2073_v45 }
 0x52c   : > { %v2068_v22 = vrot.slane %v2067_v46, 2 }
 0x52d   : > { %v2075_v23 = vrot.slane %v2074_v49, 2 }
 0x52e   : > { %v2069_v5 = vmax.f32 %v2067_v46, %v2068_v22 }
 0x52f   : > { %v2076_v51 = vmax.f32 %v2074_v49, %v2075_v23 }
 0x530   : > { %v2070_v52 = vrot.slane %v2069_v5, 1 }
 0x531   : > { %v2077_v53 = vrot.slane %v2076_v51, 1 }
 0x532   : > { %v2071_v54 = vmax.f32 %v2069_v5, %v2070_v52 }
 0x533   : > { %v2078_v56 = vmax.f32 %v2076_v51, %v2077_v53 }
 0x535   : > { %v2122_v57 = vcombine.low %v2071_v54, %v2078_v56 }
 0x537   : > { %v2136_v60 = vrot.slane %v2122_v57, %v10567_v55 }
 0x539   : > { %v2137_v3 = vcombine.low %v2129_v59, %v2136_v60  ;;  %v2146_v59 = vrot.slane %v2138_v29, %v10567_v55 }
 0x53b   : > { %v2157_v7 = vmax.f32 %v2111_v58, %v2137_v3  ;;  %v2112_v58 = vld [vmem:[#allocation12 + $0x8] sm:$0xff] }
 0x53c   : > { %v2222_v2 = vcombine.high %v2112_v58, %v2112_v58 }
 0x53d   : > { %v2161_v11 = vcombine.high %v2157_v7, %v2157_v7  ;;  %v2168_v12 = vrot.slane %v2157_v7, %v10567_v55 }
 0x53e   : > { %v2236_v7 = vrot.slane %v2222_v2, %v10567_v55 }
 0x53f   : > { %v2175_v63 = vrot.slane %v2161_v11, %v10567_v55  ;;  %v2176_v14 = vcombine.high %v2168_v12, %v2168_v12  ;;  %v2247_v18 = vsel %vm10585_vm10, %v2168_v12, %v2212_v4  ;;  %v2229_v4 = vrot.slane %v2112_v58, %v10567_v55 }
 0x541   : > { %v2177_v17 = vcombine.high %v2175_v63, %v2175_v63  ;;  %v2248_v19 = vsel %vm10585_vm10, %v2176_v14, %v2220_v13  ;;  %v2042_v20 = vpop.f32.mrb[20].mxu0  ;;  %v2249_v30 = vsel %vm10585_vm10, %v2175_v63, %v2219_v9  ;;  %v2237_v12 = vcombine.high %v2229_v4, %v2229_v4 }
 0x542   : > { %v2263_v25 = vcombine.low %v2247_v18, %v2248_v19  ;;  %v2044_v26 = vpop.f32.mrb[21].mxu0  ;;  %v2043_v34 = vadd.f32 %v2042_v20, %v1546_v16  ;;  %v2238_v14 = vcombine.high %v2236_v7, %v2236_v7 }
 0x543   : > { %v2250_v31 = vsel %vm10585_vm10, %v2177_v17, %v2221_v15  ;;  %v2046_v32 = vpop.f32.mrb[22].mxu0  ;;  %v2045_v37 = vadd.f32 %v2044_v26, %v1550_v8 }
 0x544   : > { %v2264_v33 = vcombine.low %v2249_v30, %v2250_v31  ;;  %v2047_v35 = vadd.f32 %v2046_v32, %v1546_v16  ;;  %v2048_v36 = vpop.f32.mrb[23].mxu0  ;;  %v2271_v27 = vrot.slane %v2263_v25, %v10567_v55 }
 0x545   : > { %v2049_v43 = vadd.f32 %v2048_v36, %v1550_v8 }
 0x546   : > { %v2278_v44 = vrot.slane %v2264_v33, %v10567_v55  ;;  %v2093_v41 = vmax.f32 %v2043_v34, %v2047_v35 }
 0x547   : > { %v2100_v45 = vmax.f32 %v2045_v37, %v2049_v43 }
 0x548   : > { %v2279_v46 = vcombine.low %v2271_v27, %v2278_v44  ;;  %v2094_v47 = vrot.slane %v2093_v41, 4 }
 0x549   : > { %v2101_v48 = vrot.slane %v2100_v45, 4 }
 0x54a   : > { %2299 = vst [vmem:[#allocation12] sm:$0xff] %v2279_v46  ;;  %v2095_v49 = vmax.f32 %v2093_v41, %v2094_v47 }
 0x54b   : > { %v2102_v22 = vmax.f32 %v2100_v45, %v2101_v48 }
 0x54c   : > { %v2096_v23 = vrot.slane %v2095_v49, 2 }
 0x54d   : > { %v2103_v5 = vrot.slane %v2102_v22, 2 }
 0x54e   : > { %v2097_v50 = vmax.f32 %v2095_v49, %v2096_v23 }
 0x54f   : > { %v2104_v51 = vmax.f32 %v2102_v22, %v2103_v5 }
 0x550   : > { %v2098_v52 = vrot.slane %v2097_v50, 1 }
 0x551   : > { %v2105_v53 = vrot.slane %v2104_v51, 1 }
 0x552   : > { %v2099_v54 = vmax.f32 %v2097_v50, %v2098_v52 }
 0x553   : > { %v2106_v56 = vmax.f32 %v2104_v51, %v2105_v53 }
 0x555   : > { %v2139_v57 = vcombine.low %v2099_v54, %v2106_v56 }
 0x557   : > { %v2153_v60 = vrot.slane %v2139_v57, %v10567_v55 }
 0x559   : > { %v2154_v3 = vcombine.low %v2146_v59, %v2153_v60 }
 0x55b   : > { %v2158_v6 = vmax.f32 %v2112_v58, %v2154_v3 }
 0x55d   : > { %v2178_v9 = vcombine.high %v2158_v6, %v2158_v6  ;;  %v2185_v11 = vrot.slane %v2158_v6, %v10567_v55 }
 0x55f   : > { %v2192_v13 = vrot.slane %v2178_v9, %v10567_v55  ;;  %v2193_v63 = vcombine.high %v2185_v11, %v2185_v11  ;;  %v2251_v38 = vsel %vm10585_vm10, %v2185_v11, %v2229_v4 }
 0x561   : > { %v2194_v15 = vcombine.high %v2192_v13, %v2192_v13  ;;  %v2252_v28 = vsel %vm10585_vm10, %v2193_v63, %v2237_v12  ;;  %v2253_v16 = vsel %vm10585_vm10, %v2192_v13, %v2236_v7 }
 0x562   : > { %v2280_v29 = vcombine.low %v2251_v38, %v2252_v28 }
 0x563   : > { %v2254_v17 = vsel %vm10585_vm10, %v2194_v15, %v2238_v14 }
 0x564   : > { %v2281_v18 = vcombine.low %v2253_v16, %v2254_v17  ;;  %v2288_v19 = vrot.slane %v2280_v29, %v10567_v55  ;;  %2305 = sbr.rel (!%p2301_p2) target bundleno = 3235 (0xca3), region = 160 }
 0x566   : > { %v2295_v20 = vrot.slane %v2281_v18, %v10567_v55 }
 0x568   : > { %v2296_v8 = vcombine.low %v2288_v19, %v2295_v20 }
 0x56a   : > { %2300 = vst [vmem:[#allocation12 + $0x8] sm:$0xff] %v2296_v8 }
 0x56b   : > { %v2309_v25 = vld [vmem:[#allocation13] sm:$0xff]  ;;  %v2312_v30 = vld [vmem:[#allocation13 + $0x18] sm:$0xff]  ;;  %v11949_v35 = vmov 0.0   ;;  %v2315_v55 = vld [vmem:[#allocation13 + $0x30] sm:$0xff]  ;;  %v12062_v24 = vmov 0.0   ;;  %s12063_s6 = sld [smem:[#allocation60_spill]] }
 0x56c   : > { %v2313_v26 = vld [vmem:[#allocation13 + $0x20] sm:$0xff]  ;;  %v2316_v32 = vld [vmem:[#allocation13 + $0x38] sm:$0xff]  ;;  %2566 = vmatprep.mubr.f32.mxu0 %v11949_v35  ;;  %2779 = vmatprep.mubr.f32.mxu1 %v11949_v35  ;;  %v2319_v1 = vld [vmem:[#allocation13 + $0x50] sm:$0xff]  ;;  %s12064_s20 = sld [smem:[#allocation57_spill]]  ;;  %vm10129_vm11 = vmmov 0   ;;  %s12085_s3 = sld [smem:[#allocation61_spill]] }
 0x56d   : > { %v10625_v31 = vcombine.high %v2309_v25, %v2313_v26  ;;  %v10627_v33 = vcombine.low %v2309_v25, %v2313_v26  ;;  %v2317_v62 = vld [vmem:[#allocation13 + $0x40] sm:$0xff]  ;;  %v10631_v36 = vcombine.high %v2312_v30, %v2316_v32  ;;  %v10633_v37 = vcombine.low %v2312_v30, %v2316_v32  ;;  %v2320_v27 = vld [vmem:[#allocation13 + $0x58] sm:$0xff]  ;;  %v2323_v0 = vld [vmem:[#allocation13 + $0x70] sm:$0xff]  ;;  %s12131_s19 = sld [smem:[#allocation68_spill]]  ;;  %s12132_s4 = sld [smem:[#allocation65_spill]] }
 0x56e   : > { %v2321_v34 = vld [vmem:[#allocation13 + $0x60] sm:$0xff]  ;;  %v2324_v44 = vld [vmem:[#allocation13 + $0x78] sm:$0xff]  ;;  %v2327_v42 = vld [vmem:[#allocation13 + $0x90] sm:$0xff]  ;;  %vm4039_vm12 = vcmask 1040384   ;;  %vm4584_vm13 = vcmask 1041408   ;;  %s12133_s23 = sld [smem:[#allocation66_spill]] }
 0x56f   : > { %12045 = vst [vmem:[#allocation33_spill] sm:$0xff] %v10631_v36  ;;  %12046 = vst [vmem:[#allocation34_spill] sm:$0xff] %v10633_v37  ;;  %v10635_v43 = vcombine.high %v2317_v62, %v2321_v34  ;;  %v2325_v41 = vld [vmem:[#allocation13 + $0x80] sm:$0xff]  ;;  %8813 = vmatprep.subr.bf16.mxu0 %v10625_v31  ;;  %v10638_v45 = vcombine.high %v2320_v27, %v2324_v44  ;;  %v2328_v47 = vld [vmem:[#allocation13 + $0x98] sm:$0xff]  ;;  %8909 = vmatprep.subr.bf16.mxu1 %v10631_v36  ;;  %s12134_s18 = sld [smem:[#allocation67_spill]]  ;;  %s12135_s0 = sld [smem:[#allocation69_spill]] }
 0x570   : > { %v2329_v46 = vld [vmem:[#allocation13 + $0xa0] sm:$0xff]  ;;  %v2332_v48 = vld [vmem:[#allocation13 + $0xb8] sm:$0xff]  ;;  %8815 = vmatpush1.bf16.msra.mxu0 %v10627_v33  ;;  %v10642_v49 = vcombine.low %v2317_v62, %v2321_v34  ;;  %8911 = vmatpush1.bf16.msra.mxu1 %v10633_v37  ;;  %v10646_v22 = vcombine.low %v2320_v27, %v2324_v44  ;;  %v2331_v10 = vld [vmem:[#allocation13 + $0xb0] sm:$0xff]  ;;  %s12136_s26 = sld [smem:[#allocation70_spill]]  ;;  %vm8088_vm14 = vcmask 66560  }
 0x571   : > { %12047 = vst [vmem:[#allocation35_spill] sm:$0xff] %v10638_v45  ;;  %8817 = vmatprep.subr.bf16.mxu0 %v10635_v43  ;;  %v10648_v23 = vcombine.high %v2325_v41, %v2329_v46  ;;  %8913 = vmatprep.subr.bf16.mxu1 %v10638_v45  ;;  %v10651_v5 = vcombine.high %v2328_v47, %v2332_v48  ;;  %v2333_v50 = vld [vmem:[#allocation13 + $0xc0] sm:$0xff]  ;;  %v2336_v52 = vld [vmem:[#allocation13 + $0xd8] sm:$0xff]  ;;  %v2339_v40 = vld [vmem:[#allocation13 + $0xf0] sm:$0xff] }
 0x572   : > { %12048 = vst [vmem:[#allocation36_spill] sm:$0xff] %v10646_v22  ;;  %v2337_v51 = vld [vmem:[#allocation13 + $0xe0] sm:$0xff]  ;;  %v2340_v53 = vld [vmem:[#allocation13 + $0xf8] sm:$0xff]  ;;  %v10654_v54 = vcombine.low %v2325_v41, %v2329_v46  ;;  %v10658_v56 = vcombine.low %v2328_v47, %v2332_v48  ;;  %v2310_v46 = vld [vmem:[#allocation13 + $0x8] sm:$0xff]  ;;  %v10812_v21 = vcombine.high %v2327_v42, %v2331_v10 }
 0x573   : > { %12049 = vst [vmem:[#allocation37_spill] sm:$0xff] %v10651_v5  ;;  %v10660_v57 = vcombine.high %v2333_v50, %v2337_v51  ;;  %v10663_v58 = vcombine.high %v2336_v52, %v2340_v53  ;;  %v2341_v59 = vld [vmem:[#allocation13 + $0x100] sm:$0xff]  ;;  %v2344_v2 = vld [vmem:[#allocation13 + $0x118] sm:$0xff]  ;;  %v10666_v4 = vcombine.low %v2333_v50, %v2337_v51  ;;  %v10670_v6 = vcombine.low %v2336_v52, %v2340_v53  ;;  %v2314_v47 = vld [vmem:[#allocation13 + $0x28] sm:$0xff] }
 0x574   : > { %8819 = vmatpush1.bf16.msra.mxu0 %v10642_v49  ;;  %8915 = vmatpush1.bf16.msra.mxu1 %v10646_v22  ;;  %12050 = vst [vmem:[#allocation38_spill] sm:$0xff] %v10658_v56  ;;  %v2345_v60 = vld [vmem:[#allocation13 + $0x120] sm:$0xff]  ;;  %v2348_v3 = vld [vmem:[#allocation13 + $0x138] sm:$0xff]  ;;  %v2318_v50 = vld [vmem:[#allocation13 + $0x48] sm:$0xff]  ;;  %v10720_v53 = vcombine.high %v2310_v46, %v2314_v47 }
 0x575   : > { %8821 = vmatprep.subr.bf16.mxu0 %v10648_v23  ;;  %8917 = vmatprep.subr.bf16.mxu1 %v10651_v5  ;;  %12051 = vst [vmem:[#allocation39_spill] sm:$0xff] %v10663_v58  ;;  %12052 = vst [vmem:[#allocation40_spill] sm:$0xff] %v10670_v6  ;;  %v10672_v7 = vcombine.high %v2341_v59, %v2345_v60  ;;  %v10675_v9 = vcombine.high %v2344_v2, %v2348_v3  ;;  %v2349_v11 = vld [vmem:[#allocation13 + $0x140] sm:$0xff]  ;;  %v2352_v13 = vld [vmem:[#allocation13 + $0x158] sm:$0xff] }
 0x576   : > { %v2353_v12 = vld [vmem:[#allocation13 + $0x160] sm:$0xff]  ;;  %v2356_v63 = vld [vmem:[#allocation13 + $0x178] sm:$0xff]  ;;  %v10678_v14 = vcombine.low %v2341_v59, %v2345_v60  ;;  %v10682_v15 = vcombine.low %v2344_v2, %v2348_v3  ;;  %v2322_v51 = vld [vmem:[#allocation13 + $0x68] sm:$0xff]  ;;  %v10726_v60 = vcombine.low %v2310_v46, %v2314_v47 }
 0x577   : > { %12053 = vst [vmem:[#allocation41_spill] sm:$0xff] %v10675_v9  ;;  %v10684_v38 = vcombine.high %v2349_v11, %v2353_v12  ;;  %v10687_v28 = vcombine.high %v2352_v13, %v2356_v63  ;;  %v2357_v29 = vld [vmem:[#allocation13 + $0x180] sm:$0xff]  ;;  %v2360_v17 = vld [vmem:[#allocation13 + $0x198] sm:$0xff]  ;;  %v10690_v19 = vcombine.low %v2349_v11, %v2353_v12  ;;  %v10694_v20 = vcombine.low %v2352_v13, %v2356_v63  ;;  %v10723_v59 = vld [vmem:[#allocation10] sm:$0x1] }
 0x578   : > { %8823 = vmatpush1.bf16.msra.mxu0 %v10654_v54  ;;  %8919 = vmatpush1.bf16.msra.mxu1 %v10658_v56  ;;  %v2361_v16 = vld [vmem:[#allocation13 + $0x1a0] sm:$0xff]  ;;  %v2364_v18 = vld [vmem:[#allocation13 + $0x1b8] sm:$0xff]  ;;  %v2326_v2 = vld [vmem:[#allocation13 + $0x88] sm:$0xff]  ;;  %v10730_v11 = vcombine.high %v2318_v50, %v2322_v51  ;;  %v10736_v12 = vcombine.low %v2318_v50, %v2322_v51 }
 0x579   : > { %8825 = vmatprep.subr.bf16.mxu0 %v10660_v57  ;;  %8921 = vmatprep.subr.bf16.mxu1 %v10663_v58  ;;  %12054 = vst [vmem:[#allocation42_spill] sm:$0xff] %v10687_v28  ;;  %v10696_v8 = vcombine.high %v2357_v29, %v2361_v16  ;;  %v10699_v25 = vcombine.high %v2360_v17, %v2364_v18  ;;  %v2365_v26 = vld [vmem:[#allocation13 + $0x1c0] sm:$0xff]  ;;  %v2368_v32 = vld [vmem:[#allocation13 + $0x1d8] sm:$0xff]  ;;  %v2330_v3 = vld [vmem:[#allocation13 + $0xa8] sm:$0xff] }
 0x57a   : > { %v2369_v30 = vld [vmem:[#allocation13 + $0x1e0] sm:$0xff]  ;;  %v2372_v62 = vld [vmem:[#allocation13 + $0x1f8] sm:$0xff]  ;;  %v10702_v34 = vcombine.low %v2357_v29, %v2361_v16  ;;  %v10706_v27 = vcombine.low %v2360_v17, %v2364_v18  ;;  %v2334_v13 = vld [vmem:[#allocation13 + $0xc8] sm:$0xff]  ;;  %v10740_v29 = vcombine.high %v2326_v2, %v2330_v3  ;;  %v10746_v16 = vcombine.low %v2326_v2, %v2330_v3 }
 0x57b   : > { %v10708_v44 = vcombine.high %v2365_v26, %v2369_v30  ;;  %v10711_v41 = vcombine.high %v2368_v32, %v2372_v62  ;;  %v10714_v48 = vcombine.low %v2365_v26, %v2369_v30  ;;  %v10718_v52 = vcombine.low %v2368_v32, %v2372_v62  ;;  %v2338_v63 = vld [vmem:[#allocation13 + $0xe8] sm:$0xff] }
 0x57c   : > { %8827 = vmatpush1.bf16.msra.mxu0 %v10666_v4  ;;  %8923 = vmatpush1.bf16.msra.mxu1 %v10670_v6  ;;  %v2342_v17 = vld [vmem:[#allocation13 + $0x108] sm:$0xff]  ;;  %v10750_v26 = vcombine.high %v2334_v13, %v2338_v63  ;;  %v10754_v30 = vcombine.low %v2334_v13, %v2338_v63 }
 0x57d   : > { %8829 = vmatprep.subr.bf16.mxu0 %v10672_v7  ;;  %8925 = vmatprep.subr.bf16.mxu1 %v10675_v9  ;;  %12055 = vst [vmem:[#allocation43_spill] sm:$0xff] %v10711_v41  ;;  %12056 = vst [vmem:[#allocation44_spill] sm:$0xff] %v10718_v52  ;;  %v2346_v18 = vld [vmem:[#allocation13 + $0x128] sm:$0xff] }
 0x57e   : > { %v2350_v32 = vld [vmem:[#allocation13 + $0x148] sm:$0xff]  ;;  %v10758_v46 = vcombine.high %v2342_v17, %v2346_v18  ;;  %v10762_v47 = vcombine.low %v2342_v17, %v2346_v18 }
 0x57f   : > { %v2354_v62 = vld [vmem:[#allocation13 + $0x168] sm:$0xff] }
 0x580   : > { %8831 = vmatpush1.bf16.msra.mxu0 %v10678_v14  ;;  %8927 = vmatpush1.bf16.msra.mxu1 %v10682_v15  ;;  %v2358_v50 = vld [vmem:[#allocation13 + $0x188] sm:$0xff]  ;;  %v10766_v2 = vcombine.high %v2350_v32, %v2354_v62  ;;  %v10770_v3 = vcombine.low %v2350_v32, %v2354_v62 }
 0x581   : > { %8833 = vmatprep.subr.bf16.mxu0 %v10684_v38  ;;  %8929 = vmatprep.subr.bf16.mxu1 %v10687_v28  ;;  %v2362_v51 = vld [vmem:[#allocation13 + $0x1a8] sm:$0xff] }
 0x582   : > { %12057 = vst [vmem:[#allocation45_spill] sm:$0xff] %v10770_v3  ;;  %v2366_v13 = vld [vmem:[#allocation13 + $0x1c8] sm:$0xff]  ;;  %v10774_v17 = vcombine.high %v2358_v50, %v2362_v51  ;;  %v10778_v18 = vcombine.low %v2358_v50, %v2362_v51  ;;  %v10793_v51 = vld [vmem:[#allocation11] sm:$0xff] }
 0x583   : > { %v2370_v63 = vld [vmem:[#allocation13 + $0x1e8] sm:$0xff] }
 0x584   : > { %8835 = vmatpush1.bf16.msra.mxu0 %v10690_v19  ;;  %8931 = vmatpush1.bf16.msra.mxu1 %v10694_v20  ;;  %12058 = vst [vmem:[#allocation46_spill] sm:$0xff] %v10774_v17  ;;  %12059 = vst [vmem:[#allocation47_spill] sm:$0xff] %v10778_v18  ;;  %v10782_v32 = vcombine.high %v2366_v13, %v2370_v63  ;;  %v10786_v62 = vcombine.low %v2366_v13, %v2370_v63  ;;  %v10804_v63 = vld [vmem:[#allocation11 + $0x8] sm:$0xff] }
 0x585   : > { %8837 = vmatprep.subr.bf16.mxu0 %v10696_v8  ;;  %8933 = vmatprep.subr.bf16.mxu1 %v10699_v25  ;;  %v10800_v13 = vcombine.high %v2319_v1, %v2323_v0 }
 0x586   : > { %12060 = vst [vmem:[#allocation48_spill] sm:$0xff] %v10782_v32  ;;  %12061 = vst [vmem:[#allocation49_spill] sm:$0xff] %v10786_v62 }
 0x588   : > { %8839 = vmatpush1.bf16.msra.mxu0 %v10702_v34  ;;  %8935 = vmatpush1.bf16.msra.mxu1 %v10706_v27 }
 0x589   : > { %8841 = vmatprep.subr.bf16.mxu0 %v10708_v44  ;;  %8937 = vmatprep.subr.bf16.mxu1 %v10711_v41 }
 0x58c   : > { %8843 = vmatpush1.bf16.msra.mxu0 %v10714_v48  ;;  %8939 = vmatpush1.bf16.msra.mxu1 %v10718_v52 }
 0x58d   : > { %8845 = vmatprep.subr.bf16.mxu0 %v10720_v53  ;;  %8973 = vmatprep.subr.bf16.mxu1 %v10720_v53 }
 0x58f   : > { %2567 = vmatmul.mubr.f32.vlgmr.msra.gmra.mrb[0].mxu0 %v10723_v59  ;;  %2780 = vmatmul.mubr.f32.vlgmr.msra.gmra.mrb[0].mxu1 %v10723_v59 }
 0x590   : > { %8847 = vmatpush1.bf16.msra.mxu0 %v10726_v60  ;;  %8975 = vmatpush1.bf16.msra.mxu1 %v10726_v60 }
 0x591   : > { %8849 = vmatprep.subr.bf16.mxu0 %v10730_v11  ;;  %8977 = vmatprep.subr.bf16.mxu1 %v10730_v11 }
 0x592   : > { %2637 = vmatprep.mubr.f32.mxu0 %v11949_v35  ;;  %3027 = vmatprep.mubr.f32.mxu1 %v11949_v35  ;;  %v2311_v35 = vld [vmem:[#allocation13 + $0x10] sm:$0xff] }
 0x593   : > { %v10790_v50 = vcombine.high %v2311_v35, %v2315_v55  ;;  %v10796_v61 = vcombine.low %v2311_v35, %v2315_v55  ;;  %v10808_v55 = vcombine.low %v2319_v1, %v2323_v0  ;;  %v2335_v35 = vld [vmem:[#allocation13 + $0xd0] sm:$0xff]  ;;  %v10821_v0 = vcombine.low %v2327_v42, %v2331_v10 }
 0x594   : > { %8851 = vmatpush1.bf16.msra.mxu0 %v10736_v12  ;;  %8979 = vmatpush1.bf16.msra.mxu1 %v10736_v12  ;;  %v2343_v1 = vld [vmem:[#allocation13 + $0x110] sm:$0xff]  ;;  %v10833_v42 = vcombine.low %v2335_v35, %v2339_v40 }
 0x595   : > { %8853 = vmatprep.subr.bf16.mxu0 %v10740_v29  ;;  %8981 = vmatprep.subr.bf16.mxu1 %v10740_v29  ;;  %v2351_v10 = vld [vmem:[#allocation13 + $0x150] sm:$0xff] }
 0x598   : > { %8855 = vmatpush1.bf16.msra.mxu0 %v10746_v16  ;;  %8983 = vmatpush1.bf16.msra.mxu1 %v10746_v16 }
 0x599   : > { %8857 = vmatprep.subr.bf16.mxu0 %v10750_v26  ;;  %8985 = vmatprep.subr.bf16.mxu1 %v10750_v26 }
 0x59c   : > { %8859 = vmatpush1.bf16.msra.mxu0 %v10754_v30  ;;  %8987 = vmatpush1.bf16.msra.mxu1 %v10754_v30 }
 0x59d   : > { %8861 = vmatprep.subr.bf16.mxu0 %v10758_v46  ;;  %8989 = vmatprep.subr.bf16.mxu1 %v10758_v46 }
 0x5a0   : > { %8863 = vmatpush1.bf16.msra.mxu0 %v10762_v47  ;;  %8991 = vmatpush1.bf16.msra.mxu1 %v10762_v47 }
 0x5a1   : > { %8865 = vmatprep.subr.bf16.mxu0 %v10766_v2  ;;  %8993 = vmatprep.subr.bf16.mxu1 %v10766_v2 }
 0x5a4   : > { %8867 = vmatpush1.bf16.msra.mxu0 %v10770_v3  ;;  %8995 = vmatpush1.bf16.msra.mxu1 %v10770_v3 }
 0x5a5   : > { %8869 = vmatprep.subr.bf16.mxu0 %v10774_v17  ;;  %8997 = vmatprep.subr.bf16.mxu1 %v10774_v17 }
 0x5a8   : > { %8871 = vmatpush1.bf16.msra.mxu0 %v10778_v18  ;;  %8999 = vmatpush1.bf16.msra.mxu1 %v10778_v18 }
 0x5a9   : > { %8873 = vmatprep.subr.bf16.mxu0 %v10782_v32  ;;  %9001 = vmatprep.subr.bf16.mxu1 %v10782_v32  ;;  %v10825_v32 = vcombine.high %v2335_v35, %v2339_v40  ;;  %v2359_v35 = vld [vmem:[#allocation13 + $0x190] sm:$0xff] }
 0x5ac   : > { %8875 = vmatpush1.bf16.msra.mxu0 %v10786_v62  ;;  %9003 = vmatpush1.bf16.msra.mxu1 %v10786_v62  ;;  %v2347_v62 = vld [vmem:[#allocation13 + $0x130] sm:$0xff] }
 0x5ad   : > { %8877 = vmatprep.subr.bf16.mxu0 %v10790_v50  ;;  %9037 = vmatprep.subr.bf16.mxu1 %v10631_v36  ;;  %v10816_v36 = vld [vmem:[#allocation11 + $0x10] sm:$0xff]  ;;  %v10837_v18 = vcombine.high %v2343_v1, %v2347_v62  ;;  %v10845_v40 = vcombine.low %v2343_v1, %v2347_v62  ;;  %v2367_v1 = vld [vmem:[#allocation13 + $0x1d0] sm:$0xff] }
 0x5af   : > { %2638 = vmatmul.mubr.f32.vlgmr.msra.gmra.mrb[2].mxu0 %v10723_v59  ;;  %3028 = vmatmul.mubr.f32.vlgmr.msra.gmra.mrb[2].mxu1 %v10793_v51 }
 0x5b0   : > { %8879 = vmatpush1.bf16.msra.mxu0 %v10796_v61  ;;  %3033 = vmatprep.mubr.f32.mxu1 %v12062_v24 }
 0x5b1   : > { %8881 = vmatprep.subr.bf16.mxu0 %v10800_v13  ;;  %2708 = vmatprep.mubr.f32.mxu0 %v12062_v24 }
 0x5b2   : > { %9039 = vmatpush1.bf16.msra.mxu1 %v10633_v37  ;;  %v10828_v37 = vld [vmem:[#allocation11 + $0x18] sm:$0xff] }
 0x5b3   : > { %9041 = vmatprep.subr.bf16.mxu1 %v10638_v45  ;;  %3034 = vmatmul.mubr.f32.gmra.mrb[4].mxu1 %v10804_v63  ;;  %v2355_v45 = vld [vmem:[#allocation13 + $0x170] sm:$0xff] }
 0x5b4   : > { %8883 = vmatpush1.bf16.msra.mxu0 %v10808_v55  ;;  %3039 = vmatprep.mubr.f32.mxu1 %v12062_v24  ;;  %v10849_v17 = vcombine.high %v2351_v10, %v2355_v45  ;;  %v10857_v62 = vcombine.low %v2351_v10, %v2355_v45 }
 0x5b5   : > { %8885 = vmatprep.subr.bf16.mxu0 %v10812_v21 }
 0x5b6   : > { %9043 = vmatpush1.bf16.msra.mxu1 %v10646_v22  ;;  %v10840_v22 = vld [vmem:[#allocation11 + $0x20] sm:$0xff] }
 0x5b7   : > { %9045 = vmatprep.subr.bf16.mxu1 %v10651_v5  ;;  %3040 = vmatmul.mubr.f32.gmra.mrb[6].mxu1 %v10816_v36  ;;  %v2363_v5 = vld [vmem:[#allocation13 + $0x1b0] sm:$0xff] }
 0x5b8   : > { %8887 = vmatpush1.bf16.msra.mxu0 %v10821_v0  ;;  %3045 = vmatprep.mubr.f32.mxu1 %v12062_v24  ;;  %v10861_v3 = vcombine.high %v2359_v35, %v2363_v5  ;;  %v10869_v45 = vcombine.low %v2359_v35, %v2363_v5  ;;  %v10886_v5 = vld [vmem:[#allocation11 + $0x40] sm:$0xff]  ;;  %v10903_v35 = vld [vmem:[#allocation11 + $0x50] sm:$0xff] }
 0x5b9   : > { %8889 = vmatprep.subr.bf16.mxu0 %v10825_v32 }
 0x5ba   : > { %9047 = vmatpush1.bf16.msra.mxu1 %v10658_v56  ;;  %v10852_v56 = vld [vmem:[#allocation11 + $0x28] sm:$0xff] }
 0x5bb   : > { %9049 = vmatprep.subr.bf16.mxu1 %v10663_v58  ;;  %3046 = vmatmul.mubr.f32.gmra.mrb[8].mxu1 %v10828_v37  ;;  %v2371_v58 = vld [vmem:[#allocation13 + $0x1f0] sm:$0xff] }
 0x5bc   : > { %8891 = vmatpush1.bf16.msra.mxu0 %v10833_v42  ;;  %3051 = vmatprep.mubr.f32.mxu1 %v12062_v24  ;;  %v10873_v10 = vcombine.high %v2367_v1, %v2371_v58 }
 0x5bd   : > { %8893 = vmatprep.subr.bf16.mxu0 %v10837_v18 }
 0x5be   : > { %9051 = vmatpush1.bf16.msra.mxu1 %v10670_v6  ;;  %v10864_v6 = vld [vmem:[#allocation11 + $0x30] sm:$0xff] }
 0x5bf   : > { %9053 = vmatprep.subr.bf16.mxu1 %v10675_v9  ;;  %3052 = vmatmul.mubr.f32.gmra.mrb[10].mxu1 %v10840_v22  ;;  %v10876_v9 = vld [vmem:[#allocation11 + $0x38] sm:$0xff] }
 0x5c0   : > { %8895 = vmatpush1.bf16.msra.mxu0 %v10845_v40  ;;  %3057 = vmatprep.mubr.f32.mxu1 %v12062_v24 }
 0x5c1   : > { %8897 = vmatprep.subr.bf16.mxu0 %v10849_v17 }
 0x5c2   : > { %9055 = vmatpush1.bf16.msra.mxu1 %v10682_v15 }
 0x5c3   : > { %9057 = vmatprep.subr.bf16.mxu1 %v10687_v28  ;;  %3058 = vmatmul.mubr.f32.gmra.mrb[12].mxu1 %v10852_v56  ;;  %v10881_v28 = vcombine.low %v2367_v1, %v2371_v58  ;;  %v10895_v58 = vld [vmem:[#allocation11 + $0x48] sm:$0xff] }
 0x5c4   : > { %8899 = vmatpush1.bf16.msra.mxu0 %v10857_v62  ;;  %3063 = vmatprep.mubr.f32.mxu1 %v12062_v24  ;;  %v10921_v1 = vld [vmem:[#allocation11 + $0x68] sm:$0xff] }
 0x5c5   : > { %8901 = vmatprep.subr.bf16.mxu0 %v10861_v3 }
 0x5c6   : > { %9059 = vmatpush1.bf16.msra.mxu1 %v10694_v20 }
 0x5c7   : > { %9061 = vmatprep.subr.bf16.mxu1 %v10699_v25  ;;  %3064 = vmatmul.mubr.f32.gmra.mrb[14].mxu1 %v10864_v6 }
 0x5c8   : > { %8903 = vmatpush1.bf16.msra.mxu0 %v10869_v45  ;;  %3069 = vmatprep.mubr.f32.mxu1 %v12062_v24 }
 0x5c9   : > { %8905 = vmatprep.subr.bf16.mxu0 %v10873_v10 }
 0x5ca   : > { %9063 = vmatpush1.bf16.msra.mxu1 %v10706_v27 }
 0x5cb   : > { %9065 = vmatprep.subr.bf16.mxu1 %v10711_v41  ;;  %3070 = vmatmul.mubr.f32.gmra.mrb[16].mxu1 %v10876_v9  ;;  %v10937_v41 = vld [vmem:[#allocation11 + $0x78] sm:$0xff] }
 0x5cc   : > { %8907 = vmatpush1.bf16.msra.mxu0 %v10881_v28  ;;  %3075 = vmatprep.mubr.f32.mxu1 %v12062_v24 }
 0x5cd   : > { %8941 = vmatprep.subr.bf16.mxu0 %v10625_v31 }
 0x5ce   : > { %9067 = vmatpush1.bf16.msra.mxu1 %v10718_v52  ;;  %v10927_v52 = vld [vmem:[#allocation11 + $0x70] sm:$0xff] }
 0x5cf   : > { %2709 = vmatmul.mubr.f32.vlgmr.msra.gmra.mrb[4].mxu0 %v10723_v59  ;;  %4420 = vmatprep.subr.bf16.mxu1 %v10625_v31  ;;  %v10909_v31 = vld [vmem:[#allocation11 + $0x58] sm:$0xff]  ;;  %v10915_v59 = vld [vmem:[#allocation11 + $0x60] sm:$0xff] }
 0x5d0   : > { %3076 = vmatmul.mubr.f32.gmra.mrb[18].mxu1 %v10886_v5  ;;  %8943 = vmatpush1.bf16.msra.mxu0 %v10627_v33 }
 0x5d1   : > { %3081 = vmatprep.mubr.f32.mxu1 %v12062_v24  ;;  %8945 = vmatprep.subr.bf16.mxu0 %v10635_v43 }
 0x5d2   : > { %2866 = vmatprep.mubr.f32.mxu0 %v12062_v24 }
 0x5d4   : > { %3082 = vmatmul.mubr.f32.gmra.mrb[20].mxu1 %v10895_v58  ;;  %8947 = vmatpush1.bf16.msra.mxu0 %v10642_v49 }
 0x5d5   : > { %3087 = vmatprep.mubr.f32.mxu1 %v12062_v24  ;;  %8949 = vmatprep.subr.bf16.mxu0 %v10648_v23 }
 0x5d8   : > { %3088 = vmatmul.mubr.f32.gmra.mrb[22].mxu1 %v10903_v35  ;;  %8951 = vmatpush1.bf16.msra.mxu0 %v10654_v54 }
 0x5d9   : > { %3093 = vmatprep.mubr.f32.mxu1 %v12062_v24  ;;  %8953 = vmatprep.subr.bf16.mxu0 %v10660_v57 }
 0x5dc   : > { %3094 = vmatmul.mubr.f32.gmra.mrb[24].mxu1 %v10909_v31  ;;  %8955 = vmatpush1.bf16.msra.mxu0 %v10666_v4 }
 0x5dd   : > { %3099 = vmatprep.mubr.f32.mxu1 %v12062_v24  ;;  %8957 = vmatprep.subr.bf16.mxu0 %v10672_v7 }
 0x5e0   : > { %3100 = vmatmul.mubr.f32.gmra.mrb[26].mxu1 %v10915_v59  ;;  %8959 = vmatpush1.bf16.msra.mxu0 %v10678_v14 }
 0x5e1   : > { %3105 = vmatprep.mubr.f32.mxu1 %v12062_v24  ;;  %8961 = vmatprep.subr.bf16.mxu0 %v10684_v38 }
 0x5e4   : > { %3106 = vmatmul.mubr.f32.gmra.mrb[28].mxu1 %v10921_v1  ;;  %8963 = vmatpush1.bf16.msra.mxu0 %v10690_v19 }
 0x5e5   : > { %3111 = vmatprep.mubr.f32.mxu1 %v12062_v24  ;;  %8965 = vmatprep.subr.bf16.mxu0 %v10696_v8 }
 0x5e8   : > { %3112 = vmatmul.mubr.f32.gmra.mrb[30].mxu1 %v10927_v52  ;;  %8967 = vmatpush1.bf16.msra.mxu0 %v10702_v34 }
 0x5e9   : > { %3117 = vmatprep.mubr.f32.mxu1 %v12062_v24  ;;  %8969 = vmatprep.subr.bf16.mxu0 %v10708_v44 }
 0x5ec   : > { %3118 = vmatmul.mubr.f32.gmra.mrb[32].mxu1 %v10937_v41  ;;  %8971 = vmatpush1.bf16.msra.mxu0 %v10714_v48 }
 0x5ed   : > { %3349 = vmatprep.mubr.f32.mxu1 %v12062_v24  ;;  %9005 = vmatprep.subr.bf16.mxu0 %v10790_v50 }
 0x5ef   : > { %2867 = vmatmul.mubr.f32.vlgmr.msra.gmra.mrb[6].mxu0 %v10793_v51 }
 0x5f0   : > { %3350 = vmatmul.mubr.f32.vlgmr.msra.gmra.mrb[34].mxu1 %v10793_v51  ;;  %9007 = vmatpush1.bf16.msra.mxu0 %v10796_v61 }
 0x5f1   : > { %2872 = vmatprep.mubr.f32.mxu0 %v12062_v24  ;;  %3355 = vmatprep.mubr.f32.mxu1 %v12062_v24 }
 0x5f2   : > { %9009 = vmatprep.subr.bf16.mxu0 %v10800_v13  ;;  %4421 = vmatpush1.bf16.msra.mxu1 %v10627_v33  ;;  %v9372_v33 = vld [vmem:[%s12063_s6] sm:$0xff]  }
 0x5f3   : > { %2873 = vmatmul.mubr.f32.gmra.mrb[8].mxu0 %v10804_v63  ;;  %4422 = vmatprep.subr.bf16.mxu1 %v10635_v43  ;;  %v9373_v43 = vld [vmem:[%s12063_s6 + $0x8] sm:$0xff]  }
 0x5f4   : > { %3356 = vmatmul.mubr.f32.gmra.mrb[36].mxu1 %v10804_v63  ;;  %2878 = vmatprep.mubr.f32.mxu0 %v12062_v24 }
 0x5f5   : > { %3361 = vmatprep.mubr.f32.mxu1 %v12062_v24  ;;  %9011 = vmatpush1.bf16.msra.mxu0 %v10808_v55 }
 0x5f6   : > { %9013 = vmatprep.subr.bf16.mxu0 %v10812_v21  ;;  %4423 = vmatpush1.bf16.msra.mxu1 %v10642_v49  ;;  %v9374_v49 = vld [vmem:[%s12063_s6 + $0x10] sm:$0xff]  }
 0x5f7   : > { %2879 = vmatmul.mubr.f32.gmra.mrb[10].mxu0 %v10816_v36  ;;  %4424 = vmatprep.subr.bf16.mxu1 %v10648_v23  ;;  %v9375_v23 = vld [vmem:[%s12063_s6 + $0x18] sm:$0xff]  }
 0x5f8   : > { %3362 = vmatmul.mubr.f32.gmra.mrb[38].mxu1 %v10816_v36  ;;  %2884 = vmatprep.mubr.f32.mxu0 %v12062_v24 }
 0x5f9   : > { %3367 = vmatprep.mubr.f32.mxu1 %v12062_v24  ;;  %9015 = vmatpush1.bf16.msra.mxu0 %v10821_v0 }
 0x5fa   : > { %9017 = vmatprep.subr.bf16.mxu0 %v10825_v32  ;;  %4425 = vmatpush1.bf16.msra.mxu1 %v10654_v54  ;;  %v3954_v54 = vld [vmem:[#allocation5] sm:$0x1] }
 0x5fb   : > { %2885 = vmatmul.mubr.f32.gmra.mrb[12].mxu0 %v10828_v37  ;;  %4426 = vmatprep.subr.bf16.mxu1 %v10660_v57 }
 0x5fc   : > { %3368 = vmatmul.mubr.f32.gmra.mrb[40].mxu1 %v10828_v37  ;;  %2890 = vmatprep.mubr.f32.mxu0 %v12062_v24 }
 0x5fd   : > { %3373 = vmatprep.mubr.f32.mxu1 %v12062_v24  ;;  %9019 = vmatpush1.bf16.msra.mxu0 %v10833_v42 }
 0x5fe   : > { %9021 = vmatprep.subr.bf16.mxu0 %v10837_v18  ;;  %4427 = vmatpush1.bf16.msra.mxu1 %v10666_v4 }
 0x5ff   : > { %2891 = vmatmul.mubr.f32.gmra.mrb[14].mxu0 %v10840_v22  ;;  %4428 = vmatprep.subr.bf16.mxu1 %v10672_v7 }
 0x600   : > { %3374 = vmatmul.mubr.f32.gmra.mrb[42].mxu1 %v10840_v22  ;;  %2896 = vmatprep.mubr.f32.mxu0 %v12062_v24 }
 0x601   : > { %3379 = vmatprep.mubr.f32.mxu1 %v12062_v24  ;;  %9023 = vmatpush1.bf16.msra.mxu0 %v10845_v40 }
 0x602   : > { %9025 = vmatprep.subr.bf16.mxu0 %v10849_v17  ;;  %4429 = vmatpush1.bf16.msra.mxu1 %v10678_v14 }
 0x603   : > { %2897 = vmatmul.mubr.f32.gmra.mrb[16].mxu0 %v10852_v56  ;;  %4430 = vmatprep.subr.bf16.mxu1 %v10684_v38 }
 0x604   : > { %3380 = vmatmul.mubr.f32.gmra.mrb[44].mxu1 %v10852_v56  ;;  %2902 = vmatprep.mubr.f32.mxu0 %v12062_v24 }
 0x605   : > { %3385 = vmatprep.mubr.f32.mxu1 %v12062_v24  ;;  %9027 = vmatpush1.bf16.msra.mxu0 %v10857_v62 }
 0x606   : > { %9029 = vmatprep.subr.bf16.mxu0 %v10861_v3  ;;  %4431 = vmatpush1.bf16.msra.mxu1 %v10690_v19 }
 0x607   : > { %2903 = vmatmul.mubr.f32.gmra.mrb[18].mxu0 %v10864_v6  ;;  %4432 = vmatprep.subr.bf16.mxu1 %v10696_v8  ;;  %v10130_v8 = vmov 1966171168  }
 0x608   : > { %3386 = vmatmul.mubr.f32.gmra.mrb[46].mxu1 %v10864_v6  ;;  %2908 = vmatprep.mubr.f32.mxu0 %v12062_v24 }
 0x609   : > { %3391 = vmatprep.mubr.f32.mxu1 %v12062_v24  ;;  %9031 = vmatpush1.bf16.msra.mxu0 %v10869_v45 }
 0x60a   : > { %9033 = vmatprep.subr.bf16.mxu0 %v10873_v10  ;;  %4433 = vmatpush1.bf16.msra.mxu1 %v10702_v34  ;;  %v3806_v34 = vunpack.c.l.s4 %v10130_v8 }
 0x60b   : > { %2909 = vmatmul.mubr.f32.gmra.mrb[20].mxu0 %v10876_v9  ;;  %4434 = vmatprep.subr.bf16.mxu1 %v10708_v44 }
 0x60c   : > { %3392 = vmatmul.mubr.f32.gmra.mrb[48].mxu1 %v10876_v9  ;;  %2914 = vmatprep.mubr.f32.mxu0 %v12062_v24 }
 0x60d   : > { %3397 = vmatprep.mubr.f32.mxu1 %v12062_v24  ;;  %9035 = vmatpush1.bf16.msra.mxu0 %v10881_v28 }
 0x60e   : > { %8800 = vmatprep.subr.bf16.mxu0 %v12062_v24  ;;  %4435 = vmatpush1.bf16.msra.mxu1 %v10714_v48  ;;  %v9884_v48 = vld [vmem:[#allocation13 + $0x8] sm:$0xff] }
 0x60f   : > { %2915 = vmatmul.mubr.f32.gmra.mrb[22].mxu0 %v10886_v5  ;;  %4502 = vmatprep.subr.bf16.mxu1 %v10790_v50 }
 0x610   : > { %3398 = vmatmul.mubr.f32.gmra.mrb[50].mxu1 %v10886_v5  ;;  %2920 = vmatprep.mubr.f32.mxu0 %v12062_v24 }
 0x611   : > { %3403 = vmatprep.mubr.f32.mxu1 %v12062_v24 }
 0x613   : > { %2921 = vmatmul.mubr.f32.gmra.mrb[24].mxu0 %v10895_v58 }
 0x614   : > { %3404 = vmatmul.mubr.f32.gmra.mrb[52].mxu1 %v10895_v58  ;;  %2926 = vmatprep.mubr.f32.mxu0 %v12062_v24 }
 0x615   : > { %3409 = vmatprep.mubr.f32.mxu1 %v12062_v24 }
 0x617   : > { %2927 = vmatmul.mubr.f32.gmra.mrb[26].mxu0 %v10903_v35 }
 0x618   : > { %3410 = vmatmul.mubr.f32.gmra.mrb[54].mxu1 %v10903_v35  ;;  %2932 = vmatprep.mubr.f32.mxu0 %v12062_v24 }
 0x619   : > { %3415 = vmatprep.mubr.f32.mxu1 %v12062_v24 }
 0x61b   : > { %2933 = vmatmul.mubr.f32.gmra.mrb[28].mxu0 %v10909_v31 }
 0x61c   : > { %3416 = vmatmul.mubr.f32.gmra.mrb[56].mxu1 %v10909_v31  ;;  %2938 = vmatprep.mubr.f32.mxu0 %v12062_v24 }
 0x61d   : > { %3421 = vmatprep.mubr.f32.mxu1 %v12062_v24 }
 0x61f   : > { %2939 = vmatmul.mubr.f32.gmra.mrb[30].mxu0 %v10915_v59 }
 0x620   : > { %3422 = vmatmul.mubr.f32.gmra.mrb[58].mxu1 %v10915_v59  ;;  %2944 = vmatprep.mubr.f32.mxu0 %v12062_v24 }
 0x621   : > { %3427 = vmatprep.mubr.f32.mxu1 %v12062_v24 }
 0x623   : > { %2945 = vmatmul.mubr.f32.gmra.mrb[32].mxu0 %v10921_v1 }
 0x624   : > { %3428 = vmatmul.mubr.f32.gmra.mrb[60].mxu1 %v10921_v1  ;;  %2950 = vmatprep.mubr.f32.mxu0 %v12062_v24 }
 0x625   : > { %3433 = vmatprep.mubr.f32.mxu1 %v12062_v24 }
 0x627   : > { %2951 = vmatmul.mubr.f32.gmra.mrb[34].mxu0 %v10927_v52 }
 0x628   : > { %3434 = vmatmul.mubr.f32.gmra.mrb[62].mxu1 %v10927_v52  ;;  %2956 = vmatprep.mubr.f32.mxu0 %v12062_v24 }
 0x629   : > { %3439 = vmatprep.mubr.f32.mxu1 %v12062_v24 }
 0x62b   : > { %2957 = vmatmul.mubr.f32.gmra.mrb[36].mxu0 %v10937_v41 }
 0x62c   : > { %3440 = vmatmul.mubr.f32.gmra.mrb[64].mxu1 %v10937_v41  ;;  %3188 = vmatprep.mubr.f32.mxu0 %v12062_v24 }
 0x62f   : > { %3189 = vmatmul.mubr.f32.vlgmr.msra.gmra.mrb[38].mxu0 %v10793_v51 }
 0x630   : > { %8801 = vmatpush3.bf16.msra.mxu0 %v9372_v33  ;;  %3194 = vmatprep.mubr.f32.mxu0 %v12062_v24 }
 0x631   : > { %8802 = vmatprep.subr.bf16.mxu0 %v12062_v24 }
 0x633   : > { %3195 = vmatmul.mubr.f32.gmra.mrb[40].mxu0 %v10804_v63 }
 0x634   : > { %3200 = vmatprep.mubr.f32.mxu0 %v12062_v24  ;;  %8803 = vmatpush3.bf16.msra.mxu0 %v9373_v43 }
 0x635   : > { %8804 = vmatprep.subr.bf16.mxu0 %v12062_v24 }
 0x637   : > { %3201 = vmatmul.mubr.f32.gmra.mrb[42].mxu0 %v10816_v36  ;;  %v2306_v36 = vld [vmem:[%s12064_s20] sm:$0x1] }
 0x638   : > { %3206 = vmatprep.mubr.f32.mxu0 %v12062_v24  ;;  %8805 = vmatpush3.bf16.msra.mxu0 %v9374_v49  ;;  %v12073_v49 = vld [vmem:[#allocation48_spill] sm:$0xff] }
 0x639   : > { %8806 = vmatprep.subr.bf16.mxu0 %v12062_v24 }
 0x63b   : > { %3207 = vmatmul.mubr.f32.gmra.mrb[44].mxu0 %v10828_v37  ;;  %v3952_v37 = vld [vmem:[#allocation4] sm:$0x1] }
 0x63c   : > { %3212 = vmatprep.mubr.f32.mxu0 %v12062_v24  ;;  %8807 = vmatpush3.bf16.msra.mxu0 %v9375_v23 }
 0x63d   : > { %4461 = vmatprep.subr.bf16.mxu0 %v10720_v53 }
 0x63f   : > { %3213 = vmatmul.mubr.f32.gmra.mrb[46].mxu0 %v10840_v22  ;;  %v3953_v22 = vmul.f32 %v3952_v37, %v2306_v36 }
 0x640   : > { %3218 = vmatprep.mubr.f32.mxu0 %v12062_v24 }
 0x641   : > { %v3955_v4 = vadd.f32 %v3954_v54, %v3953_v22 }
 0x643   : > { %3219 = vmatmul.mubr.f32.gmra.mrb[48].mxu0 %v10852_v56  ;;  %v3956_v38 = vmax.f32 %v3955_v4, 0.0  ;;  %v9887_v4 = vld [vmem:[#allocation13 + $0x68] sm:$0xff] }
 0x644   : > { %3224 = vmatprep.mubr.f32.mxu0 %v12062_v24  ;;  %v2400_v8 = vunpack.c.h.bf16 %v9887_v4 }
 0x645   : > { %v3957_v19 = vpack.c.bf16 %v3956_v38, %v3956_v38  ;;  %v12074_v38 = vld [vmem:[#allocation49_spill] sm:$0xff] }
 0x647   : > { %3225 = vmatmul.mubr.f32.gmra.mrb[50].mxu0 %v10864_v6 }
 0x648   : > { %3230 = vmatprep.mubr.f32.mxu0 %v12062_v24 }
 0x64b   : > { %3231 = vmatmul.mubr.f32.gmra.mrb[52].mxu0 %v10876_v9 }
 0x64c   : > { %3236 = vmatprep.mubr.f32.mxu0 %v12062_v24 }
 0x64f   : > { %3237 = vmatmul.mubr.f32.gmra.mrb[54].mxu0 %v10886_v5 }
 0x650   : > { %3242 = vmatprep.mubr.f32.mxu0 %v12062_v24 }
 0x653   : > { %3243 = vmatmul.mubr.f32.gmra.mrb[56].mxu0 %v10895_v58 }
 0x654   : > { %3248 = vmatprep.mubr.f32.mxu0 %v12062_v24 }
 0x657   : > { %3249 = vmatmul.mubr.f32.gmra.mrb[58].mxu0 %v10903_v35 }
 0x658   : > { %3254 = vmatprep.mubr.f32.mxu0 %v12062_v24 }
 0x65b   : > { %3255 = vmatmul.mubr.f32.gmra.mrb[60].mxu0 %v10909_v31  ;;  %v9886_v31 = vld [vmem:[#allocation13 + $0x48] sm:$0xff] }
 0x65c   : > { %3260 = vmatprep.mubr.f32.mxu0 %v12062_v24  ;;  %v2392_v43 = vunpack.c.h.bf16 %v9886_v31 }
 0x65f   : > { %3261 = vmatmul.mubr.f32.gmra.mrb[62].mxu0 %v10915_v59  ;;  %v2391_v59 = vunpack.c.l.bf16 %v9886_v31 }
 0x660   : > { %3266 = vmatprep.mubr.f32.mxu0 %v12062_v24 }
 0x662   : > { %v11083_v56 = vpop.f32.mrb[0].mxu0  ;;  %v11088_v6 = vpop.f32.mrb[0].mxu1 }
 0x663   : > { %v11085_v57 = vpop.f32.mrb[1].mxu0  ;;  %3267 = vmatmul.mubr.f32.gmra.mrb[64].mxu0 %v10921_v1  ;;  %12065 = vst [vmem:[#allocation50_spill] sm:$0xff] %v11088_v6  ;;  %v11093_v9 = vpop.f32.mrb[1].mxu1  ;;  %v12072_v1 = vld [vmem:[#allocation47_spill] sm:$0xff] }
 0x664   : > { %v3801_v7 = vcombine.low %v11083_v56, %v11085_v57  ;;  %3272 = vmatprep.mubr.f32.mxu0 %v12062_v24  ;;  %12066 = vst [vmem:[#allocation51_spill] sm:$0xff] %v11093_v9  ;;  %v3804_v14 = vcombine.low %v11088_v6, %v11093_v9 }
 0x667   : > { %3273 = vmatmul.mubr.f32.gmra.mrb[66].mxu0 %v10927_v52  ;;  %v2375_v52 = vunpack.c.l.bf16 %v9884_v48 }
 0x668   : > { %3278 = vmatprep.mubr.f32.mxu0 %v12062_v24 }
 0x66b   : > { %3279 = vmatmul.mubr.f32.gmra.mrb[68].mxu0 %v10937_v41 }
 0x66c   : > { %8808 = vmatprep.mubr.msk.bf16.mxu0 %vm10129_vm11, %v12062_v24  ;;  %v3807_v24 = vunpack.c.0.s8 %v3806_v34  ;;  %v12075_v34 = vld [vmem:[#allocation33_spill] sm:$0xff] }
 0x66e   : > { %v11113_v44 = vsub.s32 %v3807_v24, %v10516_v39 }
 0x66f   : > { %8809 = vmatmul.mubr.msk.bf16.vlgmr.msra.gmra.mrb[72].mxu0 %vm1050_vm7, %v3957_v19 }
 0x670   : > { %4462 = vmatpush1.bf16.msra.mxu0 %v10726_v60  ;;  %12067 = vst [vmem:[#allocation52_spill] sm:$0xff] %v11113_v44  ;;  %v11124_v39 = vrot.slane %v3801_v7, %v11113_v44  ;;  %v2399_v7 = vunpack.c.l.bf16 %v9887_v4 }
 0x671   : > { %4463 = vmatprep.subr.bf16.mxu0 %v10730_v11  ;;  %v2376_v11 = vunpack.c.h.bf16 %v9884_v48 }
 0x674   : > { %4464 = vmatpush1.bf16.msra.mxu0 %v10736_v12 }
 0x675   : > { %4465 = vmatprep.subr.bf16.mxu0 %v10740_v29 }
 0x678   : > { %4466 = vmatpush1.bf16.msra.mxu0 %v10746_v16  ;;  %v9885_v16 = vld [vmem:[#allocation13 + $0x28] sm:$0xff] }
 0x679   : > { %4467 = vmatprep.subr.bf16.mxu0 %v10750_v26  ;;  %v2383_v26 = vunpack.c.l.bf16 %v9885_v16 }
 0x67c   : > { %4468 = vmatpush1.bf16.msra.mxu0 %v10754_v30  ;;  %v12070_v30 = vld [vmem:[#allocation45_spill] sm:$0xff] }
 0x67d   : > { %4469 = vmatprep.subr.bf16.mxu0 %v10758_v46  ;;  %v2384_v46 = vunpack.c.h.bf16 %v9885_v16 }
 0x680   : > { %4470 = vmatpush1.bf16.msra.mxu0 %v10762_v47  ;;  %v12071_v47 = vld [vmem:[#allocation46_spill] sm:$0xff] }
 0x681   : > { %4471 = vmatprep.subr.bf16.mxu0 %v10766_v2 }
 0x682   : > { %v11115_v41 = vpop.f32.mrb[2].mxu0  ;;  %v3029_v60 = vpop.f32.mrb[2].mxu1 }
 0x683   : > { %12068 = vst [vmem:[#allocation53_spill] sm:$0xff] %v11115_v41  ;;  %v11117_v53 = vpop.f32.mrb[3].mxu0  ;;  %v3031_v29 = vpop.f32.mrb[3].mxu1  ;;  %v3448_v50 = vmul.f32 %v3029_v60, %v2375_v52 }
 0x684   : > { %12069 = vst [vmem:[#allocation54_spill] sm:$0xff] %v11117_v53  ;;  %v3802_v12 = vcombine.low %v11115_v41, %v11117_v53  ;;  %4472 = vmatpush1.bf16.msra.mxu0 %v12070_v30  ;;  %v3449_v51 = vmul.f32 %v3031_v29, %v2376_v11 }
 0x685   : > { %4473 = vmatprep.subr.bf16.mxu0 %v12071_v47 }
 0x686   : > { %v11127_v2 = vrot.slane %v3802_v12, %v11113_v44  ;;  %v3035_v63 = vpop.f32.mrb[4].mxu1  ;;  %v9888_v12 = vld [vmem:[#allocation13 + $0x88] sm:$0xff] }
 0x687   : > { %v3456_v58 = vmul.f32 %v3035_v63, %v2383_v26  ;;  %v3037_v35 = vpop.f32.mrb[5].mxu1  ;;  %v2407_v29 = vunpack.c.l.bf16 %v9888_v12  ;;  %v2408_v26 = vunpack.c.h.bf16 %v9888_v12  ;;  %v9889_v63 = vld [vmem:[#allocation13 + $0xa8] sm:$0xff] }
 0x688   : > { %v3833_v5 = vcombine.low %v11124_v39, %v11127_v2  ;;  %4474 = vmatpush1.bf16.msra.mxu0 %v12072_v1  ;;  %v3457_v33 = vmul.f32 %v3037_v35, %v2384_v46  ;;  %v2416_v31 = vunpack.c.h.bf16 %v9889_v63 }
 0x689   : > { %4475 = vmatprep.subr.bf16.mxu0 %v12073_v49  ;;  %v3616_v23 = vadd.f32 %v3456_v58, %v3448_v50  ;;  %v2415_v58 = vunpack.c.l.bf16 %v9889_v63 }
 0x68a   : > { %v3637_v36 = vadd.f32 %v3457_v33, %v3449_v51  ;;  %v3041_v37 = vpop.f32.mrb[6].mxu1 }
 0x68b   : > { %v3464_v22 = vmul.f32 %v3041_v37, %v2391_v59  ;;  %v3043_v54 = vpop.f32.mrb[7].mxu1 }
 0x68c   : > { %4476 = vmatpush1.bf16.msra.mxu0 %v12074_v38  ;;  %v3465_v19 = vmul.f32 %v3043_v54, %v2392_v43 }
 0x68d   : > { %4543 = vmatprep.subr.bf16.mxu0 %v12075_v34  ;;  %v3617_v24 = vadd.f32 %v3616_v23, %v3464_v22  ;;  %v9890_v23 = vld [vmem:[#allocation13 + $0xc8] sm:$0xff] }
 0x68e   : > { %v3638_v48 = vadd.f32 %v3637_v36, %v3465_v19  ;;  %v3047_v52 = vpop.f32.mrb[8].mxu1  ;;  %v2423_v36 = vunpack.c.l.bf16 %v9890_v23  ;;  %v2424_v22 = vunpack.c.h.bf16 %v9890_v23 }
 0x68f   : > { %v3472_v60 = vmul.f32 %v3047_v52, %v2399_v7  ;;  %v3049_v11 = vpop.f32.mrb[9].mxu1 }
 0x690   : > { %v3473_v16 = vmul.f32 %v3049_v11, %v2400_v8  ;;  %v9891_v8 = vld [vmem:[#allocation13 + $0xe8] sm:$0xff] }
 0x691   : > { %v3618_v30 = vadd.f32 %v3617_v24, %v3472_v60  ;;  %v2431_v34 = vunpack.c.l.bf16 %v9891_v8 }
 0x692   : > { %v3639_v46 = vadd.f32 %v3638_v48, %v3473_v16  ;;  %v3053_v47 = vpop.f32.mrb[10].mxu1  ;;  %v2432_v48 = vunpack.c.h.bf16 %v9891_v8  ;;  %v9892_v16 = vld [vmem:[#allocation13 + $0x108] sm:$0xff] }
 0x693   : > { %v3480_v50 = vmul.f32 %v3053_v47, %v2407_v29  ;;  %v3055_v51 = vpop.f32.mrb[11].mxu1 }
 0x694   : > { %v3481_v35 = vmul.f32 %v3055_v51, %v2408_v26  ;;  %v2439_v26 = vunpack.c.l.bf16 %v9892_v16 }
 0x695   : > { %v3619_v59 = vadd.f32 %v3618_v30, %v3480_v50 }
 0x696   : > { %v3640_v1 = vadd.f32 %v3639_v46, %v3481_v35  ;;  %v3059_v33 = vpop.f32.mrb[12].mxu1  ;;  %v2440_v46 = vunpack.c.h.bf16 %v9892_v16  ;;  %v3832_v35 = vrot.slane %v3804_v14, %v11113_v44 }
 0x697   : > { %v3488_v43 = vmul.f32 %v3059_v33, %v2415_v58  ;;  %v3061_v49 = vpop.f32.mrb[13].mxu1  ;;  %v9893_v33 = vld [vmem:[#allocation13 + $0x128] sm:$0xff] }
 0x698   : > { %v3489_v37 = vmul.f32 %v3061_v49, %v2416_v31  ;;  %v2448_v23 = vunpack.c.h.bf16 %v9893_v33 }
 0x699   : > { %v3620_v54 = vadd.f32 %v3619_v59, %v3488_v43  ;;  %v2447_v43 = vunpack.c.l.bf16 %v9893_v33 }
 0x69a   : > { %v3641_v4 = vadd.f32 %v3640_v1, %v3489_v37  ;;  %v3065_v7 = vpop.f32.mrb[14].mxu1 }
 0x69b   : > { %v3496_v38 = vmul.f32 %v3065_v7, %v2423_v36  ;;  %v3067_v19 = vpop.f32.mrb[15].mxu1 }
 0x69c   : > { %v3497_v24 = vmul.f32 %v3067_v19, %v2424_v22  ;;  %v9894_v19 = vld [vmem:[#allocation13 + $0x148] sm:$0xff] }
 0x69d   : > { %v3621_v52 = vadd.f32 %v3620_v54, %v3496_v38  ;;  %v2455_v8 = vunpack.c.l.bf16 %v9894_v19 }
 0x69e   : > { %v3642_v60 = vadd.f32 %v3641_v4, %v3497_v24  ;;  %v3071_v11 = vpop.f32.mrb[16].mxu1  ;;  %v11150_v24 = vrot.slane %v3833_v5, %v11113_v44 }
 0x69f   : > { %v3504_v12 = vmul.f32 %v3071_v11, %v2431_v34  ;;  %v3073_v29 = vpop.f32.mrb[17].mxu1  ;;  %v2456_v34 = vunpack.c.h.bf16 %v9894_v19 }
 0x6a0   : > { %v3505_v30 = vmul.f32 %v3073_v29, %v2432_v48 }
 0x6a1   : > { %v3622_v50 = vadd.f32 %v3621_v52, %v3504_v12 }
 0x6a2   : > { %v11135_v47 = vpop.f32.mrb[4].mxu0  ;;  %v3643_v63 = vadd.f32 %v3642_v60, %v3505_v30 }
 0x6a3   : > { %12076 = vst [vmem:[#allocation45_spill] sm:$0xff] %v11135_v47  ;;  %v11137_v51 = vpop.f32.mrb[5].mxu0  ;;  %v3077_v58 = vpop.f32.mrb[18].mxu1 }
 0x6a4   : > { %12077 = vst [vmem:[#allocation46_spill] sm:$0xff] %v11137_v51  ;;  %v3803_v31 = vcombine.low %v11135_v47, %v11137_v51  ;;  %v3512_v59 = vmul.f32 %v3077_v58, %v2439_v26  ;;  %v3079_v1 = vpop.f32.mrb[19].mxu1  ;;  %v9895_v26 = vld [vmem:[#allocation13 + $0x168] sm:$0xff] }
 0x6a5   : > { %v3513_v49 = vmul.f32 %v3079_v1, %v2440_v46  ;;  %v2463_v30 = vunpack.c.l.bf16 %v9895_v26 }
 0x6a6   : > { %v3825_v36 = vrot.slane %v3803_v31, %v11113_v44  ;;  %v3623_v37 = vadd.f32 %v3622_v50, %v3512_v59  ;;  %v2464_v50 = vunpack.c.h.bf16 %v9895_v26 }
 0x6a7   : > { %v3644_v22 = vadd.f32 %v3643_v63, %v3513_v49  ;;  %v3083_v54 = vpop.f32.mrb[20].mxu1 }
 0x6a8   : > { %v3834_v4 = vcombine.low %v3825_v36, %v3832_v35  ;;  %v3520_v7 = vmul.f32 %v3083_v54, %v2447_v43  ;;  %v3085_v38 = vpop.f32.mrb[21].mxu1  ;;  %v9896_v35 = vld [vmem:[#allocation13 + $0x188] sm:$0xff] }
 0x6a9   : > { %v3521_v14 = vmul.f32 %v3085_v38, %v2448_v23  ;;  %v2471_v31 = vunpack.c.l.bf16 %v9896_v35  ;;  %v2472_v1 = vunpack.c.h.bf16 %v9896_v35 }
 0x6aa   : > { %v11153_v48 = vrot.slane %v3834_v4, %v11113_v44  ;;  %v3624_v52 = vadd.f32 %v3623_v37, %v3520_v7  ;;  %v9897_v37 = vld [vmem:[#allocation13 + $0x1a8] sm:$0xff] }
 0x6ab   : > { %v3645_v60 = vadd.f32 %v3644_v22, %v3521_v14  ;;  %v3089_v11 = vpop.f32.mrb[22].mxu1  ;;  %v2479_v22 = vunpack.c.l.bf16 %v9897_v37  ;;  %v2480_v4 = vunpack.c.h.bf16 %v9897_v37 }
 0x6ac   : > { %v3528_v29 = vmul.f32 %v3089_v11, %v2455_v8  ;;  %v3091_v16 = vpop.f32.mrb[23].mxu1 }
 0x6ad   : > { %v3529_v46 = vmul.f32 %v3091_v16, %v2456_v34  ;;  %v9898_v34 = vld [vmem:[#allocation13 + $0x1c8] sm:$0xff] }
 0x6ae   : > { %v3625_v63 = vadd.f32 %v3624_v52, %v3528_v29  ;;  %v2487_v52 = vunpack.c.l.bf16 %v9898_v34  ;;  %v2488_v11 = vunpack.c.h.bf16 %v9898_v34  ;;  %v9903_v34 = vld [vmem:[#allocation13 + $0x40] sm:$0xff] }
 0x6af   : > { %v3646_v58 = vadd.f32 %v3645_v60, %v3529_v46  ;;  %v3095_v39 = vpop.f32.mrb[24].mxu1 }
 0x6b0   : > { %v3536_v2 = vmul.f32 %v3095_v39, %v2463_v30  ;;  %v3097_v5 = vpop.f32.mrb[25].mxu1 }
 0x6b1   : > { %v3537_v59 = vmul.f32 %v3097_v5, %v2464_v50  ;;  %v9899_v50 = vld [vmem:[#allocation13 + $0x1e8] sm:$0xff] }
 0x6b2   : > { %v3626_v33 = vadd.f32 %v3625_v63, %v3536_v2  ;;  %v2495_v63 = vunpack.c.l.bf16 %v9899_v50  ;;  %v2496_v39 = vunpack.c.h.bf16 %v9899_v50  ;;  %v9905_v50 = vld [vmem:[#allocation13 + $0x38] sm:$0xff] }
 0x6b3   : > { %v3647_v43 = vadd.f32 %v3646_v58, %v3537_v59  ;;  %v3101_v49 = vpop.f32.mrb[26].mxu1 }
 0x6b4   : > { %v3544_v23 = vmul.f32 %v3101_v49, %v2471_v31  ;;  %v3103_v36 = vpop.f32.mrb[27].mxu1  ;;  %v2308_v31 = vld [vmem:[%s11924_s10] sm:$0xff] }
 0x6b5   : > { %v3545_v54 = vmul.f32 %v3103_v36, %v2472_v1  ;;  %v9900_v49 = vld [vmem:[#allocation13] sm:$0xff] }
 0x6b6   : > { %v3627_v7 = vadd.f32 %v3626_v33, %v3544_v23  ;;  %v3792_v33 = vmul.f32 2.0, %v2308_v31  ;;  %v2373_v23 = vunpack.c.l.bf16 %v9900_v49 }
 0x6b7   : > { %v3648_v38 = vadd.f32 %v3647_v43, %v3545_v54  ;;  %v3107_v19 = vpop.f32.mrb[28].mxu1  ;;  %v9901_v54 = vld [vmem:[#allocation13 + $0x20] sm:$0xff] }
 0x6b8   : > { %v3552_v8 = vmul.f32 %v3107_v19, %v2479_v22  ;;  %v3109_v14 = vpop.f32.mrb[29].mxu1  ;;  %v2374_v22 = vunpack.c.h.bf16 %v9900_v49 }
 0x6b9   : > { %v3553_v60 = vmul.f32 %v3109_v14, %v2480_v4  ;;  %v2381_v4 = vunpack.c.l.bf16 %v9901_v54  ;;  %v2382_v14 = vunpack.c.h.bf16 %v9901_v54 }
 0x6ba   : > { %v3628_v29 = vadd.f32 %v3627_v7, %v3552_v8  ;;  %v9902_v7 = vld [vmem:[#allocation13 + $0x18] sm:$0xff] }
 0x6bb   : > { %v3649_v16 = vadd.f32 %v3648_v38, %v3553_v60  ;;  %v3113_v26 = vpop.f32.mrb[30].mxu1  ;;  %v2379_v38 = vunpack.c.l.bf16 %v9902_v7 }
 0x6bc   : > { %v3560_v30 = vmul.f32 %v3113_v26, %v2487_v52  ;;  %v3115_v46 = vpop.f32.mrb[31].mxu1  ;;  %v2389_v52 = vunpack.c.l.bf16 %v9903_v34  ;;  %v11160_v26 = vld [vmem:[#allocation13 + $0x60] sm:$0xff] }
 0x6bd   : > { %v3561_v58 = vmul.f32 %v3115_v46, %v2488_v11  ;;  %v2380_v11 = vunpack.c.h.bf16 %v9902_v7 }
 0x6be   : > { %v3629_v2 = vadd.f32 %v3628_v29, %v3560_v30  ;;  %v2397_v30 = vunpack.c.l.bf16 %v11160_v26 }
 0x6bf   : > { %v3650_v5 = vadd.f32 %v3649_v16, %v3561_v58  ;;  %v3119_v35 = vpop.f32.mrb[32].mxu1  ;;  %v2390_v16 = vunpack.c.h.bf16 %v9903_v34 }
 0x6c0   : > { %v3568_v59 = vmul.f32 %v3119_v35, %v2495_v63  ;;  %v3121_v1 = vpop.f32.mrb[33].mxu1  ;;  %v2387_v63 = vunpack.c.l.bf16 %v9905_v50  ;;  %v2388_v35 = vunpack.c.h.bf16 %v9905_v50  ;;  %v12078_v50 = vcombine.low %v11150_v24, %v11153_v48 }
 0x6c1   : > { %v3569_v43 = vmul.f32 %v3121_v1, %v2496_v39  ;;  %v2398_v39 = vunpack.c.h.bf16 %v11160_v26 }
 0x6c2   : > { %v3630_v36 = vadd.f32 %v3629_v2, %v3568_v59  ;;  %v2868_v37 = vpop.f32.mrb[6].mxu0  ;;  %v11164_v2 = vld [vmem:[#allocation13 + $0x80] sm:$0xff] }
 0x6c3   : > { %v3651_v19 = vadd.f32 %v3650_v5, %v3569_v43  ;;  %v2870_v8 = vpop.f32.mrb[7].mxu0  ;;  %v3351_v60 = vpop.f32.mrb[34].mxu1  ;;  %v2405_v5 = vunpack.c.l.bf16 %v11164_v2  ;;  %v9907_v43 = vld [vmem:[#allocation13 + $0x58] sm:$0xff]  ;;  %v3446_v34 = vmul.f32 %v2868_v37, %v2373_v23  ;;  %v2406_v37 = vunpack.c.h.bf16 %v11164_v2 }
 0x6c4   : > { %v3631_v29 = vrot.slane %v3630_v36, 4  ;;  %v3353_v46 = vpop.f32.mrb[35].mxu1  ;;  %v3452_v1 = vmul.f32 %v3351_v60, %v2379_v38  ;;  %v2395_v49 = vunpack.c.l.bf16 %v9907_v43  ;;  %v2396_v54 = vunpack.c.h.bf16 %v9907_v43 }
 0x6c5   : > { %v3652_v58 = vrot.slane %v3651_v19, 4  ;;  %v3453_v51 = vmul.f32 %v3353_v46, %v2380_v11  ;;  %v3447_v41 = vmul.f32 %v2870_v8, %v2374_v22  ;;  %v9908_v8 = vld [vmem:[#allocation13 + $0x78] sm:$0xff] }
 0x6c6   : > { %v3632_v31 = vadd.f32 %v3631_v29, %v3630_v36  ;;  %v2874_v59 = vpop.f32.mrb[8].mxu0  ;;  %v11170_v36 = vmul.f32 %v12078_v50, %v3792_v33  ;;  %v10131_v50 = vmov 0  }
 0x6c7   : > { %v3653_v7 = vadd.f32 %v3652_v58, %v3651_v19  ;;  %v3454_v12 = vmul.f32 %v2874_v59, %v2381_v4  ;;  %v2876_v44 = vpop.f32.mrb[9].mxu0  ;;  %v3357_v47 = vpop.f32.mrb[36].mxu1  ;;  %v2404_v58 = vunpack.c.h.bf16 %v9908_v8  ;;  %4452 = vmatprep.mubr.bf16.mxu1 %v10131_v50  ;;  %4493 = vmatprep.mubr.bf16.mxu0 %v10131_v50 }
 0x6c8   : > { %v3633_v53 = vrot.slane %v3632_v31, 2  ;;  %v3455_v26 = vmul.f32 %v2876_v44, %v2382_v14  ;;  %v3460_v9 = vmul.f32 %v3357_v47, %v2387_v63  ;;  %v3359_v6 = vpop.f32.mrb[37].mxu1  ;;  %v2403_v14 = vunpack.c.l.bf16 %v9908_v8 }
 0x6c9   : > { %v3654_v38 = vrot.slane %v3653_v7, 2  ;;  %v3574_v60 = vadd.f32 %v3454_v12, %v3446_v34  ;;  %v3461_v29 = vmul.f32 %v3359_v6, %v2388_v35  ;;  %v12079_v12 = vld [vmem:[#allocation28_spill] sm:$0xff] }
 0x6ca   : > { %v3634_v43 = vadd.f32 %v3633_v53, %v3632_v31  ;;  %v3595_v19 = vadd.f32 %v3455_v26, %v3447_v41  ;;  %v2880_v23 = vpop.f32.mrb[10].mxu0  ;;  %v3700_v4 = vadd.f32 %v3460_v9, %v3452_v1  ;;  %v3864_v6 = vrot.slane %v11170_v36, %v12079_v12 }
 0x6cb   : > { %v3655_v11 = vadd.f32 %v3654_v38, %v3653_v7  ;;  %v3462_v46 = vmul.f32 %v2880_v23, %v2389_v52  ;;  %v2882_v22 = vpop.f32.mrb[11].mxu0  ;;  %v3721_v44 = vadd.f32 %v3461_v29, %v3453_v51  ;;  %v3363_v47 = vpop.f32.mrb[38].mxu1  ;;  %v12080_v51 = vld [vmem:[#allocation29_spill] sm:$0xff] }
 0x6cc   : > { %v3635_v63 = vrot.slane %v3634_v43, 1  ;;  %v3463_v24 = vmul.f32 %v2882_v22, %v2390_v16  ;;  %v3468_v48 = vmul.f32 %v3363_v47, %v2395_v49  ;;  %v3365_v33 = vpop.f32.mrb[39].mxu1  ;;  %v3868_v7 = vrot.slane %v11170_v36, %v12080_v51 }
 0x6cd   : > { %v3656_v41 = vrot.slane %v3655_v11, 1  ;;  %v3575_v53 = vadd.f32 %v3574_v60, %v3462_v46  ;;  %v3469_v35 = vmul.f32 %v3365_v33, %v2396_v54 }
 0x6ce   : > { %v3636_v31 = vadd.f32 %v3635_v63, %v3634_v43  ;;  %v3596_v9 = vadd.f32 %v3595_v19, %v3463_v24  ;;  %v2886_v59 = vpop.f32.mrb[12].mxu0  ;;  %v3701_v52 = vadd.f32 %v3700_v4, %v3468_v48  ;;  %v9909_v43 = vld [vmem:[#allocation13 + $0x98] sm:$0xff]  ;;  %v9910_v63 = vld [vmem:[#allocation13 + $0xa0] sm:$0xff] }
 0x6cf   : > { %v3657_v1 = vadd.f32 %v3656_v41, %v3655_v11  ;;  %v3470_v34 = vmul.f32 %v2886_v59, %v2397_v30  ;;  %v2888_v26 = vpop.f32.mrb[13].mxu0  ;;  %v3722_v16 = vadd.f32 %v3721_v44, %v3469_v35  ;;  %v3369_v49 = vpop.f32.mrb[40].mxu1  ;;  %v2411_v19 = vunpack.c.l.bf16 %v9909_v43  ;;  %v9911_v35 = vld [vmem:[#allocation13 + $0xb8] sm:$0xff] }
 0x6d0   : > { %v11178_v38 = vadd.f32 %v3864_v6, %v3636_v31  ;;  %v3471_v29 = vmul.f32 %v2888_v26, %v2398_v39  ;;  %v3476_v60 = vmul.f32 %v3369_v49, %v2403_v14  ;;  %v3371_v54 = vpop.f32.mrb[41].mxu1  ;;  %v2412_v30 = vunpack.c.h.bf16 %v9909_v43 }
 0x6d1   : > { %v11181_v23 = vadd.f32 %v3868_v7, %v3657_v1  ;;  %v3576_v4 = vadd.f32 %v3575_v53, %v3470_v34  ;;  %v3477_v11 = vmul.f32 %v3371_v54, %v2404_v58  ;;  %v2413_v39 = vunpack.c.l.bf16 %v9910_v63  ;;  %v9913_v54 = vld [vmem:[#allocation13 + $0xd8] sm:$0xff] }
 0x6d2   : > { %v3597_v46 = vadd.f32 %v3596_v9, %v3471_v29  ;;  %v2892_v22 = vpop.f32.mrb[14].mxu0  ;;  %v3702_v44 = vadd.f32 %v3701_v52, %v3476_v60  ;;  %v2414_v33 = vunpack.c.h.bf16 %v9910_v63  ;;  %v2419_v31 = vunpack.c.l.bf16 %v9911_v35 }
 0x6d3   : > { %v3478_v47 = vmul.f32 %v2892_v22, %v2405_v5  ;;  %v2894_v8 = vpop.f32.mrb[15].mxu0  ;;  %v3723_v14 = vadd.f32 %v3722_v16, %v3477_v11  ;;  %v3375_v24 = vpop.f32.mrb[42].mxu1  ;;  %v2420_v59 = vunpack.c.h.bf16 %v9911_v35  ;;  %v9912_v5 = vld [vmem:[#allocation13 + $0xc0] sm:$0xff]  ;;  %v2427_v43 = vunpack.c.l.bf16 %v9913_v54 }
 0x6d4   : > { %v3479_v48 = vmul.f32 %v2894_v8, %v2406_v37  ;;  %v3484_v6 = vmul.f32 %v3375_v24, %v2411_v19  ;;  %v3377_v41 = vpop.f32.mrb[43].mxu1  ;;  %v2421_v34 = vunpack.c.l.bf16 %v9912_v5  ;;  %v2422_v29 = vunpack.c.h.bf16 %v9912_v5  ;;  %v9914_v8 = vld [vmem:[#allocation13 + $0xe0] sm:$0xff] }
 0x6d5   : > { %v3577_v53 = vadd.f32 %v3576_v4, %v3478_v47  ;;  %v3485_v58 = vmul.f32 %v3377_v41, %v2412_v30  ;;  %v2428_v4 = vunpack.c.h.bf16 %v9913_v54  ;;  %v2429_v63 = vunpack.c.l.bf16 %v9914_v8  ;;  %v9915_v41 = vld [vmem:[#allocation13 + $0xf8] sm:$0xff] }
 0x6d6   : > { %v3598_v9 = vadd.f32 %v3597_v46, %v3479_v48  ;;  %v2898_v1 = vpop.f32.mrb[16].mxu0  ;;  %v3703_v52 = vadd.f32 %v3702_v44, %v3484_v6  ;;  %v2430_v48 = vunpack.c.h.bf16 %v9914_v8  ;;  %v2435_v35 = vunpack.c.l.bf16 %v9915_v41 }
 0x6d7   : > { %v3486_v7 = vmul.f32 %v2898_v1, %v2413_v39  ;;  %v2900_v2 = vpop.f32.mrb[17].mxu0  ;;  %v3724_v26 = vadd.f32 %v3723_v14, %v3485_v58  ;;  %v3381_v49 = vpop.f32.mrb[44].mxu1 }
 0x6d8   : > { %v3487_v16 = vmul.f32 %v2900_v2, %v2414_v33  ;;  %v3492_v37 = vmul.f32 %v3381_v49, %v2419_v31  ;;  %v3383_v60 = vpop.f32.mrb[45].mxu1  ;;  %v9916_v2 = vld [vmem:[#allocation13 + $0x100] sm:$0xff] }
 0x6d9   : > { %v3578_v19 = vadd.f32 %v3577_v53, %v3486_v7  ;;  %v3493_v11 = vmul.f32 %v3383_v60, %v2420_v59  ;;  %v2436_v53 = vunpack.c.h.bf16 %v9915_v41  ;;  %v2437_v5 = vunpack.c.l.bf16 %v9916_v2  ;;  %v9917_v60 = vld [vmem:[#allocation13 + $0x118] sm:$0xff] }
 0x6da   : > { %v3599_v30 = vadd.f32 %v3598_v9, %v3487_v16  ;;  %v2904_v22 = vpop.f32.mrb[18].mxu0  ;;  %v3704_v46 = vadd.f32 %v3703_v52, %v3492_v37  ;;  %v2438_v16 = vunpack.c.h.bf16 %v9916_v2  ;;  %v2443_v54 = vunpack.c.l.bf16 %v9917_v60 }
 0x6db   : > { %v3494_v47 = vmul.f32 %v2904_v22, %v2421_v34  ;;  %v2906_v44 = vpop.f32.mrb[19].mxu0  ;;  %v3725_v39 = vadd.f32 %v3724_v26, %v3493_v11  ;;  %v3387_v24 = vpop.f32.mrb[46].mxu1 }
 0x6dc   : > { %v3495_v14 = vmul.f32 %v2906_v44, %v2422_v29  ;;  %v3500_v33 = vmul.f32 %v3387_v24, %v2427_v43  ;;  %v3389_v6 = vpop.f32.mrb[47].mxu1  ;;  %v9918_v44 = vld [vmem:[#allocation13 + $0x120] sm:$0xff] }
 0x6dd   : > { %v3579_v31 = vadd.f32 %v3578_v19, %v3494_v47  ;;  %v3501_v58 = vmul.f32 %v3389_v6, %v2428_v4  ;;  %v2444_v19 = vunpack.c.h.bf16 %v9917_v60  ;;  %v2445_v8 = vunpack.c.l.bf16 %v9918_v44  ;;  %v9919_v6 = vld [vmem:[#allocation13 + $0x138] sm:$0xff] }
 0x6de   : > { %v3600_v59 = vadd.f32 %v3599_v30, %v3495_v14  ;;  %v2910_v1 = vpop.f32.mrb[20].mxu0  ;;  %v3705_v9 = vadd.f32 %v3704_v46, %v3500_v33  ;;  %v2446_v14 = vunpack.c.h.bf16 %v9918_v44  ;;  %v2451_v41 = vunpack.c.l.bf16 %v9919_v6 }
 0x6df   : > { %v3502_v7 = vmul.f32 %v2910_v1, %v2429_v63  ;;  %v2912_v52 = vpop.f32.mrb[21].mxu0  ;;  %v3726_v34 = vadd.f32 %v3725_v39, %v3501_v58  ;;  %v3393_v49 = vpop.f32.mrb[48].mxu1 }
 0x6e0   : > { %v3503_v26 = vmul.f32 %v2912_v52, %v2430_v48  ;;  %v3508_v29 = vmul.f32 %v3393_v49, %v2435_v35  ;;  %v3395_v37 = vpop.f32.mrb[49].mxu1  ;;  %v9920_v52 = vld [vmem:[#allocation13 + $0x140] sm:$0xff] }
 0x6e1   : > { %v3580_v43 = vadd.f32 %v3579_v31, %v3502_v7  ;;  %v3509_v11 = vmul.f32 %v3395_v37, %v2436_v53  ;;  %v2452_v31 = vunpack.c.h.bf16 %v9919_v6  ;;  %v2453_v2 = vunpack.c.l.bf16 %v9920_v52  ;;  %v9921_v37 = vld [vmem:[#allocation13 + $0x158] sm:$0xff] }
 0x6e2   : > { %v3601_v4 = vadd.f32 %v3600_v59, %v3503_v26  ;;  %v2916_v22 = vpop.f32.mrb[22].mxu0  ;;  %v3706_v30 = vadd.f32 %v3705_v9, %v3508_v29  ;;  %v2454_v26 = vunpack.c.h.bf16 %v9920_v52  ;;  %v2459_v60 = vunpack.c.l.bf16 %v9921_v37 }
 0x6e3   : > { %v3510_v47 = vmul.f32 %v2916_v22, %v2437_v5  ;;  %v2918_v46 = vpop.f32.mrb[23].mxu0  ;;  %v3727_v63 = vadd.f32 %v3726_v34, %v3509_v11  ;;  %v3399_v24 = vpop.f32.mrb[50].mxu1 }
 0x6e4   : > { %v3511_v39 = vmul.f32 %v2918_v46, %v2438_v16  ;;  %v3516_v48 = vmul.f32 %v3399_v24, %v2443_v54  ;;  %v3401_v33 = vpop.f32.mrb[51].mxu1  ;;  %v9922_v46 = vld [vmem:[#allocation13 + $0x160] sm:$0xff] }
 0x6e5   : > { %v3581_v35 = vadd.f32 %v3580_v43, %v3510_v47  ;;  %v3517_v58 = vmul.f32 %v3401_v33, %v2444_v19  ;;  %v2460_v43 = vunpack.c.h.bf16 %v9921_v37  ;;  %v2461_v44 = vunpack.c.l.bf16 %v9922_v46  ;;  %v9923_v33 = vld [vmem:[#allocation13 + $0x178] sm:$0xff] }
 0x6e6   : > { %v3602_v53 = vadd.f32 %v3601_v4, %v3511_v39  ;;  %v2922_v1 = vpop.f32.mrb[24].mxu0  ;;  %v3707_v59 = vadd.f32 %v3706_v30, %v3516_v48  ;;  %v2462_v39 = vunpack.c.h.bf16 %v9922_v46  ;;  %v2467_v6 = vunpack.c.l.bf16 %v9923_v33 }
 0x6e7   : > { %v3518_v7 = vmul.f32 %v2922_v1, %v2445_v8  ;;  %v2924_v9 = vpop.f32.mrb[25].mxu0  ;;  %v3728_v5 = vadd.f32 %v3727_v63, %v3517_v58  ;;  %v3405_v49 = vpop.f32.mrb[52].mxu1 }
 0x6e8   : > { %v3519_v34 = vmul.f32 %v2924_v9, %v2446_v14  ;;  %v3524_v16 = vmul.f32 %v3405_v49, %v2451_v41  ;;  %v3407_v29 = vpop.f32.mrb[53].mxu1  ;;  %v9924_v9 = vld [vmem:[#allocation13 + $0x180] sm:$0xff] }
 0x6e9   : > { %v3582_v54 = vadd.f32 %v3581_v35, %v3518_v7  ;;  %v3525_v11 = vmul.f32 %v3407_v29, %v2452_v31  ;;  %v2468_v35 = vunpack.c.h.bf16 %v9923_v33  ;;  %v2469_v52 = vunpack.c.l.bf16 %v9924_v9  ;;  %v9925_v29 = vld [vmem:[#allocation13 + $0x198] sm:$0xff] }
 0x6ea   : > { %v3603_v19 = vadd.f32 %v3602_v53, %v3519_v34  ;;  %v2928_v22 = vpop.f32.mrb[26].mxu0  ;;  %v3708_v4 = vadd.f32 %v3707_v59, %v3524_v16  ;;  %v2470_v34 = vunpack.c.h.bf16 %v9924_v9  ;;  %v2475_v37 = vunpack.c.l.bf16 %v9925_v29  ;;  %v9928_v9 = vld [vmem:[#allocation13 + $0x1c0] sm:$0xff] }
 0x6eb   : > { %v3526_v47 = vmul.f32 %v2928_v22, %v2453_v2  ;;  %v2930_v30 = vpop.f32.mrb[27].mxu0  ;;  %v3729_v8 = vadd.f32 %v3728_v5, %v3525_v11  ;;  %v3411_v24 = vpop.f32.mrb[54].mxu1 }
 0x6ec   : > { %v3527_v63 = vmul.f32 %v2930_v30, %v2454_v26  ;;  %v3532_v14 = vmul.f32 %v3411_v24, %v2459_v60  ;;  %v3413_v48 = vpop.f32.mrb[55].mxu1  ;;  %v9926_v30 = vld [vmem:[#allocation13 + $0x1a0] sm:$0xff] }
 0x6ed   : > { %v3583_v41 = vadd.f32 %v3582_v54, %v3526_v47  ;;  %v3533_v58 = vmul.f32 %v3413_v48, %v2460_v43  ;;  %v2476_v54 = vunpack.c.h.bf16 %v9925_v29  ;;  %v2477_v46 = vunpack.c.l.bf16 %v9926_v30  ;;  %v9927_v48 = vld [vmem:[#allocation13 + $0x1b8] sm:$0xff] }
 0x6ee   : > { %v3604_v31 = vadd.f32 %v3603_v19, %v3527_v63  ;;  %v2934_v1 = vpop.f32.mrb[28].mxu0  ;;  %v3709_v53 = vadd.f32 %v3708_v4, %v3532_v14  ;;  %v2478_v63 = vunpack.c.h.bf16 %v9926_v30  ;;  %v2483_v33 = vunpack.c.l.bf16 %v9927_v48 }
 0x6ef   : > { %v3534_v7 = vmul.f32 %v2934_v1, %v2461_v44  ;;  %v2936_v59 = vpop.f32.mrb[29].mxu0  ;;  %v3730_v2 = vadd.f32 %v3729_v8, %v3533_v58  ;;  %v3417_v49 = vpop.f32.mrb[56].mxu1 }
 0x6f0   : > { %v3535_v5 = vmul.f32 %v2936_v59, %v2462_v39  ;;  %v3540_v26 = vmul.f32 %v3417_v49, %v2467_v6  ;;  %v3419_v16 = vpop.f32.mrb[57].mxu1 }
 0x6f1   : > { %v3584_v60 = vadd.f32 %v3583_v41, %v3534_v7  ;;  %v3541_v11 = vmul.f32 %v3419_v16, %v2468_v35  ;;  %v2484_v41 = vunpack.c.h.bf16 %v9927_v48  ;;  %v9929_v16 = vld [vmem:[#allocation13 + $0x1d8] sm:$0xff] }
 0x6f2   : > { %v3605_v43 = vadd.f32 %v3604_v31, %v3535_v5  ;;  %v2940_v22 = vpop.f32.mrb[30].mxu0  ;;  %v3710_v19 = vadd.f32 %v3709_v53, %v3540_v26  ;;  %v2491_v29 = vunpack.c.l.bf16 %v9929_v16 }
 0x6f3   : > { %v3542_v47 = vmul.f32 %v2940_v22, %v2469_v52  ;;  %v2942_v4 = vpop.f32.mrb[31].mxu0  ;;  %v3731_v44 = vadd.f32 %v3730_v2, %v3541_v11  ;;  %v3423_v24 = vpop.f32.mrb[58].mxu1  ;;  %v2485_v52 = vunpack.c.l.bf16 %v9928_v9 }
 0x6f4   : > { %v3543_v8 = vmul.f32 %v2942_v4, %v2470_v34  ;;  %v3548_v39 = vmul.f32 %v3423_v24, %v2475_v37  ;;  %v3425_v14 = vpop.f32.mrb[59].mxu1  ;;  %v2486_v34 = vunpack.c.h.bf16 %v9928_v9 }
 0x6f5   : > { %v3585_v6 = vadd.f32 %v3584_v60, %v3542_v47  ;;  %v3549_v58 = vmul.f32 %v3425_v14, %v2476_v54  ;;  %v2492_v60 = vunpack.c.h.bf16 %v9929_v16 }
 0x6f6   : > { %v3606_v35 = vadd.f32 %v3605_v43, %v3543_v8  ;;  %v2946_v1 = vpop.f32.mrb[32].mxu0  ;;  %v3711_v31 = vadd.f32 %v3710_v19, %v3548_v39  ;;  %v9931_v39 = vld [vmem:[#allocation13 + $0x1f8] sm:$0xff] }
 0x6f7   : > { %v3550_v7 = vmul.f32 %v2946_v1, %v2477_v46  ;;  %v2948_v53 = vpop.f32.mrb[33].mxu0  ;;  %v3732_v59 = vadd.f32 %v3731_v44, %v3549_v58  ;;  %v3429_v49 = vpop.f32.mrb[60].mxu1  ;;  %v9930_v46 = vld [vmem:[#allocation13 + $0x1e0] sm:$0xff]  ;;  %v2499_v14 = vunpack.c.l.bf16 %v9931_v39 }
 0x6f8   : > { %v3551_v2 = vmul.f32 %v2948_v53, %v2478_v63  ;;  %v3556_v5 = vmul.f32 %v3429_v49, %v2483_v33  ;;  %v3431_v26 = vpop.f32.mrb[61].mxu1  ;;  %v2493_v44 = vunpack.c.l.bf16 %v9930_v46  ;;  %v2494_v48 = vunpack.c.h.bf16 %v9930_v46 }
 0x6f9   : > { %v3586_v37 = vadd.f32 %v3585_v6, %v3550_v7  ;;  %v3557_v11 = vmul.f32 %v3431_v26, %v2484_v41  ;;  %v2500_v6 = vunpack.c.h.bf16 %v9931_v39  ;;  %v9934_v39 = vld [vmem:[#allocation13 + $0x50] sm:$0xff] }
 0x6fa   : > { %v3607_v54 = vadd.f32 %v3606_v35, %v3551_v2  ;;  %v2952_v22 = vpop.f32.mrb[34].mxu0  ;;  %v3712_v43 = vadd.f32 %v3711_v31, %v3556_v5 }
 0x6fb   : > { %v3558_v47 = vmul.f32 %v2952_v22, %v2485_v52  ;;  %v2954_v19 = vpop.f32.mrb[35].mxu0  ;;  %v3733_v4 = vadd.f32 %v3732_v59, %v3557_v11  ;;  %v3435_v30 = vpop.f32.mrb[62].mxu1 }
 0x6fc   : > { %v3559_v24 = vmul.f32 %v2954_v19, %v2486_v34  ;;  %v3564_v8 = vmul.f32 %v3435_v30, %v2491_v29  ;;  %v3437_v63 = vpop.f32.mrb[63].mxu1 }
 0x6fd   : > { %v3587_v33 = vadd.f32 %v3586_v37, %v3558_v47  ;;  %v3565_v58 = vmul.f32 %v3437_v63, %v2492_v60  ;;  %v9932_v37 = vld [vmem:[#allocation13 + $0x10] sm:$0xff] }
 0x6fe   : > { %v3608_v41 = vadd.f32 %v3607_v54, %v3559_v24  ;;  %v3713_v1 = vadd.f32 %v3712_v43, %v3564_v8  ;;  %v2958_v35 = vpop.f32.mrb[36].mxu0  ;;  %v2377_v60 = vunpack.c.l.bf16 %v9932_v37  ;;  %v9933_v54 = vld [vmem:[#allocation13 + $0x30] sm:$0xff] }
 0x6ff   : > { %v3734_v7 = vadd.f32 %v3733_v4, %v3565_v58  ;;  %v3566_v31 = vmul.f32 %v2958_v35, %v2493_v44  ;;  %v3441_v53 = vpop.f32.mrb[64].mxu1  ;;  %v2960_v9 = vpop.f32.mrb[37].mxu0  ;;  %v2385_v43 = vunpack.c.l.bf16 %v9933_v54  ;;  %v2378_v4 = vunpack.c.h.bf16 %v9932_v37 }
 0x700   : > { %v3572_v59 = vmul.f32 %v3441_v53, %v2499_v14  ;;  %v3567_v52 = vmul.f32 %v2960_v9, %v2494_v48  ;;  %v3443_v49 = vpop.f32.mrb[65].mxu1  ;;  %v2386_v30 = vunpack.c.h.bf16 %v9933_v54  ;;  %v2393_v14 = vunpack.c.l.bf16 %v9934_v39 }
 0x701   : > { %v3588_v2 = vadd.f32 %v3587_v33, %v3566_v31  ;;  %v3573_v5 = vmul.f32 %v3443_v49, %v2500_v6  ;;  %v2394_v48 = vunpack.c.h.bf16 %v9934_v39  ;;  %v9935_v49 = vld [vmem:[#allocation13 + $0x70] sm:$0xff] }
 0x702   : > { %v3714_v34 = vadd.f32 %v3713_v1, %v3572_v59  ;;  %v3609_v26 = vadd.f32 %v3608_v41, %v3567_v52  ;;  %v3190_v16 = vpop.f32.mrb[38].mxu0  ;;  %v2402_v37 = vunpack.c.h.bf16 %v9935_v49 }
 0x703   : > { %v3589_v29 = vrot.slane %v3588_v2, 4  ;;  %v3735_v11 = vadd.f32 %v3734_v7, %v3573_v5  ;;  %v3192_v22 = vpop.f32.mrb[39].mxu0  ;;  %v3450_v6 = vmul.f32 %v3190_v16, %v2377_v60  ;;  %v9936_v60 = vld [vmem:[#allocation13 + $0x90] sm:$0xff] }
 0x704   : > { %v3715_v47 = vrot.slane %v3714_v34, 4  ;;  %v3610_v19 = vrot.slane %v3609_v26, 4  ;;  %v3451_v31 = vmul.f32 %v3192_v22, %v2378_v4 }
 0x705   : > { %v3590_v46 = vadd.f32 %v3589_v29, %v3588_v2  ;;  %v3736_v44 = vrot.slane %v3735_v11, 4  ;;  %v2401_v2 = vunpack.c.l.bf16 %v9935_v49 }
 0x706   : > { %v3716_v24 = vadd.f32 %v3715_v47, %v3714_v34  ;;  %v3611_v8 = vadd.f32 %v3610_v19, %v3609_v26  ;;  %v3196_v63 = vpop.f32.mrb[40].mxu0  ;;  %v12081_v19 = vld [vmem:[#allocation24_spill] sm:$0xff] }
 0x707   : > { %v3591_v33 = vrot.slane %v3590_v46, 2  ;;  %v3737_v58 = vadd.f32 %v3736_v44, %v3735_v11  ;;  %v3458_v41 = vmul.f32 %v3196_v63, %v2385_v43  ;;  %v3198_v1 = vpop.f32.mrb[41].mxu0  ;;  %v2409_v43 = vunpack.c.l.bf16 %v9936_v60  ;;  %v12082_v63 = vld [vmem:[#allocation31_spill] sm:$0xff] }
 0x708   : > { %v3717_v35 = vrot.slane %v3716_v24, 2  ;;  %v3612_v7 = vrot.slane %v3611_v8, 2  ;;  %v3459_v53 = vmul.f32 %v3198_v1, %v2386_v30  ;;  %v3856_v22 = vrot.slane %v11170_v36, %v12081_v19 }
 0x709   : > { %v3592_v9 = vadd.f32 %v3591_v33, %v3590_v46  ;;  %v3738_v59 = vrot.slane %v3737_v58, 2  ;;  %v3658_v52 = vadd.f32 %v3458_v41, %v3450_v6  ;;  %v12083_v41 = vld [vmem:[#allocation25_spill] sm:$0xff] }
 0x70a   : > { %v3718_v5 = vadd.f32 %v3717_v35, %v3716_v24  ;;  %v3613_v34 = vadd.f32 %v3612_v7, %v3611_v8  ;;  %v3679_v26 = vadd.f32 %v3459_v53, %v3451_v31  ;;  %v3202_v29 = vpop.f32.mrb[42].mxu0  ;;  %v3880_v24 = vrot.slane %v11170_v36, %v12082_v63  ;;  %v12084_v31 = vld [vmem:[#allocation32_spill] sm:$0xff] }
 0x70b   : > { %v3593_v54 = vrot.slane %v3592_v9, 1  ;;  %v3739_v47 = vadd.f32 %v3738_v59, %v3737_v58  ;;  %v3466_v11 = vmul.f32 %v3202_v29, %v2393_v14  ;;  %v3204_v16 = vpop.f32.mrb[43].mxu0  ;;  %v3860_v14 = vrot.slane %v11170_v36, %v12083_v41 }
 0x70c   : > { %v3719_v4 = vrot.slane %v3718_v5, 1  ;;  %v3614_v30 = vrot.slane %v3613_v34, 1  ;;  %v3467_v46 = vmul.f32 %v3204_v16, %v2394_v48  ;;  %v3884_v53 = vrot.slane %v11170_v36, %v12084_v31 }
 0x70d   : > { %v3594_v44 = vadd.f32 %v3593_v54, %v3592_v9  ;;  %v3740_v8 = vrot.slane %v3739_v47, 1  ;;  %v3659_v39 = vadd.f32 %v3658_v52, %v3466_v11 }
 0x70e   : > { %v3720_v33 = vadd.f32 %v3719_v4, %v3718_v5  ;;  %v3615_v6 = vadd.f32 %v3614_v30, %v3613_v34  ;;  %v3680_v58 = vadd.f32 %v3679_v26, %v3467_v46  ;;  %v3208_v1 = vpop.f32.mrb[44].mxu0  ;;  %v2410_v5 = vunpack.c.h.bf16 %v9936_v60 }
 0x70f   : > { %v11191_v35 = vadd.f32 %v3856_v22, %v3594_v44  ;;  %v3741_v7 = vadd.f32 %v3740_v8, %v3739_v47  ;;  %v3474_v48 = vmul.f32 %v3208_v1, %v2401_v2  ;;  %v3210_v9 = vpop.f32.mrb[45].mxu0  ;;  %v9937_v22 = vld [vmem:[#allocation13 + $0xb0] sm:$0xff] }
 0x710   : > { %v11195_v59 = vadd.f32 %v3880_v24, %v3720_v33  ;;  %v11197_v49 = vadd.f32 %v3860_v14, %v3615_v6  ;;  %v3475_v52 = vmul.f32 %v3210_v9, %v2402_v37  ;;  %v2417_v47 = vunpack.c.l.bf16 %v9937_v22  ;;  %v9938_v33 = vld [vmem:[#allocation13 + $0xd0] sm:$0xff] }
 0x711   : > { %v11199_v34 = vadd.f32 %v3884_v53, %v3741_v7  ;;  %v3660_v29 = vadd.f32 %v3659_v39, %v3474_v48  ;;  %v2418_v30 = vunpack.c.h.bf16 %v9937_v22  ;;  %v2425_v6 = vunpack.c.l.bf16 %v9938_v33 }
 0x712   : > { %v3681_v54 = vadd.f32 %v3680_v58, %v3475_v52  ;;  %v3214_v26 = vpop.f32.mrb[46].mxu0  ;;  %v2426_v60 = vunpack.c.h.bf16 %v9938_v33 }
 0x713   : > { %v3482_v11 = vmul.f32 %v3214_v26, %v2409_v43  ;;  %v3216_v16 = vpop.f32.mrb[47].mxu0  ;;  %v9939_v43 = vld [vmem:[#allocation13 + $0xf0] sm:$0xff] }
 0x714   : > { %v3483_v4 = vmul.f32 %v3216_v16, %v2410_v5  ;;  %v2433_v53 = vunpack.c.l.bf16 %v9939_v43  ;;  %v2434_v9 = vunpack.c.h.bf16 %v9939_v43 }
 0x715   : > { %v3661_v46 = vadd.f32 %v3660_v29, %v3482_v11  ;;  %v9940_v11 = vld [vmem:[#allocation13 + $0x110] sm:$0xff] }
 0x716   : > { %v3682_v2 = vadd.f32 %v3681_v54, %v3483_v4  ;;  %v3220_v44 = vpop.f32.mrb[48].mxu0  ;;  %v2441_v16 = vunpack.c.l.bf16 %v9940_v11 }
 0x717   : > { %v3490_v24 = vmul.f32 %v3220_v44, %v2417_v47  ;;  %v3222_v8 = vpop.f32.mrb[49].mxu0  ;;  %v2442_v47 = vunpack.c.h.bf16 %v9940_v11 }
 0x718   : > { %v3491_v37 = vmul.f32 %v3222_v8, %v2418_v30 }
 0x719   : > { %v3662_v14 = vadd.f32 %v3661_v46, %v3490_v24  ;;  %v9941_v24 = vld [vmem:[#allocation13 + $0x130] sm:$0xff] }
 0x71a   : > { %v3683_v1 = vadd.f32 %v3682_v2, %v3491_v37  ;;  %v3226_v39 = vpop.f32.mrb[50].mxu0  ;;  %v2449_v8 = vunpack.c.l.bf16 %v9941_v24 }
 0x71b   : > { %v3498_v58 = vmul.f32 %v3226_v39, %v2425_v6  ;;  %v3228_v7 = vpop.f32.mrb[51].mxu0  ;;  %v2450_v6 = vunpack.c.h.bf16 %v9941_v24 }
 0x71c   : > { %v3499_v48 = vmul.f32 %v3228_v7, %v2426_v60 }
 0x71d   : > { %v3663_v52 = vadd.f32 %v3662_v14, %v3498_v58  ;;  %v9942_v58 = vld [vmem:[#allocation13 + $0x150] sm:$0xff] }
 0x71e   : > { %v3684_v5 = vadd.f32 %v3683_v1, %v3499_v48  ;;  %v3232_v29 = vpop.f32.mrb[52].mxu0  ;;  %v2457_v7 = vunpack.c.l.bf16 %v9942_v58 }
 0x71f   : > { %v3506_v54 = vmul.f32 %v3232_v29, %v2433_v53  ;;  %v3234_v26 = vpop.f32.mrb[53].mxu0  ;;  %v2458_v53 = vunpack.c.h.bf16 %v9942_v58 }
 0x720   : > { %v3507_v22 = vmul.f32 %v3234_v26, %v2434_v9 }
 0x721   : > { %v3664_v4 = vadd.f32 %v3663_v52, %v3506_v54  ;;  %v9943_v54 = vld [vmem:[#allocation13 + $0x170] sm:$0xff] }
 0x722   : > { %v3685_v30 = vadd.f32 %v3684_v5, %v3507_v22  ;;  %v3238_v46 = vpop.f32.mrb[54].mxu0  ;;  %v2465_v26 = vunpack.c.l.bf16 %v9943_v54 }
 0x723   : > { %v3514_v2 = vmul.f32 %v3238_v46, %v2441_v16  ;;  %v3240_v44 = vpop.f32.mrb[55].mxu0  ;;  %v2466_v16 = vunpack.c.h.bf16 %v9943_v54 }
 0x724   : > { %v3515_v33 = vmul.f32 %v3240_v44, %v2442_v47 }
 0x725   : > { %v3665_v37 = vadd.f32 %v3664_v4, %v3514_v2  ;;  %v9944_v2 = vld [vmem:[#allocation13 + $0x190] sm:$0xff] }
 0x726   : > { %v3686_v60 = vadd.f32 %v3685_v30, %v3515_v33  ;;  %v3244_v14 = vpop.f32.mrb[56].mxu0  ;;  %v2473_v44 = vunpack.c.l.bf16 %v9944_v2 }
 0x727   : > { %v3522_v1 = vmul.f32 %v3244_v14, %v2449_v8  ;;  %v3246_v39 = vpop.f32.mrb[57].mxu0  ;;  %v2474_v8 = vunpack.c.h.bf16 %v9944_v2 }
 0x728   : > { %v3523_v43 = vmul.f32 %v3246_v39, %v2450_v6 }
 0x729   : > { %v3666_v48 = vadd.f32 %v3665_v37, %v3522_v1  ;;  %v9945_v1 = vld [vmem:[#allocation13 + $0x1b0] sm:$0xff] }
 0x72a   : > { %v3687_v9 = vadd.f32 %v3686_v60, %v3523_v43  ;;  %v3250_v52 = vpop.f32.mrb[58].mxu0  ;;  %v2481_v39 = vunpack.c.l.bf16 %v9945_v1 }
 0x72b   : > { %v3530_v5 = vmul.f32 %v3250_v52, %v2457_v7  ;;  %v3252_v29 = vpop.f32.mrb[59].mxu0  ;;  %v2482_v7 = vunpack.c.h.bf16 %v9945_v1 }
 0x72c   : > { %v3531_v11 = vmul.f32 %v3252_v29, %v2458_v53 }
 0x72d   : > { %v3667_v22 = vadd.f32 %v3666_v48, %v3530_v5  ;;  %v9946_v5 = vld [vmem:[#allocation13 + $0x1d0] sm:$0xff] }
 0x72e   : > { %v3688_v47 = vadd.f32 %v3687_v9, %v3531_v11  ;;  %v3256_v4 = vpop.f32.mrb[60].mxu0  ;;  %v2489_v29 = vunpack.c.l.bf16 %v9946_v5 }
 0x72f   : > { %v3538_v30 = vmul.f32 %v3256_v4, %v2465_v26  ;;  %v3258_v46 = vpop.f32.mrb[61].mxu0  ;;  %v2490_v26 = vunpack.c.h.bf16 %v9946_v5 }
 0x730   : > { %v3539_v24 = vmul.f32 %v3258_v46, %v2466_v16 }
 0x731   : > { %v3668_v33 = vadd.f32 %v3667_v22, %v3538_v30  ;;  %v9947_v30 = vld [vmem:[#allocation13 + $0x1f0] sm:$0xff] }
 0x732   : > { %v3689_v6 = vadd.f32 %v3688_v47, %v3539_v24  ;;  %v3262_v37 = vpop.f32.mrb[62].mxu0  ;;  %v2497_v46 = vunpack.c.l.bf16 %v9947_v30 }
 0x733   : > { %v3546_v60 = vmul.f32 %v3262_v37, %v2473_v44  ;;  %v3264_v14 = vpop.f32.mrb[63].mxu0  ;;  %v2498_v44 = vunpack.c.h.bf16 %v9947_v30 }
 0x734   : > { %v3547_v58 = vmul.f32 %v3264_v14, %v2474_v8 }
 0x735   : > { %v3669_v43 = vadd.f32 %v3668_v33, %v3546_v60 }
 0x736   : > { %v3690_v53 = vadd.f32 %v3689_v6, %v3547_v58  ;;  %v3268_v48 = vpop.f32.mrb[64].mxu0  ;;  %v2307_v6 = vld [vmem:[%s12085_s3] sm:$0x1] }
 0x737   : > { %v3554_v9 = vmul.f32 %v3268_v48, %v2481_v39  ;;  %v3270_v52 = vpop.f32.mrb[65].mxu0  ;;  %v4037_v39 = vrot.slane %v2307_v6, %v12081_v19  ;;  %v8298_v48 = vld [vmem:[#allocation8] ss:$0 sm:$0xff] }
 0x738   : > { %v3555_v54 = vmul.f32 %v3270_v52, %v2482_v7 }
 0x739   : > { %v3670_v11 = vadd.f32 %v3669_v43, %v3554_v9 }
 0x73a   : > { %v3691_v16 = vadd.f32 %v3690_v53, %v3555_v54  ;;  %v3274_v22 = vpop.f32.mrb[66].mxu0 }
 0x73b   : > { %v3562_v47 = vmul.f32 %v3274_v22, %v2489_v29  ;;  %v3276_v4 = vpop.f32.mrb[67].mxu0 }
 0x73c   : > { %v3563_v2 = vmul.f32 %v3276_v4, %v2490_v26  ;;  %v8299_v26 = vld [vmem:[#allocation9] ss:$0 sm:$0xff] }
 0x73d   : > { %v3671_v24 = vadd.f32 %v3670_v11, %v3562_v47 }
 0x73e   : > { %v3692_v8 = vadd.f32 %v3691_v16, %v3563_v2  ;;  %v3280_v33 = vpop.f32.mrb[68].mxu0 }
 0x73f   : > { %v3570_v37 = vmul.f32 %v3280_v33, %v2497_v46  ;;  %v3282_v60 = vpop.f32.mrb[69].mxu0 }
 0x740   : > { %v3571_v14 = vmul.f32 %v3282_v60, %v2498_v44 }
 0x741   : > { %v3672_v1 = vadd.f32 %v3671_v24, %v3570_v37  ;;  %v12086_v37 = vld [vmem:[#allocation26_spill] sm:$0xff] }
 0x742   : > { %v3693_v58 = vadd.f32 %v3692_v8, %v3571_v14  ;;  %v4027_v7 = vpop.f32.mrb[72].mxu0  ;;  %v3872_v60 = vrot.slane %v11170_v36, %v12086_v37 }
 0x743   : > { %v3673_v43 = vrot.slane %v3672_v1, 4  ;;  %v4028_v53 = vadd.f32 %v4027_v7, %v2307_v6  ;;  %v8810_v9 = vpop.f32.mrb[73].mxu0  ;;  %v12088_v7 = vld [vmem:[#allocation34_spill] sm:$0xff] }
 0x744   : > { %v3694_v52 = vrot.slane %v3693_v58, 4  ;;  %v4030_v5 = vpop.f32.mrb[74].mxu0  ;;  %v12094_v9 = vld [vmem:[#allocation40_spill] sm:$0xff] }
 0x745   : > { %v3674_v29 = vadd.f32 %v3673_v43, %v3672_v1  ;;  %v4040_v54 = vsel %vm4039_vm12, %v4028_v53, %v4037_v39  ;;  %v8811_v11 = vpop.f32.mrb[75].mxu0  ;;  %v12087_v1 = vld [vmem:[#allocation27_spill] sm:$0xff] }
 0x746   : > { %v3695_v16 = vadd.f32 %v3694_v52, %v3693_v58  ;;  %v4048_v22 = vmul.f32 %v8298_v48, %v4040_v54  ;;  %v3876_v39 = vrot.slane %v11170_v36, %v12087_v1  ;;  %v12089_v53 = vld [vmem:[#allocation35_spill] sm:$0xff]  ;;  %v12090_v36 = vld [vmem:[#allocation36_spill] sm:$0xff]  ;;  %v12091_v48 = vld [vmem:[#allocation37_spill] sm:$0xff] }
 0x747   : > { %v3675_v47 = vrot.slane %v3674_v29, 2  ;;  %v9394_v52 = vld [vmem:[#allocation16 + $0x60] ss:$16 sps:$4 sm:$0xff]   ;;  %v9397_v5 = vld [vmem:[#allocation16 + $0x68] ss:$16 sps:$4 sm:$0xff]  }
 0x748   : > { %v3696_v4 = vrot.slane %v3695_v16, 2  ;;  %v4056_v30 = vadd.f32 %v8299_v26, %v4048_v22  ;;  %v9405_v54 = vld [vmem:[#allocation16 + $0x8c] ss:$16 sps:$4 sm:$0xff]   ;;  %v9400_v26 = vld [vmem:[#allocation16 + $0x80] ss:$16 sps:$4 sm:$0xff]  }
 0x749   : > { %v3676_v46 = vadd.f32 %v3675_v47, %v3674_v29  ;;  %v9402_v29 = vld [vmem:[#allocation16 + $0x84] ss:$16 sps:$4 sm:$0xff]   ;;  %v9403_v11 = vld [vmem:[#allocation16 + $0x88] ss:$16 sps:$4 sm:$0xff]   ;;  %v9411_v22 = vld [vmem:[#allocation16 + $0xac] ss:$16 sps:$4 sm:$0xff]  }
 0x74a   : > { %v3697_v2 = vadd.f32 %v3696_v4, %v3695_v16  ;;  %v4057_v44 = vmax.f32 %v4056_v30, 0.0  ;;  %v9408_v16 = vld [vmem:[#allocation16 + $0xa4] ss:$16 sps:$4 sm:$0xff]   ;;  %v9406_v47 = vld [vmem:[#allocation16 + $0xa0] ss:$16 sps:$4 sm:$0xff]  }
 0x74b   : > { %v3677_v24 = vrot.slane %v3676_v46, 1  ;;  %v9409_v4 = vld [vmem:[#allocation16 + $0xa8] ss:$16 sps:$4 sm:$0xff]   ;;  %v9414_v30 = vld [vmem:[#allocation16 + $0xc4] ss:$16 sps:$4 sm:$0xff]  }
 0x74c   : > { %v3698_v8 = vrot.slane %v3697_v2, 1  ;;  %v4058_v33 = vpack.c.bf16 %v4057_v44, %v4057_v44  ;;  %v9415_v44 = vld [vmem:[#allocation16 + $0xc8] ss:$16 sps:$4 sm:$0xff]  }
 0x74d   : > { %v3678_v6 = vadd.f32 %v3677_v24, %v3676_v46  ;;  %v9417_v46 = vld [vmem:[#allocation16 + $0xcc] ss:$16 sps:$4 sm:$0xff]   ;;  %v9420_v24 = vld [vmem:[#allocation16 + $0xe4] ss:$16 sps:$4 sm:$0xff]  }
 0x74e   : > { %v3699_v14 = vadd.f32 %v3698_v8, %v3697_v2  ;;  %4453 = vmatmul.mubr.bf16.vlgmr.msra.gmra.mrb[68].mxu1 %v4058_v33  ;;  %4494 = vmatmul.mubr.bf16.vlgmr.msra.gmra.mrb[76].mxu0 %v4058_v33  ;;  %v9412_v2 = vld [vmem:[#allocation16 + $0xc0] ss:$16 sps:$4 sm:$0xff]   ;;  %v9423_v8 = vld [vmem:[#allocation16 + $0xec] ss:$16 sps:$4 sm:$0xff]  }
 0x74f   : > { %v11209_v58 = vadd.f32 %v3872_v60, %v3678_v6  ;;  %4503 = vmatpush1.bf16.msra.mxu1 %v10796_v61  ;;  %4544 = vmatpush1.bf16.msra.mxu0 %v12088_v7  ;;  %v12092_v61 = vld [vmem:[#allocation38_spill] sm:$0xff] }
 0x750   : > { %v11213_v43 = vadd.f32 %v3876_v39, %v3699_v14  ;;  %4504 = vmatprep.subr.bf16.mxu1 %v10800_v13  ;;  %4545 = vmatprep.subr.bf16.mxu0 %v12089_v53  ;;  %v12093_v13 = vld [vmem:[#allocation39_spill] sm:$0xff]  ;;  %v9426_v60 = vld [vmem:[#allocation16 + $0x104] ss:$16 sps:$4 sm:$0xff]  }
 0x751   : > { %4534 = vmatprep.mubr.bf16.mxu1 %v10131_v50  ;;  %4575 = vmatprep.mubr.bf16.mxu0 %v10131_v50  ;;  %v9399_v50 = vld [vmem:[#allocation16 + $0x6c] ss:$16 sps:$4 sm:$0xff]   ;;  %v9421_v6 = vld [vmem:[#allocation16 + $0xe8] ss:$16 sps:$4 sm:$0xff]   ;;  %v9424_v39 = vld [vmem:[#allocation16 + $0x100] ss:$16 sps:$4 sm:$0xff]  }
 0x752   : > { %v9429_v14 = vld [vmem:[#allocation16 + $0x10c] ss:$16 sps:$4 sm:$0xff]   ;;  %v9427_v7 = vld [vmem:[#allocation16 + $0x108] ss:$16 sps:$4 sm:$0xff]   ;;  %v9432_v53 = vld [vmem:[#allocation16 + $0x124] ss:$16 sps:$4 sm:$0xff]  }
 0x753   : > { %4505 = vmatpush1.bf16.msra.mxu1 %v10808_v55  ;;  %4546 = vmatpush1.bf16.msra.mxu0 %v12090_v36  ;;  %v12095_v55 = vld [vmem:[#allocation41_spill] sm:$0xff] }
 0x754   : > { %4506 = vmatprep.subr.bf16.mxu1 %v10812_v21  ;;  %4547 = vmatprep.subr.bf16.mxu0 %v12091_v48  ;;  %v12096_v21 = vld [vmem:[#allocation42_spill] sm:$0xff]  ;;  %v9435_v36 = vld [vmem:[#allocation16 + $0x12c] ss:$16 sps:$4 sm:$0xff]  }
 0x755   : > { %v9430_v48 = vld [vmem:[#allocation16 + $0x120] ss:$16 sps:$4 sm:$0xff]  }
 0x757   : > { %4507 = vmatpush1.bf16.msra.mxu1 %v10821_v0  ;;  %4548 = vmatpush1.bf16.msra.mxu0 %v12092_v61  ;;  %v9382_v0 = vld [vmem:[#allocation16 + $0x20] ss:$16 sps:$4 sm:$0xff]   ;;  %v9433_v61 = vld [vmem:[#allocation16 + $0x128] ss:$16 sps:$4 sm:$0xff]  }
 0x758   : > { %4508 = vmatprep.subr.bf16.mxu1 %v10825_v32  ;;  %4549 = vmatprep.subr.bf16.mxu0 %v12093_v13  ;;  %v9376_v32 = vld [vmem:[#allocation16] ss:$16 sps:$4 sm:$0xff]   ;;  %v11248_v13 = vld [vmem:[%s11924_s10] sm:$0xff] }
 0x75b   : > { %4509 = vmatpush1.bf16.msra.mxu1 %v10833_v42  ;;  %4550 = vmatpush1.bf16.msra.mxu0 %v12094_v9  ;;  %v9385_v42 = vld [vmem:[#allocation16 + $0x28] ss:$16 sps:$4 sm:$0xff]   ;;  %v11252_v9 = vmul.f32 %v11248_v13, %v11248_v13 }
 0x75c   : > { %4510 = vmatprep.subr.bf16.mxu1 %v10837_v18  ;;  %4551 = vmatprep.subr.bf16.mxu0 %v12095_v55  ;;  %v12097_v18 = vld [vmem:[#allocation43_spill] sm:$0xff]  ;;  %v3742_v55 = vmul.f32 32.0, %v11248_v13 }
 0x75f   : > { %4511 = vmatpush1.bf16.msra.mxu1 %v10845_v40  ;;  %4552 = vmatpush1.bf16.msra.mxu0 %v10682_v15  ;;  %v12098_v15 = vld [vmem:[#allocation44_spill] sm:$0xff]  ;;  %v9393_v40 = vld [vmem:[#allocation16 + $0x4c] ss:$16 sps:$4 sm:$0xff]  }
 0x760   : > { %4512 = vmatprep.subr.bf16.mxu1 %v10849_v17  ;;  %4553 = vmatprep.subr.bf16.mxu0 %v12096_v21  ;;  %v9378_v17 = vld [vmem:[#allocation16 + $0x4] ss:$16 sps:$4 sm:$0xff]  }
 0x761   : > { %v9438_v21 = vld [vmem:[#allocation16 + $0x144] ss:$16 sps:$4 sm:$0xff]  }
 0x763   : > { %4513 = vmatpush1.bf16.msra.mxu1 %v10857_v62  ;;  %4554 = vmatpush1.bf16.msra.mxu0 %v10694_v20  ;;  %v9381_v20 = vld [vmem:[#allocation16 + $0xc] ss:$16 sps:$4 sm:$0xff]   ;;  %v9388_v62 = vld [vmem:[#allocation16 + $0x40] ss:$16 sps:$4 sm:$0xff]  }
 0x764   : > { %4514 = vmatprep.subr.bf16.mxu1 %v10861_v3  ;;  %4555 = vmatprep.subr.bf16.mxu0 %v10699_v25  ;;  %v9379_v3 = vld [vmem:[#allocation16 + $0x8] ss:$16 sps:$4 sm:$0xff]   ;;  %v9384_v25 = vld [vmem:[#allocation16 + $0x24] ss:$16 sps:$4 sm:$0xff]  }
 0x767   : > { %4515 = vmatpush1.bf16.msra.mxu1 %v10869_v45  ;;  %4556 = vmatpush1.bf16.msra.mxu0 %v10706_v27  ;;  %v9387_v27 = vld [vmem:[#allocation16 + $0x2c] ss:$16 sps:$4 sm:$0xff]   ;;  %v9391_v45 = vld [vmem:[#allocation16 + $0x48] ss:$16 sps:$4 sm:$0xff]  }
 0x768   : > { %4516 = vmatprep.subr.bf16.mxu1 %v10873_v10  ;;  %4557 = vmatprep.subr.bf16.mxu0 %v12097_v18  ;;  %v9396_v10 = vld [vmem:[#allocation16 + $0x64] ss:$16 sps:$4 sm:$0xff]   ;;  %v9441_v18 = vld [vmem:[#allocation16 + $0x14c] ss:$16 sps:$4 sm:$0xff]  }
 0x76b   : > { %4517 = vmatpush1.bf16.msra.mxu1 %v10881_v28  ;;  %4558 = vmatpush1.bf16.msra.mxu0 %v12098_v15  ;;  %v9390_v28 = vld [vmem:[#allocation16 + $0x44] ss:$16 sps:$4 sm:$0xff]   ;;  %v9436_v15 = vld [vmem:[#allocation16 + $0x140] ss:$16 sps:$4 sm:$0xff]  }
 0x76c   : > { %6863 = vmatprep.subr.bf16.mxu1 %v9378_v17  ;;  %7027 = vmatprep.subr.bf16.mxu0 %v9381_v20  ;;  %v9439_v17 = vld [vmem:[#allocation16 + $0x148] ss:$16 sps:$4 sm:$0xff]   ;;  %v11256_v20 = vmul.f32 32.0, %v11252_v9 }
 0x76e   : > { %4535 = vmatmul.mubr.bf16.vlgmr.msra.gmra.mrb[72].mxu1 %v4058_v33  ;;  %4576 = vmatmul.mubr.bf16.vlgmr.msra.gmra.mrb[80].mxu0 %v4058_v33  ;;  %v9418_v33 = vld [vmem:[#allocation16 + $0xe0] ss:$16 sps:$4 sm:$0xff]  }
 0x76f   : > { %6864 = vmatpush1.bf16.msra.mxu1 %v9376_v32  ;;  %7028 = vmatpush1.bf16.msra.mxu0 %v9379_v3  ;;  %v3747_v32 = vrot.slane %v3742_v55, %v12081_v19  ;;  %v9442_v3 = vld [vmem:[#allocation16 + $0x160] ss:$16 sps:$4 sm:$0xff]  }
 0x770   : > { %6865 = vmatprep.subr.bf16.mxu1 %v9384_v25  ;;  %7029 = vmatprep.subr.bf16.mxu0 %v9387_v27  ;;  %v9444_v25 = vld [vmem:[#allocation16 + $0x164] ss:$16 sps:$4 sm:$0xff]   ;;  %v9445_v27 = vld [vmem:[#allocation16 + $0x168] ss:$16 sps:$4 sm:$0xff]  }
 0x773   : > { %6866 = vmatpush1.bf16.msra.mxu1 %v9382_v0  ;;  %7030 = vmatpush1.bf16.msra.mxu0 %v9385_v42  ;;  %v3751_v0 = vrot.slane %v3742_v55, %v12083_v41  ;;  %v3771_v42 = vrot.slane %v3742_v55, %v12082_v63 }
 0x774   : > { %6867 = vmatprep.subr.bf16.mxu1 %v9390_v28  ;;  %7031 = vmatprep.subr.bf16.mxu0 %v9393_v40  ;;  %v3775_v28 = vrot.slane %v3742_v55, %v12084_v31  ;;  %v9447_v40 = vld [vmem:[#allocation16 + $0x16c] ss:$16 sps:$4 sm:$0xff]  }
 0x777   : > { %6868 = vmatpush1.bf16.msra.mxu1 %v9388_v62  ;;  %7032 = vmatpush1.bf16.msra.mxu0 %v9391_v45  ;;  %v9450_v62 = vld [vmem:[#allocation16 + $0x184] ss:$16 sps:$4 sm:$0xff]   ;;  %v3755_v45 = vrot.slane %v3742_v55, %v12079_v12 }
 0x778   : > { %6869 = vmatprep.subr.bf16.mxu1 %v9396_v10  ;;  %7033 = vmatprep.subr.bf16.mxu0 %v9399_v50  ;;  %v3759_v10 = vrot.slane %v3742_v55, %v12080_v51  ;;  %v9453_v50 = vld [vmem:[#allocation16 + $0x18c] ss:$16 sps:$4 sm:$0xff]  }
 0x77b   : > { %6870 = vmatpush1.bf16.msra.mxu1 %v9394_v52  ;;  %7034 = vmatpush1.bf16.msra.mxu0 %v9397_v5  ;;  %v3763_v52 = vrot.slane %v3742_v55, %v12086_v37  ;;  %v3767_v5 = vrot.slane %v3742_v55, %v12087_v1  ;;  %v9454_v55 = vld [vmem:[#allocation16 + $0x1a0] ss:$16 sps:$4 sm:$0xff]  }
 0x77c   : > { %6871 = vmatprep.subr.bf16.mxu1 %v9402_v29  ;;  %7035 = vmatprep.subr.bf16.mxu0 %v9405_v54  ;;  %v11267_v29 = vadd.f32 %v3747_v32, %v11083_v56  ;;  %v3915_v54 = vrot.slane %v11256_v20, %v12079_v12  ;;  %v9456_v56 = vld [vmem:[#allocation16 + $0x1a4] ss:$16 sps:$4 sm:$0xff]  }
 0x77d   : > { %v9462_v32 = vld [vmem:[#allocation16 + $0x1c4] ss:$16 sps:$4 sm:$0xff]  }
 0x77f   : > { %6872 = vmatpush1.bf16.msra.mxu1 %v9400_v26  ;;  %7036 = vmatpush1.bf16.msra.mxu0 %v9403_v11  ;;  %v3919_v26 = vrot.slane %v11256_v20, %v12080_v51  ;;  %v9448_v11 = vld [vmem:[#allocation16 + $0x180] ss:$16 sps:$4 sm:$0xff]  }
 0x780   : > { %6873 = vmatprep.subr.bf16.mxu1 %v9408_v16  ;;  %7037 = vmatprep.subr.bf16.mxu0 %v9411_v22  ;;  %v9451_v16 = vld [vmem:[#allocation16 + $0x188] ss:$16 sps:$4 sm:$0xff]   ;;  %v11274_v22 = vadd.f32 %v3751_v0, %v11085_v57  ;;  %v3907_v57 = vrot.slane %v11256_v20, %v12081_v19 }
 0x782   : > { %v11329_v0 = vadd.f32 %v3907_v57, %v11191_v35 }
 0x783   : > { %6874 = vmatpush1.bf16.msra.mxu1 %v9406_v47  ;;  %7038 = vmatpush1.bf16.msra.mxu0 %v9409_v4  ;;  %v12099_v47 = vld [vmem:[#allocation50_spill] sm:$0xff] }
 0x784   : > { %6875 = vmatprep.subr.bf16.mxu1 %v9414_v30  ;;  %7039 = vmatprep.subr.bf16.mxu0 %v9417_v46  ;;  %v11277_v4 = vadd.f32 %v3771_v42, %v12099_v47  ;;  %v12100_v30 = vld [vmem:[#allocation51_spill] sm:$0xff]  ;;  %v11334_v42 = vld [vmem:[%s11925_s11] sm:$0xff] }
 0x785   : > { %v11280_v46 = vadd.f32 %v3775_v28, %v12100_v30 }
 0x787   : > { %6876 = vmatpush1.bf16.msra.mxu1 %v9412_v2  ;;  %7040 = vmatpush1.bf16.msra.mxu0 %v9415_v44  ;;  %12101 = vst [vmem:[#allocation47_spill] sm:$0xff] %v11280_v46  ;;  %v9459_v2 = vld [vmem:[#allocation16 + $0x1ac] ss:$16 sps:$4 sm:$0xff]  }
 0x788   : > { %6877 = vmatprep.subr.bf16.mxu1 %v9420_v24  ;;  %7041 = vmatprep.subr.bf16.mxu0 %v9423_v8  ;;  %v12102_v44 = vld [vmem:[#allocation53_spill] sm:$0xff]  ;;  %v12103_v8 = vld [vmem:[#allocation54_spill] sm:$0xff] }
 0x789   : > { %v11283_v24 = vadd.f32 %v3755_v45, %v12102_v44  ;;  %v11379_v44 = vrot.slane %v11248_v13, %v12086_v37 }
 0x78b   : > { %6878 = vmatpush1.bf16.msra.mxu1 %v9418_v33  ;;  %7042 = vmatpush1.bf16.msra.mxu0 %v9421_v6  ;;  %v11286_v33 = vadd.f32 %v3759_v10, %v12103_v8  ;;  %v3931_v6 = vrot.slane %v11256_v20, %v12082_v63  ;;  %v11383_v8 = vrot.slane %v11248_v13, %v12082_v63 }
 0x78c   : > { %6879 = vmatprep.subr.bf16.mxu1 %v9426_v60  ;;  %7043 = vmatprep.subr.bf16.mxu0 %v9429_v14  ;;  %v12104_v60 = vld [vmem:[#allocation45_spill] sm:$0xff] }
 0x78d   : > { %v11293_v14 = vadd.f32 %v3763_v52, %v12104_v60  ;;  %v9471_v52 = vld [vmem:[#allocation16 + $0x1ec] ss:$16 sps:$4 sm:$0xff]  }
 0x78f   : > { %6880 = vmatpush1.bf16.msra.mxu1 %v9424_v39  ;;  %7044 = vmatpush1.bf16.msra.mxu0 %v9427_v7  ;;  %v3911_v39 = vrot.slane %v11256_v20, %v12083_v41  ;;  %v3935_v7 = vrot.slane %v11256_v20, %v12084_v31 }
 0x790   : > { %6881 = vmatprep.subr.bf16.mxu1 %v9432_v53  ;;  %7045 = vmatprep.subr.bf16.mxu0 %v9435_v36  ;;  %v3923_v53 = vrot.slane %v11256_v20, %v12086_v37  ;;  %v3927_v36 = vrot.slane %v11256_v20, %v12087_v1  ;;  %v11320_v20 = vrot.slane %v11248_v13, %v12080_v51 }
 0x792   : > { %v11353_v45 = vadd.f32 %v3927_v36, %v11213_v43  ;;  %v9468_v43 = vld [vmem:[#allocation16 + $0x1e4] ss:$16 sps:$4 sm:$0xff]   ;;  %v9469_v36 = vld [vmem:[#allocation16 + $0x1e8] ss:$16 sps:$4 sm:$0xff]  }
 0x793   : > { %6882 = vmatpush1.bf16.msra.mxu1 %v9430_v48  ;;  %7046 = vmatpush1.bf16.msra.mxu0 %v9433_v61  ;;  %v11305_v48 = vrot.slane %v11248_v13, %v12081_v19  ;;  %v11309_v61 = vrot.slane %v11248_v13, %v12083_v41 }
 0x794   : > { %6883 = vmatprep.subr.bf16.mxu1 %v9438_v21  ;;  %7047 = vmatprep.subr.bf16.mxu0 %v9441_v18  ;;  %v9457_v21 = vld [vmem:[#allocation16 + $0x1a8] ss:$16 sps:$4 sm:$0xff]   ;;  %12109 = vst [vmem:[#allocation34_spill] sm:$0xff] %v11353_v45 }
 0x795   : > { %v12105_v18 = vld [vmem:[#allocation46_spill] sm:$0xff]  ;;  %v5064_v28 = vcombine.low %v11305_v48, %v11309_v61 }
 0x797   : > { %6884 = vmatpush1.bf16.msra.mxu1 %v9436_v15  ;;  %7048 = vmatpush1.bf16.msra.mxu0 %v9439_v17  ;;  %v11312_v15 = vadd.f32 %v3767_v5, %v12105_v18  ;;  %v11316_v17 = vrot.slane %v11248_v13, %v12079_v12  ;;  %v9474_v5 = vld [vmem:[#allocation16 + $0x204] ss:$16 sps:$4 sm:$0xff]  }
 0x798   : > { %6885 = vmatprep.subr.bf16.mxu1 %v9444_v25  ;;  %7049 = vmatprep.subr.bf16.mxu0 %v9447_v40  ;;  %v11323_v25 = vadd.f32 %v3915_v54, %v11178_v38  ;;  %v11339_v40 = vadd.f32 %v3931_v6, %v11195_v59  ;;  %v11342_v38 = vadd.f32 %v3911_v39, %v11197_v49  ;;  %v9460_v59 = vld [vmem:[#allocation16 + $0x1c0] ss:$16 sps:$4 sm:$0xff]   ;;  %v9463_v49 = vld [vmem:[#allocation16 + $0x1c8] ss:$16 sps:$4 sm:$0xff]  }
 0x799   : > { %12106 = vst [vmem:[#allocation48_spill] sm:$0xff] %v11312_v15  ;;  %v5065_v35 = vcombine.low %v11316_v17, %v11320_v20 }
 0x79a   : > { %12107 = vst [vmem:[#allocation49_spill] sm:$0xff] %v11339_v40 }
 0x79b   : > { %6886 = vmatpush1.bf16.msra.mxu1 %v9442_v3  ;;  %7050 = vmatpush1.bf16.msra.mxu0 %v9445_v27  ;;  %v9465_v3 = vld [vmem:[#allocation16 + $0x1cc] ss:$16 sps:$4 sm:$0xff]   ;;  %v11326_v27 = vadd.f32 %v3919_v26, %v11181_v23  ;;  %v11345_v23 = vadd.f32 %v3935_v7, %v11199_v34  ;;  %v12110_v26 = vld [vmem:[#allocation30_spill] sm:$0xff]  ;;  %v11391_v7 = vrot.slane %v11248_v13, %v12087_v1 }
 0x79c   : > { %6887 = vmatprep.subr.bf16.mxu1 %v9450_v62  ;;  %7051 = vmatprep.subr.bf16.mxu0 %v9453_v50  ;;  %v11350_v62 = vadd.f32 %v3923_v53, %v11209_v58  ;;  %v9466_v53 = vld [vmem:[#allocation16 + $0x1e0] ss:$16 sps:$4 sm:$0xff]  }
 0x79d   : > { %12108 = vst [vmem:[#allocation33_spill] sm:$0xff] %v11345_v23 }
 0x79f   : > { %6888 = vmatpush1.bf16.msra.mxu1 %v9448_v11  ;;  %7052 = vmatpush1.bf16.msra.mxu0 %v9451_v16  ;;  %v11368_v11 = vrot.slane %v5064_v28, %v12110_v26 }
 0x7a0   : > { %6889 = vmatprep.subr.bf16.mxu1 %v9456_v56  ;;  %7053 = vmatprep.subr.bf16.mxu0 %v9459_v2  ;;  %v11375_v2 = vrot.slane %v5065_v35, %v12110_v26 }
 0x7a1   : > { %12111 = vst [vmem:[#allocation35_spill] sm:$0xff] %v11368_v11 }
 0x7a2   : > { %12112 = vst [vmem:[#allocation36_spill] sm:$0xff] %v11375_v2 }
 0x7a3   : > { %6890 = vmatpush1.bf16.msra.mxu1 %v9454_v55  ;;  %7054 = vmatpush1.bf16.msra.mxu0 %v9457_v21 }
 0x7a4   : > { %6891 = vmatprep.subr.bf16.mxu1 %v9462_v32  ;;  %7055 = vmatprep.subr.bf16.mxu0 %v9465_v3  ;;  %v11400_v3 = vrot.slane %v11248_v13, %v12084_v31 }
 0x7a7   : > { %6892 = vmatpush1.bf16.msra.mxu1 %v9460_v59  ;;  %7056 = vmatpush1.bf16.msra.mxu0 %v9463_v49 }
 0x7a8   : > { %6893 = vmatprep.subr.bf16.mxu1 %v9468_v43  ;;  %7057 = vmatprep.subr.bf16.mxu0 %v9471_v52 }
 0x7ab   : > { %6894 = vmatpush1.bf16.msra.mxu1 %v9466_v53  ;;  %7058 = vmatpush1.bf16.msra.mxu0 %v9469_v36 }
 0x7ac   : > { %6904 = vmatprep.subr.bf16.mxu1 %v9474_v5 }
 0x821   : > { %v4454_v47 = vpop.f32.mrb[68].mxu1  ;;  %v4495_v30 = vpop.f32.mrb[76].mxu0 }
 0x822   : > { %v4455_v57 = vadd.f32 %v4454_v47, %v11305_v48  ;;  %v4496_v6 = vadd.f32 %v4495_v30, %v11316_v17  ;;  %v4456_v60 = vpop.f32.mrb[69].mxu1  ;;  %v11387_v39 = vpop.f32.mrb[77].mxu0 }
 0x823   : > { %v11394_v55 = vadd.f32 %v4456_v60, %v11309_v61  ;;  %v4458_v21 = vpop.f32.mrb[70].mxu1  ;;  %v4499_v18 = vpop.f32.mrb[78].mxu0 }
 0x824   : > { %v4585_v28 = vsel %vm4584_vm13, %v4455_v57, 0.0  ;;  %v4665_v35 = vmul.f32 %v4455_v57, %v4455_v57  ;;  %v4962_v59 = vsel %vm4584_vm13, %v4455_v57, -inf  ;;  %v4599_v49 = vsel %vm4584_vm13, %v4496_v6, 0.0  ;;  %v4459_v47 = vpop.f32.mrb[71].mxu1  ;;  %v4500_v30 = vpop.f32.mrb[79].mxu0 }
 0x825   : > { %v4586_v60 = vrot.slane %v4585_v28, 4  ;;  %v4963_v21 = vrot.slane %v4962_v59, 4  ;;  %v4600_v18 = vrot.slane %v4599_v49, 4  ;;  %v4667_v56 = vmul.f32 %v4496_v6, %v4496_v6 }
 0x826   : > { %v4673_v32 = vsel %vm4584_vm13, %v4665_v35, 0.0  ;;  %v4976_v13 = vsel %vm4584_vm13, %v4496_v6, -inf  ;;  %v4592_v43 = vsel %vm4584_vm13, %v11394_v55, 0.0  ;;  %v4666_v52 = vmul.f32 %v11394_v55, %v11394_v55  ;;  %v9477_v6 = vld [vmem:[#allocation16 + $0x20c] ss:$16 sps:$4 sm:$0xff]  }
 0x827   : > { %v4587_v57 = vadd.f32 %v4586_v60, %v4585_v28  ;;  %v4674_v54 = vrot.slane %v4673_v32, 4  ;;  %v4964_v47 = vmax.f32 %v4962_v59, %v4963_v21  ;;  %v4601_v30 = vadd.f32 %v4600_v18, %v4599_v49  ;;  %7068 = vmatprep.subr.bf16.mxu0 %v9477_v6 }
 0x828   : > { %v4687_v16 = vsel %vm4584_vm13, %v4667_v56, 0.0  ;;  %v4977_v34 = vrot.slane %v4976_v13, 4  ;;  %v4593_v58 = vrot.slane %v4592_v43, 4  ;;  %v4680_v35 = vsel %vm4584_vm13, %v4666_v52, 0.0 }
 0x829   : > { %v4588_v50 = vrot.slane %v4587_v57, 2  ;;  %v4675_v10 = vadd.f32 %v4674_v54, %v4673_v32  ;;  %v4965_v23 = vrot.slane %v4964_v47, 2  ;;  %v4602_v46 = vrot.slane %v4601_v30, 2 }
 0x82a   : > { %v4688_v11 = vrot.slane %v4687_v16, 4  ;;  %v4978_v53 = vmax.f32 %v4976_v13, %v4977_v34  ;;  %v4594_v36 = vadd.f32 %v4593_v58, %v4592_v43  ;;  %v4681_v28 = vrot.slane %v4680_v35, 4 }
 0x82b   : > { %v4589_v59 = vadd.f32 %v4588_v50, %v4587_v57  ;;  %v4676_v49 = vrot.slane %v4675_v10, 2  ;;  %v4966_v60 = vmax.f32 %v4964_v47, %v4965_v23  ;;  %v4603_v21 = vadd.f32 %v4602_v46, %v4601_v30 }
 0x82c   : > { %v4689_v56 = vadd.f32 %v4688_v11, %v4687_v16  ;;  %v4979_v18 = vrot.slane %v4978_v53, 2  ;;  %v4595_v2 = vrot.slane %v4594_v36, 2  ;;  %v4682_v45 = vadd.f32 %v4681_v28, %v4680_v35 }
 0x82d   : > { %v4590_v52 = vrot.slane %v4589_v59, 1  ;;  %v4677_v31 = vadd.f32 %v4676_v49, %v4675_v10  ;;  %v4967_v15 = vrot.slane %v4966_v60, 1  ;;  %v4604_v54 = vrot.slane %v4603_v21, 1 }
 0x82e   : > { %v4690_v32 = vrot.slane %v4689_v56, 2  ;;  %v11413_v40 = vmax.f32 %v4978_v53, %v4979_v18  ;;  %v4596_v5 = vadd.f32 %v4595_v2, %v4594_v36  ;;  %v4683_v34 = vrot.slane %v4682_v45, 2 }
 0x82f   : > { %v4591_v58 = vadd.f32 %v4590_v52, %v4589_v59  ;;  %v4678_v13 = vrot.slane %v4677_v31, 1  ;;  %v4605_v43 = vadd.f32 %v4604_v54, %v4603_v21  ;;  %v4498_v23 = vadd.f32 %v11387_v39, %v11320_v20 }
 0x830   : > { %v11417_v46 = vmax.f32 %v4966_v60, %v4967_v15  ;;  %v4691_v50 = vadd.f32 %v4690_v32, %v4689_v56  ;;  %v4597_v11 = vrot.slane %v4596_v5, 1  ;;  %v4684_v16 = vadd.f32 %v4683_v34, %v4682_v45 }
 0x831   : > { %v4641_v10 = vadd.f32 %v4591_v58, %v11305_v48  ;;  %v4679_v57 = vadd.f32 %v4678_v13, %v4677_v31  ;;  %v4643_v47 = vadd.f32 %v4605_v43, %v11316_v17  ;;  %v4969_v2 = vsel %vm4584_vm13, %v11394_v55, -inf }
 0x832   : > { %v4692_v30 = vrot.slane %v4691_v50, 1  ;;  %v4981_v35 = vrot.slane %v11413_v40, 1  ;;  %v4598_v6 = vadd.f32 %v4597_v11, %v4596_v5  ;;  %v4685_v53 = vrot.slane %v4684_v16, 1 }
 0x833   : > { %v4649_v36 = vmul.f32 4.0, %v4641_v10  ;;  %v12113_v15 = vrot.slane %v11252_v9, %v12081_v19  ;;  %v4651_v28 = vmul.f32 4.0, %v4643_v47  ;;  %v4970_v45 = vrot.slane %v4969_v2, 4 }
 0x834   : > { %v4693_v59 = vadd.f32 %v4692_v30, %v4691_v50  ;;  %v4642_v31 = vadd.f32 %v4598_v6, %v11309_v61  ;;  %v4686_v48 = vadd.f32 %v4685_v53, %v4684_v16  ;;  %v4606_v17 = vsel %vm4584_vm13, %v4498_v23, 0.0 }
 0x835   : > { %v4770_v39 = vadd.f32 %v12113_v15, %v4679_v57  ;;  %v4657_v55 = vadd.f32 %v4649_v36, %v11267_v29  ;;  %v4659_v60 = vadd.f32 %v4651_v28, %v11283_v24  ;;  %v4971_v21 = vmax.f32 %v4969_v2, %v4970_v45 }
 0x836   : > { %v12114_v56 = vrot.slane %v11252_v9, %v12079_v12  ;;  %v4650_v52 = vmul.f32 4.0, %v4642_v31  ;;  %v12115_v54 = vrot.slane %v11252_v9, %v12083_v41  ;;  %v4607_v5 = vrot.slane %v4606_v17, 4 }
 0x837   : > { %v4778_v49 = vmul.f32 4.0, %v4770_v39  ;;  %v11438_v34 = vmul.f32 0.022727273, %v4657_v55  ;;  %v11440_v58 = vmul.f32 0.022727273, %v4659_v60  ;;  %v4972_v29 = vrot.slane %v4971_v21, 2 }
 0x838   : > { %v4772_v18 = vadd.f32 %v12114_v56, %v4693_v59  ;;  %v4771_v32 = vadd.f32 %v12115_v54, %v4686_v48  ;;  %v4658_v24 = vadd.f32 %v4650_v52, %v11274_v22  ;;  %v4608_v50 = vadd.f32 %v4607_v5, %v4606_v17 }
 0x839   : > { %v4786_v61 = vadd.f32 %v4778_v49, %v11329_v0  ;;  %v4812_v16 = vmul.f32 %v11438_v34, %v11438_v34  ;;  %v4814_v10 = vmul.f32 %v11440_v58, %v11440_v58  ;;  %v4973_v57 = vmax.f32 %v4971_v21, %v4972_v29 }
 0x83a   : > { %v4780_v13 = vmul.f32 4.0, %v4772_v18  ;;  %v4779_v43 = vmul.f32 4.0, %v4771_v32  ;;  %v11449_v2 = vmul.f32 0.022727273, %v4658_v24  ;;  %v4609_v30 = vrot.slane %v4608_v50, 2 }
 0x83b   : > { %v4804_v11 = vmul.f32 0.022727273, %v4786_v61  ;;  %v4974_v53 = vrot.slane %v4973_v57, 1  ;;  %v4668_v22 = vmul.f32 %v4498_v23, %v4498_v23  ;;  %v4983_v36 = vsel %vm4584_vm13, %v4498_v23, -inf }
 0x83c   : > { %v4788_v0 = vadd.f32 %v4780_v13, %v11323_v25  ;;  %v4787_v47 = vadd.f32 %v4779_v43, %v11342_v38  ;;  %v4813_v28 = vmul.f32 %v11449_v2, %v11449_v2  ;;  %v4610_v45 = vadd.f32 %v4609_v30, %v4608_v50 }
 0x83d   : > { %v4820_v6 = vsub.f32 %v4804_v11, %v4812_v16  ;;  %v4975_v31 = vmax.f32 %v4973_v57, %v4974_v53  ;;  %v4694_v25 = vsel %vm4584_vm13, %v4668_v22, 0.0  ;;  %v4984_v48 = vrot.slane %v4983_v36, 4 }
 0x83e   : > { %v4806_v15 = vmul.f32 0.022727273, %v4788_v0  ;;  %v4805_v39 = vmul.f32 0.022727273, %v4787_v47  ;;  %v4611_v55 = vrot.slane %v4610_v45, 1  ;;  %v4695_v49 = vrot.slane %v4694_v25, 4 }
 0x83f   : > { %v4828_v59 = vadd.f32 1e-05, %v4820_v6  ;;  %v5026_v60 = vcombine.low %v11417_v46, %v4975_v31  ;;  %v4985_v21 = vmax.f32 %v4983_v36, %v4984_v48  ;;  %v4757_v23 = vrot.slane %v11252_v9, %v12082_v63 }
 0x840   : > { %v4822_v38 = vsub.f32 %v4806_v15, %v4814_v10  ;;  %v4821_v17 = vsub.f32 %v4805_v39, %v4813_v28  ;;  %v4612_v52 = vadd.f32 %v4611_v55, %v4610_v45  ;;  %v4696_v54 = vadd.f32 %v4695_v49, %v4694_v25 }
 0x841   : > { %9856 = vrsqrt.f32 %v4828_v59  ;;  %v4982_v32 = vmax.f32 %v11413_v40, %v4981_v35  ;;  %v4986_v5 = vrot.slane %v4985_v21, 2  ;;  %v4536_v61 = vpop.f32.mrb[72].mxu1  ;;  %v4864_v29 = vrot.slane %v11334_v42, %v12086_v37  ;;  %v4577_v13 = vpop.f32.mrb[80].mxu0 }
 0x842   : > { %v4830_v56 = vadd.f32 1e-05, %v4822_v38  ;;  %v4829_v18 = vadd.f32 1e-05, %v4821_v17  ;;  %v4753_v24 = vrot.slane %v11252_v9, %v12087_v1  ;;  %v4644_v46 = vadd.f32 %v4612_v52, %v11320_v20  ;;  %v4538_v11 = vpop.f32.mrb[73].mxu1  ;;  %v11465_v16 = vpop.f32.mrb[81].mxu0 }
 0x843   : > { %v4697_v43 = vrot.slane %v4696_v54, 2  ;;  %v4537_v50 = vadd.f32 %v4536_v61, %v11379_v44  ;;  %v11468_v40 = vrot.slane %v5026_v60, %v12110_v26  ;;  %v4987_v35 = vmax.f32 %v4985_v21, %v4986_v5  ;;  %v4540_v57 = vpop.f32.mrb[74].mxu1  ;;  %v4581_v0 = vpop.f32.mrb[82].mxu0 }
 0x844   : > { %9858 = vrsqrt.f32 %v4830_v56  ;;  %v11471_v10 = vadd.f32 %v4577_v13, %v11383_v8  ;;  %v4652_v47 = vmul.f32 4.0, %v4644_v46  ;;  %v4541_v53 = vpop.f32.mrb[75].mxu1  ;;  %v4582_v22 = vpop.f32.mrb[83].mxu0  ;;  %v11482_v56 = vadd.f32 %v4538_v11, %v11391_v7 }
 0x845   : > { %9860 = vrsqrt.f32 %v4829_v18  ;;  %v4698_v30 = vadd.f32 %v4697_v43, %v4696_v54  ;;  %v4613_v20 = vsel %vm4584_vm13, %v4537_v50, 0.0  ;;  %v4669_v6 = vmul.f32 %v4537_v50, %v4537_v50 }
 0x846   : > { %v4988_v36 = vrot.slane %v4987_v35, 1  ;;  %v4614_v15 = vrot.slane %v4613_v20, 4  ;;  %v4990_v39 = vsel %vm4584_vm13, %v4537_v50, -inf  ;;  %v4627_v28 = vsel %vm4584_vm13, %v11471_v10, 0.0 }
 0x847   : > { %v4660_v45 = vadd.f32 %v4652_v47, %v11286_v33  ;;  %v4699_v59 = vrot.slane %v4698_v30, 1  ;;  %v4701_v31 = vsel %vm4584_vm13, %v4669_v6, 0.0  ;;  %v4991_v25 = vrot.slane %v4990_v39, 4 }
 0x848   : > { %v4989_v48 = vmax.f32 %v4987_v35, %v4988_v36  ;;  %v4615_v38 = vadd.f32 %v4614_v15, %v4613_v20  ;;  %v4702_v17 = vrot.slane %v4701_v31, 4  ;;  %v4628_v55 = vrot.slane %v4627_v28, 4 }
 0x849   : > { %v4700_v49 = vadd.f32 %v4699_v59, %v4698_v30  ;;  %v4992_v60 = vmax.f32 %v4990_v39, %v4991_v25  ;;  %v4671_v21 = vmul.f32 %v11471_v10, %v11471_v10  ;;  %v12116_v61 = vrot.slane %v11334_v42, %v12081_v19 }
 0x84a   : > { %v5027_v52 = vcombine.low %v4982_v32, %v4989_v48  ;;  %v4616_v54 = vrot.slane %v4615_v38, 2  ;;  %v4703_v33 = vadd.f32 %v4702_v17, %v4701_v31  ;;  %v4629_v5 = vadd.f32 %v4628_v55, %v4627_v28 }
 0x84b   : > { %v9857_v18 = vpop.eup %9856  ;;  %v12117_v46 = vrot.slane %v11252_v9, %v12080_v51  ;;  %v11492_v50 = vmul.f32 0.022727273, %v4660_v45  ;;  %v4993_v35 = vrot.slane %v4992_v60, 2  ;;  %v4715_v53 = vsel %vm4584_vm13, %v4671_v21, 0.0 }
 0x84c   : > { %v11487_v13 = vmul.f32 %v9857_v18, %v12116_v61  ;;  %v11495_v11 = vrot.slane %v5027_v52, %v12110_v26  ;;  %v4617_v57 = vadd.f32 %v4616_v54, %v4615_v38  ;;  %v4704_v32 = vrot.slane %v4703_v33, 2 }
 0x84d   : > { %v4773_v43 = vadd.f32 %v12117_v46, %v4700_v49  ;;  %v4630_v0 = vrot.slane %v4629_v5, 2  ;;  %v4994_v6 = vmax.f32 %v4992_v60, %v4993_v35  ;;  %v12118_v36 = vrot.slane %v11334_v42, %v12079_v12 }
 0x84e   : > { %v9859_v47 = vpop.eup %9858  ;;  %v4893_v30 = vmul.f32 %v11487_v13, %v11438_v34  ;;  %v5042_v39 = vcombine.low %v11468_v40, %v11495_v11  ;;  %v4618_v28 = vrot.slane %v4617_v57, 1  ;;  %v4705_v45 = vadd.f32 %v4704_v32, %v4703_v33 }
 0x84f   : > { %v4781_v20 = vmul.f32 4.0, %v4773_v43  ;;  %v9861_v22 = vpop.eup %9860  ;;  %v11503_v15 = vmul.f32 %v9859_v47, %v12118_v36  ;;  %v12119_v59 = vrot.slane %v11334_v42, %v12083_v41  ;;  %v4815_v25 = vmul.f32 %v11492_v50, %v11492_v50 }
 0x850   : > { %v4631_v48 = vadd.f32 %v4630_v0, %v4629_v5  ;;  %v4619_v17 = vadd.f32 %v4618_v28, %v4617_v57  ;;  %v4706_v55 = vrot.slane %v4705_v45, 1  ;;  %v4716_v49 = vrot.slane %v4715_v53, 4 }
 0x851   : > { %v11510_v31 = vmul.f32 %v9861_v22, %v12119_v59  ;;  %v4789_v34 = vadd.f32 %v4781_v20, %v11326_v27  ;;  %v11517_v38 = vmul.f32 %v11503_v15, %v11440_v58  ;;  %v4995_v18 = vrot.slane %v4994_v6, 1 }
 0x852   : > { %v4632_v52 = vrot.slane %v4631_v48, 1  ;;  %v4645_v54 = vadd.f32 %v4619_v17, %v11379_v44  ;;  %v4707_v27 = vadd.f32 %v4706_v55, %v4705_v45  ;;  %v4717_v33 = vadd.f32 %v4716_v49, %v4715_v53 }
 0x853   : > { %v4894_v60 = vmul.f32 %v11510_v31, %v11449_v2  ;;  %v4807_v21 = vmul.f32 0.022727273, %v4789_v34  ;;  %v5004_v5 = vsel %vm4584_vm13, %v11471_v10, -inf  ;;  %v12120_v57 = vrot.slane %v11252_v9, %v12086_v37 }
 0x854   : > { %v4633_v58 = vadd.f32 %v4632_v52, %v4631_v48  ;;  %v5005_v43 = vrot.slane %v5004_v5, 4  ;;  %v4653_v35 = vmul.f32 4.0, %v4645_v54  ;;  %v4718_v2 = vrot.slane %v4717_v33, 2 }
 0x855   : > { %v4909_v61 = vcombine.low %v4893_v30, %v4894_v60  ;;  %v4823_v46 = vsub.f32 %v4807_v21, %v4815_v25  ;;  %v4774_v32 = vadd.f32 %v12120_v57, %v4707_v27  ;;  %v4620_v0 = vsel %vm4584_vm13, %v11482_v56, 0.0 }
 0x856   : > { %v11529_v20 = vmax.f32 %v4994_v6, %v4995_v18  ;;  %v4647_v53 = vadd.f32 %v4633_v58, %v11383_v8  ;;  %v5006_v22 = vmax.f32 %v5004_v5, %v5005_v43  ;;  %v4661_v10 = vadd.f32 %v4653_v35, %v11293_v14 }
 0x857   : > { %v4831_v47 = vadd.f32 1e-05, %v4823_v46  ;;  %v4782_v30 = vmul.f32 4.0, %v4774_v32  ;;  %v4719_v36 = vadd.f32 %v4718_v2, %v4717_v33  ;;  %v4621_v28 = vrot.slane %v4620_v0, 4 }
 0x858   : > { %v4655_v45 = vmul.f32 4.0, %v4647_v53  ;;  %v5007_v59 = vrot.slane %v5006_v22, 2  ;;  %v4670_v34 = vmul.f32 %v11482_v56, %v11482_v56  ;;  %v11536_v48 = vmul.f32 0.022727273, %v4661_v10 }
 0x859   : > { %9862 = vrsqrt.f32 %v4831_v47  ;;  %v4790_v25 = vadd.f32 %v4782_v30, %v11350_v62  ;;  %v4720_v6 = vrot.slane %v4719_v36, 1  ;;  %v4622_v17 = vadd.f32 %v4621_v28, %v4620_v0  ;;  %v12121_v62 = vld [vmem:[#allocation52_spill] sm:$0xff] }
 0x85a   : > { %v4663_v55 = vadd.f32 %v4655_v45, %v11277_v4  ;;  %v11539_v49 = vmax.f32 %v5006_v22, %v5007_v59  ;;  %v4708_v14 = vsel %vm4584_vm13, %v4670_v34, 0.0  ;;  %v4997_v60 = vsel %vm4584_vm13, %v11482_v56, -inf }
 0x85b   : > { %v4808_v21 = vmul.f32 0.022727273, %v4790_v25  ;;  %v4816_v18 = vmul.f32 %v11536_v48, %v11536_v48  ;;  %v4721_v52 = vadd.f32 %v4720_v6, %v4719_v36  ;;  %v4623_v54 = vrot.slane %v4622_v17, 2  ;;  %v12122_v36 = vld [vmem:[#allocation49_spill] sm:$0xff] }
 0x85c   : > { %v11547_v27 = vrot.slane %v4909_v61, %v12121_v62  ;;  %v11549_v33 = vmul.f32 0.022727273, %v4663_v55  ;;  %v4709_v5 = vrot.slane %v4708_v14, 4  ;;  %v4998_v4 = vrot.slane %v4997_v60, 4 }
 0x85d   : > { %v4824_v46 = vsub.f32 %v4808_v21, %v4816_v18  ;;  %v4776_v58 = vadd.f32 %v4757_v23, %v4721_v52  ;;  %v4624_v43 = vadd.f32 %v4623_v54, %v4622_v17  ;;  %v4580_v56 = vadd.f32 %v11465_v16, %v11400_v3 }
 0x85e   : > { %v4818_v35 = vmul.f32 %v11549_v33, %v11549_v33  ;;  %v5009_v57 = vrot.slane %v11539_v49, 1  ;;  %v4710_v61 = vadd.f32 %v4709_v5, %v4708_v14  ;;  %v4999_v32 = vmax.f32 %v4997_v60, %v4998_v4 }
 0x85f   : > { %v4832_v2 = vadd.f32 1e-05, %v4824_v46  ;;  %v4784_v0 = vmul.f32 4.0, %v4776_v58  ;;  %v4625_v47 = vrot.slane %v4624_v43, 1  ;;  %v4634_v53 = vsel %vm4584_vm13, %v4580_v56, 0.0 }
 0x860   : > { %v4711_v22 = vrot.slane %v4710_v61, 2  ;;  %v5000_v10 = vrot.slane %v4999_v32, 2  ;;  %v4635_v30 = vrot.slane %v4634_v53, 4  ;;  %v4672_v23 = vmul.f32 %v4580_v56, %v4580_v56 }
 0x861   : > { %9864 = vrsqrt.f32 %v4832_v2  ;;  %v4792_v28 = vadd.f32 %v4784_v0, %v12122_v36  ;;  %v4626_v16 = vadd.f32 %v4625_v47, %v4624_v43  ;;  %v5011_v45 = vsel %vm4584_vm13, %v4580_v56, -inf }
 0x862   : > { %v4712_v34 = vadd.f32 %v4711_v22, %v4710_v61  ;;  %v5001_v25 = vmax.f32 %v4999_v32, %v5000_v10  ;;  %v4636_v6 = vadd.f32 %v4635_v30, %v4634_v53  ;;  %v4722_v17 = vsel %vm4584_vm13, %v4672_v23, 0.0  ;;  %v12124_v22 = vld [vmem:[#allocation48_spill] sm:$0xff] }
 0x863   : > { %v9863_v59 = vpop.eup %9862  ;;  %v12123_v55 = vrot.slane %v11334_v42, %v12080_v51  ;;  %v4810_v60 = vmul.f32 0.022727273, %v4792_v28  ;;  %v4646_v21 = vadd.f32 %v4626_v16, %v11391_v7  ;;  %v4723_v18 = vrot.slane %v4722_v17, 4 }
 0x864   : > { %v4713_v52 = vrot.slane %v4712_v34, 1  ;;  %v5002_v54 = vrot.slane %v5001_v25, 1  ;;  %v4637_v5 = vrot.slane %v4636_v6, 2  ;;  %v5012_v4 = vrot.slane %v5011_v45, 4 }
 0x865   : > { %v4888_v14 = vmul.f32 %v9863_v59, %v12123_v55  ;;  %v4826_v58 = vsub.f32 %v4810_v60, %v4818_v35  ;;  %v4654_v43 = vmul.f32 4.0, %v4646_v21  ;;  %v4724_v56 = vadd.f32 %v4723_v18, %v4722_v17  ;;  %v12126_v18 = vld [vmem:[#allocation34_spill] sm:$0xff] }
 0x866   : > { %v4714_v61 = vadd.f32 %v4713_v52, %v4712_v34  ;;  %v5003_v32 = vmax.f32 %v5001_v25, %v5002_v54  ;;  %v4638_v2 = vadd.f32 %v4637_v5, %v4636_v6  ;;  %v5013_v0 = vmax.f32 %v5011_v45, %v5012_v4  ;;  %v12125_v34 = vld [vmem:[#allocation32_spill] sm:$0xff] }
 0x867   : > { %v4896_v46 = vmul.f32 %v4888_v14, %v11492_v50  ;;  %v4834_v53 = vadd.f32 1e-05, %v4826_v58  ;;  %v4662_v10 = vadd.f32 %v4654_v43, %v12124_v22  ;;  %v4725_v30 = vrot.slane %v4724_v56, 2  ;;  %v12127_v4 = vld [vmem:[#allocation36_spill] sm:$0xff] }
 0x868   : > { %v4775_v23 = vadd.f32 %v4753_v24, %v4714_v61  ;;  %v5043_v36 = vcombine.low %v11529_v20, %v5003_v32  ;;  %v4639_v50 = vrot.slane %v4638_v2, 1  ;;  %v5014_v35 = vrot.slane %v5013_v0, 2  ;;  %v4960_v32 = vld [vmem:[#allocation12] sm:$0xff] }
 0x869   : > { %v4910_v47 = vcombine.low %v11517_v38, %v4896_v46  ;;  %9866 = vrsqrt.f32 %v4834_v53  ;;  %v4801_v16 = vmul.f32 0.022727273, %v4662_v10  ;;  %v4726_v45 = vadd.f32 %v4725_v30, %v4724_v56  ;;  %v12129_v30 = vld [vmem:[#allocation47_spill] sm:$0xff] }
 0x86a   : > { %v4783_v59 = vmul.f32 4.0, %v4775_v23  ;;  %v4640_v38 = vadd.f32 %v4639_v50, %v4638_v2  ;;  %v4761_v25 = vrot.slane %v11252_v9, %v12125_v34  ;;  %v5015_v6 = vmax.f32 %v5013_v0, %v5014_v35  ;;  %v12128_v9 = vld [vmem:[#allocation35_spill] sm:$0xff] }
 0x86b   : > { %v11575_v28 = vrot.slane %v4910_v47, %v12121_v62  ;;  %v9865_v17 = vpop.eup %9864  ;;  %v5010_v20 = vmax.f32 %v11539_v49, %v5009_v57  ;;  %v4817_v55 = vmul.f32 %v4801_v16, %v4801_v16  ;;  %v4727_v60 = vrot.slane %v4726_v45, 1 }
 0x86c   : > { %v4889_v21 = vmul.f32 %v9865_v17, %v4864_v29  ;;  %v4791_v52 = vadd.f32 %v4783_v59, %v12126_v18  ;;  %v4648_v54 = vadd.f32 %v4640_v38, %v11400_v3  ;;  %v5016_v5 = vrot.slane %v5015_v6, 1 }
 0x86d   : > { %v4941_v24 = vcombine.low %v11547_v27, %v11575_v28  ;;  %v5080_v46 = vcombine.low %v12128_v9, %v12127_v4  ;;  %v4872_v58 = vrot.slane %v11334_v42, %v12082_v63  ;;  %v4728_v43 = vadd.f32 %v4727_v60, %v4726_v45 }
 0x86e   : > { %v5105_v49 = vrot.slane %v11487_v13, %v12081_v19  ;;  %v4897_v57 = vmul.f32 %v4889_v21, %v11536_v48  ;;  %v4809_v56 = vmul.f32 0.022727273, %v4791_v52  ;;  %v4656_v61 = vmul.f32 4.0, %v4648_v54 }
 0x86f   : > { %v5017_v29 = vmax.f32 %v5015_v6, %v5016_v5  ;;  %v4777_v2 = vadd.f32 %v4761_v25, %v4728_v43  ;;  %v5109_v0 = vrot.slane %v11510_v31, %v12081_v19  ;;  %v5113_v47 = vrot.slane %v11503_v15, %v12081_v19  ;;  %v12130_v25 = vld [vmem:[#allocation33_spill] sm:$0xff] }
 0x870   : > { %v5117_v53 = vrot.slane %v4888_v14, %v12081_v19  ;;  %v4825_v22 = vsub.f32 %v4809_v56, %v4817_v55  ;;  %v5051_v10 = vrot.slane %v5043_v36, %v12110_v26  ;;  %v4664_v13 = vadd.f32 %v4656_v61, %v12129_v30 }
 0x871   : > { %v5044_v23 = vcombine.low %v5010_v20, %v5017_v29  ;;  %v4785_v48 = vmul.f32 4.0, %v4777_v2  ;;  %v5062_v50 = vmax.f32 %v4960_v32, %v5042_v39  ;;  %v5142_v35 = vcombine.low %v5105_v49, %v5109_v0 }
 0x872   : > { %v5143_v45 = vcombine.low %v5113_v47, %v5117_v53  ;;  %v4833_v59 = vadd.f32 1e-05, %v4825_v22  ;;  %v4803_v31 = vmul.f32 0.022727273, %v4664_v13  ;;  %v4868_v5 = vrot.slane %v11334_v42, %v12087_v1 }
 0x873   : > { %v5058_v38 = vrot.slane %v5044_v23, %v12110_v26  ;;  %v9867_v15 = vpop.eup %9866  ;;  %v4793_v14 = vadd.f32 %v4785_v48, %v12130_v25  ;;  %v5150_v6 = vrot.slane %v5142_v35, %v12110_v26  ;;  %v5100_v40 = vmax.f32 %v5062_v50, %v5080_v46 }
 0x874   : > { %v5157_v36 = vrot.slane %v5143_v45, %v12110_v26  ;;  %v4891_v17 = vmul.f32 %v9867_v15, %v4872_v58  ;;  %9868 = vrsqrt.f32 %v4833_v59  ;;  %v4819_v20 = vmul.f32 %v4803_v31, %v4803_v31  ;;  %v4795_v59 = vld [vmem:[%s11926_s12] sm:$0xff] }
 0x875   : > { %v5059_v55 = vcombine.low %v5051_v10, %v5058_v38  ;;  %v4811_v60 = vmul.f32 0.022727273, %v4793_v14  ;;  %v5121_v43 = vrot.slane %v4889_v21, %v12081_v19  ;;  %v5081_v49 = vcombine.low %v11379_v44, %v11391_v7 }
 0x876   : > { %v5158_v11 = vcombine.low %v5150_v6, %v5157_v36  ;;  %v4899_v39 = vmul.f32 %v4891_v17, %v11549_v33  ;;  %v5082_v46 = vcombine.low %v11383_v8, %v11400_v3  ;;  %v4876_v56 = vrot.slane %v11334_v42, %v12125_v34 }
 0x877   : > { %v4827_v18 = vsub.f32 %v4811_v60, %v4819_v20  ;;  %v5089_v2 = vrot.slane %v5081_v49, %v12110_v26  ;;  %v5129_v47 = vrot.slane %v4891_v17, %v12081_v19  ;;  %v4949_v50 = vrot.slane %v4941_v24, %v12121_v62  ;;  %v9472_v49 = vld [vmem:[#allocation16 + $0x200] ss:$16 sps:$4 sm:$0xff]  }
 0x878   : > { %v5178_v52 = vmul.f32 %v5158_v11, %v5100_v40  ;;  %v5096_v0 = vrot.slane %v5082_v46, %v12110_v26  ;;  %v9475_v46 = vld [vmem:[#allocation16 + $0x208] ss:$16 sps:$4 sm:$0xff]  }
 0x879   : > { %v4835_v54 = vadd.f32 1e-05, %v4827_v18 }
 0x87a   : > { %v5097_v8 = vcombine.low %v5089_v2, %v5096_v0  ;;  %v9481_v2 = vld [vmem:[#allocation16 + $0x228] ss:$16 sps:$4 sm:$0xff]   ;;  %v9486_v0 = vld [vmem:[#allocation16 + $0x244] ss:$16 sps:$4 sm:$0xff]  }
 0x87b   : > { %9870 = vrsqrt.f32 %v4835_v54 }
 0x87e   : > { %v9869_v4 = vpop.eup %9868 }
 0x87f   : > { %v4890_v9 = vmul.f32 %v9869_v4, %v4868_v5 }
 0x881   : > { %v4898_v58 = vmul.f32 %v4890_v9, %v4801_v16  ;;  %v5125_v33 = vrot.slane %v4890_v9, %v12081_v19  ;;  %v4961_v16 = vld [vmem:[#allocation12 + $0x8] sm:$0xff] }
 0x882   : > { %v5063_v3 = vmax.f32 %v4961_v16, %v5059_v55  ;;  %v9484_v16 = vld [vmem:[#allocation16 + $0x240] ss:$16 sps:$4 sm:$0xff]  }
 0x883   : > { %v4911_v61 = vcombine.low %v4897_v57, %v4898_v58  ;;  %v5159_v29 = vcombine.low %v5121_v43, %v5125_v33 }
 0x884   : > { %v5101_v23 = vmax.f32 %v5063_v3, %v5097_v8  ;;  %v9490_v8 = vld [vmem:[#allocation16 + $0x260] ss:$16 sps:$4 sm:$0xff]   ;;  %v9493_v3 = vld [vmem:[#allocation16 + $0x268] ss:$16 sps:$4 sm:$0xff]  }
 0x885   : > { %v9871_v32 = vpop.eup %9870  ;;  %v4933_v53 = vrot.slane %v4911_v61, %v12121_v62  ;;  %v5167_v57 = vrot.slane %v5159_v29, %v12110_v26  ;;  %v9480_v61 = vld [vmem:[#allocation16 + $0x224] ss:$16 sps:$4 sm:$0xff]   ;;  %v9483_v29 = vld [vmem:[#allocation16 + $0x22c] ss:$16 sps:$4 sm:$0xff]  }
 0x886   : > { %v4892_v21 = vmul.f32 %v9871_v32, %v4876_v56  ;;  %v9478_v32 = vld [vmem:[#allocation16 + $0x220] ss:$16 sps:$4 sm:$0xff]  }
 0x888   : > { %v4900_v44 = vmul.f32 %v4892_v21, %v4803_v31  ;;  %v5133_v7 = vrot.slane %v4892_v21, %v12081_v19  ;;  %v9489_v21 = vld [vmem:[#allocation16 + $0x24c] ss:$16 sps:$4 sm:$0xff]  }
 0x88a   : > { %v4912_v22 = vcombine.low %v4899_v39, %v4900_v44  ;;  %v5160_v42 = vcombine.low %v5129_v47, %v5133_v7  ;;  %v9487_v47 = vld [vmem:[#allocation16 + $0x248] ss:$16 sps:$4 sm:$0xff]   ;;  %v9492_v44 = vld [vmem:[#allocation16 + $0x264] ss:$16 sps:$4 sm:$0xff]   ;;  %v9495_v7 = vld [vmem:[#allocation16 + $0x26c] ss:$16 sps:$4 sm:$0xff]  }
 0x88c   : > { %v4940_v10 = vrot.slane %v4912_v22, %v12121_v62  ;;  %v5174_v30 = vrot.slane %v5160_v42, %v12110_v26  ;;  %v9501_v22 = vld [vmem:[#allocation16 + $0x28c] ss:$16 sps:$4 sm:$0xff]   ;;  %v9496_v42 = vld [vmem:[#allocation16 + $0x280] ss:$16 sps:$4 sm:$0xff]  }
 0x88e   : > { %v4942_v13 = vcombine.low %v4933_v53, %v4940_v10  ;;  %v5175_v48 = vcombine.low %v5167_v57, %v5174_v30  ;;  %v9498_v53 = vld [vmem:[#allocation16 + $0x284] ss:$16 sps:$4 sm:$0xff]   ;;  %v9499_v57 = vld [vmem:[#allocation16 + $0x288] ss:$16 sps:$4 sm:$0xff]   ;;  %v9507_v30 = vld [vmem:[#allocation16 + $0x2ac] ss:$16 sps:$4 sm:$0xff]  }
 0x88f   : > { %v9504_v10 = vld [vmem:[#allocation16 + $0x2a4] ss:$16 sps:$4 sm:$0xff]  }
 0x890   : > { %v4956_v35 = vrot.slane %v4942_v13, %v12121_v62  ;;  %v5179_v45 = vmul.f32 %v5175_v48, %v5101_v23  ;;  %v9502_v13 = vld [vmem:[#allocation16 + $0x2a0] ss:$16 sps:$4 sm:$0xff]   ;;  %v9505_v23 = vld [vmem:[#allocation16 + $0x2a8] ss:$16 sps:$4 sm:$0xff]   ;;  %v9510_v48 = vld [vmem:[#allocation16 + $0x2c4] ss:$16 sps:$4 sm:$0xff]  }
 0x892   : > { %v4957_v31 = vcombine.low %v4949_v50, %v4956_v35  ;;  %v9513_v50 = vld [vmem:[#allocation16 + $0x2cc] ss:$16 sps:$4 sm:$0xff]   ;;  %v9508_v35 = vld [vmem:[#allocation16 + $0x2c0] ss:$16 sps:$4 sm:$0xff]  }
 0x894   : > { %v4959_v38 = vsub.f32 %v4795_v59, %v4957_v31  ;;  %v9516_v59 = vld [vmem:[#allocation16 + $0x2e4] ss:$16 sps:$4 sm:$0xff]   ;;  %v9519_v31 = vld [vmem:[#allocation16 + $0x2ec] ss:$16 sps:$4 sm:$0xff]  }
 0x896   : > { %v5184_v15 = vrot.slane %v4959_v38, %v12081_v19  ;;  %v5188_v25 = vrot.slane %v4959_v38, %v12083_v41  ;;  %v5192_v14 = vrot.slane %v4959_v38, %v12079_v12  ;;  %v5196_v6 = vrot.slane %v4959_v38, %v12080_v51 }
 0x897   : > { %v5200_v27 = vrot.slane %v4959_v38, %v12086_v37  ;;  %v5204_v28 = vrot.slane %v4959_v38, %v12087_v1  ;;  %v5208_v24 = vrot.slane %v4959_v38, %v12082_v63  ;;  %v5212_v36 = vrot.slane %v4959_v38, %v12125_v34  ;;  %v9514_v38 = vld [vmem:[#allocation16 + $0x2e0] ss:$16 sps:$4 sm:$0xff]  }
 0x898   : > { %v5213_v17 = vcombine.low %v5184_v15, %v5188_v25  ;;  %v5214_v20 = vcombine.low %v5192_v14, %v5196_v6  ;;  %v9517_v15 = vld [vmem:[#allocation16 + $0x2e8] ss:$16 sps:$4 sm:$0xff]   ;;  %v9522_v25 = vld [vmem:[#allocation16 + $0x304] ss:$16 sps:$4 sm:$0xff]   ;;  %v9525_v14 = vld [vmem:[#allocation16 + $0x30c] ss:$16 sps:$4 sm:$0xff]  }
 0x899   : > { %v5230_v55 = vcombine.low %v5200_v27, %v5204_v28  ;;  %v5231_v60 = vcombine.low %v5208_v24, %v5212_v36  ;;  %v9520_v6 = vld [vmem:[#allocation16 + $0x300] ss:$16 sps:$4 sm:$0xff]   ;;  %v9523_v27 = vld [vmem:[#allocation16 + $0x308] ss:$16 sps:$4 sm:$0xff]   ;;  %v9528_v28 = vld [vmem:[#allocation16 + $0x324] ss:$16 sps:$4 sm:$0xff]  }
 0x89a   : > { %v5221_v40 = vrot.slane %v5213_v17, %v12110_v26  ;;  %v5228_v11 = vrot.slane %v5214_v20, %v12110_v26  ;;  %v9531_v24 = vld [vmem:[#allocation16 + $0x32c] ss:$16 sps:$4 sm:$0xff]   ;;  %v9526_v36 = vld [vmem:[#allocation16 + $0x320] ss:$16 sps:$4 sm:$0xff]   ;;  %v9529_v17 = vld [vmem:[#allocation16 + $0x328] ss:$16 sps:$4 sm:$0xff]  }
 0x89b   : > { %v5238_v39 = vrot.slane %v5230_v55, %v12110_v26  ;;  %v5245_v18 = vrot.slane %v5231_v60, %v12110_v26  ;;  %v9534_v20 = vld [vmem:[#allocation16 + $0x344] ss:$16 sps:$4 sm:$0xff]   ;;  %v9537_v55 = vld [vmem:[#allocation16 + $0x34c] ss:$16 sps:$4 sm:$0xff]   ;;  %v9532_v60 = vld [vmem:[#allocation16 + $0x340] ss:$16 sps:$4 sm:$0xff]  }
 0x89c   : > { %v5229_v54 = vcombine.low %v5221_v40, %v5228_v11  ;;  %v9535_v40 = vld [vmem:[#allocation16 + $0x348] ss:$16 sps:$4 sm:$0xff]   ;;  %v9540_v11 = vld [vmem:[#allocation16 + $0x364] ss:$16 sps:$4 sm:$0xff]  }
 0x89d   : > { %v5246_v37 = vcombine.low %v5238_v39, %v5245_v18  ;;  %v9543_v39 = vld [vmem:[#allocation16 + $0x36c] ss:$16 sps:$4 sm:$0xff]   ;;  %v9538_v18 = vld [vmem:[#allocation16 + $0x360] ss:$16 sps:$4 sm:$0xff]  }
 0x89e   : > { %v5249_v5 = vadd.f32 %v5229_v54, %v5178_v52  ;;  %v9541_v54 = vld [vmem:[#allocation16 + $0x368] ss:$16 sps:$4 sm:$0xff]  }
 0x89f   : > { %v11647_v1 = vadd.f32 %v5246_v37, %v5179_v45  ;;  %v9511_v45 = vld [vmem:[#allocation16 + $0x2c8] ss:$16 sps:$4 sm:$0xff]   ;;  %v9546_v37 = vld [vmem:[#allocation16 + $0x384] ss:$16 sps:$4 sm:$0xff]  }
 0x8a0   : > { %v5251_v63 = vmax.f32 %v5249_v5, 0.0  ;;  %v9549_v5 = vld [vmem:[#allocation16 + $0x38c] ss:$16 sps:$4 sm:$0xff]  }
 0x8a2   : > { %v5262_v34 = vrot.slane %v5251_v63, %v12110_v26  ;;  %v5255_v4 = vcombine.high %v5251_v63, %v5251_v63  ;;  %v9544_v63 = vld [vmem:[#allocation16 + $0x380] ss:$16 sps:$4 sm:$0xff]  }
 0x8a4   : > { %v5270_v9 = vcombine.high %v5262_v34, %v5262_v34  ;;  %v11651_v43 = vrot.slane %v5255_v4, %v12110_v26  ;;  %v5297_v56 = vpack.c.bf16 %v5262_v34, %v5262_v34  ;;  %v9547_v34 = vld [vmem:[#allocation16 + $0x388] ss:$16 sps:$4 sm:$0xff]   ;;  %v9552_v4 = vld [vmem:[#allocation16 + $0x3a4] ss:$16 sps:$4 sm:$0xff]  }
 0x8a6   : > { %v5298_v58 = vpack.c.bf16 %v5270_v9, %v5270_v9  ;;  %v5271_v33 = vcombine.high %v11651_v43, %v11651_v43  ;;  %v9555_v9 = vld [vmem:[#allocation16 + $0x3ac] ss:$16 sps:$4 sm:$0xff]  }
 0x8a8   : > { %6895 = vmatprep.mubr.bf16.mxu1 %v5298_v58  ;;  %7059 = vmatprep.mubr.bf16.mxu0 %v5298_v58  ;;  %v5300_v52 = vpack.c.bf16 %v5271_v33, %v5271_v33  ;;  %v9550_v58 = vld [vmem:[#allocation16 + $0x3a0] ss:$16 sps:$4 sm:$0xff]   ;;  %v9561_v33 = vld [vmem:[#allocation16 + $0x3cc] ss:$16 sps:$4 sm:$0xff]  }
 0x8a9   : > { %6896 = vmatmul.mubr.bf16.vlgmr.msra.gmra.mrb[76].mxu1 %v5297_v56  ;;  %7060 = vmatmul.mubr.bf16.vlgmr.msra.gmra.mrb[84].mxu0 %v5297_v56  ;;  %v11656_v56 = vmax.f32 %v11647_v1, 0.0  ;;  %v9570_v1 = vld [vmem:[#allocation16 + $0x404] ss:$16 sps:$4 sm:$0xff]  }
 0x8aa   : > { %6905 = vmatpush1.bf16.msra.mxu1 %v9472_v49  ;;  %7069 = vmatpush1.bf16.msra.mxu0 %v9475_v46  ;;  %v9553_v49 = vld [vmem:[#allocation16 + $0x3a8] ss:$16 sps:$4 sm:$0xff]   ;;  %v9558_v46 = vld [vmem:[#allocation16 + $0x3c4] ss:$16 sps:$4 sm:$0xff]  }
 0x8ab   : > { %6936 = vmatprep.mubr.bf16.mxu1 %v5300_v52  ;;  %7100 = vmatprep.mubr.bf16.mxu0 %v5300_v52  ;;  %v9556_v52 = vld [vmem:[#allocation16 + $0x3c0] ss:$16 sps:$4 sm:$0xff]  }
 0x8ac   : > { %6906 = vmatprep.subr.bf16.mxu1 %v9480_v61  ;;  %7070 = vmatprep.subr.bf16.mxu0 %v9483_v29  ;;  %v9559_v61 = vld [vmem:[#allocation16 + $0x3c8] ss:$16 sps:$4 sm:$0xff]   ;;  %v9564_v29 = vld [vmem:[#allocation16 + $0x3e4] ss:$16 sps:$4 sm:$0xff]  }
 0x8ae   : > { %6907 = vmatpush1.bf16.msra.mxu1 %v9478_v32  ;;  %7071 = vmatpush1.bf16.msra.mxu0 %v9481_v2  ;;  %v9567_v32 = vld [vmem:[#allocation16 + $0x3ec] ss:$16 sps:$4 sm:$0xff]   ;;  %v11660_v2 = vrot.slane %v11656_v56, %v12110_v26 }
 0x8af   : > { %6908 = vmatprep.subr.bf16.mxu1 %v9486_v0  ;;  %7072 = vmatprep.subr.bf16.mxu0 %v9489_v21  ;;  %v9562_v0 = vld [vmem:[#allocation16 + $0x3e0] ss:$16 sps:$4 sm:$0xff]   ;;  %v9565_v21 = vld [vmem:[#allocation16 + $0x3e8] ss:$16 sps:$4 sm:$0xff]  }
 0x8b2   : > { %6909 = vmatpush1.bf16.msra.mxu1 %v9484_v16  ;;  %7073 = vmatpush1.bf16.msra.mxu0 %v9487_v47  ;;  %v9573_v16 = vld [vmem:[#allocation16 + $0x40c] ss:$16 sps:$4 sm:$0xff]   ;;  %v5287_v47 = vcombine.high %v11660_v2, %v11660_v2 }
 0x8b3   : > { %6910 = vmatprep.subr.bf16.mxu1 %v9492_v44  ;;  %7074 = vmatprep.subr.bf16.mxu0 %v9495_v7  ;;  %v9568_v44 = vld [vmem:[#allocation16 + $0x400] ss:$16 sps:$4 sm:$0xff]   ;;  %v5299_v7 = vpack.c.bf16 %v11651_v43, %v11651_v43 }
 0x8b4   : > { %v9580_v43 = vld [vmem:[#allocation16 + $0x440] ss:$16 sps:$4 sm:$0xff]  }
 0x8b6   : > { %6911 = vmatpush1.bf16.msra.mxu1 %v9490_v8  ;;  %7075 = vmatpush1.bf16.msra.mxu0 %v9493_v3  ;;  %v9571_v8 = vld [vmem:[#allocation16 + $0x408] ss:$16 sps:$4 sm:$0xff]   ;;  %v5302_v3 = vpack.c.bf16 %v5287_v47, %v5287_v47 }
 0x8b7   : > { %6912 = vmatprep.subr.bf16.mxu1 %v9498_v53  ;;  %7076 = vmatprep.subr.bf16.mxu0 %v9501_v22  ;;  %v9576_v53 = vld [vmem:[#allocation16 + $0x424] ss:$16 sps:$4 sm:$0xff]   ;;  %v9579_v22 = vld [vmem:[#allocation16 + $0x42c] ss:$16 sps:$4 sm:$0xff]   ;;  %v9649_v47 = vld [vmem:[#allocation16 + $0x5a8] ss:$16 sps:$4 sm:$0xff]  }
 0x8ba   : > { %6913 = vmatpush1.bf16.msra.mxu1 %v9496_v42  ;;  %7077 = vmatpush1.bf16.msra.mxu0 %v9499_v57  ;;  %v9574_v42 = vld [vmem:[#allocation16 + $0x420] ss:$16 sps:$4 sm:$0xff]   ;;  %v9577_v57 = vld [vmem:[#allocation16 + $0x428] ss:$16 sps:$4 sm:$0xff]  }
 0x8bb   : > { %6914 = vmatprep.subr.bf16.mxu1 %v9504_v10  ;;  %7078 = vmatprep.subr.bf16.mxu0 %v9507_v30  ;;  %v9582_v10 = vld [vmem:[#allocation16 + $0x444] ss:$16 sps:$4 sm:$0xff]   ;;  %v9585_v30 = vld [vmem:[#allocation16 + $0x44c] ss:$16 sps:$4 sm:$0xff]  }
 0x8be   : > { %6915 = vmatpush1.bf16.msra.mxu1 %v9502_v13  ;;  %7079 = vmatpush1.bf16.msra.mxu0 %v9505_v23  ;;  %v9583_v13 = vld [vmem:[#allocation16 + $0x448] ss:$16 sps:$4 sm:$0xff]   ;;  %v9588_v23 = vld [vmem:[#allocation16 + $0x464] ss:$16 sps:$4 sm:$0xff]  }
 0x8bf   : > { %6916 = vmatprep.subr.bf16.mxu1 %v9510_v48  ;;  %7080 = vmatprep.subr.bf16.mxu0 %v9513_v50  ;;  %v9591_v48 = vld [vmem:[#allocation16 + $0x46c] ss:$16 sps:$4 sm:$0xff]   ;;  %v9586_v50 = vld [vmem:[#allocation16 + $0x460] ss:$16 sps:$4 sm:$0xff]  }
 0x8c2   : > { %6917 = vmatpush1.bf16.msra.mxu1 %v9508_v35  ;;  %7081 = vmatpush1.bf16.msra.mxu0 %v9511_v45  ;;  %v9589_v35 = vld [vmem:[#allocation16 + $0x468] ss:$16 sps:$4 sm:$0xff]   ;;  %v9594_v45 = vld [vmem:[#allocation16 + $0x484] ss:$16 sps:$4 sm:$0xff]  }
 0x8c3   : > { %6918 = vmatprep.subr.bf16.mxu1 %v9516_v59  ;;  %7082 = vmatprep.subr.bf16.mxu0 %v9519_v31  ;;  %v9597_v59 = vld [vmem:[#allocation16 + $0x48c] ss:$16 sps:$4 sm:$0xff]   ;;  %v9592_v31 = vld [vmem:[#allocation16 + $0x480] ss:$16 sps:$4 sm:$0xff]  }
 0x8c6   : > { %6919 = vmatpush1.bf16.msra.mxu1 %v9514_v38  ;;  %7083 = vmatpush1.bf16.msra.mxu0 %v9517_v15  ;;  %v9595_v38 = vld [vmem:[#allocation16 + $0x488] ss:$16 sps:$4 sm:$0xff]   ;;  %v9600_v15 = vld [vmem:[#allocation16 + $0x4a4] ss:$16 sps:$4 sm:$0xff]  }
 0x8c7   : > { %6920 = vmatprep.subr.bf16.mxu1 %v9522_v25  ;;  %7084 = vmatprep.subr.bf16.mxu0 %v9525_v14  ;;  %v9603_v25 = vld [vmem:[#allocation16 + $0x4ac] ss:$16 sps:$4 sm:$0xff]   ;;  %v9598_v14 = vld [vmem:[#allocation16 + $0x4a0] ss:$16 sps:$4 sm:$0xff]  }
 0x8ca   : > { %6921 = vmatpush1.bf16.msra.mxu1 %v9520_v6  ;;  %7085 = vmatpush1.bf16.msra.mxu0 %v9523_v27  ;;  %v9601_v6 = vld [vmem:[#allocation16 + $0x4a8] ss:$16 sps:$4 sm:$0xff]   ;;  %v9606_v27 = vld [vmem:[#allocation16 + $0x4c4] ss:$16 sps:$4 sm:$0xff]  }
 0x8cb   : > { %6922 = vmatprep.subr.bf16.mxu1 %v9528_v28  ;;  %7086 = vmatprep.subr.bf16.mxu0 %v9531_v24  ;;  %v9609_v28 = vld [vmem:[#allocation16 + $0x4cc] ss:$16 sps:$4 sm:$0xff]   ;;  %v9604_v24 = vld [vmem:[#allocation16 + $0x4c0] ss:$16 sps:$4 sm:$0xff]  }
 0x8ce   : > { %6923 = vmatpush1.bf16.msra.mxu1 %v9526_v36  ;;  %7087 = vmatpush1.bf16.msra.mxu0 %v9529_v17  ;;  %v9607_v36 = vld [vmem:[#allocation16 + $0x4c8] ss:$16 sps:$4 sm:$0xff]   ;;  %v9612_v17 = vld [vmem:[#allocation16 + $0x4e4] ss:$16 sps:$4 sm:$0xff]  }
 0x8cf   : > { %6924 = vmatprep.subr.bf16.mxu1 %v9534_v20  ;;  %7088 = vmatprep.subr.bf16.mxu0 %v9537_v55  ;;  %v9615_v20 = vld [vmem:[#allocation16 + $0x4ec] ss:$16 sps:$4 sm:$0xff]   ;;  %v9610_v55 = vld [vmem:[#allocation16 + $0x4e0] ss:$16 sps:$4 sm:$0xff]  }
 0x8d2   : > { %6925 = vmatpush1.bf16.msra.mxu1 %v9532_v60  ;;  %7089 = vmatpush1.bf16.msra.mxu0 %v9535_v40  ;;  %v9613_v60 = vld [vmem:[#allocation16 + $0x4e8] ss:$16 sps:$4 sm:$0xff]   ;;  %v9618_v40 = vld [vmem:[#allocation16 + $0x504] ss:$16 sps:$4 sm:$0xff]  }
 0x8d3   : > { %6926 = vmatprep.subr.bf16.mxu1 %v9540_v11  ;;  %7090 = vmatprep.subr.bf16.mxu0 %v9543_v39  ;;  %v9621_v11 = vld [vmem:[#allocation16 + $0x50c] ss:$16 sps:$4 sm:$0xff]   ;;  %v9616_v39 = vld [vmem:[#allocation16 + $0x500] ss:$16 sps:$4 sm:$0xff]  }
 0x8d6   : > { %6927 = vmatpush1.bf16.msra.mxu1 %v9538_v18  ;;  %7091 = vmatpush1.bf16.msra.mxu0 %v9541_v54  ;;  %v9619_v18 = vld [vmem:[#allocation16 + $0x508] ss:$16 sps:$4 sm:$0xff]   ;;  %v9624_v54 = vld [vmem:[#allocation16 + $0x524] ss:$16 sps:$4 sm:$0xff]  }
 0x8d7   : > { %6928 = vmatprep.subr.bf16.mxu1 %v9546_v37  ;;  %7092 = vmatprep.subr.bf16.mxu0 %v9549_v5  ;;  %v9627_v37 = vld [vmem:[#allocation16 + $0x52c] ss:$16 sps:$4 sm:$0xff]   ;;  %v9622_v5 = vld [vmem:[#allocation16 + $0x520] ss:$16 sps:$4 sm:$0xff]  }
 0x8da   : > { %6929 = vmatpush1.bf16.msra.mxu1 %v9544_v63  ;;  %7093 = vmatpush1.bf16.msra.mxu0 %v9547_v34  ;;  %v9625_v63 = vld [vmem:[#allocation16 + $0x528] ss:$16 sps:$4 sm:$0xff]   ;;  %v9630_v34 = vld [vmem:[#allocation16 + $0x544] ss:$16 sps:$4 sm:$0xff]  }
 0x8db   : > { %6930 = vmatprep.subr.bf16.mxu1 %v9552_v4  ;;  %7094 = vmatprep.subr.bf16.mxu0 %v9555_v9  ;;  %v9633_v4 = vld [vmem:[#allocation16 + $0x54c] ss:$16 sps:$4 sm:$0xff]   ;;  %v9628_v9 = vld [vmem:[#allocation16 + $0x540] ss:$16 sps:$4 sm:$0xff]  }
 0x8de   : > { %6931 = vmatpush1.bf16.msra.mxu1 %v9550_v58  ;;  %7095 = vmatpush1.bf16.msra.mxu0 %v9553_v49  ;;  %v9631_v58 = vld [vmem:[#allocation16 + $0x548] ss:$16 sps:$4 sm:$0xff]   ;;  %v9636_v49 = vld [vmem:[#allocation16 + $0x564] ss:$16 sps:$4 sm:$0xff]  }
 0x8df   : > { %6932 = vmatprep.subr.bf16.mxu1 %v9558_v46  ;;  %7096 = vmatprep.subr.bf16.mxu0 %v9561_v33  ;;  %v9639_v46 = vld [vmem:[#allocation16 + $0x56c] ss:$16 sps:$4 sm:$0xff]   ;;  %v9634_v33 = vld [vmem:[#allocation16 + $0x560] ss:$16 sps:$4 sm:$0xff]  }
 0x8e2   : > { %6933 = vmatpush1.bf16.msra.mxu1 %v9556_v52  ;;  %7097 = vmatpush1.bf16.msra.mxu0 %v9559_v61  ;;  %v9637_v52 = vld [vmem:[#allocation16 + $0x568] ss:$16 sps:$4 sm:$0xff]   ;;  %v9642_v61 = vld [vmem:[#allocation16 + $0x584] ss:$16 sps:$4 sm:$0xff]  }
 0x8e3   : > { %6934 = vmatprep.subr.bf16.mxu1 %v9564_v29  ;;  %7098 = vmatprep.subr.bf16.mxu0 %v9567_v32  ;;  %v9645_v29 = vld [vmem:[#allocation16 + $0x58c] ss:$16 sps:$4 sm:$0xff]   ;;  %v9640_v32 = vld [vmem:[#allocation16 + $0x580] ss:$16 sps:$4 sm:$0xff]  }
 0x8e6   : > { %6935 = vmatpush1.bf16.msra.mxu1 %v9562_v0  ;;  %7099 = vmatpush1.bf16.msra.mxu0 %v9565_v21  ;;  %v9643_v0 = vld [vmem:[#allocation16 + $0x588] ss:$16 sps:$4 sm:$0xff]   ;;  %v9648_v21 = vld [vmem:[#allocation16 + $0x5a4] ss:$16 sps:$4 sm:$0xff]  }
 0x8e7   : > { %6945 = vmatprep.subr.bf16.mxu1 %v9570_v1  ;;  %7109 = vmatprep.subr.bf16.mxu0 %v9573_v16  ;;  %v9651_v1 = vld [vmem:[#allocation16 + $0x5ac] ss:$16 sps:$4 sm:$0xff]   ;;  %v9646_v16 = vld [vmem:[#allocation16 + $0x5a0] ss:$16 sps:$4 sm:$0xff]  }
 0x8e9   : > { %6937 = vmatmul.mubr.bf16.vlgmr.msra.gmra.mrb[76].mxu1 %v5299_v7  ;;  %7101 = vmatmul.mubr.bf16.vlgmr.msra.gmra.mrb[84].mxu0 %v5299_v7  ;;  %v9657_v7 = vld [vmem:[#allocation16 + $0x5cc] ss:$16 sps:$4 sm:$0xff]  }
 0x8ea   : > { %6946 = vmatpush1.bf16.msra.mxu1 %v9568_v44  ;;  %6977 = vmatprep.mubr.bf16.mxu1 %v5302_v3  ;;  %v9654_v44 = vld [vmem:[#allocation16 + $0x5c4] ss:$16 sps:$4 sm:$0xff]  }
 0x8eb   : > { %7110 = vmatpush1.bf16.msra.mxu0 %v9571_v8  ;;  %7141 = vmatprep.mubr.bf16.mxu0 %v5302_v3  ;;  %v5272_v8 = vcombine.high %v11656_v56, %v11656_v56  ;;  %v9652_v3 = vld [vmem:[#allocation16 + $0x5c0] ss:$16 sps:$4 sm:$0xff]  }
 0x8ec   : > { %6947 = vmatprep.subr.bf16.mxu1 %v9576_v53  ;;  %7111 = vmatprep.subr.bf16.mxu0 %v9579_v22  ;;  %v9655_v53 = vld [vmem:[#allocation16 + $0x5c8] ss:$16 sps:$4 sm:$0xff]   ;;  %v9660_v22 = vld [vmem:[#allocation16 + $0x5e4] ss:$16 sps:$4 sm:$0xff]  }
 0x8ee   : > { %6948 = vmatpush1.bf16.msra.mxu1 %v9574_v42  ;;  %v9663_v42 = vld [vmem:[#allocation16 + $0x5ec] ss:$16 sps:$4 sm:$0xff]  }
 0x8ef   : > { %7112 = vmatpush1.bf16.msra.mxu0 %v9577_v57  ;;  %6949 = vmatprep.subr.bf16.mxu1 %v9582_v10  ;;  %v11669_v57 = vrot.slane %v5272_v8, %v12110_v26  ;;  %v9658_v10 = vld [vmem:[#allocation16 + $0x5e0] ss:$16 sps:$4 sm:$0xff]   ;;  %v9667_v26 = vld [vmem:[#allocation16 + $0x608] ss:$16 sps:$4 sm:$0xff]   ;;  %v9738_v8 = vld [vmem:[#allocation16 + $0x784] ss:$16 sps:$4 sm:$0xff]  }
 0x8f0   : > { %7113 = vmatprep.subr.bf16.mxu0 %v9585_v30  ;;  %v9661_v30 = vld [vmem:[#allocation16 + $0x5e8] ss:$16 sps:$4 sm:$0xff]  }
 0x8f1   : > { %v5288_v56 = vcombine.high %v11669_v57, %v11669_v57 }
 0x8f2   : > { %6950 = vmatpush1.bf16.msra.mxu1 %v9580_v43  ;;  %v9666_v43 = vld [vmem:[#allocation16 + $0x604] ss:$16 sps:$4 sm:$0xff]  }
 0x8f3   : > { %7114 = vmatpush1.bf16.msra.mxu0 %v9583_v13  ;;  %6951 = vmatprep.subr.bf16.mxu1 %v9588_v23  ;;  %v9669_v13 = vld [vmem:[#allocation16 + $0x60c] ss:$16 sps:$4 sm:$0xff]   ;;  %v9664_v23 = vld [vmem:[#allocation16 + $0x600] ss:$16 sps:$4 sm:$0xff]  }
 0x8f4   : > { %7115 = vmatprep.subr.bf16.mxu0 %v9591_v48  ;;  %v5301_v48 = vpack.c.bf16 %v11660_v2, %v11660_v2  ;;  %v9676_v2 = vld [vmem:[#allocation16 + $0x640] ss:$16 sps:$4 sm:$0xff]  }
 0x8f6   : > { %6952 = vmatpush1.bf16.msra.mxu1 %v9586_v50  ;;  %v9672_v50 = vld [vmem:[#allocation16 + $0x624] ss:$16 sps:$4 sm:$0xff]  }
 0x8f7   : > { %7116 = vmatpush1.bf16.msra.mxu0 %v9589_v35  ;;  %6953 = vmatprep.subr.bf16.mxu1 %v9594_v45  ;;  %v5304_v35 = vpack.c.bf16 %v5288_v56, %v5288_v56  ;;  %v9675_v45 = vld [vmem:[#allocation16 + $0x62c] ss:$16 sps:$4 sm:$0xff]  }
 0x8f8   : > { %7117 = vmatprep.subr.bf16.mxu0 %v9597_v59  ;;  %v9670_v59 = vld [vmem:[#allocation16 + $0x620] ss:$16 sps:$4 sm:$0xff]   ;;  %v9753_v56 = vld [vmem:[#allocation16 + $0x7cc] ss:$16 sps:$4 sm:$0xff]  }
 0x8fa   : > { %6954 = vmatpush1.bf16.msra.mxu1 %v9592_v31  ;;  %v9673_v31 = vld [vmem:[#allocation16 + $0x628] ss:$16 sps:$4 sm:$0xff]  }
 0x8fb   : > { %7118 = vmatpush1.bf16.msra.mxu0 %v9595_v38  ;;  %6955 = vmatprep.subr.bf16.mxu1 %v9600_v15  ;;  %v9678_v38 = vld [vmem:[#allocation16 + $0x644] ss:$16 sps:$4 sm:$0xff]   ;;  %v9681_v15 = vld [vmem:[#allocation16 + $0x64c] ss:$16 sps:$4 sm:$0xff]  }
 0x8fc   : > { %7119 = vmatprep.subr.bf16.mxu0 %v9603_v25  ;;  %v9679_v25 = vld [vmem:[#allocation16 + $0x648] ss:$16 sps:$4 sm:$0xff]  }
 0x8fe   : > { %6956 = vmatpush1.bf16.msra.mxu1 %v9598_v14  ;;  %v9684_v14 = vld [vmem:[#allocation16 + $0x664] ss:$16 sps:$4 sm:$0xff]  }
 0x8ff   : > { %7120 = vmatpush1.bf16.msra.mxu0 %v9601_v6  ;;  %6957 = vmatprep.subr.bf16.mxu1 %v9606_v27  ;;  %v9687_v6 = vld [vmem:[#allocation16 + $0x66c] ss:$16 sps:$4 sm:$0xff]   ;;  %v9682_v27 = vld [vmem:[#allocation16 + $0x660] ss:$16 sps:$4 sm:$0xff]  }
 0x900   : > { %7121 = vmatprep.subr.bf16.mxu0 %v9609_v28  ;;  %v9685_v28 = vld [vmem:[#allocation16 + $0x668] ss:$16 sps:$4 sm:$0xff]  }
 0x902   : > { %6958 = vmatpush1.bf16.msra.mxu1 %v9604_v24  ;;  %v9690_v24 = vld [vmem:[#allocation16 + $0x684] ss:$16 sps:$4 sm:$0xff]  }
 0x903   : > { %7122 = vmatpush1.bf16.msra.mxu0 %v9607_v36  ;;  %6959 = vmatprep.subr.bf16.mxu1 %v9612_v17  ;;  %v9693_v36 = vld [vmem:[#allocation16 + $0x68c] ss:$16 sps:$4 sm:$0xff]   ;;  %v9688_v17 = vld [vmem:[#allocation16 + $0x680] ss:$16 sps:$4 sm:$0xff]  }
 0x904   : > { %7123 = vmatprep.subr.bf16.mxu0 %v9615_v20  ;;  %v9691_v20 = vld [vmem:[#allocation16 + $0x688] ss:$16 sps:$4 sm:$0xff]  }
 0x906   : > { %6960 = vmatpush1.bf16.msra.mxu1 %v9610_v55  ;;  %v9696_v55 = vld [vmem:[#allocation16 + $0x6a4] ss:$16 sps:$4 sm:$0xff]  }
 0x907   : > { %7124 = vmatpush1.bf16.msra.mxu0 %v9613_v60  ;;  %6961 = vmatprep.subr.bf16.mxu1 %v9618_v40  ;;  %v9699_v60 = vld [vmem:[#allocation16 + $0x6ac] ss:$16 sps:$4 sm:$0xff]   ;;  %v9694_v40 = vld [vmem:[#allocation16 + $0x6a0] ss:$16 sps:$4 sm:$0xff]  }
 0x908   : > { %7125 = vmatprep.subr.bf16.mxu0 %v9621_v11  ;;  %v9697_v11 = vld [vmem:[#allocation16 + $0x6a8] ss:$16 sps:$4 sm:$0xff]  }
 0x90a   : > { %6962 = vmatpush1.bf16.msra.mxu1 %v9616_v39  ;;  %v9702_v39 = vld [vmem:[#allocation16 + $0x6c4] ss:$16 sps:$4 sm:$0xff]  }
 0x90b   : > { %7126 = vmatpush1.bf16.msra.mxu0 %v9619_v18  ;;  %6963 = vmatprep.subr.bf16.mxu1 %v9624_v54  ;;  %v9705_v18 = vld [vmem:[#allocation16 + $0x6cc] ss:$16 sps:$4 sm:$0xff]   ;;  %v9700_v54 = vld [vmem:[#allocation16 + $0x6c0] ss:$16 sps:$4 sm:$0xff]  }
 0x90c   : > { %7127 = vmatprep.subr.bf16.mxu0 %v9627_v37  ;;  %v9703_v37 = vld [vmem:[#allocation16 + $0x6c8] ss:$16 sps:$4 sm:$0xff]  }
 0x90e   : > { %6964 = vmatpush1.bf16.msra.mxu1 %v9622_v5  ;;  %v9708_v5 = vld [vmem:[#allocation16 + $0x6e4] ss:$16 sps:$4 sm:$0xff]  }
 0x90f   : > { %7128 = vmatpush1.bf16.msra.mxu0 %v9625_v63  ;;  %6965 = vmatprep.subr.bf16.mxu1 %v9630_v34  ;;  %v9711_v63 = vld [vmem:[#allocation16 + $0x6ec] ss:$16 sps:$4 sm:$0xff]   ;;  %v9706_v34 = vld [vmem:[#allocation16 + $0x6e0] ss:$16 sps:$4 sm:$0xff]  }
 0x910   : > { %7129 = vmatprep.subr.bf16.mxu0 %v9633_v4  ;;  %v9709_v4 = vld [vmem:[#allocation16 + $0x6e8] ss:$16 sps:$4 sm:$0xff]  }
 0x912   : > { %6966 = vmatpush1.bf16.msra.mxu1 %v9628_v9  ;;  %v9714_v9 = vld [vmem:[#allocation16 + $0x704] ss:$16 sps:$4 sm:$0xff]  }
 0x913   : > { %7130 = vmatpush1.bf16.msra.mxu0 %v9631_v58  ;;  %6967 = vmatprep.subr.bf16.mxu1 %v9636_v49  ;;  %v9717_v58 = vld [vmem:[#allocation16 + $0x70c] ss:$16 sps:$4 sm:$0xff]   ;;  %v9712_v49 = vld [vmem:[#allocation16 + $0x700] ss:$16 sps:$4 sm:$0xff]  }
 0x914   : > { %7131 = vmatprep.subr.bf16.mxu0 %v9639_v46  ;;  %v9715_v46 = vld [vmem:[#allocation16 + $0x708] ss:$16 sps:$4 sm:$0xff]  }
 0x916   : > { %6968 = vmatpush1.bf16.msra.mxu1 %v9634_v33  ;;  %v9720_v33 = vld [vmem:[#allocation16 + $0x724] ss:$16 sps:$4 sm:$0xff]  }
 0x917   : > { %7132 = vmatpush1.bf16.msra.mxu0 %v9637_v52  ;;  %6969 = vmatprep.subr.bf16.mxu1 %v9642_v61  ;;  %v9723_v52 = vld [vmem:[#allocation16 + $0x72c] ss:$16 sps:$4 sm:$0xff]   ;;  %v9718_v61 = vld [vmem:[#allocation16 + $0x720] ss:$16 sps:$4 sm:$0xff]  }
 0x918   : > { %7133 = vmatprep.subr.bf16.mxu0 %v9645_v29  ;;  %v9721_v29 = vld [vmem:[#allocation16 + $0x728] ss:$16 sps:$4 sm:$0xff]  }
 0x91a   : > { %6970 = vmatpush1.bf16.msra.mxu1 %v9640_v32  ;;  %v9726_v32 = vld [vmem:[#allocation16 + $0x744] ss:$16 sps:$4 sm:$0xff]  }
 0x91b   : > { %7134 = vmatpush1.bf16.msra.mxu0 %v9643_v0  ;;  %6971 = vmatprep.subr.bf16.mxu1 %v9648_v21  ;;  %v9729_v0 = vld [vmem:[#allocation16 + $0x74c] ss:$16 sps:$4 sm:$0xff]   ;;  %v9724_v21 = vld [vmem:[#allocation16 + $0x740] ss:$16 sps:$4 sm:$0xff]  }
 0x91c   : > { %7135 = vmatprep.subr.bf16.mxu0 %v9651_v1  ;;  %v9727_v1 = vld [vmem:[#allocation16 + $0x748] ss:$16 sps:$4 sm:$0xff]  }
 0x91e   : > { %6972 = vmatpush1.bf16.msra.mxu1 %v9646_v16  ;;  %v9732_v16 = vld [vmem:[#allocation16 + $0x764] ss:$16 sps:$4 sm:$0xff]  }
 0x91f   : > { %7136 = vmatpush1.bf16.msra.mxu0 %v9649_v47  ;;  %6973 = vmatprep.subr.bf16.mxu1 %v9654_v44  ;;  %v9735_v47 = vld [vmem:[#allocation16 + $0x76c] ss:$16 sps:$4 sm:$0xff]   ;;  %v9730_v44 = vld [vmem:[#allocation16 + $0x760] ss:$16 sps:$4 sm:$0xff]  }
 0x920   : > { %7137 = vmatprep.subr.bf16.mxu0 %v9657_v7  ;;  %v9733_v7 = vld [vmem:[#allocation16 + $0x768] ss:$16 sps:$4 sm:$0xff]  }
 0x922   : > { %6974 = vmatpush1.bf16.msra.mxu1 %v9652_v3  ;;  %v9741_v3 = vld [vmem:[#allocation16 + $0x78c] ss:$16 sps:$4 sm:$0xff]  }
 0x923   : > { %7138 = vmatpush1.bf16.msra.mxu0 %v9655_v53  ;;  %6975 = vmatprep.subr.bf16.mxu1 %v9660_v22  ;;  %v9736_v53 = vld [vmem:[#allocation16 + $0x780] ss:$16 sps:$4 sm:$0xff]   ;;  %v9739_v22 = vld [vmem:[#allocation16 + $0x788] ss:$16 sps:$4 sm:$0xff]  }
 0x924   : > { %7139 = vmatprep.subr.bf16.mxu0 %v9663_v42  ;;  %v9744_v42 = vld [vmem:[#allocation16 + $0x7a4] ss:$16 sps:$4 sm:$0xff]  }
 0x926   : > { %6976 = vmatpush1.bf16.msra.mxu1 %v9658_v10  ;;  %v9747_v10 = vld [vmem:[#allocation16 + $0x7ac] ss:$16 sps:$4 sm:$0xff]  }
 0x927   : > { %7140 = vmatpush1.bf16.msra.mxu0 %v9661_v30  ;;  %6986 = vmatprep.subr.bf16.mxu1 %v9666_v43  ;;  %v9742_v30 = vld [vmem:[#allocation16 + $0x7a0] ss:$16 sps:$4 sm:$0xff]   ;;  %v9745_v43 = vld [vmem:[#allocation16 + $0x7a8] ss:$16 sps:$4 sm:$0xff]  }
 0x928   : > { %7150 = vmatprep.subr.bf16.mxu0 %v9669_v13  ;;  %v9750_v13 = vld [vmem:[#allocation16 + $0x7c4] ss:$16 sps:$4 sm:$0xff]  }
 0x929   : > { %6978 = vmatmul.mubr.bf16.vlgmr.msra.gmra.mrb[76].mxu1 %v5301_v48 }
 0x92a   : > { %7142 = vmatmul.mubr.bf16.vlgmr.msra.gmra.mrb[84].mxu0 %v5301_v48  ;;  %6987 = vmatpush1.bf16.msra.mxu1 %v9664_v23  ;;  %v9748_v23 = vld [vmem:[#allocation16 + $0x7c0] ss:$16 sps:$4 sm:$0xff]   ;;  %v9751_v48 = vld [vmem:[#allocation16 + $0x7c8] ss:$16 sps:$4 sm:$0xff]  }
 0x92b   : > { %7018 = vmatprep.mubr.bf16.mxu1 %v5304_v35  ;;  %7151 = vmatpush1.bf16.msra.mxu0 %v9667_v26  ;;  %v9756_v26 = vld [vmem:[#allocation16 + $0x7e4] ss:$16 sps:$4 sm:$0xff]  }
 0x92c   : > { %7182 = vmatprep.mubr.bf16.mxu0 %v5304_v35  ;;  %6988 = vmatprep.subr.bf16.mxu1 %v9672_v50  ;;  %v9759_v50 = vld [vmem:[#allocation16 + $0x7ec] ss:$16 sps:$4 sm:$0xff]   ;;  %v9754_v35 = vld [vmem:[#allocation16 + $0x7e0] ss:$16 sps:$4 sm:$0xff]  }
 0x92d   : > { %7152 = vmatprep.subr.bf16.mxu0 %v9675_v45  ;;  %v9757_v45 = vld [vmem:[#allocation16 + $0x7e8] ss:$16 sps:$4 sm:$0xff]  }
 0x92e   : > { %6989 = vmatpush1.bf16.msra.mxu1 %v9670_v59  ;;  %v9762_v59 = vld [vmem:[#allocation18 + $0x4] ss:$8 sps:$4 sm:$0xff]  }
 0x92f   : > { %7153 = vmatpush1.bf16.msra.mxu0 %v9673_v31  ;;  %6990 = vmatprep.subr.bf16.mxu1 %v9678_v38  ;;  %v9760_v31 = vld [vmem:[#allocation18] ss:$8 sps:$4 sm:$0xff]   ;;  %v5303_v38 = vpack.c.bf16 %v11669_v57, %v11669_v57  ;;  %v9777_v57 = vld [vmem:[#allocation18 + $0x54] ss:$8 sps:$4 sm:$0xff]  }
 0x930   : > { %7154 = vmatprep.subr.bf16.mxu0 %v9681_v15  ;;  %v9765_v15 = vld [vmem:[#allocation18 + $0x14] ss:$8 sps:$4 sm:$0xff]  }
 0x932   : > { %6991 = vmatpush1.bf16.msra.mxu1 %v9676_v2  ;;  %v9763_v2 = vld [vmem:[#allocation18 + $0x10] ss:$8 sps:$4 sm:$0xff]  }
 0x933   : > { %7155 = vmatpush1.bf16.msra.mxu0 %v9679_v25  ;;  %6992 = vmatprep.subr.bf16.mxu1 %v9684_v14  ;;  %v9768_v25 = vld [vmem:[#allocation18 + $0x24] ss:$8 sps:$4 sm:$0xff]   ;;  %v9766_v14 = vld [vmem:[#allocation18 + $0x20] ss:$8 sps:$4 sm:$0xff]  }
 0x934   : > { %7156 = vmatprep.subr.bf16.mxu0 %v9687_v6  ;;  %v9771_v6 = vld [vmem:[#allocation18 + $0x34] ss:$8 sps:$4 sm:$0xff]  }
 0x936   : > { %6993 = vmatpush1.bf16.msra.mxu1 %v9682_v27  ;;  %v9769_v27 = vld [vmem:[#allocation18 + $0x30] ss:$8 sps:$4 sm:$0xff]  }
 0x937   : > { %7157 = vmatpush1.bf16.msra.mxu0 %v9685_v28  ;;  %6994 = vmatprep.subr.bf16.mxu1 %v9690_v24  ;;  %v9774_v28 = vld [vmem:[#allocation18 + $0x44] ss:$8 sps:$4 sm:$0xff]   ;;  %v9772_v24 = vld [vmem:[#allocation18 + $0x40] ss:$8 sps:$4 sm:$0xff]  }
 0x938   : > { %7158 = vmatprep.subr.bf16.mxu0 %v9693_v36  ;;  %v9775_v36 = vld [vmem:[#allocation18 + $0x50] ss:$8 sps:$4 sm:$0xff]  }
 0x93a   : > { %6995 = vmatpush1.bf16.msra.mxu1 %v9688_v17  ;;  %v9780_v17 = vld [vmem:[#allocation18 + $0x64] ss:$8 sps:$4 sm:$0xff]  }
 0x93b   : > { %7159 = vmatpush1.bf16.msra.mxu0 %v9691_v20  ;;  %6996 = vmatprep.subr.bf16.mxu1 %v9696_v55  ;;  %v9778_v20 = vld [vmem:[#allocation18 + $0x60] ss:$8 sps:$4 sm:$0xff]   ;;  %v9783_v55 = vld [vmem:[#allocation18 + $0x74] ss:$8 sps:$4 sm:$0xff]  }
 0x93c   : > { %7160 = vmatprep.subr.bf16.mxu0 %v9699_v60  ;;  %v9781_v60 = vld [vmem:[#allocation18 + $0x70] ss:$8 sps:$4 sm:$0xff]  }
 0x93e   : > { %6997 = vmatpush1.bf16.msra.mxu1 %v9694_v40  ;;  %v9786_v40 = vld [vmem:[#allocation18 + $0x84] ss:$8 sps:$4 sm:$0xff]  }
 0x93f   : > { %7161 = vmatpush1.bf16.msra.mxu0 %v9697_v11  ;;  %6998 = vmatprep.subr.bf16.mxu1 %v9702_v39  ;;  %v9784_v11 = vld [vmem:[#allocation18 + $0x80] ss:$8 sps:$4 sm:$0xff]   ;;  %v9787_v39 = vld [vmem:[#allocation18 + $0x90] ss:$8 sps:$4 sm:$0xff]  }
 0x940   : > { %7162 = vmatprep.subr.bf16.mxu0 %v9705_v18  ;;  %v9789_v18 = vld [vmem:[#allocation18 + $0x94] ss:$8 sps:$4 sm:$0xff]  }
 0x942   : > { %6999 = vmatpush1.bf16.msra.mxu1 %v9700_v54  ;;  %v9792_v54 = vld [vmem:[#allocation18 + $0xa4] ss:$8 sps:$4 sm:$0xff]  }
 0x943   : > { %7163 = vmatpush1.bf16.msra.mxu0 %v9703_v37  ;;  %7000 = vmatprep.subr.bf16.mxu1 %v9708_v5  ;;  %v9790_v37 = vld [vmem:[#allocation18 + $0xa0] ss:$8 sps:$4 sm:$0xff]   ;;  %v9795_v5 = vld [vmem:[#allocation18 + $0xb4] ss:$8 sps:$4 sm:$0xff]  }
 0x944   : > { %7164 = vmatprep.subr.bf16.mxu0 %v9711_v63  ;;  %v9793_v63 = vld [vmem:[#allocation18 + $0xb0] ss:$8 sps:$4 sm:$0xff]  }
 0x946   : > { %7001 = vmatpush1.bf16.msra.mxu1 %v9706_v34  ;;  %v9798_v34 = vld [vmem:[#allocation18 + $0xc4] ss:$8 sps:$4 sm:$0xff]  }
 0x947   : > { %7165 = vmatpush1.bf16.msra.mxu0 %v9709_v4  ;;  %7002 = vmatprep.subr.bf16.mxu1 %v9714_v9  ;;  %v9796_v4 = vld [vmem:[#allocation18 + $0xc0] ss:$8 sps:$4 sm:$0xff]   ;;  %v9801_v9 = vld [vmem:[#allocation18 + $0xd4] ss:$8 sps:$4 sm:$0xff]  }
 0x948   : > { %7166 = vmatprep.subr.bf16.mxu0 %v9717_v58  ;;  %v9799_v58 = vld [vmem:[#allocation18 + $0xd0] ss:$8 sps:$4 sm:$0xff]  }
 0x94a   : > { %7003 = vmatpush1.bf16.msra.mxu1 %v9712_v49  ;;  %v9804_v49 = vld [vmem:[#allocation18 + $0xe4] ss:$8 sps:$4 sm:$0xff]  }
 0x94b   : > { %7167 = vmatpush1.bf16.msra.mxu0 %v9715_v46  ;;  %7004 = vmatprep.subr.bf16.mxu1 %v9720_v33  ;;  %v9802_v46 = vld [vmem:[#allocation18 + $0xe0] ss:$8 sps:$4 sm:$0xff]   ;;  %v9807_v33 = vld [vmem:[#allocation18 + $0xf4] ss:$8 sps:$4 sm:$0xff]  }
 0x94c   : > { %7168 = vmatprep.subr.bf16.mxu0 %v9723_v52  ;;  %v9805_v52 = vld [vmem:[#allocation18 + $0xf0] ss:$8 sps:$4 sm:$0xff]  }
 0x94e   : > { %7005 = vmatpush1.bf16.msra.mxu1 %v9718_v61  ;;  %v9810_v61 = vld [vmem:[#allocation18 + $0x104] ss:$8 sps:$4 sm:$0xff]  }
 0x94f   : > { %7169 = vmatpush1.bf16.msra.mxu0 %v9721_v29  ;;  %7006 = vmatprep.subr.bf16.mxu1 %v9726_v32  ;;  %v5561_v29 = vld [vmem:[%s11928_s14] sm:$0xf] }
 0x950   : > { %7170 = vmatprep.subr.bf16.mxu0 %v9729_v0  ;;  %v5566_v32 = vrot.slane %v5561_v29, %v12081_v19  ;;  %v5574_v0 = vrot.slane %v5561_v29, %v12079_v12 }
 0x952   : > { %7007 = vmatpush1.bf16.msra.mxu1 %v9724_v21  ;;  %v5570_v21 = vrot.slane %v5561_v29, %v12083_v41 }
 0x953   : > { %7171 = vmatpush1.bf16.msra.mxu0 %v9727_v1  ;;  %7008 = vmatprep.subr.bf16.mxu1 %v9732_v16  ;;  %v5578_v1 = vrot.slane %v5561_v29, %v12080_v51 }
 0x954   : > { %7172 = vmatprep.subr.bf16.mxu0 %v9735_v47 }
 0x956   : > { %7009 = vmatpush1.bf16.msra.mxu1 %v9730_v44 }
 0x957   : > { %7173 = vmatpush1.bf16.msra.mxu0 %v9733_v7  ;;  %7010 = vmatprep.subr.bf16.mxu1 %v9738_v8 }
 0x958   : > { %7174 = vmatprep.subr.bf16.mxu0 %v9741_v3 }
 0x95a   : > { %7011 = vmatpush1.bf16.msra.mxu1 %v9736_v53 }
 0x95b   : > { %7175 = vmatpush1.bf16.msra.mxu0 %v9739_v22  ;;  %7012 = vmatprep.subr.bf16.mxu1 %v9744_v42 }
 0x95c   : > { %7176 = vmatprep.subr.bf16.mxu0 %v9747_v10 }
 0x95e   : > { %7013 = vmatpush1.bf16.msra.mxu1 %v9742_v30 }
 0x95f   : > { %7177 = vmatpush1.bf16.msra.mxu0 %v9745_v43  ;;  %7014 = vmatprep.subr.bf16.mxu1 %v9750_v13 }
 0x960   : > { %7178 = vmatprep.subr.bf16.mxu0 %v9753_v56 }
 0x962   : > { %7015 = vmatpush1.bf16.msra.mxu1 %v9748_v23 }
 0x963   : > { %7179 = vmatpush1.bf16.msra.mxu0 %v9751_v48  ;;  %7016 = vmatprep.subr.bf16.mxu1 %v9756_v26 }
 0x964   : > { %7180 = vmatprep.subr.bf16.mxu0 %v9759_v50 }
 0x966   : > { %7017 = vmatpush1.bf16.msra.mxu1 %v9754_v35 }
 0x967   : > { %7181 = vmatpush1.bf16.msra.mxu0 %v9757_v45  ;;  %7786 = vmatprep.subr.bf16.mxu1 %v9762_v59 }
 0x969   : > { %7019 = vmatmul.mubr.bf16.vlgmr.msra.gmra.mrb[76].mxu1 %v5303_v38 }
 0x96a   : > { %7183 = vmatmul.mubr.bf16.vlgmr.msra.gmra.mrb[84].mxu0 %v5303_v38  ;;  %7787 = vmatpush1.bf16.msra.mxu1 %v9760_v31 }
 0x96b   : > { %7788 = vmatprep.subr.bf16.mxu1 %v9765_v15 }
 0x96e   : > { %7789 = vmatpush1.bf16.msra.mxu1 %v9763_v2 }
 0x96f   : > { %7790 = vmatprep.subr.bf16.mxu1 %v9768_v25 }
 0x972   : > { %7791 = vmatpush1.bf16.msra.mxu1 %v9766_v14 }
 0x973   : > { %7792 = vmatprep.subr.bf16.mxu1 %v9771_v6 }
 0x976   : > { %7793 = vmatpush1.bf16.msra.mxu1 %v9769_v27 }
 0x977   : > { %7794 = vmatprep.subr.bf16.mxu1 %v9774_v28 }
 0x97a   : > { %7795 = vmatpush1.bf16.msra.mxu1 %v9772_v24 }
 0x97b   : > { %7796 = vmatprep.subr.bf16.mxu1 %v9777_v57 }
 0x97e   : > { %7797 = vmatpush1.bf16.msra.mxu1 %v9775_v36 }
 0x97f   : > { %7798 = vmatprep.subr.bf16.mxu1 %v9780_v17 }
 0x982   : > { %7799 = vmatpush1.bf16.msra.mxu1 %v9778_v20 }
 0x983   : > { %7800 = vmatprep.subr.bf16.mxu1 %v9783_v55 }
 0x986   : > { %7801 = vmatpush1.bf16.msra.mxu1 %v9781_v60 }
 0x987   : > { %7802 = vmatprep.subr.bf16.mxu1 %v9786_v40 }
 0x98a   : > { %7803 = vmatpush1.bf16.msra.mxu1 %v9784_v11 }
 0x98b   : > { %7804 = vmatprep.subr.bf16.mxu1 %v9789_v18 }
 0x98e   : > { %7805 = vmatpush1.bf16.msra.mxu1 %v9787_v39 }
 0x98f   : > { %7806 = vmatprep.subr.bf16.mxu1 %v9792_v54 }
 0x992   : > { %7807 = vmatpush1.bf16.msra.mxu1 %v9790_v37 }
 0x993   : > { %7808 = vmatprep.subr.bf16.mxu1 %v9795_v5 }
 0x996   : > { %7809 = vmatpush1.bf16.msra.mxu1 %v9793_v63 }
 0x997   : > { %7810 = vmatprep.subr.bf16.mxu1 %v9798_v34 }
 0x99a   : > { %7811 = vmatpush1.bf16.msra.mxu1 %v9796_v4 }
 0x99b   : > { %7812 = vmatprep.subr.bf16.mxu1 %v9801_v9 }
 0x99e   : > { %7813 = vmatpush1.bf16.msra.mxu1 %v9799_v58 }
 0x99f   : > { %7814 = vmatprep.subr.bf16.mxu1 %v9804_v49 }
 0x9a2   : > { %7815 = vmatpush1.bf16.msra.mxu1 %v9802_v46 }
 0x9a3   : > { %7816 = vmatprep.subr.bf16.mxu1 %v9807_v33 }
 0x9a6   : > { %7817 = vmatpush1.bf16.msra.mxu1 %v9805_v52 }
 0x9a7   : > { %7827 = vmatprep.subr.bf16.mxu1 %v9810_v61 }
 0xa3c   : > { %v7020_v16 = vpop.f32.mrb[76].mxu1 }
 0xa3d   : > { %v11684_v47 = vadd.f32 %v7020_v16, %v5566_v32  ;;  %v7184_v44 = vpop.f32.mrb[84].mxu0  ;;  %v7022_v7 = vpop.f32.mrb[77].mxu1 }
 0xa3e   : > { %v11686_v8 = vadd.f32 %v7184_v44, %v5574_v0  ;;  %v11688_v3 = vadd.f32 %v7022_v7, %v5570_v21  ;;  %v7186_v53 = vpop.f32.mrb[85].mxu0  ;;  %v7024_v22 = vpop.f32.mrb[78].mxu1 }
 0xa3f   : > { %v7193_v42 = vsel %vm4584_vm13, %v11684_v47, 0.0  ;;  %v7226_v10 = vmul.f32 %v11684_v47, %v11684_v47  ;;  %v11694_v30 = vadd.f32 %v7186_v53, %v5578_v1  ;;  %v7188_v43 = vpop.f32.mrb[86].mxu0  ;;  %v7025_v13 = vpop.f32.mrb[79].mxu1 }
 0xa40   : > { %v7194_v56 = vrot.slane %v7193_v42, 4  ;;  %v7207_v23 = vsel %vm4584_vm13, %v11686_v8, 0.0  ;;  %v7228_v48 = vmul.f32 %v11686_v8, %v11686_v8  ;;  %v7200_v26 = vsel %vm4584_vm13, %v11688_v3, 0.0  ;;  %v7189_v50 = vpop.f32.mrb[87].mxu0 }
 0xa41   : > { %v7230_v35 = vsel %vm4584_vm13, %v7226_v10, 0.0  ;;  %v7208_v45 = vrot.slane %v7207_v23, 4  ;;  %v7201_v59 = vrot.slane %v7200_v26, 4  ;;  %v7227_v31 = vmul.f32 %v11688_v3, %v11688_v3 }
 0xa42   : > { %v7195_v38 = vadd.f32 %v7194_v56, %v7193_v42  ;;  %v7231_v15 = vrot.slane %v7230_v35, 4  ;;  %v7244_v2 = vsel %vm4584_vm13, %v7228_v48, 0.0  ;;  %v7214_v25 = vsel %vm4584_vm13, %v11694_v30, 0.0 }
 0xa43   : > { %v7209_v14 = vadd.f32 %v7208_v45, %v7207_v23  ;;  %v7245_v6 = vrot.slane %v7244_v2, 4  ;;  %v7202_v27 = vadd.f32 %v7201_v59, %v7200_v26  ;;  %v7237_v28 = vsel %vm4584_vm13, %v7227_v31, 0.0 }
 0xa44   : > { %v7196_v24 = vrot.slane %v7195_v38, 2  ;;  %v7232_v57 = vadd.f32 %v7231_v15, %v7230_v35  ;;  %v7238_v36 = vrot.slane %v7237_v28, 4  ;;  %v7215_v17 = vrot.slane %v7214_v25, 4 }
 0xa45   : > { %v7210_v20 = vrot.slane %v7209_v14, 2  ;;  %v7246_v55 = vadd.f32 %v7245_v6, %v7244_v2  ;;  %v7203_v60 = vrot.slane %v7202_v27, 2  ;;  %v7229_v40 = vmul.f32 %v11694_v30, %v11694_v30 }
 0xa46   : > { %v7197_v11 = vadd.f32 %v7196_v24, %v7195_v38  ;;  %v7233_v39 = vrot.slane %v7232_v57, 2  ;;  %v7239_v18 = vadd.f32 %v7238_v36, %v7237_v28  ;;  %v7216_v54 = vadd.f32 %v7215_v17, %v7214_v25 }
 0xa47   : > { %v7211_v37 = vadd.f32 %v7210_v20, %v7209_v14  ;;  %v7247_v5 = vrot.slane %v7246_v55, 2  ;;  %v7204_v63 = vadd.f32 %v7203_v60, %v7202_v27  ;;  %v7251_v34 = vsel %vm4584_vm13, %v7229_v40, 0.0  ;;  %v7191_v60 = vld [vmem:[%s11929_s15] sm:$0xf] }
 0xa48   : > { %v7198_v4 = vrot.slane %v7197_v11, 1  ;;  %v7234_v9 = vadd.f32 %v7233_v39, %v7232_v57  ;;  %v7240_v58 = vrot.slane %v7239_v18, 2  ;;  %v7217_v49 = vrot.slane %v7216_v54, 2 }
 0xa49   : > { %v7212_v46 = vrot.slane %v7211_v37, 1  ;;  %v7248_v33 = vadd.f32 %v7247_v5, %v7246_v55  ;;  %v7205_v52 = vrot.slane %v7204_v63, 1  ;;  %v7252_v61 = vrot.slane %v7251_v34, 4 }
 0xa4a   : > { %v7199_v29 = vadd.f32 %v7198_v4, %v7197_v11  ;;  %v7235_v32 = vrot.slane %v7234_v9, 1  ;;  %v7241_v0 = vadd.f32 %v7240_v58, %v7239_v18  ;;  %v7218_v21 = vadd.f32 %v7217_v49, %v7216_v54 }
 0xa4b   : > { %v7213_v1 = vadd.f32 %v7212_v46, %v7211_v37  ;;  %v7249_v16 = vrot.slane %v7248_v33, 1  ;;  %v7206_v44 = vadd.f32 %v7205_v52, %v7204_v63  ;;  %v7253_v7 = vadd.f32 %v7252_v61, %v7251_v34 }
 0xa4c   : > { %v7222_v53 = vmul.f32 0.5, %v7199_v29  ;;  %v7236_v22 = vadd.f32 %v7235_v32, %v7234_v9  ;;  %v7242_v42 = vrot.slane %v7241_v0, 1  ;;  %v7219_v10 = vrot.slane %v7218_v21, 1 }
 0xa4d   : > { %v7224_v43 = vmul.f32 0.5, %v7213_v1  ;;  %v7250_v13 = vadd.f32 %v7249_v16, %v7248_v33  ;;  %v7223_v56 = vmul.f32 0.5, %v7206_v44  ;;  %v7254_v23 = vrot.slane %v7253_v7, 2 }
 0xa4e   : > { %v7258_v48 = vmul.f32 0.5, %v7236_v22  ;;  %v7262_v26 = vmul.f32 %v7222_v53, %v7222_v53  ;;  %v7243_v50 = vadd.f32 %v7242_v42, %v7241_v0  ;;  %v7220_v35 = vadd.f32 %v7219_v10, %v7218_v21 }
 0xa4f   : > { %v7260_v45 = vmul.f32 0.5, %v7250_v13  ;;  %v7264_v59 = vmul.f32 %v7224_v43, %v7224_v43  ;;  %v7263_v31 = vmul.f32 %v7223_v56, %v7223_v56  ;;  %v7255_v38 = vadd.f32 %v7254_v23, %v7253_v7 }
 0xa50   : > { %v7266_v15 = vsub.f32 %v7258_v48, %v7262_v26  ;;  %v7259_v2 = vmul.f32 0.5, %v7243_v50  ;;  %v7225_v25 = vmul.f32 0.5, %v7220_v35  ;;  %v7282_v11 = vrot.slane %v7191_v60, %v12081_v19 }
 0xa51   : > { %v7268_v14 = vsub.f32 %v7260_v45, %v7264_v59  ;;  %v7256_v6 = vrot.slane %v7255_v38, 1  ;;  %v7290_v39 = vrot.slane %v7191_v60, %v12079_v12  ;;  %v7286_v18 = vrot.slane %v7191_v60, %v12083_v41 }
 0xa52   : > { %v7270_v27 = vadd.f32 1e-05, %v7266_v15  ;;  %v7267_v28 = vsub.f32 %v7259_v2, %v7263_v31  ;;  %v7265_v36 = vmul.f32 %v7225_v25, %v7225_v25  ;;  %v7294_v49 = vrot.slane %v7191_v60, %v12080_v51  ;;  %v9831_v60 = vld [vmem:[#allocation18 + $0x174] ss:$8 sps:$4 sm:$0xff]  }
 0xa53   : > { %v7272_v24 = vadd.f32 1e-05, %v7268_v14  ;;  %v7257_v57 = vadd.f32 %v7256_v6, %v7255_v38  ;;  %v9814_v6 = vld [vmem:[#allocation18 + $0x120] ss:$8 sps:$4 sm:$0xff]  }
 0xa54   : > { %9872 = vrsqrt.f32 %v7270_v27  ;;  %v7271_v17 = vadd.f32 1e-05, %v7267_v28  ;;  %v9819_v27 = vld [vmem:[#allocation18 + $0x134] ss:$8 sps:$4 sm:$0xff]   ;;  %v9817_v28 = vld [vmem:[#allocation18 + $0x130] ss:$8 sps:$4 sm:$0xff]  }
 0xa55   : > { %9874 = vrsqrt.f32 %v7272_v24  ;;  %v7261_v20 = vmul.f32 0.5, %v7257_v57  ;;  %v9822_v24 = vld [vmem:[#allocation18 + $0x144] ss:$8 sps:$4 sm:$0xff]   ;;  %v9820_v57 = vld [vmem:[#allocation18 + $0x140] ss:$8 sps:$4 sm:$0xff]  }
 0xa56   : > { %9876 = vrsqrt.f32 %v7271_v17  ;;  %v9823_v17 = vld [vmem:[#allocation18 + $0x150] ss:$8 sps:$4 sm:$0xff]  }
 0xa57   : > { %v7269_v55 = vsub.f32 %v7261_v20, %v7265_v36  ;;  %v9825_v36 = vld [vmem:[#allocation18 + $0x154] ss:$8 sps:$4 sm:$0xff]   ;;  %v9828_v20 = vld [vmem:[#allocation18 + $0x164] ss:$8 sps:$4 sm:$0xff]  }
 0xa59   : > { %v7273_v40 = vadd.f32 1e-05, %v7269_v55  ;;  %v9826_v55 = vld [vmem:[#allocation18 + $0x160] ss:$8 sps:$4 sm:$0xff]  }
 0xa5b   : > { %9878 = vrsqrt.f32 %v7273_v40  ;;  %v9829_v40 = vld [vmem:[#allocation18 + $0x170] ss:$8 sps:$4 sm:$0xff]  }
 0xa5e   : > { %v9873_v54 = vpop.eup %9872 }
 0xa5f   : > { %v9875_v37 = vpop.eup %9874  ;;  %v7299_v5 = vmul.f32 %v9873_v54, %v7282_v11  ;;  %v9834_v11 = vld [vmem:[#allocation18 + $0x184] ss:$8 sps:$4 sm:$0xff]   ;;  %v9835_v54 = vld [vmem:[#allocation18 + $0x190] ss:$8 sps:$4 sm:$0xff]  }
 0xa60   : > { %v9877_v63 = vpop.eup %9876  ;;  %v7301_v34 = vmul.f32 %v9875_v37, %v7290_v39  ;;  %v9832_v39 = vld [vmem:[#allocation18 + $0x180] ss:$8 sps:$4 sm:$0xff]   ;;  %v9840_v37 = vld [vmem:[#allocation18 + $0x1a4] ss:$8 sps:$4 sm:$0xff]  }
 0xa61   : > { %v7303_v4 = vmul.f32 %v7299_v5, %v7222_v53  ;;  %v7300_v9 = vmul.f32 %v9877_v63, %v7286_v18  ;;  %v7340_v7 = vrot.slane %v7299_v5, %v12081_v19  ;;  %v9837_v18 = vld [vmem:[#allocation18 + $0x194] ss:$8 sps:$4 sm:$0xff]   ;;  %v9838_v5 = vld [vmem:[#allocation18 + $0x1a0] ss:$8 sps:$4 sm:$0xff]  }
 0xa62   : > { %v7348_v58 = vrot.slane %v7301_v34, %v12081_v19  ;;  %v7305_v29 = vmul.f32 %v7301_v34, %v7224_v43  ;;  %v9843_v63 = vld [vmem:[#allocation18 + $0x1b4] ss:$8 sps:$4 sm:$0xff]   ;;  %v9841_v34 = vld [vmem:[#allocation18 + $0x1b0] ss:$8 sps:$4 sm:$0xff]  }
 0xa63   : > { %v7304_v46 = vmul.f32 %v7300_v9, %v7223_v56  ;;  %v7344_v53 = vrot.slane %v7300_v9, %v12081_v19  ;;  %v7353_v43 = vmul.f32 %v11684_v47, %v7340_v7  ;;  %v9844_v9 = vld [vmem:[#allocation18 + $0x1c0] ss:$8 sps:$4 sm:$0xff]  }
 0xa64   : > { %v7355_v33 = vmul.f32 %v11686_v8, %v7348_v58  ;;  %v7192_v8 = vld [vmem:[%s11930_s16] sm:$0xf]  ;;  %v9849_v58 = vld [vmem:[#allocation18 + $0x1d4] ss:$8 sps:$4 sm:$0xff]  }
 0xa65   : > { %v9879_v52 = vpop.eup %9878  ;;  %v7311_v61 = vcombine.low %v7303_v4, %v7304_v46  ;;  %v7354_v13 = vmul.f32 %v11688_v3, %v7344_v53  ;;  %v9808_v3 = vld [vmem:[#allocation18 + $0x100] ss:$8 sps:$4 sm:$0xff]   ;;  %v9846_v4 = vld [vmem:[#allocation18 + $0x1c4] ss:$8 sps:$4 sm:$0xff]   ;;  %v7989_v53 = vld [vmem:[%s12131_s19 + $0x90] sm:$0xff] }
 0xa66   : > { %v7302_v32 = vmul.f32 %v9879_v52, %v7294_v49  ;;  %v9847_v49 = vld [vmem:[#allocation18 + $0x1d0] ss:$8 sps:$4 sm:$0xff]   ;;  %v9852_v46 = vld [vmem:[#allocation18 + $0x1e4] ss:$8 sps:$4 sm:$0xff]   ;;  %v9855_v52 = vld [vmem:[#allocation18 + $0x1f4] ss:$8 sps:$4 sm:$0xff]  }
 0xa67   : > { %v7319_v21 = vrot.slane %v7311_v61, %v12121_v62  ;;  %v9853_v61 = vld [vmem:[#allocation18 + $0x1f0] ss:$8 sps:$4 sm:$0xff]  }
 0xa68   : > { %v7306_v0 = vmul.f32 %v7302_v32, %v7225_v25  ;;  %v7352_v22 = vrot.slane %v7302_v32, %v12081_v19 }
 0xa6a   : > { %v7312_v1 = vcombine.low %v7305_v29, %v7306_v0  ;;  %v7356_v56 = vmul.f32 %v11694_v30, %v7352_v22  ;;  %v9813_v30 = vld [vmem:[#allocation18 + $0x114] ss:$8 sps:$4 sm:$0xff]   ;;  %v7987_v0 = vld [vmem:[%s12131_s19 + $0x80] sm:$0xff] }
 0xa6b   : > { %v7990_v22 = vld [vmem:[%s12131_s19 + $0x98] sm:$0xff] }
 0xa6c   : > { %v7326_v16 = vrot.slane %v7312_v1, %v12121_v62 }
 0xa6e   : > { %v7327_v44 = vcombine.low %v7319_v21, %v7326_v16  ;;  %v7988_v21 = vld [vmem:[%s12131_s19 + $0x88] sm:$0xff]  ;;  %v7971_v16 = vld [vmem:[%s12131_s19] sm:$0xff] }
 0xa6f   : > { %v9068_v1 = vpack.c.bf16 %v7988_v21, %v7987_v0 }
 0xa70   : > { %v7334_v42 = vrot.slane %v7327_v44, %v12121_v62  ;;  %v7972_v44 = vld [vmem:[%s12131_s19 + $0x8] sm:$0xff] }
 0xa71   : > { %v9070_v7 = vpack.c.bf16 %v7972_v44, %v7971_v16  ;;  %9069 = vmatprep.subr.bf16.mxu0 %v9068_v1 }
 0xa72   : > { %v7336_v10 = vsub.f32 %v7192_v8, %v7334_v42  ;;  %v9072_v8 = vpack.c.bf16 %v7990_v22, %v7989_v53  ;;  %v7973_v42 = vld [vmem:[%s12131_s19 + $0x10] sm:$0xff] }
 0xa73   : > { %9071 = vmatpush3.bf16.msra.mxu0 %v9070_v7 }
 0xa74   : > { %v7365_v23 = vrot.slane %v7336_v10, %v12083_v41  ;;  %v7361_v48 = vrot.slane %v7336_v10, %v12081_v19  ;;  %v7373_v26 = vrot.slane %v7336_v10, %v12080_v51  ;;  %v7369_v50 = vrot.slane %v7336_v10, %v12079_v12  ;;  %v9811_v51 = vld [vmem:[#allocation18 + $0x110] ss:$8 sps:$4 sm:$0xff]   ;;  %v9816_v12 = vld [vmem:[#allocation18 + $0x124] ss:$8 sps:$4 sm:$0xff]   ;;  %9073 = vmatprep.subr.bf16.mxu0 %v9072_v8 }
 0xa75   : > { %v7974_v10 = vld [vmem:[%s12131_s19 + $0x18] sm:$0xff] }
 0xa76   : > { %v7379_v35 = vadd.f32 %v7365_v23, %v7354_v13  ;;  %v7378_v45 = vadd.f32 %v7361_v48, %v7353_v43  ;;  %v7381_v59 = vadd.f32 %v7373_v26, %v7356_v56  ;;  %v11737_v31 = vadd.f32 %v7369_v50, %v7355_v33  ;;  %v9850_v33 = vld [vmem:[#allocation18 + $0x1e0] ss:$8 sps:$4 sm:$0xff]   ;;  %v7992_v56 = vld [vmem:[%s12131_s19 + $0xa8] sm:$0xff]  ;;  %v7993_v50 = vld [vmem:[%s12131_s19 + $0xb0] sm:$0xff] }
 0xa77   : > { %v7991_v43 = vld [vmem:[%s12131_s19 + $0xa0] sm:$0xff]  ;;  %v9074_v13 = vpack.c.bf16 %v7974_v10, %v7973_v42  ;;  %v7976_v48 = vld [vmem:[%s12131_s19 + $0x28] sm:$0xff] }
 0xa78   : > { %v7383_v38 = vmax.f32 %v7379_v35, 0.0  ;;  %v7382_v15 = vmax.f32 %v7378_v45, 0.0  ;;  %v7385_v47 = vmax.f32 %v7381_v59, 0.0  ;;  %v7384_v29 = vmax.f32 %v11737_v31, 0.0  ;;  %v7975_v23 = vld [vmem:[%s12131_s19 + $0x20] sm:$0xff]  ;;  %v7994_v35 = vld [vmem:[%s12131_s19 + $0xb8] sm:$0xff] }
 0xa79   : > { %v9076_v26 = vpack.c.bf16 %v7992_v56, %v7991_v43  ;;  %9075 = vmatpush3.bf16.msra.mxu0 %v9074_v13  ;;  %v9078_v45 = vpack.c.bf16 %v7976_v48, %v7975_v23  ;;  %v9080_v59 = vpack.c.bf16 %v7994_v35, %v7993_v50  ;;  %v7977_v31 = vld [vmem:[%s12131_s19 + $0x30] sm:$0xff] }
 0xa7a   : > { %v7387_v2 = vpack.c.bf16 %v7383_v38, %v7383_v38  ;;  %v7386_v25 = vpack.c.bf16 %v7382_v15, %v7382_v15  ;;  %v7389_v14 = vpack.c.bf16 %v7385_v47, %v7385_v47  ;;  %v7388_v32 = vpack.c.bf16 %v7384_v29, %v7384_v29  ;;  %v7978_v38 = vld [vmem:[%s12131_s19 + $0x38] sm:$0xff]  ;;  %v7995_v15 = vld [vmem:[%s12131_s19 + $0xc0] sm:$0xff]  ;;  %v7996_v47 = vld [vmem:[%s12131_s19 + $0xc8] sm:$0xff] }
 0xa7b   : > { %9077 = vmatprep.subr.bf16.mxu0 %v9076_v26 }
 0xa7c   : > { %7818 = vmatprep.mubr.bf16.mxu1 %v7387_v2  ;;  %v9082_v2 = vpack.c.bf16 %v7978_v38, %v7977_v31 }
 0xa7d   : > { %7819 = vmatmul.mubr.bf16.vlgmr.msra.gmra.mrb[80].mxu1 %v7386_v25  ;;  %9079 = vmatpush3.bf16.msra.mxu0 %v9078_v45  ;;  %v7979_v25 = vld [vmem:[%s12131_s19 + $0x40] sm:$0xff] }
 0xa7e   : > { %7828 = vmatpush1.bf16.msra.mxu1 %v9808_v3  ;;  %7859 = vmatprep.mubr.bf16.mxu1 %v7389_v14  ;;  %v9084_v3 = vpack.c.bf16 %v7996_v47, %v7995_v15  ;;  %v7997_v14 = vld [vmem:[%s12131_s19 + $0xd0] sm:$0xff] }
 0xa7f   : > { %7829 = vmatprep.subr.bf16.mxu1 %v9813_v30  ;;  %9081 = vmatprep.subr.bf16.mxu0 %v9080_v59  ;;  %v7980_v30 = vld [vmem:[%s12131_s19 + $0x48] sm:$0xff] }
 0xa81   : > { %9083 = vmatpush3.bf16.msra.mxu0 %v9082_v2 }
 0xa82   : > { %7830 = vmatpush1.bf16.msra.mxu1 %v9811_v51  ;;  %v7998_v51 = vld [vmem:[%s12131_s19 + $0xd8] sm:$0xff]  ;;  %9085 = vmatprep.subr.bf16.mxu0 %v9084_v3 }
 0xa83   : > { %7831 = vmatprep.subr.bf16.mxu1 %v9816_v12  ;;  %v9086_v12 = vpack.c.bf16 %v7980_v30, %v7979_v25 }
 0xa85   : > { %9087 = vmatpush3.bf16.msra.mxu0 %v9086_v12 }
 0xa86   : > { %7832 = vmatpush1.bf16.msra.mxu1 %v9814_v6  ;;  %v9088_v6 = vpack.c.bf16 %v7998_v51, %v7997_v14 }
 0xa87   : > { %7833 = vmatprep.subr.bf16.mxu1 %v9819_v27  ;;  %v7981_v27 = vld [vmem:[%s12131_s19 + $0x50] sm:$0xff] }
 0xa88   : > { %9089 = vmatprep.subr.bf16.mxu0 %v9088_v6 }
 0xa8a   : > { %7834 = vmatpush1.bf16.msra.mxu1 %v9817_v28  ;;  %v7982_v28 = vld [vmem:[%s12131_s19 + $0x58] sm:$0xff] }
 0xa8b   : > { %7835 = vmatprep.subr.bf16.mxu1 %v9822_v24  ;;  %v7999_v24 = vld [vmem:[%s12131_s19 + $0xe0] sm:$0xff] }
 0xa8e   : > { %7836 = vmatpush1.bf16.msra.mxu1 %v9820_v57  ;;  %v8000_v57 = vld [vmem:[%s12131_s19 + $0xe8] sm:$0xff] }
 0xa8f   : > { %7837 = vmatprep.subr.bf16.mxu1 %v9825_v36  ;;  %v9090_v36 = vpack.c.bf16 %v7982_v28, %v7981_v27 }
 0xa91   : > { %9091 = vmatpush3.bf16.msra.mxu0 %v9090_v36 }
 0xa92   : > { %7838 = vmatpush1.bf16.msra.mxu1 %v9823_v17  ;;  %v9092_v17 = vpack.c.bf16 %v8000_v57, %v7999_v24  ;;  %v7868_v57 = vld [vmem:[%s12133_s23] sm:$0x3] }
 0xa93   : > { %7839 = vmatprep.subr.bf16.mxu1 %v9828_v20  ;;  %v7983_v20 = vld [vmem:[%s12131_s19 + $0x60] sm:$0xff]  ;;  %v7916_v36 = vrot.slane %v7868_v57, %v12081_v19 }
 0xa94   : > { %9093 = vmatprep.subr.bf16.mxu0 %v9092_v17  ;;  %v7920_v17 = vrot.slane %v7868_v57, %v12083_v41 }
 0xa96   : > { %7840 = vmatpush1.bf16.msra.mxu1 %v9826_v55  ;;  %v7984_v55 = vld [vmem:[%s12131_s19 + $0x68] sm:$0xff] }
 0xa97   : > { %7841 = vmatprep.subr.bf16.mxu1 %v9831_v60  ;;  %v8001_v60 = vld [vmem:[%s12131_s19 + $0xf0] sm:$0xff] }
 0xa9a   : > { %7842 = vmatpush1.bf16.msra.mxu1 %v9829_v40  ;;  %v8002_v40 = vld [vmem:[%s12131_s19 + $0xf8] sm:$0xff] }
 0xa9b   : > { %7843 = vmatprep.subr.bf16.mxu1 %v9834_v11  ;;  %v9094_v11 = vpack.c.bf16 %v7984_v55, %v7983_v20 }
 0xa9d   : > { %9095 = vmatpush3.bf16.msra.mxu0 %v9094_v11 }
 0xa9e   : > { %7844 = vmatpush1.bf16.msra.mxu1 %v9832_v39  ;;  %v9096_v39 = vpack.c.bf16 %v8002_v40, %v8001_v60 }
 0xa9f   : > { %7845 = vmatprep.subr.bf16.mxu1 %v9837_v18  ;;  %v7985_v18 = vld [vmem:[%s12131_s19 + $0x70] sm:$0xff] }
 0xaa0   : > { %9097 = vmatprep.subr.bf16.mxu0 %v9096_v39 }
 0xaa2   : > { %7846 = vmatpush1.bf16.msra.mxu1 %v9835_v54  ;;  %v7986_v54 = vld [vmem:[%s12131_s19 + $0x78] sm:$0xff] }
 0xaa3   : > { %7847 = vmatprep.subr.bf16.mxu1 %v9840_v37  ;;  %v9098_v37 = vpack.c.bf16 %v7986_v54, %v7985_v18 }
 0xaa5   : > { %9099 = vmatpush3.bf16.msra.mxu0 %v9098_v37  ;;  %v7869_v37 = vld [vmem:[%s12134_s18] sm:$0x3] }
 0xaa6   : > { %7848 = vmatpush1.bf16.msra.mxu1 %v9838_v5  ;;  %v7454_v5 = vld [vmem:[%s12132_s4] sm:$0x3] }
 0xaa7   : > { %7849 = vmatprep.subr.bf16.mxu1 %v9843_v63  ;;  %v7459_v63 = vrot.slane %v7454_v5, %v12081_v19 }
 0xaaa   : > { %7850 = vmatpush1.bf16.msra.mxu1 %v9841_v34  ;;  %v7463_v34 = vrot.slane %v7454_v5, %v12083_v41 }
 0xaab   : > { %7851 = vmatprep.subr.bf16.mxu1 %v9846_v4 }
 0xaae   : > { %7852 = vmatpush1.bf16.msra.mxu1 %v9844_v9 }
 0xaaf   : > { %7853 = vmatprep.subr.bf16.mxu1 %v9849_v58 }
 0xab2   : > { %7854 = vmatpush1.bf16.msra.mxu1 %v9847_v49 }
 0xab3   : > { %7855 = vmatprep.subr.bf16.mxu1 %v9852_v46 }
 0xab6   : > { %7856 = vmatpush1.bf16.msra.mxu1 %v9850_v33 }
 0xab7   : > { %7857 = vmatprep.subr.bf16.mxu1 %v9855_v52 }
 0xaba   : > { %7858 = vmatpush1.bf16.msra.mxu1 %v9853_v61 }
 0xabd   : > { %7860 = vmatmul.mubr.bf16.vlgmr.msra.gmra.mrb[80].mxu1 %v7388_v32 }
 0xb90   : > { %v7861_v4 = vpop.f32.mrb[80].mxu1 }
 0xb91   : > { %v11841_v9 = vadd.f32 %v7861_v4, %v7459_v63  ;;  %v7863_v58 = vpop.f32.mrb[81].mxu1 }
 0xb92   : > { %v9105_v49 = vadd.f32 %v7863_v58, %v7463_v34  ;;  %v7865_v46 = vpop.f32.mrb[82].mxu1 }
 0xb93   : > { %v7870_v33 = vsel %vm4584_vm13, %v11841_v9, 0.0  ;;  %v7886_v52 = vmul.f32 %v11841_v9, %v11841_v9  ;;  %v7866_v61 = vpop.f32.mrb[83].mxu1 }
 0xb94   : > { %v7871_v29 = vrot.slane %v7870_v33, 4  ;;  %v7877_v32 = vsel %vm4584_vm13, %v9105_v49, 0.0  ;;  %v7887_v0 = vmul.f32 %v9105_v49, %v9105_v49 }
 0xb95   : > { %v7888_v21 = vsel %vm4584_vm13, %v7886_v52, 0.0  ;;  %v7878_v1 = vrot.slane %v7877_v32, 4 }
 0xb96   : > { %v7872_v16 = vadd.f32 %v7871_v29, %v7870_v33  ;;  %v7889_v44 = vrot.slane %v7888_v21, 4  ;;  %v7895_v7 = vsel %vm4584_vm13, %v7887_v0, 0.0 }
 0xb97   : > { %v7879_v53 = vadd.f32 %v7878_v1, %v7877_v32  ;;  %v7896_v22 = vrot.slane %v7895_v7, 4  ;;  %v8684_v1 = vld [vmem:[%s12135_s0] ss:$0 sm:$0xff] }
 0xb98   : > { %v7873_v8 = vrot.slane %v7872_v16, 2  ;;  %v7890_v42 = vadd.f32 %v7889_v44, %v7888_v21 }
 0xb99   : > { %v7880_v10 = vrot.slane %v7879_v53, 2  ;;  %v7897_v43 = vadd.f32 %v7896_v22, %v7895_v7 }
 0xb9a   : > { %v7874_v13 = vadd.f32 %v7873_v8, %v7872_v16  ;;  %v7891_v56 = vrot.slane %v7890_v42, 2 }
 0xb9b   : > { %v7881_v23 = vadd.f32 %v7880_v10, %v7879_v53  ;;  %v7898_v48 = vrot.slane %v7897_v43, 2 }
 0xb9c   : > { %v7875_v26 = vrot.slane %v7874_v13, 1  ;;  %v7892_v50 = vadd.f32 %v7891_v56, %v7890_v42 }
 0xb9d   : > { %v7882_v35 = vrot.slane %v7881_v23, 1  ;;  %v7899_v45 = vadd.f32 %v7898_v48, %v7897_v43 }
 0xb9e   : > { %v7876_v59 = vadd.f32 %v7875_v26, %v7874_v13  ;;  %v7893_v31 = vrot.slane %v7892_v50, 1 }
 0xb9f   : > { %v7883_v38 = vadd.f32 %v7882_v35, %v7881_v23  ;;  %v7900_v15 = vrot.slane %v7899_v45, 1 }
 0xba0   : > { %v7884_v47 = vmul.f32 0.5, %v7876_v59  ;;  %v7894_v2 = vadd.f32 %v7893_v31, %v7892_v50 }
 0xba1   : > { %v7885_v3 = vmul.f32 0.5, %v7883_v38  ;;  %v7901_v25 = vadd.f32 %v7900_v15, %v7899_v45 }
 0xba2   : > { %v7902_v30 = vmul.f32 0.5, %v7894_v2  ;;  %v7904_v14 = vmul.f32 %v7884_v47, %v7884_v47 }
 0xba3   : > { %v7903_v51 = vmul.f32 0.5, %v7901_v25  ;;  %v7905_v12 = vmul.f32 %v7885_v3, %v7885_v3 }
 0xba4   : > { %v7906_v6 = vsub.f32 %v7902_v30, %v7904_v14 }
 0xba5   : > { %v7907_v27 = vsub.f32 %v7903_v51, %v7905_v12 }
 0xba6   : > { %v7908_v28 = vadd.f32 1e-05, %v7906_v6 }
 0xba7   : > { %v7909_v24 = vadd.f32 1e-05, %v7907_v27 }
 0xba8   : > { %9880 = vrsqrt.f32 %v7908_v28 }
 0xba9   : > { %9882 = vrsqrt.f32 %v7909_v24 }
 0xbb2   : > { %v9881_v20 = vpop.eup %9880 }
 0xbb3   : > { %v9883_v55 = vpop.eup %9882  ;;  %v7923_v60 = vmul.f32 %v9881_v20, %v7916_v36 }
 0xbb4   : > { %v7924_v40 = vmul.f32 %v9883_v55, %v7920_v17 }
 0xbb5   : > { %v7925_v11 = vmul.f32 %v7923_v60, %v7884_v47  ;;  %v7949_v5 = vrot.slane %v7923_v60, %v12081_v19 }
 0xbb6   : > { %v7926_v39 = vmul.f32 %v7924_v40, %v7885_v3  ;;  %v7953_v63 = vrot.slane %v7924_v40, %v12081_v19 }
 0xbb7   : > { %v7954_v58 = vmul.f32 %v11841_v9, %v7949_v5  ;;  %v8685_v9 = vld [vmem:[%s12136_s26] ss:$0 sm:$0xff] }
 0xbb8   : > { %v7929_v18 = vcombine.low %v7925_v11, %v7926_v39  ;;  %v7955_v46 = vmul.f32 %v9105_v49, %v7953_v63 }
 0xbba   : > { %v7936_v54 = vrot.slane %v7929_v18, %v12121_v62 }
 0xbbc   : > { %v7943_v34 = vrot.slane %v7936_v54, %v12121_v62 }
 0xbbe   : > { %v7945_v4 = vsub.f32 %v7869_v37, %v7943_v34 }
 0xbc0   : > { %v7964_v33 = vrot.slane %v7945_v4, %v12083_v41  ;;  %v7960_v52 = vrot.slane %v7945_v4, %v12081_v19 }
 0xbc2   : > { %v7968_v61 = vadd.f32 %v7964_v33, %v7955_v46  ;;  %v7967_v29 = vadd.f32 %v7960_v52, %v7954_v58 }
 0xbc4   : > { %v7970_v32 = vmax.f32 %v7968_v61, 0.0  ;;  %v7969_v0 = vmax.f32 %v7967_v29, 0.0 }
 0xbc6   : > { %8074 = vmatprep.mubr.f32.mxu0 %v7970_v32 }
 0xbc7   : > { %8075 = vmatmul.mubr.f32.vlgmr.msra.gmra.mrb[70].mxu0 %v7969_v0 }
 0xc9a   : > { %v8750_v21 = vpop.f32.mrb[70].mxu0 }
 0xc9b   : > { %v8751_v62 = vpop.f32.mrb[71].mxu0 }
 0xc9c   : > { %v8752_v16 = vadd.f32 %v8751_v62, %v8750_v21 }
 0xc9e   : > { %v8077_v41 = vadd.f32 %v8752_v16, %v8684_v1 }
 0xca0   : > { %v8087_v19 = vadd.f32 %v8685_v9, %v8077_v41 }
 0xca2   : > { %8089 = vst.msk [vmem:[#allocation19] sm:$0x3] %vm8088_vm14, %v8087_v19 }
 0xca3 PF: > { %s12137_s22 = sld [smem:[#allocation23_spill]]  ;;  %s10132_s6 = smov [#allocation19]  }
 0xca4   : > { %s8097_s7 = sshll.u32 %s10132_s6, 4  ;;  %s8098_s7 = int_to_ptr.vmem [resolvable:$true] %s8097_s7 }
 0xca5   : > { %s10033_s4 = scalar_lea.vmem %s8098_s7, 32  ;;  %p10040_p10 = scmp.lt.s32.totalorder %s8098_s7, %s8098_s7 }
 0xca6   : > { %p10034_p5 = scmp.ne.s32.totalorder %s8098_s7, %s10033_s4  ;;  %p10041_p11 = scmp.lt.s32.totalorder %s10033_s4, %s10033_s4 }
 0xca8   : > { %p10042_p12 = por %p10041_p11, %p10040_p10 }
 0xca9   : > { %s12138_s5 = sadd.s32 4294967295, %s12137_s22  }
 0xcaa   : > { %p11873_p8 = scmp.eq.s32.totalorder %s12138_s5, 5 }
 0xcac   : > { %p10035_p7 = pnand %p10034_p5, %p11873_p8 }
 0xcae   : > { %p10036_p9 = pneg %p10035_p7 }
 0xcb0   : > { %p10043_p13 = pnand %p10042_p12, %p10036_p9 }
 0xcb2   : > { %10046 = shalt.err (!%p10043_p13)
}
 0xcb3   : > { %s12140_s23 = sld [smem:[#allocation71_spill]] }
 0xcb9   : > { %s10047_s21 = scalar_lea.hbm %s12140_s23, 32 }
 0xcba   : > { %p10048_p0 = scmp.ne.s32.totalorder %s12140_s23, %s10047_s21  ;;  %p10053_p6 = scmp.lt.u32.totalorder %s10047_s21, %s12140_s23 }
 0xcbc   : > { %p10049_p1 = pnand %p10048_p0, %p11873_p8 }
 0xcbe   : > { %p10050_p4 = pneg %p10049_p1 }
 0xcc0   : > { %p10055_p3 = pnand %p10053_p6, %p10050_p4 }
 0xcc2   : > { %10058 = shalt.err (!%p10055_p3)
}
 0xcc3   : > { %9275 = dma.vmem_to_hbm [thread:$0]  (%p11873_p8), %s8098_s7, 32, %s12140_s23, [#allocation15]  }
 0xcc4   : > { %10088 = dma.done.wait (%p11873_p8), [#allocation15], 32  }
 0xcc5   : > { %10090 = vsyncadd (%p11873_p8), [#allocation15], 4294967264 }
 0xcc6 PF: > { %s12141_s3 = sld [smem:[#allocation23_spill]]  ;;  %s12142_s5 = smov %s10101_s27 }
 0xcc7   : > { %s12143_s26 = smov %s10105_s28  ;;  %s12144_s27 = smov %s12147_s1 }
 0xcc8   : > { %s12145_s28 = smov %s12151_s2 }
 0xccc   : > { %s37_s6 = sadd.s32 1, %s12141_s3  }
 0xccd   : > { %p34_p2 = scmp.ge.s32.totalorder %s37_s6, 8  }
 0xccf   :  { %36 = sbr.rel (!%p34_p2) target bundleno = 23 (0x17), region = 188 }
 0xcd6   :  { %8110 = vsyncpa [#allocation14], 1 }
 0xcd7   :  { %8112 = vsyncpa [#allocation14 + $0x1], 1 }
 0xcd8   :  { %8113 = vsyncpa [#allocation17], 1 }
 0xcd9   :  { %8114 = vsyncpa [#allocation15], 1 }
 0xcda   :  { %8116 = vsyncpa [#allocation15 + $0x1], 1 }

</bundles_post_ra>
